<compile_context>
chip_gen: v6e
topology: v6e:2x2x1
jax: 0.10.0
libtpu: 0.0.40
codegen_flags: <defaults>
</compile_context>

<pallas_src>
import numpy as np
import jax
import jax.numpy as jnp
from jax.experimental import pallas as pl
from jax.experimental.pallas import tpu as pltpu

BN_EPS = 0.8  # nn.BatchNorm2d(out_filters, 0.8): 2nd positional arg is eps.


# ----------------------------- Pallas kernel --------------------------------

def _disc_kernel(x0_ref,
                 bw0_ref, b0_ref,
                 bw1_ref, b1_ref, s1_ref, t1_ref,
                 bw2_ref, b2_ref, s2_ref, t2_ref,
                 bw3_ref, b3_ref, s3_ref, t3_ref,
                 advw_ref, advb_ref, auxw_ref, auxb_ref,
                 val_ref, lab_ref,
                 buf1, buf2, buf3):
    f32 = jnp.float32

    # Zero only the H-padding rows of the VMEM-resident activation buffers
    # (interior rows are fully written before they are read).
    for buf in (buf1, buf2, buf3):
        z = jnp.zeros(buf.shape[1:], buf.dtype)
        buf[0] = z
        buf[buf.shape[0] - 1] = z

    def conv_row(in_ref, bw_ref, ho):
        # 3x3 / stride-2 conv for one output row = 3 accumulated MXU matmuls
        # of (B, W_in*Cin) x (W_in*Cin, W_out*Cout).  Stride-2 / W-padding are
        # folded into bw_ref (the expanded tap weights).
        acc = jnp.dot(in_ref[2 * ho], bw_ref[0], preferred_element_type=f32)
        acc += jnp.dot(in_ref[2 * ho + 1], bw_ref[1], preferred_element_type=f32)
        acc += jnp.dot(in_ref[2 * ho + 2], bw_ref[2], preferred_element_type=f32)
        return acc

    def block(in_ref, out_ref, bw_ref, bias_ref, scale_ref, shift_ref):
        # Conv + bias + LeakyReLU(0.2) [+ folded eval BatchNorm].
        # Dropout2d(0.25) is identity in eval mode.
        n_rows = out_ref.shape[0] - 2
        for ho in range(n_rows):                      # static unrolled loop
            y = conv_row(in_ref, bw_ref, ho) + bias_ref[...]
            y = jnp.where(y > 0, y, 0.2 * y)          # LeakyReLU(0.2), f32 VPU
            if scale_ref is not None:
                y = y * scale_ref[...] + shift_ref[...]
            out_ref[ho + 1] = y.astype(out_ref.dtype)  # lane-dense 256-wide row

    # conv blocks 0..2 (bn=False for block 0) -> VMEM scratch buffers.
    block(x0_ref, buf1, bw0_ref, b0_ref, None, None)       # C    -> 16
    block(buf1, buf2, bw1_ref, b1_ref, s1_ref, t1_ref)     # 16   -> 32
    block(buf2, buf3, bw2_ref, b2_ref, s2_ref, t2_ref)     # 32   -> 64

    # conv block 3 (64 -> 128) fused with the classifier head: accumulate the
    # adv/aux Linear layers row-by-row so the flat feature never materializes.
    B = x0_ref.shape[1]
    row_w = bw3_ref.shape[2]                   # W_out3 * 128
    n_rows3 = advw_ref.shape[0] // row_w       # H_out3
    adv = jnp.zeros((B, advw_ref.shape[1]), f32)
    aux = jnp.zeros((B, auxw_ref.shape[1]), f32)
    for ho in range(n_rows3):
        y = conv_row(buf3, bw3_ref, ho) + b3_ref[...]
        y = jnp.where(y > 0, y, 0.2 * y)
        y = y * s3_ref[...] + t3_ref[...]      # (B, row_w) f32 features, row ho
        lo = ho * row_w
        adv += jnp.dot(y, advw_ref[lo:lo + row_w, :], preferred_element_type=f32)
        aux += jnp.dot(y, auxw_ref[lo:lo + row_w, :], preferred_element_type=f32)

    # adv_layer: Linear -> Sigmoid (exact path keeps the [0, 1] guarantee).
    adv = adv + advb_ref[...]
    val_ref[...] = 1.0 / (1.0 + jnp.exp(-adv))

    # aux_layer: Linear -> Softmax(dim=1).  Exact normalization (the output is
    # only (B, n_classes) elements, so division cost is negligible and the
    # rows sum to 1 to f32 precision).
    logits = aux + auxb_ref[...]
    m = jnp.max(logits, axis=-1, keepdims=True)
    e = jnp.exp(logits - m)
    s = jnp.sum(e, axis=-1, keepdims=True)
    lab_ref[...] = e / s


# ------------------------------ Wrapper --------------------------------------

def _full(shape):
    # Whole-array block, single grid step.
    return pl.BlockSpec(shape, lambda i: (0,) * len(shape))


def discriminator_forward(prep, img):
    B, C, H, W = img.shape
    n_classes = prep["aux_b"].shape[1]

    # NCHW -> H-major rows of NHWC pixels: x[h+1, b, w*C + c] = img[b, c, h, w],
    # one zero pad row top & bottom (conv H-padding; W-padding is folded into
    # the expanded tap weights).  Tiny one-off XLA layout op on the input only.
    x = img.transpose(2, 0, 3, 1).reshape(H, B, W * C)
    x = jnp.pad(x, ((1, 1), (0, 0), (0, 0))).astype(jnp.bfloat16)

    args = (x,
            prep["bw0"], prep["bias0"],
            prep["bw1"], prep["bias1"], prep["scale1"], prep["shift1"],
            prep["bw2"], prep["bias2"], prep["scale2"], prep["shift2"],
            prep["bw3"], prep["bias3"], prep["scale3"], prep["shift3"],
            prep["adv_w"], prep["adv_b"], prep["aux_w"], prep["aux_b"])

    scratch = [pltpu.VMEM((H // 2 + 2, B, (W // 2) * 16), jnp.bfloat16),
               pltpu.VMEM((H // 4 + 2, B, (W // 4) * 32), jnp.bfloat16),
               pltpu.VMEM((H // 8 + 2, B, (W // 8) * 64), jnp.bfloat16)]

    validity, label = pl.pallas_call(
        _disc_kernel,
        out_shape=(jax.ShapeDtypeStruct((B, 1), jnp.float32),
                   jax.ShapeDtypeStruct((B, n_classes), jnp.float32)),
        grid=(1,),
        in_specs=[_full(a.shape) for a in args],
        out_specs=(_full((B, 1)), _full((B, n_classes))),
        scratch_shapes=scratch,
        compiler_params=pltpu.CompilerParams(
            dimension_semantics=("arbitrary",)),
    )(*args)
    return validity, label


# --------------------------- Parameters --------------------------------------

def init_params(key, channels, n_classes, img_size):
    """Raw parameters in PyTorch layouts/conventions."""
    chans = [channels, 16, 32, 64, 128]
    keys = jax.random.split(key, 20)
    k = 0
    params = {}
    for l in range(4):
        cin, cout = chans[l], chans[l + 1]
        params[f"conv{l}_w"] = 0.1 * jax.random.normal(keys[k], (cout, cin, 3, 3), jnp.float32); k += 1
        params[f"conv{l}_b"] = 0.1 * jax.random.normal(keys[k], (cout,), jnp.float32); k += 1
        if l > 0:  # bn=True for blocks 1..3
            params[f"bn{l}_gamma"] = 1.0 + 0.1 * jax.random.normal(keys[k], (cout,), jnp.float32); k += 1
            params[f"bn{l}_beta"] = 0.1 * jax.random.normal(keys[k], (cout,), jnp.float32); k += 1
            params[f"bn{l}_mean"] = jnp.zeros((cout,), jnp.float32)   # eval running stats
            params[f"bn{l}_var"] = jnp.ones((cout,), jnp.float32)
    ds = img_size // 2 ** 4
    feat = 128 * ds * ds
    params["adv_w"] = 0.05 * jax.random.normal(keys[k], (1, feat), jnp.float32); k += 1
    params["adv_b"] = jnp.zeros((1,), jnp.float32)
    params["aux_w"] = 0.05 * jax.random.normal(keys[k], (n_classes, feat), jnp.float32); k += 1
    params["aux_b"] = jnp.zeros((n_classes,), jnp.float32)
    return params


def prepare_params(params, channels, img_size, n_classes):
    """One-time host-side prep: expanded tap weights, tiled bias / folded BN
    affine per output row, and head weights permuted to the kernel's NHWC
    feature order.  Done once, outside the jitted forward."""
    chans = [channels, 16, 32, 64, 128]
    sizes = [img_size // (2 ** l) for l in range(5)]
    prep = {}
    for l in range(4):
        cin, cout = chans[l], chans[l + 1]
        w_in, w_out = sizes[l], sizes[l + 1]
        wt = np.asarray(params[f"conv{l}_w"], np.float32)      # (cout, cin, 3, 3)
        bias = np.asarray(params[f"conv{l}_b"], np.float32)
        # Expanded tap weights: BigW[kh, w*cin+ci, wo*cout+co] = wt[co, ci, kh, kw]
        # where kw = w - 2*wo + 1 (stride-2 + W-pad folded in; OOB columns = 0).
        bigw = np.zeros((3, w_in * cin, w_out * cout), np.float32)
        for kh in range(3):
            for wo in range(w_out):
                for kw in range(3):
                    wi = 2 * wo + kw - 1
                    if 0 <= wi < w_in:
                        bigw[kh, wi * cin:(wi + 1) * cin,
                             wo * cout:(wo + 1) * cout] = wt[:, :, kh, kw].T
        prep[f"bw{l}"] = jnp.asarray(bigw, jnp.bfloat16)
        prep[f"bias{l}"] = jnp.asarray(np.tile(bias, w_out)[None, :], jnp.float32)
        if l > 0:  # fold eval-mode BatchNorm into a per-channel affine
            g = np.asarray(params[f"bn{l}_gamma"], np.float32)
            bt = np.asarray(params[f"bn{l}_beta"], np.float32)
            mu = np.asarray(params[f"bn{l}_mean"], np.float32)
            var = np.asarray(params[f"bn{l}_var"], np.float32)
            sc = g / np.sqrt(var + BN_EPS)
            sh = bt - mu * sc
            prep[f"scale{l}"] = jnp.asarray(np.tile(sc, w_out)[None, :], jnp.float32)
            prep[f"shift{l}"] = jnp.asarray(np.tile(sh, w_out)[None, :], jnp.float32)

    ds = img_size // 2 ** 4
    cfin = 128

    def head_w(w_torch):  # torch (out, C*H*W) NCHW-flatten -> (H*W*C, out) NHWC-flatten
        out_f = w_torch.shape[0]
        w = np.asarray(w_torch, np.float32).reshape(out_f, cfin, ds, ds)
        return jnp.asarray(w.transpose(2, 3, 1, 0).reshape(ds * ds * cfin, out_f),
                           jnp.float32)

    prep["adv_w"] = head_w(params["adv_w"])
    prep["adv_b"] = jnp.asarray(np.asarray(params["adv_b"], np.float32).reshape(1, 1))
    prep["aux_w"] = head_w(params["aux_w"])
    prep["aux_b"] = jnp.asarray(np.asarray(params["aux_b"], np.float32).reshape(1, n_classes))
    return prep


# ------------------------------ Main ------------------------------------------

if __name__ == "__main__":
    batch, channels, img_size, n_classes = 2, 1, 32, 10
    key = jax.random.PRNGKey(0)
    pkey, xkey = jax.random.split(key)

    params = init_params(pkey, channels, n_classes, img_size)
    prep = prepare_params(params, channels, img_size, n_classes)
    img = jax.random.normal(xkey, (batch, channels, img_size, img_size), jnp.float32)

    fwd = jax.jit(discriminator_forward)
    validity, label = fwd(prep, img)
    jax.block_until_ready((validity, label))

    assert validity.shape == (batch, 1) and label.shape == (batch, n_classes)
    assert bool(jnp.all((validity >= 0.0) & (validity <= 1.0)))
    assert bool(jnp.all(jnp.isfinite(label)))
    # exact softmax normalization -> rows sum to 1 at f32 precision
    assert bool(jnp.allclose(jnp.sum(label, axis=-1), 1.0, atol=1e-3))
    print("KERNEL_OK")
</pallas_src>

<mosaic_0001>
module attributes {stable_mosaic.version = 11 : i64} {
  func.func @_disc_kernel(%arg0: i32, %arg1: memref<34x2x32xbf16, #tpu.memory_space<vmem>>, %arg2: memref<3x32x256xbf16, #tpu.memory_space<vmem>>, %arg3: memref<1x256xf32, #tpu.memory_space<vmem>>, %arg4: memref<3x256x256xbf16, #tpu.memory_space<vmem>>, %arg5: memref<1x256xf32, #tpu.memory_space<vmem>>, %arg6: memref<1x256xf32, #tpu.memory_space<vmem>>, %arg7: memref<1x256xf32, #tpu.memory_space<vmem>>, %arg8: memref<3x256x256xbf16, #tpu.memory_space<vmem>>, %arg9: memref<1x256xf32, #tpu.memory_space<vmem>>, %arg10: memref<1x256xf32, #tpu.memory_space<vmem>>, %arg11: memref<1x256xf32, #tpu.memory_space<vmem>>, %arg12: memref<3x256x256xbf16, #tpu.memory_space<vmem>>, %arg13: memref<1x256xf32, #tpu.memory_space<vmem>>, %arg14: memref<1x256xf32, #tpu.memory_space<vmem>>, %arg15: memref<1x256xf32, #tpu.memory_space<vmem>>, %arg16: memref<512x1xf32, #tpu.memory_space<vmem>>, %arg17: memref<1x1xf32, #tpu.memory_space<vmem>>, %arg18: memref<512x10xf32, #tpu.memory_space<vmem>>, %arg19: memref<1x10xf32, #tpu.memory_space<vmem>>, %arg20: memref<2x1xf32, #tpu.memory_space<vmem>>, %arg21: memref<2x10xf32, #tpu.memory_space<vmem>>, %arg22: memref<18x2x256xbf16, #tpu.memory_space<vmem>>, %arg23: memref<10x2x256xbf16, #tpu.memory_space<vmem>>, %arg24: memref<6x2x256xbf16, #tpu.memory_space<vmem>>) attributes {dimension_semantics = [#tpu.dimension_semantics<arbitrary>], iteration_bounds = array<i64: 1>, scalar_prefetch = 0 : i64, scratch_operands = 3 : i64, tpu.core_type = #tpu.core_type<tc>, window_params = [{pipeline_mode = #tpu.pipeline_mode<synchronous>, transform_indices = @transform_0, window_bounds = array<i64: 34, 2, 32>}, {pipeline_mode = #tpu.pipeline_mode<synchronous>, transform_indices = @transform_1, window_bounds = array<i64: 3, 32, 256>}, {pipeline_mode = #tpu.pipeline_mode<synchronous>, transform_indices = @transform_2, window_bounds = array<i64: 1, 256>}, {pipeline_mode = #tpu.pipeline_mode<synchronous>, transform_indices = @transform_3, window_bounds = array<i64: 3, 256, 256>}, {pipeline_mode = #tpu.pipeline_mode<synchronous>, transform_indices = @transform_4, window_bounds = array<i64: 1, 256>}, {pipeline_mode = #tpu.pipeline_mode<synchronous>, transform_indices = @transform_5, window_bounds = array<i64: 1, 256>}, {pipeline_mode = #tpu.pipeline_mode<synchronous>, transform_indices = @transform_6, window_bounds = array<i64: 1, 256>}, {pipeline_mode = #tpu.pipeline_mode<synchronous>, transform_indices = @transform_7, window_bounds = array<i64: 3, 256, 256>}, {pipeline_mode = #tpu.pipeline_mode<synchronous>, transform_indices = @transform_8, window_bounds = array<i64: 1, 256>}, {pipeline_mode = #tpu.pipeline_mode<synchronous>, transform_indices = @transform_9, window_bounds = array<i64: 1, 256>}, {pipeline_mode = #tpu.pipeline_mode<synchronous>, transform_indices = @transform_10, window_bounds = array<i64: 1, 256>}, {pipeline_mode = #tpu.pipeline_mode<synchronous>, transform_indices = @transform_11, window_bounds = array<i64: 3, 256, 256>}, {pipeline_mode = #tpu.pipeline_mode<synchronous>, transform_indices = @transform_12, window_bounds = array<i64: 1, 256>}, {pipeline_mode = #tpu.pipeline_mode<synchronous>, transform_indices = @transform_13, window_bounds = array<i64: 1, 256>}, {pipeline_mode = #tpu.pipeline_mode<synchronous>, transform_indices = @transform_14, window_bounds = array<i64: 1, 256>}, {pipeline_mode = #tpu.pipeline_mode<synchronous>, transform_indices = @transform_15, window_bounds = array<i64: 512, 1>}, {pipeline_mode = #tpu.pipeline_mode<synchronous>, transform_indices = @transform_16, window_bounds = array<i64: 1, 1>}, {pipeline_mode = #tpu.pipeline_mode<synchronous>, transform_indices = @transform_17, window_bounds = array<i64: 512, 10>}, {pipeline_mode = #tpu.pipeline_mode<synchronous>, transform_indices = @transform_18, window_bounds = array<i64: 1, 10>}, {pipeline_mode = #tpu.pipeline_mode<synchronous>, transform_indices = @transform_19, window_bounds = array<i64: 2, 1>}, {pipeline_mode = #tpu.pipeline_mode<synchronous>, transform_indices = @transform_20, window_bounds = array<i64: 2, 10>}]} {
    %cst = arith.constant 0.000000e+00 : bf16
    %0 = vector.broadcast %cst : bf16 to vector<2x256xbf16>
    %c0 = arith.constant 0 : index
    %c0_0 = arith.constant 0 : index
    %c0_1 = arith.constant 0 : index
    %1 = vector.load %arg22[%c0, %c0_0, %c0_1] : memref<18x2x256xbf16, #tpu.memory_space<vmem>>, vector<1x2x256xbf16>
    %2 = vector.shape_cast %1 : vector<1x2x256xbf16> to vector<2x256xbf16>
    %3 = vector.shape_cast %0 : vector<2x256xbf16> to vector<1x2x256xbf16>
    tpu.vector_store %arg22[%c0, %c0_0, %c0_1], %3 {strides = array<i32>} : memref<18x2x256xbf16, #tpu.memory_space<vmem>>, vector<1x2x256xbf16>,
    %c17 = arith.constant 17 : index
    %c0_2 = arith.constant 0 : index
    %c0_3 = arith.constant 0 : index
    %4 = vector.load %arg22[%c17, %c0_2, %c0_3] : memref<18x2x256xbf16, #tpu.memory_space<vmem>>, vector<1x2x256xbf16>
    %5 = vector.shape_cast %4 : vector<1x2x256xbf16> to vector<2x256xbf16>
    %6 = vector.shape_cast %0 : vector<2x256xbf16> to vector<1x2x256xbf16>
    tpu.vector_store %arg22[%c17, %c0_2, %c0_3], %6 {strides = array<i32>} : memref<18x2x256xbf16, #tpu.memory_space<vmem>>, vector<1x2x256xbf16>,
    %cst_4 = arith.constant 0.000000e+00 : bf16
    %7 = vector.broadcast %cst_4 : bf16 to vector<2x256xbf16>
    %c0_5 = arith.constant 0 : index
    %c0_6 = arith.constant 0 : index
    %c0_7 = arith.constant 0 : index
    %8 = vector.load %arg23[%c0_5, %c0_6, %c0_7] : memref<10x2x256xbf16, #tpu.memory_space<vmem>>, vector<1x2x256xbf16>
    %9 = vector.shape_cast %8 : vector<1x2x256xbf16> to vector<2x256xbf16>
    %10 = vector.shape_cast %7 : vector<2x256xbf16> to vector<1x2x256xbf16>
    tpu.vector_store %arg23[%c0_5, %c0_6, %c0_7], %10 {strides = array<i32>} : memref<10x2x256xbf16, #tpu.memory_space<vmem>>, vector<1x2x256xbf16>,
    %c9 = arith.constant 9 : index
    %c0_8 = arith.constant 0 : index
    %c0_9 = arith.constant 0 : index
    %11 = vector.load %arg23[%c9, %c0_8, %c0_9] : memref<10x2x256xbf16, #tpu.memory_space<vmem>>, vector<1x2x256xbf16>
    %12 = vector.shape_cast %11 : vector<1x2x256xbf16> to vector<2x256xbf16>
    %13 = vector.shape_cast %7 : vector<2x256xbf16> to vector<1x2x256xbf16>
    tpu.vector_store %arg23[%c9, %c0_8, %c0_9], %13 {strides = array<i32>} : memref<10x2x256xbf16, #tpu.memory_space<vmem>>, vector<1x2x256xbf16>,
    %cst_10 = arith.constant 0.000000e+00 : bf16
    %14 = vector.broadcast %cst_10 : bf16 to vector<2x256xbf16>
    %c0_11 = arith.constant 0 : index
    %c0_12 = arith.constant 0 : index
    %c0_13 = arith.constant 0 : index
    %15 = vector.load %arg24[%c0_11, %c0_12, %c0_13] : memref<6x2x256xbf16, #tpu.memory_space<vmem>>, vector<1x2x256xbf16>
    %16 = vector.shape_cast %15 : vector<1x2x256xbf16> to vector<2x256xbf16>
    %17 = vector.shape_cast %14 : vector<2x256xbf16> to vector<1x2x256xbf16>
    tpu.vector_store %arg24[%c0_11, %c0_12, %c0_13], %17 {strides = array<i32>} : memref<6x2x256xbf16, #tpu.memory_space<vmem>>, vector<1x2x256xbf16>,
    %c5 = arith.constant 5 : index
    %c0_14 = arith.constant 0 : index
    %c0_15 = arith.constant 0 : index
    %18 = vector.load %arg24[%c5, %c0_14, %c0_15] : memref<6x2x256xbf16, #tpu.memory_space<vmem>>, vector<1x2x256xbf16>
    %19 = vector.shape_cast %18 : vector<1x2x256xbf16> to vector<2x256xbf16>
    %20 = vector.shape_cast %14 : vector<2x256xbf16> to vector<1x2x256xbf16>
    tpu.vector_store %arg24[%c5, %c0_14, %c0_15], %20 {strides = array<i32>} : memref<6x2x256xbf16, #tpu.memory_space<vmem>>, vector<1x2x256xbf16>,
    %c0_16 = arith.constant 0 : index
    %c0_17 = arith.constant 0 : index
    %c0_18 = arith.constant 0 : index
    %21 = vector.load %arg1[%c0_16, %c0_17, %c0_18] : memref<34x2x32xbf16, #tpu.memory_space<vmem>>, vector<1x2x32xbf16>
    %22 = vector.shape_cast %21 : vector<1x2x32xbf16> to vector<2x32xbf16>
    %c0_19 = arith.constant 0 : index
    %c0_20 = arith.constant 0 : index
    %c0_21 = arith.constant 0 : index
    %23 = vector.load %arg2[%c0_19, %c0_20, %c0_21] : memref<3x32x256xbf16, #tpu.memory_space<vmem>>, vector<1x32x256xbf16>
    %24 = vector.shape_cast %23 : vector<1x32x256xbf16> to vector<32x256xbf16>
    %cst_22 = arith.constant dense<0.000000e+00> : vector<2x256xf32>
    %25 = tpu.matmul %22, %24, %cst_22 {dimension_numbers = #tpu.dot_dimension_numbers<[1], [0], [0], [1], [0, 0, 1, 1], [], []>} : vector<2x32xbf16>, vector<32x256xbf16>, vector<2x256xf32> -> vector<2x256xf32>
    %c1 = arith.constant 1 : index
    %c0_23 = arith.constant 0 : index
    %c0_24 = arith.constant 0 : index
    %26 = vector.load %arg1[%c1, %c0_23, %c0_24] : memref<34x2x32xbf16, #tpu.memory_space<vmem>>, vector<1x2x32xbf16>
    %27 = vector.shape_cast %26 : vector<1x2x32xbf16> to vector<2x32xbf16>
    %c1_25 = arith.constant 1 : index
    %c0_26 = arith.constant 0 : index
    %c0_27 = arith.constant 0 : index
    %28 = vector.load %arg2[%c1_25, %c0_26, %c0_27] : memref<3x32x256xbf16, #tpu.memory_space<vmem>>, vector<1x32x256xbf16>
    %29 = vector.shape_cast %28 : vector<1x32x256xbf16> to vector<32x256xbf16>
    %cst_28 = arith.constant dense<0.000000e+00> : vector<2x256xf32>
    %30 = tpu.matmul %27, %29, %cst_28 {dimension_numbers = #tpu.dot_dimension_numbers<[1], [0], [0], [1], [0, 0, 1, 1], [], []>} : vector<2x32xbf16>, vector<32x256xbf16>, vector<2x256xf32> -> vector<2x256xf32>
    %31 = arith.addf %25, %30 : vector<2x256xf32>
    %c2 = arith.constant 2 : index
    %c0_29 = arith.constant 0 : index
    %c0_30 = arith.constant 0 : index
    %32 = vector.load %arg1[%c2, %c0_29, %c0_30] : memref<34x2x32xbf16, #tpu.memory_space<vmem>>, vector<1x2x32xbf16>
    %33 = vector.shape_cast %32 : vector<1x2x32xbf16> to vector<2x32xbf16>
    %c2_31 = arith.constant 2 : index
    %c0_32 = arith.constant 0 : index
    %c0_33 = arith.constant 0 : index
    %34 = vector.load %arg2[%c2_31, %c0_32, %c0_33] : memref<3x32x256xbf16, #tpu.memory_space<vmem>>, vector<1x32x256xbf16>
    %35 = vector.shape_cast %34 : vector<1x32x256xbf16> to vector<32x256xbf16>
    %cst_34 = arith.constant dense<0.000000e+00> : vector<2x256xf32>
    %36 = tpu.matmul %33, %35, %cst_34 {dimension_numbers = #tpu.dot_dimension_numbers<[1], [0], [0], [1], [0, 0, 1, 1], [], []>} : vector<2x32xbf16>, vector<32x256xbf16>, vector<2x256xf32> -> vector<2x256xf32>
    %37 = arith.addf %31, %36 : vector<2x256xf32>
    %c0_35 = arith.constant 0 : index
    %c0_36 = arith.constant 0 : index
    %38 = vector.load %arg3[%c0_35, %c0_36] : memref<1x256xf32, #tpu.memory_space<vmem>>, vector<1x256xf32>
    %39 = vector.broadcast %38 : vector<1x256xf32> to vector<2x256xf32>
    %40 = arith.addf %37, %39 : vector<2x256xf32>
    %cst_37 = arith.constant 0.000000e+00 : f32
    %41 = vector.broadcast %cst_37 : f32 to vector<2x256xf32>
    %42 = arith.cmpf ogt, %40, %41 : vector<2x256xf32>
    %cst_38 = arith.constant 2.000000e-01 : f32
    %43 = vector.broadcast %cst_38 : f32 to vector<2x256xf32>
    %44 = arith.mulf %43, %40 : vector<2x256xf32>
    %45 = arith.select %42, %40, %44 : vector<2x256xi1>, vector<2x256xf32>
    %46 = arith.truncf %45 : vector<2x256xf32> to vector<2x256xbf16>
    %c1_39 = arith.constant 1 : index
    %c0_40 = arith.constant 0 : index
    %c0_41 = arith.constant 0 : index
    %47 = vector.load %arg22[%c1_39, %c0_40, %c0_41] : memref<18x2x256xbf16, #tpu.memory_space<vmem>>, vector<1x2x256xbf16>
    %48 = vector.shape_cast %47 : vector<1x2x256xbf16> to vector<2x256xbf16>
    %49 = vector.shape_cast %46 : vector<2x256xbf16> to vector<1x2x256xbf16>
    tpu.vector_store %arg22[%c1_39, %c0_40, %c0_41], %49 {strides = array<i32>} : memref<18x2x256xbf16, #tpu.memory_space<vmem>>, vector<1x2x256xbf16>,
    %c2_42 = arith.constant 2 : index
    %c0_43 = arith.constant 0 : index
    %c0_44 = arith.constant 0 : index
    %50 = vector.load %arg1[%c2_42, %c0_43, %c0_44] : memref<34x2x32xbf16, #tpu.memory_space<vmem>>, vector<1x2x32xbf16>
    %51 = vector.shape_cast %50 : vector<1x2x32xbf16> to vector<2x32xbf16>
    %c0_45 = arith.constant 0 : index
    %c0_46 = arith.constant 0 : index
    %c0_47 = arith.constant 0 : index
    %52 = vector.load %arg2[%c0_45, %c0_46, %c0_47] : memref<3x32x256xbf16, #tpu.memory_space<vmem>>, vector<1x32x256xbf16>
    %53 = vector.shape_cast %52 : vector<1x32x256xbf16> to vector<32x256xbf16>
    %cst_48 = arith.constant dense<0.000000e+00> : vector<2x256xf32>
    %54 = tpu.matmul %51, %53, %cst_48 {dimension_numbers = #tpu.dot_dimension_numbers<[1], [0], [0], [1], [0, 0, 1, 1], [], []>} : vector<2x32xbf16>, vector<32x256xbf16>, vector<2x256xf32> -> vector<2x256xf32>
    %c3 = arith.constant 3 : index
    %c0_49 = arith.constant 0 : index
    %c0_50 = arith.constant 0 : index
    %55 = vector.load %arg1[%c3, %c0_49, %c0_50] : memref<34x2x32xbf16, #tpu.memory_space<vmem>>, vector<1x2x32xbf16>
    %56 = vector.shape_cast %55 : vector<1x2x32xbf16> to vector<2x32xbf16>
    %c1_51 = arith.constant 1 : index
    %c0_52 = arith.constant 0 : index
    %c0_53 = arith.constant 0 : index
    %57 = vector.load %arg2[%c1_51, %c0_52, %c0_53] : memref<3x32x256xbf16, #tpu.memory_space<vmem>>, vector<1x32x256xbf16>
    %58 = vector.shape_cast %57 : vector<1x32x256xbf16> to vector<32x256xbf16>
    %cst_54 = arith.constant dense<0.000000e+00> : vector<2x256xf32>
    %59 = tpu.matmul %56, %58, %cst_54 {dimension_numbers = #tpu.dot_dimension_numbers<[1], [0], [0], [1], [0, 0, 1, 1], [], []>} : vector<2x32xbf16>, vector<32x256xbf16>, vector<2x256xf32> -> vector<2x256xf32>
    %60 = arith.addf %54, %59 : vector<2x256xf32>
    %c4 = arith.constant 4 : index
    %c0_55 = arith.constant 0 : index
    %c0_56 = arith.constant 0 : index
    %61 = vector.load %arg1[%c4, %c0_55, %c0_56] : memref<34x2x32xbf16, #tpu.memory_space<vmem>>, vector<1x2x32xbf16>
    %62 = vector.shape_cast %61 : vector<1x2x32xbf16> to vector<2x32xbf16>
    %c2_57 = arith.constant 2 : index
    %c0_58 = arith.constant 0 : index
    %c0_59 = arith.constant 0 : index
    %63 = vector.load %arg2[%c2_57, %c0_58, %c0_59] : memref<3x32x256xbf16, #tpu.memory_space<vmem>>, vector<1x32x256xbf16>
    %64 = vector.shape_cast %63 : vector<1x32x256xbf16> to vector<32x256xbf16>
    %cst_60 = arith.constant dense<0.000000e+00> : vector<2x256xf32>
    %65 = tpu.matmul %62, %64, %cst_60 {dimension_numbers = #tpu.dot_dimension_numbers<[1], [0], [0], [1], [0, 0, 1, 1], [], []>} : vector<2x32xbf16>, vector<32x256xbf16>, vector<2x256xf32> -> vector<2x256xf32>
    %66 = arith.addf %60, %65 : vector<2x256xf32>
    %c0_61 = arith.constant 0 : index
    %c0_62 = arith.constant 0 : index
    %67 = vector.load %arg3[%c0_61, %c0_62] : memref<1x256xf32, #tpu.memory_space<vmem>>, vector<1x256xf32>
    %68 = vector.broadcast %67 : vector<1x256xf32> to vector<2x256xf32>
    %69 = arith.addf %66, %68 : vector<2x256xf32>
    %cst_63 = arith.constant 0.000000e+00 : f32
    %70 = vector.broadcast %cst_63 : f32 to vector<2x256xf32>
    %71 = arith.cmpf ogt, %69, %70 : vector<2x256xf32>
    %cst_64 = arith.constant 2.000000e-01 : f32
    %72 = vector.broadcast %cst_64 : f32 to vector<2x256xf32>
    %73 = arith.mulf %72, %69 : vector<2x256xf32>
    %74 = arith.select %71, %69, %73 : vector<2x256xi1>, vector<2x256xf32>
    %75 = arith.truncf %74 : vector<2x256xf32> to vector<2x256xbf16>
    %c2_65 = arith.constant 2 : index
    %c0_66 = arith.constant 0 : index
    %c0_67 = arith.constant 0 : index
    %76 = vector.load %arg22[%c2_65, %c0_66, %c0_67] : memref<18x2x256xbf16, #tpu.memory_space<vmem>>, vector<1x2x256xbf16>
    %77 = vector.shape_cast %76 : vector<1x2x256xbf16> to vector<2x256xbf16>
    %78 = vector.shape_cast %75 : vector<2x256xbf16> to vector<1x2x256xbf16>
    tpu.vector_store %arg22[%c2_65, %c0_66, %c0_67], %78 {strides = array<i32>} : memref<18x2x256xbf16, #tpu.memory_space<vmem>>, vector<1x2x256xbf16>,
    %c4_68 = arith.constant 4 : index
    %c0_69 = arith.constant 0 : index
    %c0_70 = arith.constant 0 : index
    %79 = vector.load %arg1[%c4_68, %c0_69, %c0_70] : memref<34x2x32xbf16, #tpu.memory_space<vmem>>, vector<1x2x32xbf16>
    %80 = vector.shape_cast %79 : vector<1x2x32xbf16> to vector<2x32xbf16>
    %c0_71 = arith.constant 0 : index
    %c0_72 = arith.constant 0 : index
    %c0_73 = arith.constant 0 : index
    %81 = vector.load %arg2[%c0_71, %c0_72, %c0_73] : memref<3x32x256xbf16, #tpu.memory_space<vmem>>, vector<1x32x256xbf16>
    %82 = vector.shape_cast %81 : vector<1x32x256xbf16> to vector<32x256xbf16>
    %cst_74 = arith.constant dense<0.000000e+00> : vector<2x256xf32>
    %83 = tpu.matmul %80, %82, %cst_74 {dimension_numbers = #tpu.dot_dimension_numbers<[1], [0], [0], [1], [0, 0, 1, 1], [], []>} : vector<2x32xbf16>, vector<32x256xbf16>, vector<2x256xf32> -> vector<2x256xf32>
    %c5_75 = arith.constant 5 : index
    %c0_76 = arith.constant 0 : index
    %c0_77 = arith.constant 0 : index
    %84 = vector.load %arg1[%c5_75, %c0_76, %c0_77] : memref<34x2x32xbf16, #tpu.memory_space<vmem>>, vector<1x2x32xbf16>
    %85 = vector.shape_cast %84 : vector<1x2x32xbf16> to vector<2x32xbf16>
    %c1_78 = arith.constant 1 : index
    %c0_79 = arith.constant 0 : index
    %c0_80 = arith.constant 0 : index
    %86 = vector.load %arg2[%c1_78, %c0_79, %c0_80] : memref<3x32x256xbf16, #tpu.memory_space<vmem>>, vector<1x32x256xbf16>
    %87 = vector.shape_cast %86 : vector<1x32x256xbf16> to vector<32x256xbf16>
    %cst_81 = arith.constant dense<0.000000e+00> : vector<2x256xf32>
    %88 = tpu.matmul %85, %87, %cst_81 {dimension_numbers = #tpu.dot_dimension_numbers<[1], [0], [0], [1], [0, 0, 1, 1], [], []>} : vector<2x32xbf16>, vector<32x256xbf16>, vector<2x256xf32> -> vector<2x256xf32>
    %89 = arith.addf %83, %88 : vector<2x256xf32>
    %c6 = arith.constant 6 : index
    %c0_82 = arith.constant 0 : index
    %c0_83 = arith.constant 0 : index
    %90 = vector.load %arg1[%c6, %c0_82, %c0_83] : memref<34x2x32xbf16, #tpu.memory_space<vmem>>, vector<1x2x32xbf16>
    %91 = vector.shape_cast %90 : vector<1x2x32xbf16> to vector<2x32xbf16>
    %c2_84 = arith.constant 2 : index
    %c0_85 = arith.constant 0 : index
    %c0_86 = arith.constant 0 : index
    %92 = vector.load %arg2[%c2_84, %c0_85, %c0_86] : memref<3x32x256xbf16, #tpu.memory_space<vmem>>, vector<1x32x256xbf16>
    %93 = vector.shape_cast %92 : vector<1x32x256xbf16> to vector<32x256xbf16>
    %cst_87 = arith.constant dense<0.000000e+00> : vector<2x256xf32>
    %94 = tpu.matmul %91, %93, %cst_87 {dimension_numbers = #tpu.dot_dimension_numbers<[1], [0], [0], [1], [0, 0, 1, 1], [], []>} : vector<2x32xbf16>, vector<32x256xbf16>, vector<2x256xf32> -> vector<2x256xf32>
    %95 = arith.addf %89, %94 : vector<2x256xf32>
    %c0_88 = arith.constant 0 : index
    %c0_89 = arith.constant 0 : index
    %96 = vector.load %arg3[%c0_88, %c0_89] : memref<1x256xf32, #tpu.memory_space<vmem>>, vector<1x256xf32>
    %97 = vector.broadcast %96 : vector<1x256xf32> to vector<2x256xf32>
    %98 = arith.addf %95, %97 : vector<2x256xf32>
    %cst_90 = arith.constant 0.000000e+00 : f32
    %99 = vector.broadcast %cst_90 : f32 to vector<2x256xf32>
    %100 = arith.cmpf ogt, %98, %99 : vector<2x256xf32>
    %cst_91 = arith.constant 2.000000e-01 : f32
    %101 = vector.broadcast %cst_91 : f32 to vector<2x256xf32>
    %102 = arith.mulf %101, %98 : vector<2x256xf32>
    %103 = arith.select %100, %98, %102 : vector<2x256xi1>, vector<2x256xf32>
    %104 = arith.truncf %103 : vector<2x256xf32> to vector<2x256xbf16>
    %c3_92 = arith.constant 3 : index
    %c0_93 = arith.constant 0 : index
    %c0_94 = arith.constant 0 : index
    %105 = vector.load %arg22[%c3_92, %c0_93, %c0_94] : memref<18x2x256xbf16, #tpu.memory_space<vmem>>, vector<1x2x256xbf16>
    %106 = vector.shape_cast %105 : vector<1x2x256xbf16> to vector<2x256xbf16>
    %107 = vector.shape_cast %104 : vector<2x256xbf16> to vector<1x2x256xbf16>
    tpu.vector_store %arg22[%c3_92, %c0_93, %c0_94], %107 {strides = array<i32>} : memref<18x2x256xbf16, #tpu.memory_space<vmem>>, vector<1x2x256xbf16>,
    %c6_95 = arith.constant 6 : index
    %c0_96 = arith.constant 0 : index
    %c0_97 = arith.constant 0 : index
    %108 = vector.load %arg1[%c6_95, %c0_96, %c0_97] : memref<34x2x32xbf16, #tpu.memory_space<vmem>>, vector<1x2x32xbf16>
    %109 = vector.shape_cast %108 : vector<1x2x32xbf16> to vector<2x32xbf16>
    %c0_98 = arith.constant 0 : index
    %c0_99 = arith.constant 0 : index
    %c0_100 = arith.constant 0 : index
    %110 = vector.load %arg2[%c0_98, %c0_99, %c0_100] : memref<3x32x256xbf16, #tpu.memory_space<vmem>>, vector<1x32x256xbf16>
    %111 = vector.shape_cast %110 : vector<1x32x256xbf16> to vector<32x256xbf16>
    %cst_101 = arith.constant dense<0.000000e+00> : vector<2x256xf32>
    %112 = tpu.matmul %109, %111, %cst_101 {dimension_numbers = #tpu.dot_dimension_numbers<[1], [0], [0], [1], [0, 0, 1, 1], [], []>} : vector<2x32xbf16>, vector<32x256xbf16>, vector<2x256xf32> -> vector<2x256xf32>
    %c7 = arith.constant 7 : index
    %c0_102 = arith.constant 0 : index
    %c0_103 = arith.constant 0 : index
    %113 = vector.load %arg1[%c7, %c0_102, %c0_103] : memref<34x2x32xbf16, #tpu.memory_space<vmem>>, vector<1x2x32xbf16>
    %114 = vector.shape_cast %113 : vector<1x2x32xbf16> to vector<2x32xbf16>
    %c1_104 = arith.constant 1 : index
    %c0_105 = arith.constant 0 : index
    %c0_106 = arith.constant 0 : index
    %115 = vector.load %arg2[%c1_104, %c0_105, %c0_106] : memref<3x32x256xbf16, #tpu.memory_space<vmem>>, vector<1x32x256xbf16>
    %116 = vector.shape_cast %115 : vector<1x32x256xbf16> to vector<32x256xbf16>
    %cst_107 = arith.constant dense<0.000000e+00> : vector<2x256xf32>
    %117 = tpu.matmul %114, %116, %cst_107 {dimension_numbers = #tpu.dot_dimension_numbers<[1], [0], [0], [1], [0, 0, 1, 1], [], []>} : vector<2x32xbf16>, vector<32x256xbf16>, vector<2x256xf32> -> vector<2x256xf32>
    %118 = arith.addf %112, %117 : vector<2x256xf32>
    %c8 = arith.constant 8 : index
    %c0_108 = arith.constant 0 : index
    %c0_109 = arith.constant 0 : index
    %119 = vector.load %arg1[%c8, %c0_108, %c0_109] : memref<34x2x32xbf16, #tpu.memory_space<vmem>>, vector<1x2x32xbf16>
    %120 = vector.shape_cast %119 : vector<1x2x32xbf16> to vector<2x32xbf16>
    %c2_110 = arith.constant 2 : index
    %c0_111 = arith.constant 0 : index
    %c0_112 = arith.constant 0 : index
    %121 = vector.load %arg2[%c2_110, %c0_111, %c0_112] : memref<3x32x256xbf16, #tpu.memory_space<vmem>>, vector<1x32x256xbf16>
    %122 = vector.shape_cast %121 : vector<1x32x256xbf16> to vector<32x256xbf16>
    %cst_113 = arith.constant dense<0.000000e+00> : vector<2x256xf32>
    %123 = tpu.matmul %120, %122, %cst_113 {dimension_numbers = #tpu.dot_dimension_numbers<[1], [0], [0], [1], [0, 0, 1, 1], [], []>} : vector<2x32xbf16>, vector<32x256xbf16>, vector<2x256xf32> -> vector<2x256xf32>
    %124 = arith.addf %118, %123 : vector<2x256xf32>
    %c0_114 = arith.constant 0 : index
    %c0_115 = arith.constant 0 : index
    %125 = vector.load %arg3[%c0_114, %c0_115] : memref<1x256xf32, #tpu.memory_space<vmem>>, vector<1x256xf32>
    %126 = vector.broadcast %125 : vector<1x256xf32> to vector<2x256xf32>
    %127 = arith.addf %124, %126 : vector<2x256xf32>
    %cst_116 = arith.constant 0.000000e+00 : f32
    %128 = vector.broadcast %cst_116 : f32 to vector<2x256xf32>
    %129 = arith.cmpf ogt, %127, %128 : vector<2x256xf32>
    %cst_117 = arith.constant 2.000000e-01 : f32
    %130 = vector.broadcast %cst_117 : f32 to vector<2x256xf32>
    %131 = arith.mulf %130, %127 : vector<2x256xf32>
    %132 = arith.select %129, %127, %131 : vector<2x256xi1>, vector<2x256xf32>
    %133 = arith.truncf %132 : vector<2x256xf32> to vector<2x256xbf16>
    %c4_118 = arith.constant 4 : index
    %c0_119 = arith.constant 0 : index
    %c0_120 = arith.constant 0 : index
    %134 = vector.load %arg22[%c4_118, %c0_119, %c0_120] : memref<18x2x256xbf16, #tpu.memory_space<vmem>>, vector<1x2x256xbf16>
    %135 = vector.shape_cast %134 : vector<1x2x256xbf16> to vector<2x256xbf16>
    %136 = vector.shape_cast %133 : vector<2x256xbf16> to vector<1x2x256xbf16>
    tpu.vector_store %arg22[%c4_118, %c0_119, %c0_120], %136 {strides = array<i32>} : memref<18x2x256xbf16, #tpu.memory_space<vmem>>, vector<1x2x256xbf16>,
    %c8_121 = arith.constant 8 : index
    %c0_122 = arith.constant 0 : index
    %c0_123 = arith.constant 0 : index
    %137 = vector.load %arg1[%c8_121, %c0_122, %c0_123] : memref<34x2x32xbf16, #tpu.memory_space<vmem>>, vector<1x2x32xbf16>
    %138 = vector.shape_cast %137 : vector<1x2x32xbf16> to vector<2x32xbf16>
    %c0_124 = arith.constant 0 : index
    %c0_125 = arith.constant 0 : index
    %c0_126 = arith.constant 0 : index
    %139 = vector.load %arg2[%c0_124, %c0_125, %c0_126] : memref<3x32x256xbf16, #tpu.memory_space<vmem>>, vector<1x32x256xbf16>
    %140 = vector.shape_cast %139 : vector<1x32x256xbf16> to vector<32x256xbf16>
    %cst_127 = arith.constant dense<0.000000e+00> : vector<2x256xf32>
    %141 = tpu.matmul %138, %140, %cst_127 {dimension_numbers = #tpu.dot_dimension_numbers<[1], [0], [0], [1], [0, 0, 1, 1], [], []>} : vector<2x32xbf16>, vector<32x256xbf16>, vector<2x256xf32> -> vector<2x256xf32>
    %c9_128 = arith.constant 9 : index
    %c0_129 = arith.constant 0 : index
    %c0_130 = arith.constant 0 : index
    %142 = vector.load %arg1[%c9_128, %c0_129, %c0_130] : memref<34x2x32xbf16, #tpu.memory_space<vmem>>, vector<1x2x32xbf16>
    %143 = vector.shape_cast %142 : vector<1x2x32xbf16> to vector<2x32xbf16>
    %c1_131 = arith.constant 1 : index
    %c0_132 = arith.constant 0 : index
    %c0_133 = arith.constant 0 : index
    %144 = vector.load %arg2[%c1_131, %c0_132, %c0_133] : memref<3x32x256xbf16, #tpu.memory_space<vmem>>, vector<1x32x256xbf16>
    %145 = vector.shape_cast %144 : vector<1x32x256xbf16> to vector<32x256xbf16>
    %cst_134 = arith.constant dense<0.000000e+00> : vector<2x256xf32>
    %146 = tpu.matmul %143, %145, %cst_134 {dimension_numbers = #tpu.dot_dimension_numbers<[1], [0], [0], [1], [0, 0, 1, 1], [], []>} : vector<2x32xbf16>, vector<32x256xbf16>, vector<2x256xf32> -> vector<2x256xf32>
    %147 = arith.addf %141, %146 : vector<2x256xf32>
    %c10 = arith.constant 10 : index
    %c0_135 = arith.constant 0 : index
    %c0_136 = arith.constant 0 : index
    %148 = vector.load %arg1[%c10, %c0_135, %c0_136] : memref<34x2x32xbf16, #tpu.memory_space<vmem>>, vector<1x2x32xbf16>
    %149 = vector.shape_cast %148 : vector<1x2x32xbf16> to vector<2x32xbf16>
    %c2_137 = arith.constant 2 : index
    %c0_138 = arith.constant 0 : index
    %c0_139 = arith.constant 0 : index
    %150 = vector.load %arg2[%c2_137, %c0_138, %c0_139] : memref<3x32x256xbf16, #tpu.memory_space<vmem>>, vector<1x32x256xbf16>
    %151 = vector.shape_cast %150 : vector<1x32x256xbf16> to vector<32x256xbf16>
    %cst_140 = arith.constant dense<0.000000e+00> : vector<2x256xf32>
    %152 = tpu.matmul %149, %151, %cst_140 {dimension_numbers = #tpu.dot_dimension_numbers<[1], [0], [0], [1], [0, 0, 1, 1], [], []>} : vector<2x32xbf16>, vector<32x256xbf16>, vector<2x256xf32> -> vector<2x256xf32>
    %153 = arith.addf %147, %152 : vector<2x256xf32>
    %c0_141 = arith.constant 0 : index
    %c0_142 = arith.constant 0 : index
    %154 = vector.load %arg3[%c0_141, %c0_142] : memref<1x256xf32, #tpu.memory_space<vmem>>, vector<1x256xf32>
    %155 = vector.broadcast %154 : vector<1x256xf32> to vector<2x256xf32>
    %156 = arith.addf %153, %155 : vector<2x256xf32>
    %cst_143 = arith.constant 0.000000e+00 : f32
    %157 = vector.broadcast %cst_143 : f32 to vector<2x256xf32>
    %158 = arith.cmpf ogt, %156, %157 : vector<2x256xf32>
    %cst_144 = arith.constant 2.000000e-01 : f32
    %159 = vector.broadcast %cst_144 : f32 to vector<2x256xf32>
    %160 = arith.mulf %159, %156 : vector<2x256xf32>
    %161 = arith.select %158, %156, %160 : vector<2x256xi1>, vector<2x256xf32>
    %162 = arith.truncf %161 : vector<2x256xf32> to vector<2x256xbf16>
    %c5_145 = arith.constant 5 : index
    %c0_146 = arith.constant 0 : index
    %c0_147 = arith.constant 0 : index
    %163 = vector.load %arg22[%c5_145, %c0_146, %c0_147] : memref<18x2x256xbf16, #tpu.memory_space<vmem>>, vector<1x2x256xbf16>
    %164 = vector.shape_cast %163 : vector<1x2x256xbf16> to vector<2x256xbf16>
    %165 = vector.shape_cast %162 : vector<2x256xbf16> to vector<1x2x256xbf16>
    tpu.vector_store %arg22[%c5_145, %c0_146, %c0_147], %165 {strides = array<i32>} : memref<18x2x256xbf16, #tpu.memory_space<vmem>>, vector<1x2x256xbf16>,
    %c10_148 = arith.constant 10 : index
    %c0_149 = arith.constant 0 : index
    %c0_150 = arith.constant 0 : index
    %166 = vector.load %arg1[%c10_148, %c0_149, %c0_150] : memref<34x2x32xbf16, #tpu.memory_space<vmem>>, vector<1x2x32xbf16>
    %167 = vector.shape_cast %166 : vector<1x2x32xbf16> to vector<2x32xbf16>
    %c0_151 = arith.constant 0 : index
    %c0_152 = arith.constant 0 : index
    %c0_153 = arith.constant 0 : index
    %168 = vector.load %arg2[%c0_151, %c0_152, %c0_153] : memref<3x32x256xbf16, #tpu.memory_space<vmem>>, vector<1x32x256xbf16>
    %169 = vector.shape_cast %168 : vector<1x32x256xbf16> to vector<32x256xbf16>
    %cst_154 = arith.constant dense<0.000000e+00> : vector<2x256xf32>
    %170 = tpu.matmul %167, %169, %cst_154 {dimension_numbers = #tpu.dot_dimension_numbers<[1], [0], [0], [1], [0, 0, 1, 1], [], []>} : vector<2x32xbf16>, vector<32x256xbf16>, vector<2x256xf32> -> vector<2x256xf32>
    %c11 = arith.constant 11 : index
    %c0_155 = arith.constant 0 : index
    %c0_156 = arith.constant 0 : index
    %171 = vector.load %arg1[%c11, %c0_155, %c0_156] : memref<34x2x32xbf16, #tpu.memory_space<vmem>>, vector<1x2x32xbf16>
    %172 = vector.shape_cast %171 : vector<1x2x32xbf16> to vector<2x32xbf16>
    %c1_157 = arith.constant 1 : index
    %c0_158 = arith.constant 0 : index
    %c0_159 = arith.constant 0 : index
    %173 = vector.load %arg2[%c1_157, %c0_158, %c0_159] : memref<3x32x256xbf16, #tpu.memory_space<vmem>>, vector<1x32x256xbf16>
    %174 = vector.shape_cast %173 : vector<1x32x256xbf16> to vector<32x256xbf16>
    %cst_160 = arith.constant dense<0.000000e+00> : vector<2x256xf32>
    %175 = tpu.matmul %172, %174, %cst_160 {dimension_numbers = #tpu.dot_dimension_numbers<[1], [0], [0], [1], [0, 0, 1, 1], [], []>} : vector<2x32xbf16>, vector<32x256xbf16>, vector<2x256xf32> -> vector<2x256xf32>
    %176 = arith.addf %170, %175 : vector<2x256xf32>
    %c12 = arith.constant 12 : index
    %c0_161 = arith.constant 0 : index
    %c0_162 = arith.constant 0 : index
    %177 = vector.load %arg1[%c12, %c0_161, %c0_162] : memref<34x2x32xbf16, #tpu.memory_space<vmem>>, vector<1x2x32xbf16>
    %178 = vector.shape_cast %177 : vector<1x2x32xbf16> to vector<2x32xbf16>
    %c2_163 = arith.constant 2 : index
    %c0_164 = arith.constant 0 : index
    %c0_165 = arith.constant 0 : index
    %179 = vector.load %arg2[%c2_163, %c0_164, %c0_165] : memref<3x32x256xbf16, #tpu.memory_space<vmem>>, vector<1x32x256xbf16>
    %180 = vector.shape_cast %179 : vector<1x32x256xbf16> to vector<32x256xbf16>
    %cst_166 = arith.constant dense<0.000000e+00> : vector<2x256xf32>
    %181 = tpu.matmul %178, %180, %cst_166 {dimension_numbers = #tpu.dot_dimension_numbers<[1], [0], [0], [1], [0, 0, 1, 1], [], []>} : vector<2x32xbf16>, vector<32x256xbf16>, vector<2x256xf32> -> vector<2x256xf32>
    %182 = arith.addf %176, %181 : vector<2x256xf32>
    %c0_167 = arith.constant 0 : index
    %c0_168 = arith.constant 0 : index
    %183 = vector.load %arg3[%c0_167, %c0_168] : memref<1x256xf32, #tpu.memory_space<vmem>>, vector<1x256xf32>
    %184 = vector.broadcast %183 : vector<1x256xf32> to vector<2x256xf32>
    %185 = arith.addf %182, %184 : vector<2x256xf32>
    %cst_169 = arith.constant 0.000000e+00 : f32
    %186 = vector.broadcast %cst_169 : f32 to vector<2x256xf32>
    %187 = arith.cmpf ogt, %185, %186 : vector<2x256xf32>
    %cst_170 = arith.constant 2.000000e-01 : f32
    %188 = vector.broadcast %cst_170 : f32 to vector<2x256xf32>
    %189 = arith.mulf %188, %185 : vector<2x256xf32>
    %190 = arith.select %187, %185, %189 : vector<2x256xi1>, vector<2x256xf32>
    %191 = arith.truncf %190 : vector<2x256xf32> to vector<2x256xbf16>
    %c6_171 = arith.constant 6 : index
    %c0_172 = arith.constant 0 : index
    %c0_173 = arith.constant 0 : index
    %192 = vector.load %arg22[%c6_171, %c0_172, %c0_173] : memref<18x2x256xbf16, #tpu.memory_space<vmem>>, vector<1x2x256xbf16>
    %193 = vector.shape_cast %192 : vector<1x2x256xbf16> to vector<2x256xbf16>
    %194 = vector.shape_cast %191 : vector<2x256xbf16> to vector<1x2x256xbf16>
    tpu.vector_store %arg22[%c6_171, %c0_172, %c0_173], %194 {strides = array<i32>} : memref<18x2x256xbf16, #tpu.memory_space<vmem>>, vector<1x2x256xbf16>,
    %c12_174 = arith.constant 12 : index
    %c0_175 = arith.constant 0 : index
    %c0_176 = arith.constant 0 : index
    %195 = vector.load %arg1[%c12_174, %c0_175, %c0_176] : memref<34x2x32xbf16, #tpu.memory_space<vmem>>, vector<1x2x32xbf16>
    %196 = vector.shape_cast %195 : vector<1x2x32xbf16> to vector<2x32xbf16>
    %c0_177 = arith.constant 0 : index
    %c0_178 = arith.constant 0 : index
    %c0_179 = arith.constant 0 : index
    %197 = vector.load %arg2[%c0_177, %c0_178, %c0_179] : memref<3x32x256xbf16, #tpu.memory_space<vmem>>, vector<1x32x256xbf16>
    %198 = vector.shape_cast %197 : vector<1x32x256xbf16> to vector<32x256xbf16>
    %cst_180 = arith.constant dense<0.000000e+00> : vector<2x256xf32>
    %199 = tpu.matmul %196, %198, %cst_180 {dimension_numbers = #tpu.dot_dimension_numbers<[1], [0], [0], [1], [0, 0, 1, 1], [], []>} : vector<2x32xbf16>, vector<32x256xbf16>, vector<2x256xf32> -> vector<2x256xf32>
    %c13 = arith.constant 13 : index
    %c0_181 = arith.constant 0 : index
    %c0_182 = arith.constant 0 : index
    %200 = vector.load %arg1[%c13, %c0_181, %c0_182] : memref<34x2x32xbf16, #tpu.memory_space<vmem>>, vector<1x2x32xbf16>
    %201 = vector.shape_cast %200 : vector<1x2x32xbf16> to vector<2x32xbf16>
    %c1_183 = arith.constant 1 : index
    %c0_184 = arith.constant 0 : index
    %c0_185 = arith.constant 0 : index
    %202 = vector.load %arg2[%c1_183, %c0_184, %c0_185] : memref<3x32x256xbf16, #tpu.memory_space<vmem>>, vector<1x32x256xbf16>
    %203 = vector.shape_cast %202 : vector<1x32x256xbf16> to vector<32x256xbf16>
    %cst_186 = arith.constant dense<0.000000e+00> : vector<2x256xf32>
    %204 = tpu.matmul %201, %203, %cst_186 {dimension_numbers = #tpu.dot_dimension_numbers<[1], [0], [0], [1], [0, 0, 1, 1], [], []>} : vector<2x32xbf16>, vector<32x256xbf16>, vector<2x256xf32> -> vector<2x256xf32>
    %205 = arith.addf %199, %204 : vector<2x256xf32>
    %c14 = arith.constant 14 : index
    %c0_187 = arith.constant 0 : index
    %c0_188 = arith.constant 0 : index
    %206 = vector.load %arg1[%c14, %c0_187, %c0_188] : memref<34x2x32xbf16, #tpu.memory_space<vmem>>, vector<1x2x32xbf16>
    %207 = vector.shape_cast %206 : vector<1x2x32xbf16> to vector<2x32xbf16>
    %c2_189 = arith.constant 2 : index
    %c0_190 = arith.constant 0 : index
    %c0_191 = arith.constant 0 : index
    %208 = vector.load %arg2[%c2_189, %c0_190, %c0_191] : memref<3x32x256xbf16, #tpu.memory_space<vmem>>, vector<1x32x256xbf16>
    %209 = vector.shape_cast %208 : vector<1x32x256xbf16> to vector<32x256xbf16>
    %cst_192 = arith.constant dense<0.000000e+00> : vector<2x256xf32>
    %210 = tpu.matmul %207, %209, %cst_192 {dimension_numbers = #tpu.dot_dimension_numbers<[1], [0], [0], [1], [0, 0, 1, 1], [], []>} : vector<2x32xbf16>, vector<32x256xbf16>, vector<2x256xf32> -> vector<2x256xf32>
    %211 = arith.addf %205, %210 : vector<2x256xf32>
    %c0_193 = arith.constant 0 : index
    %c0_194 = arith.constant 0 : index
    %212 = vector.load %arg3[%c0_193, %c0_194] : memref<1x256xf32, #tpu.memory_space<vmem>>, vector<1x256xf32>
    %213 = vector.broadcast %212 : vector<1x256xf32> to vector<2x256xf32>
    %214 = arith.addf %211, %213 : vector<2x256xf32>
    %cst_195 = arith.constant 0.000000e+00 : f32
    %215 = vector.broadcast %cst_195 : f32 to vector<2x256xf32>
    %216 = arith.cmpf ogt, %214, %215 : vector<2x256xf32>
    %cst_196 = arith.constant 2.000000e-01 : f32
    %217 = vector.broadcast %cst_196 : f32 to vector<2x256xf32>
    %218 = arith.mulf %217, %214 : vector<2x256xf32>
    %219 = arith.select %216, %214, %218 : vector<2x256xi1>, vector<2x256xf32>
    %220 = arith.truncf %219 : vector<2x256xf32> to vector<2x256xbf16>
    %c7_197 = arith.constant 7 : index
    %c0_198 = arith.constant 0 : index
    %c0_199 = arith.constant 0 : index
    %221 = vector.load %arg22[%c7_197, %c0_198, %c0_199] : memref<18x2x256xbf16, #tpu.memory_space<vmem>>, vector<1x2x256xbf16>
    %222 = vector.shape_cast %221 : vector<1x2x256xbf16> to vector<2x256xbf16>
    %223 = vector.shape_cast %220 : vector<2x256xbf16> to vector<1x2x256xbf16>
    tpu.vector_store %arg22[%c7_197, %c0_198, %c0_199], %223 {strides = array<i32>} : memref<18x2x256xbf16, #tpu.memory_space<vmem>>, vector<1x2x256xbf16>,
    %c14_200 = arith.constant 14 : index
    %c0_201 = arith.constant 0 : index
    %c0_202 = arith.constant 0 : index
    %224 = vector.load %arg1[%c14_200, %c0_201, %c0_202] : memref<34x2x32xbf16, #tpu.memory_space<vmem>>, vector<1x2x32xbf16>
    %225 = vector.shape_cast %224 : vector<1x2x32xbf16> to vector<2x32xbf16>
    %c0_203 = arith.constant 0 : index
    %c0_204 = arith.constant 0 : index
    %c0_205 = arith.constant 0 : index
    %226 = vector.load %arg2[%c0_203, %c0_204, %c0_205] : memref<3x32x256xbf16, #tpu.memory_space<vmem>>, vector<1x32x256xbf16>
    %227 = vector.shape_cast %226 : vector<1x32x256xbf16> to vector<32x256xbf16>
    %cst_206 = arith.constant dense<0.000000e+00> : vector<2x256xf32>
    %228 = tpu.matmul %225, %227, %cst_206 {dimension_numbers = #tpu.dot_dimension_numbers<[1], [0], [0], [1], [0, 0, 1, 1], [], []>} : vector<2x32xbf16>, vector<32x256xbf16>, vector<2x256xf32> -> vector<2x256xf32>
    %c15 = arith.constant 15 : index
    %c0_207 = arith.constant 0 : index
    %c0_208 = arith.constant 0 : index
    %229 = vector.load %arg1[%c15, %c0_207, %c0_208] : memref<34x2x32xbf16, #tpu.memory_space<vmem>>, vector<1x2x32xbf16>
    %230 = vector.shape_cast %229 : vector<1x2x32xbf16> to vector<2x32xbf16>
    %c1_209 = arith.constant 1 : index
    %c0_210 = arith.constant 0 : index
    %c0_211 = arith.constant 0 : index
    %231 = vector.load %arg2[%c1_209, %c0_210, %c0_211] : memref<3x32x256xbf16, #tpu.memory_space<vmem>>, vector<1x32x256xbf16>
    %232 = vector.shape_cast %231 : vector<1x32x256xbf16> to vector<32x256xbf16>
    %cst_212 = arith.constant dense<0.000000e+00> : vector<2x256xf32>
    %233 = tpu.matmul %230, %232, %cst_212 {dimension_numbers = #tpu.dot_dimension_numbers<[1], [0], [0], [1], [0, 0, 1, 1], [], []>} : vector<2x32xbf16>, vector<32x256xbf16>, vector<2x256xf32> -> vector<2x256xf32>
    %234 = arith.addf %228, %233 : vector<2x256xf32>
    %c16 = arith.constant 16 : index
    %c0_213 = arith.constant 0 : index
    %c0_214 = arith.constant 0 : index
    %235 = vector.load %arg1[%c16, %c0_213, %c0_214] : memref<34x2x32xbf16, #tpu.memory_space<vmem>>, vector<1x2x32xbf16>
    %236 = vector.shape_cast %235 : vector<1x2x32xbf16> to vector<2x32xbf16>
    %c2_215 = arith.constant 2 : index
    %c0_216 = arith.constant 0 : index
    %c0_217 = arith.constant 0 : index
    %237 = vector.load %arg2[%c2_215, %c0_216, %c0_217] : memref<3x32x256xbf16, #tpu.memory_space<vmem>>, vector<1x32x256xbf16>
    %238 = vector.shape_cast %237 : vector<1x32x256xbf16> to vector<32x256xbf16>
    %cst_218 = arith.constant dense<0.000000e+00> : vector<2x256xf32>
    %239 = tpu.matmul %236, %238, %cst_218 {dimension_numbers = #tpu.dot_dimension_numbers<[1], [0], [0], [1], [0, 0, 1, 1], [], []>} : vector<2x32xbf16>, vector<32x256xbf16>, vector<2x256xf32> -> vector<2x256xf32>
    %240 = arith.addf %234, %239 : vector<2x256xf32>
    %c0_219 = arith.constant 0 : index
    %c0_220 = arith.constant 0 : index
    %241 = vector.load %arg3[%c0_219, %c0_220] : memref<1x256xf32, #tpu.memory_space<vmem>>, vector<1x256xf32>
    %242 = vector.broadcast %241 : vector<1x256xf32> to vector<2x256xf32>
    %243 = arith.addf %240, %242 : vector<2x256xf32>
    %cst_221 = arith.constant 0.000000e+00 : f32
    %244 = vector.broadcast %cst_221 : f32 to vector<2x256xf32>
    %245 = arith.cmpf ogt, %243, %244 : vector<2x256xf32>
    %cst_222 = arith.constant 2.000000e-01 : f32
    %246 = vector.broadcast %cst_222 : f32 to vector<2x256xf32>
    %247 = arith.mulf %246, %243 : vector<2x256xf32>
    %248 = arith.select %245, %243, %247 : vector<2x256xi1>, vector<2x256xf32>
    %249 = arith.truncf %248 : vector<2x256xf32> to vector<2x256xbf16>
    %c8_223 = arith.constant 8 : index
    %c0_224 = arith.constant 0 : index
    %c0_225 = arith.constant 0 : index
    %250 = vector.load %arg22[%c8_223, %c0_224, %c0_225] : memref<18x2x256xbf16, #tpu.memory_space<vmem>>, vector<1x2x256xbf16>
    %251 = vector.shape_cast %250 : vector<1x2x256xbf16> to vector<2x256xbf16>
    %252 = vector.shape_cast %249 : vector<2x256xbf16> to vector<1x2x256xbf16>
    tpu.vector_store %arg22[%c8_223, %c0_224, %c0_225], %252 {strides = array<i32>} : memref<18x2x256xbf16, #tpu.memory_space<vmem>>, vector<1x2x256xbf16>,
    %c16_226 = arith.constant 16 : index
    %c0_227 = arith.constant 0 : index
    %c0_228 = arith.constant 0 : index
    %253 = vector.load %arg1[%c16_226, %c0_227, %c0_228] : memref<34x2x32xbf16, #tpu.memory_space<vmem>>, vector<1x2x32xbf16>
    %254 = vector.shape_cast %253 : vector<1x2x32xbf16> to vector<2x32xbf16>
    %c0_229 = arith.constant 0 : index
    %c0_230 = arith.constant 0 : index
    %c0_231 = arith.constant 0 : index
    %255 = vector.load %arg2[%c0_229, %c0_230, %c0_231] : memref<3x32x256xbf16, #tpu.memory_space<vmem>>, vector<1x32x256xbf16>
    %256 = vector.shape_cast %255 : vector<1x32x256xbf16> to vector<32x256xbf16>
    %cst_232 = arith.constant dense<0.000000e+00> : vector<2x256xf32>
    %257 = tpu.matmul %254, %256, %cst_232 {dimension_numbers = #tpu.dot_dimension_numbers<[1], [0], [0], [1], [0, 0, 1, 1], [], []>} : vector<2x32xbf16>, vector<32x256xbf16>, vector<2x256xf32> -> vector<2x256xf32>
    %c17_233 = arith.constant 17 : index
    %c0_234 = arith.constant 0 : index
    %c0_235 = arith.constant 0 : index
    %258 = vector.load %arg1[%c17_233, %c0_234, %c0_235] : memref<34x2x32xbf16, #tpu.memory_space<vmem>>, vector<1x2x32xbf16>
    %259 = vector.shape_cast %258 : vector<1x2x32xbf16> to vector<2x32xbf16>
    %c1_236 = arith.constant 1 : index
    %c0_237 = arith.constant 0 : index
    %c0_238 = arith.constant 0 : index
    %260 = vector.load %arg2[%c1_236, %c0_237, %c0_238] : memref<3x32x256xbf16, #tpu.memory_space<vmem>>, vector<1x32x256xbf16>
    %261 = vector.shape_cast %260 : vector<1x32x256xbf16> to vector<32x256xbf16>
    %cst_239 = arith.constant dense<0.000000e+00> : vector<2x256xf32>
    %262 = tpu.matmul %259, %261, %cst_239 {dimension_numbers = #tpu.dot_dimension_numbers<[1], [0], [0], [1], [0, 0, 1, 1], [], []>} : vector<2x32xbf16>, vector<32x256xbf16>, vector<2x256xf32> -> vector<2x256xf32>
    %263 = arith.addf %257, %262 : vector<2x256xf32>
    %c18 = arith.constant 18 : index
    %c0_240 = arith.constant 0 : index
    %c0_241 = arith.constant 0 : index
    %264 = vector.load %arg1[%c18, %c0_240, %c0_241] : memref<34x2x32xbf16, #tpu.memory_space<vmem>>, vector<1x2x32xbf16>
    %265 = vector.shape_cast %264 : vector<1x2x32xbf16> to vector<2x32xbf16>
    %c2_242 = arith.constant 2 : index
    %c0_243 = arith.constant 0 : index
    %c0_244 = arith.constant 0 : index
    %266 = vector.load %arg2[%c2_242, %c0_243, %c0_244] : memref<3x32x256xbf16, #tpu.memory_space<vmem>>, vector<1x32x256xbf16>
    %267 = vector.shape_cast %266 : vector<1x32x256xbf16> to vector<32x256xbf16>
    %cst_245 = arith.constant dense<0.000000e+00> : vector<2x256xf32>
    %268 = tpu.matmul %265, %267, %cst_245 {dimension_numbers = #tpu.dot_dimension_numbers<[1], [0], [0], [1], [0, 0, 1, 1], [], []>} : vector<2x32xbf16>, vector<32x256xbf16>, vector<2x256xf32> -> vector<2x256xf32>
    %269 = arith.addf %263, %268 : vector<2x256xf32>
    %c0_246 = arith.constant 0 : index
    %c0_247 = arith.constant 0 : index
    %270 = vector.load %arg3[%c0_246, %c0_247] : memref<1x256xf32, #tpu.memory_space<vmem>>, vector<1x256xf32>
    %271 = vector.broadcast %270 : vector<1x256xf32> to vector<2x256xf32>
    %272 = arith.addf %269, %271 : vector<2x256xf32>
    %cst_248 = arith.constant 0.000000e+00 : f32
    %273 = vector.broadcast %cst_248 : f32 to vector<2x256xf32>
    %274 = arith.cmpf ogt, %272, %273 : vector<2x256xf32>
    %cst_249 = arith.constant 2.000000e-01 : f32
    %275 = vector.broadcast %cst_249 : f32 to vector<2x256xf32>
    %276 = arith.mulf %275, %272 : vector<2x256xf32>
    %277 = arith.select %274, %272, %276 : vector<2x256xi1>, vector<2x256xf32>
    %278 = arith.truncf %277 : vector<2x256xf32> to vector<2x256xbf16>
    %c9_250 = arith.constant 9 : index
    %c0_251 = arith.constant 0 : index
    %c0_252 = arith.constant 0 : index
    %279 = vector.load %arg22[%c9_250, %c0_251, %c0_252] : memref<18x2x256xbf16, #tpu.memory_space<vmem>>, vector<1x2x256xbf16>
    %280 = vector.shape_cast %279 : vector<1x2x256xbf16> to vector<2x256xbf16>
    %281 = vector.shape_cast %278 : vector<2x256xbf16> to vector<1x2x256xbf16>
    tpu.vector_store %arg22[%c9_250, %c0_251, %c0_252], %281 {strides = array<i32>} : memref<18x2x256xbf16, #tpu.memory_space<vmem>>, vector<1x2x256xbf16>,
    %c18_253 = arith.constant 18 : index
    %c0_254 = arith.constant 0 : index
    %c0_255 = arith.constant 0 : index
    %282 = vector.load %arg1[%c18_253, %c0_254, %c0_255] : memref<34x2x32xbf16, #tpu.memory_space<vmem>>, vector<1x2x32xbf16>
    %283 = vector.shape_cast %282 : vector<1x2x32xbf16> to vector<2x32xbf16>
    %c0_256 = arith.constant 0 : index
    %c0_257 = arith.constant 0 : index
    %c0_258 = arith.constant 0 : index
    %284 = vector.load %arg2[%c0_256, %c0_257, %c0_258] : memref<3x32x256xbf16, #tpu.memory_space<vmem>>, vector<1x32x256xbf16>
    %285 = vector.shape_cast %284 : vector<1x32x256xbf16> to vector<32x256xbf16>
    %cst_259 = arith.constant dense<0.000000e+00> : vector<2x256xf32>
    %286 = tpu.matmul %283, %285, %cst_259 {dimension_numbers = #tpu.dot_dimension_numbers<[1], [0], [0], [1], [0, 0, 1, 1], [], []>} : vector<2x32xbf16>, vector<32x256xbf16>, vector<2x256xf32> -> vector<2x256xf32>
    %c19 = arith.constant 19 : index
    %c0_260 = arith.constant 0 : index
    %c0_261 = arith.constant 0 : index
    %287 = vector.load %arg1[%c19, %c0_260, %c0_261] : memref<34x2x32xbf16, #tpu.memory_space<vmem>>, vector<1x2x32xbf16>
    %288 = vector.shape_cast %287 : vector<1x2x32xbf16> to vector<2x32xbf16>
    %c1_262 = arith.constant 1 : index
    %c0_263 = arith.constant 0 : index
    %c0_264 = arith.constant 0 : index
    %289 = vector.load %arg2[%c1_262, %c0_263, %c0_264] : memref<3x32x256xbf16, #tpu.memory_space<vmem>>, vector<1x32x256xbf16>
    %290 = vector.shape_cast %289 : vector<1x32x256xbf16> to vector<32x256xbf16>
    %cst_265 = arith.constant dense<0.000000e+00> : vector<2x256xf32>
    %291 = tpu.matmul %288, %290, %cst_265 {dimension_numbers = #tpu.dot_dimension_numbers<[1], [0], [0], [1], [0, 0, 1, 1], [], []>} : vector<2x32xbf16>, vector<32x256xbf16>, vector<2x256xf32> -> vector<2x256xf32>
    %292 = arith.addf %286, %291 : vector<2x256xf32>
    %c20 = arith.constant 20 : index
    %c0_266 = arith.constant 0 : index
    %c0_267 = arith.constant 0 : index
    %293 = vector.load %arg1[%c20, %c0_266, %c0_267] : memref<34x2x32xbf16, #tpu.memory_space<vmem>>, vector<1x2x32xbf16>
    %294 = vector.shape_cast %293 : vector<1x2x32xbf16> to vector<2x32xbf16>
    %c2_268 = arith.constant 2 : index
    %c0_269 = arith.constant 0 : index
    %c0_270 = arith.constant 0 : index
    %295 = vector.load %arg2[%c2_268, %c0_269, %c0_270] : memref<3x32x256xbf16, #tpu.memory_space<vmem>>, vector<1x32x256xbf16>
    %296 = vector.shape_cast %295 : vector<1x32x256xbf16> to vector<32x256xbf16>
    %cst_271 = arith.constant dense<0.000000e+00> : vector<2x256xf32>
    %297 = tpu.matmul %294, %296, %cst_271 {dimension_numbers = #tpu.dot_dimension_numbers<[1], [0], [0], [1], [0, 0, 1, 1], [], []>} : vector<2x32xbf16>, vector<32x256xbf16>, vector<2x256xf32> -> vector<2x256xf32>
    %298 = arith.addf %292, %297 : vector<2x256xf32>
    %c0_272 = arith.constant 0 : index
    %c0_273 = arith.constant 0 : index
    %299 = vector.load %arg3[%c0_272, %c0_273] : memref<1x256xf32, #tpu.memory_space<vmem>>, vector<1x256xf32>
    %300 = vector.broadcast %299 : vector<1x256xf32> to vector<2x256xf32>
    %301 = arith.addf %298, %300 : vector<2x256xf32>
    %cst_274 = arith.constant 0.000000e+00 : f32
    %302 = vector.broadcast %cst_274 : f32 to vector<2x256xf32>
    %303 = arith.cmpf ogt, %301, %302 : vector<2x256xf32>
    %cst_275 = arith.constant 2.000000e-01 : f32
    %304 = vector.broadcast %cst_275 : f32 to vector<2x256xf32>
    %305 = arith.mulf %304, %301 : vector<2x256xf32>
    %306 = arith.select %303, %301, %305 : vector<2x256xi1>, vector<2x256xf32>
    %307 = arith.truncf %306 : vector<2x256xf32> to vector<2x256xbf16>
    %c10_276 = arith.constant 10 : index
    %c0_277 = arith.constant 0 : index
    %c0_278 = arith.constant 0 : index
    %308 = vector.load %arg22[%c10_276, %c0_277, %c0_278] : memref<18x2x256xbf16, #tpu.memory_space<vmem>>, vector<1x2x256xbf16>
    %309 = vector.shape_cast %308 : vector<1x2x256xbf16> to vector<2x256xbf16>
    %310 = vector.shape_cast %307 : vector<2x256xbf16> to vector<1x2x256xbf16>
    tpu.vector_store %arg22[%c10_276, %c0_277, %c0_278], %310 {strides = array<i32>} : memref<18x2x256xbf16, #tpu.memory_space<vmem>>, vector<1x2x256xbf16>,
    %c20_279 = arith.constant 20 : index
    %c0_280 = arith.constant 0 : index
    %c0_281 = arith.constant 0 : index
    %311 = vector.load %arg1[%c20_279, %c0_280, %c0_281] : memref<34x2x32xbf16, #tpu.memory_space<vmem>>, vector<1x2x32xbf16>
    %312 = vector.shape_cast %311 : vector<1x2x32xbf16> to vector<2x32xbf16>
    %c0_282 = arith.constant 0 : index
    %c0_283 = arith.constant 0 : index
    %c0_284 = arith.constant 0 : index
    %313 = vector.load %arg2[%c0_282, %c0_283, %c0_284] : memref<3x32x256xbf16, #tpu.memory_space<vmem>>, vector<1x32x256xbf16>
    %314 = vector.shape_cast %313 : vector<1x32x256xbf16> to vector<32x256xbf16>
    %cst_285 = arith.constant dense<0.000000e+00> : vector<2x256xf32>
    %315 = tpu.matmul %312, %314, %cst_285 {dimension_numbers = #tpu.dot_dimension_numbers<[1], [0], [0], [1], [0, 0, 1, 1], [], []>} : vector<2x32xbf16>, vector<32x256xbf16>, vector<2x256xf32> -> vector<2x256xf32>
    %c21 = arith.constant 21 : index
    %c0_286 = arith.constant 0 : index
    %c0_287 = arith.constant 0 : index
    %316 = vector.load %arg1[%c21, %c0_286, %c0_287] : memref<34x2x32xbf16, #tpu.memory_space<vmem>>, vector<1x2x32xbf16>
    %317 = vector.shape_cast %316 : vector<1x2x32xbf16> to vector<2x32xbf16>
    %c1_288 = arith.constant 1 : index
    %c0_289 = arith.constant 0 : index
    %c0_290 = arith.constant 0 : index
    %318 = vector.load %arg2[%c1_288, %c0_289, %c0_290] : memref<3x32x256xbf16, #tpu.memory_space<vmem>>, vector<1x32x256xbf16>
    %319 = vector.shape_cast %318 : vector<1x32x256xbf16> to vector<32x256xbf16>
    %cst_291 = arith.constant dense<0.000000e+00> : vector<2x256xf32>
    %320 = tpu.matmul %317, %319, %cst_291 {dimension_numbers = #tpu.dot_dimension_numbers<[1], [0], [0], [1], [0, 0, 1, 1], [], []>} : vector<2x32xbf16>, vector<32x256xbf16>, vector<2x256xf32> -> vector<2x256xf32>
    %321 = arith.addf %315, %320 : vector<2x256xf32>
    %c22 = arith.constant 22 : index
    %c0_292 = arith.constant 0 : index
    %c0_293 = arith.constant 0 : index
    %322 = vector.load %arg1[%c22, %c0_292, %c0_293] : memref<34x2x32xbf16, #tpu.memory_space<vmem>>, vector<1x2x32xbf16>
    %323 = vector.shape_cast %322 : vector<1x2x32xbf16> to vector<2x32xbf16>
    %c2_294 = arith.constant 2 : index
    %c0_295 = arith.constant 0 : index
    %c0_296 = arith.constant 0 : index
    %324 = vector.load %arg2[%c2_294, %c0_295, %c0_296] : memref<3x32x256xbf16, #tpu.memory_space<vmem>>, vector<1x32x256xbf16>
    %325 = vector.shape_cast %324 : vector<1x32x256xbf16> to vector<32x256xbf16>
    %cst_297 = arith.constant dense<0.000000e+00> : vector<2x256xf32>
    %326 = tpu.matmul %323, %325, %cst_297 {dimension_numbers = #tpu.dot_dimension_numbers<[1], [0], [0], [1], [0, 0, 1, 1], [], []>} : vector<2x32xbf16>, vector<32x256xbf16>, vector<2x256xf32> -> vector<2x256xf32>
    %327 = arith.addf %321, %326 : vector<2x256xf32>
    %c0_298 = arith.constant 0 : index
    %c0_299 = arith.constant 0 : index
    %328 = vector.load %arg3[%c0_298, %c0_299] : memref<1x256xf32, #tpu.memory_space<vmem>>, vector<1x256xf32>
    %329 = vector.broadcast %328 : vector<1x256xf32> to vector<2x256xf32>
    %330 = arith.addf %327, %329 : vector<2x256xf32>
    %cst_300 = arith.constant 0.000000e+00 : f32
    %331 = vector.broadcast %cst_300 : f32 to vector<2x256xf32>
    %332 = arith.cmpf ogt, %330, %331 : vector<2x256xf32>
    %cst_301 = arith.constant 2.000000e-01 : f32
    %333 = vector.broadcast %cst_301 : f32 to vector<2x256xf32>
    %334 = arith.mulf %333, %330 : vector<2x256xf32>
    %335 = arith.select %332, %330, %334 : vector<2x256xi1>, vector<2x256xf32>
    %336 = arith.truncf %335 : vector<2x256xf32> to vector<2x256xbf16>
    %c11_302 = arith.constant 11 : index
    %c0_303 = arith.constant 0 : index
    %c0_304 = arith.constant 0 : index
    %337 = vector.load %arg22[%c11_302, %c0_303, %c0_304] : memref<18x2x256xbf16, #tpu.memory_space<vmem>>, vector<1x2x256xbf16>
    %338 = vector.shape_cast %337 : vector<1x2x256xbf16> to vector<2x256xbf16>
    %339 = vector.shape_cast %336 : vector<2x256xbf16> to vector<1x2x256xbf16>
    tpu.vector_store %arg22[%c11_302, %c0_303, %c0_304], %339 {strides = array<i32>} : memref<18x2x256xbf16, #tpu.memory_space<vmem>>, vector<1x2x256xbf16>,
    %c22_305 = arith.constant 22 : index
    %c0_306 = arith.constant 0 : index
    %c0_307 = arith.constant 0 : index
    %340 = vector.load %arg1[%c22_305, %c0_306, %c0_307] : memref<34x2x32xbf16, #tpu.memory_space<vmem>>, vector<1x2x32xbf16>
    %341 = vector.shape_cast %340 : vector<1x2x32xbf16> to vector<2x32xbf16>
    %c0_308 = arith.constant 0 : index
    %c0_309 = arith.constant 0 : index
    %c0_310 = arith.constant 0 : index
    %342 = vector.load %arg2[%c0_308, %c0_309, %c0_310] : memref<3x32x256xbf16, #tpu.memory_space<vmem>>, vector<1x32x256xbf16>
    %343 = vector.shape_cast %342 : vector<1x32x256xbf16> to vector<32x256xbf16>
    %cst_311 = arith.constant dense<0.000000e+00> : vector<2x256xf32>
    %344 = tpu.matmul %341, %343, %cst_311 {dimension_numbers = #tpu.dot_dimension_numbers<[1], [0], [0], [1], [0, 0, 1, 1], [], []>} : vector<2x32xbf16>, vector<32x256xbf16>, vector<2x256xf32> -> vector<2x256xf32>
    %c23 = arith.constant 23 : index
    %c0_312 = arith.constant 0 : index
    %c0_313 = arith.constant 0 : index
    %345 = vector.load %arg1[%c23, %c0_312, %c0_313] : memref<34x2x32xbf16, #tpu.memory_space<vmem>>, vector<1x2x32xbf16>
    %346 = vector.shape_cast %345 : vector<1x2x32xbf16> to vector<2x32xbf16>
    %c1_314 = arith.constant 1 : index
    %c0_315 = arith.constant 0 : index
    %c0_316 = arith.constant 0 : index
    %347 = vector.load %arg2[%c1_314, %c0_315, %c0_316] : memref<3x32x256xbf16, #tpu.memory_space<vmem>>, vector<1x32x256xbf16>
    %348 = vector.shape_cast %347 : vector<1x32x256xbf16> to vector<32x256xbf16>
    %cst_317 = arith.constant dense<0.000000e+00> : vector<2x256xf32>
    %349 = tpu.matmul %346, %348, %cst_317 {dimension_numbers = #tpu.dot_dimension_numbers<[1], [0], [0], [1], [0, 0, 1, 1], [], []>} : vector<2x32xbf16>, vector<32x256xbf16>, vector<2x256xf32> -> vector<2x256xf32>
    %350 = arith.addf %344, %349 : vector<2x256xf32>
    %c24 = arith.constant 24 : index
    %c0_318 = arith.constant 0 : index
    %c0_319 = arith.constant 0 : index
    %351 = vector.load %arg1[%c24, %c0_318, %c0_319] : memref<34x2x32xbf16, #tpu.memory_space<vmem>>, vector<1x2x32xbf16>
    %352 = vector.shape_cast %351 : vector<1x2x32xbf16> to vector<2x32xbf16>
    %c2_320 = arith.constant 2 : index
    %c0_321 = arith.constant 0 : index
    %c0_322 = arith.constant 0 : index
    %353 = vector.load %arg2[%c2_320, %c0_321, %c0_322] : memref<3x32x256xbf16, #tpu.memory_space<vmem>>, vector<1x32x256xbf16>
    %354 = vector.shape_cast %353 : vector<1x32x256xbf16> to vector<32x256xbf16>
    %cst_323 = arith.constant dense<0.000000e+00> : vector<2x256xf32>
    %355 = tpu.matmul %352, %354, %cst_323 {dimension_numbers = #tpu.dot_dimension_numbers<[1], [0], [0], [1], [0, 0, 1, 1], [], []>} : vector<2x32xbf16>, vector<32x256xbf16>, vector<2x256xf32> -> vector<2x256xf32>
    %356 = arith.addf %350, %355 : vector<2x256xf32>
    %c0_324 = arith.constant 0 : index
    %c0_325 = arith.constant 0 : index
    %357 = vector.load %arg3[%c0_324, %c0_325] : memref<1x256xf32, #tpu.memory_space<vmem>>, vector<1x256xf32>
    %358 = vector.broadcast %357 : vector<1x256xf32> to vector<2x256xf32>
    %359 = arith.addf %356, %358 : vector<2x256xf32>
    %cst_326 = arith.constant 0.000000e+00 : f32
    %360 = vector.broadcast %cst_326 : f32 to vector<2x256xf32>
    %361 = arith.cmpf ogt, %359, %360 : vector<2x256xf32>
    %cst_327 = arith.constant 2.000000e-01 : f32
    %362 = vector.broadcast %cst_327 : f32 to vector<2x256xf32>
    %363 = arith.mulf %362, %359 : vector<2x256xf32>
    %364 = arith.select %361, %359, %363 : vector<2x256xi1>, vector<2x256xf32>
    %365 = arith.truncf %364 : vector<2x256xf32> to vector<2x256xbf16>
    %c12_328 = arith.constant 12 : index
    %c0_329 = arith.constant 0 : index
    %c0_330 = arith.constant 0 : index
    %366 = vector.load %arg22[%c12_328, %c0_329, %c0_330] : memref<18x2x256xbf16, #tpu.memory_space<vmem>>, vector<1x2x256xbf16>
    %367 = vector.shape_cast %366 : vector<1x2x256xbf16> to vector<2x256xbf16>
    %368 = vector.shape_cast %365 : vector<2x256xbf16> to vector<1x2x256xbf16>
    tpu.vector_store %arg22[%c12_328, %c0_329, %c0_330], %368 {strides = array<i32>} : memref<18x2x256xbf16, #tpu.memory_space<vmem>>, vector<1x2x256xbf16>,
    %c24_331 = arith.constant 24 : index
    %c0_332 = arith.constant 0 : index
    %c0_333 = arith.constant 0 : index
    %369 = vector.load %arg1[%c24_331, %c0_332, %c0_333] : memref<34x2x32xbf16, #tpu.memory_space<vmem>>, vector<1x2x32xbf16>
    %370 = vector.shape_cast %369 : vector<1x2x32xbf16> to vector<2x32xbf16>
    %c0_334 = arith.constant 0 : index
    %c0_335 = arith.constant 0 : index
    %c0_336 = arith.constant 0 : index
    %371 = vector.load %arg2[%c0_334, %c0_335, %c0_336] : memref<3x32x256xbf16, #tpu.memory_space<vmem>>, vector<1x32x256xbf16>
    %372 = vector.shape_cast %371 : vector<1x32x256xbf16> to vector<32x256xbf16>
    %cst_337 = arith.constant dense<0.000000e+00> : vector<2x256xf32>
    %373 = tpu.matmul %370, %372, %cst_337 {dimension_numbers = #tpu.dot_dimension_numbers<[1], [0], [0], [1], [0, 0, 1, 1], [], []>} : vector<2x32xbf16>, vector<32x256xbf16>, vector<2x256xf32> -> vector<2x256xf32>
    %c25 = arith.constant 25 : index
    %c0_338 = arith.constant 0 : index
    %c0_339 = arith.constant 0 : index
    %374 = vector.load %arg1[%c25, %c0_338, %c0_339] : memref<34x2x32xbf16, #tpu.memory_space<vmem>>, vector<1x2x32xbf16>
    %375 = vector.shape_cast %374 : vector<1x2x32xbf16> to vector<2x32xbf16>
    %c1_340 = arith.constant 1 : index
    %c0_341 = arith.constant 0 : index
    %c0_342 = arith.constant 0 : index
    %376 = vector.load %arg2[%c1_340, %c0_341, %c0_342] : memref<3x32x256xbf16, #tpu.memory_space<vmem>>, vector<1x32x256xbf16>
    %377 = vector.shape_cast %376 : vector<1x32x256xbf16> to vector<32x256xbf16>
    %cst_343 = arith.constant dense<0.000000e+00> : vector<2x256xf32>
    %378 = tpu.matmul %375, %377, %cst_343 {dimension_numbers = #tpu.dot_dimension_numbers<[1], [0], [0], [1], [0, 0, 1, 1], [], []>} : vector<2x32xbf16>, vector<32x256xbf16>, vector<2x256xf32> -> vector<2x256xf32>
    %379 = arith.addf %373, %378 : vector<2x256xf32>
    %c26 = arith.constant 26 : index
    %c0_344 = arith.constant 0 : index
    %c0_345 = arith.constant 0 : index
    %380 = vector.load %arg1[%c26, %c0_344, %c0_345] : memref<34x2x32xbf16, #tpu.memory_space<vmem>>, vector<1x2x32xbf16>
    %381 = vector.shape_cast %380 : vector<1x2x32xbf16> to vector<2x32xbf16>
    %c2_346 = arith.constant 2 : index
    %c0_347 = arith.constant 0 : index
    %c0_348 = arith.constant 0 : index
    %382 = vector.load %arg2[%c2_346, %c0_347, %c0_348] : memref<3x32x256xbf16, #tpu.memory_space<vmem>>, vector<1x32x256xbf16>
    %383 = vector.shape_cast %382 : vector<1x32x256xbf16> to vector<32x256xbf16>
    %cst_349 = arith.constant dense<0.000000e+00> : vector<2x256xf32>
    %384 = tpu.matmul %381, %383, %cst_349 {dimension_numbers = #tpu.dot_dimension_numbers<[1], [0], [0], [1], [0, 0, 1, 1], [], []>} : vector<2x32xbf16>, vector<32x256xbf16>, vector<2x256xf32> -> vector<2x256xf32>
    %385 = arith.addf %379, %384 : vector<2x256xf32>
    %c0_350 = arith.constant 0 : index
    %c0_351 = arith.constant 0 : index
    %386 = vector.load %arg3[%c0_350, %c0_351] : memref<1x256xf32, #tpu.memory_space<vmem>>, vector<1x256xf32>
    %387 = vector.broadcast %386 : vector<1x256xf32> to vector<2x256xf32>
    %388 = arith.addf %385, %387 : vector<2x256xf32>
    %cst_352 = arith.constant 0.000000e+00 : f32
    %389 = vector.broadcast %cst_352 : f32 to vector<2x256xf32>
    %390 = arith.cmpf ogt, %388, %389 : vector<2x256xf32>
    %cst_353 = arith.constant 2.000000e-01 : f32
    %391 = vector.broadcast %cst_353 : f32 to vector<2x256xf32>
    %392 = arith.mulf %391, %388 : vector<2x256xf32>
    %393 = arith.select %390, %388, %392 : vector<2x256xi1>, vector<2x256xf32>
    %394 = arith.truncf %393 : vector<2x256xf32> to vector<2x256xbf16>
    %c13_354 = arith.constant 13 : index
    %c0_355 = arith.constant 0 : index
    %c0_356 = arith.constant 0 : index
    %395 = vector.load %arg22[%c13_354, %c0_355, %c0_356] : memref<18x2x256xbf16, #tpu.memory_space<vmem>>, vector<1x2x256xbf16>
    %396 = vector.shape_cast %395 : vector<1x2x256xbf16> to vector<2x256xbf16>
    %397 = vector.shape_cast %394 : vector<2x256xbf16> to vector<1x2x256xbf16>
    tpu.vector_store %arg22[%c13_354, %c0_355, %c0_356], %397 {strides = array<i32>} : memref<18x2x256xbf16, #tpu.memory_space<vmem>>, vector<1x2x256xbf16>,
    %c26_357 = arith.constant 26 : index
    %c0_358 = arith.constant 0 : index
    %c0_359 = arith.constant 0 : index
    %398 = vector.load %arg1[%c26_357, %c0_358, %c0_359] : memref<34x2x32xbf16, #tpu.memory_space<vmem>>, vector<1x2x32xbf16>
    %399 = vector.shape_cast %398 : vector<1x2x32xbf16> to vector<2x32xbf16>
    %c0_360 = arith.constant 0 : index
    %c0_361 = arith.constant 0 : index
    %c0_362 = arith.constant 0 : index
    %400 = vector.load %arg2[%c0_360, %c0_361, %c0_362] : memref<3x32x256xbf16, #tpu.memory_space<vmem>>, vector<1x32x256xbf16>
    %401 = vector.shape_cast %400 : vector<1x32x256xbf16> to vector<32x256xbf16>
    %cst_363 = arith.constant dense<0.000000e+00> : vector<2x256xf32>
    %402 = tpu.matmul %399, %401, %cst_363 {dimension_numbers = #tpu.dot_dimension_numbers<[1], [0], [0], [1], [0, 0, 1, 1], [], []>} : vector<2x32xbf16>, vector<32x256xbf16>, vector<2x256xf32> -> vector<2x256xf32>
    %c27 = arith.constant 27 : index
    %c0_364 = arith.constant 0 : index
    %c0_365 = arith.constant 0 : index
    %403 = vector.load %arg1[%c27, %c0_364, %c0_365] : memref<34x2x32xbf16, #tpu.memory_space<vmem>>, vector<1x2x32xbf16>
    %404 = vector.shape_cast %403 : vector<1x2x32xbf16> to vector<2x32xbf16>
    %c1_366 = arith.constant 1 : index
    %c0_367 = arith.constant 0 : index
    %c0_368 = arith.constant 0 : index
    %405 = vector.load %arg2[%c1_366, %c0_367, %c0_368] : memref<3x32x256xbf16, #tpu.memory_space<vmem>>, vector<1x32x256xbf16>
    %406 = vector.shape_cast %405 : vector<1x32x256xbf16> to vector<32x256xbf16>
    %cst_369 = arith.constant dense<0.000000e+00> : vector<2x256xf32>
    %407 = tpu.matmul %404, %406, %cst_369 {dimension_numbers = #tpu.dot_dimension_numbers<[1], [0], [0], [1], [0, 0, 1, 1], [], []>} : vector<2x32xbf16>, vector<32x256xbf16>, vector<2x256xf32> -> vector<2x256xf32>
    %408 = arith.addf %402, %407 : vector<2x256xf32>
    %c28 = arith.constant 28 : index
    %c0_370 = arith.constant 0 : index
    %c0_371 = arith.constant 0 : index
    %409 = vector.load %arg1[%c28, %c0_370, %c0_371] : memref<34x2x32xbf16, #tpu.memory_space<vmem>>, vector<1x2x32xbf16>
    %410 = vector.shape_cast %409 : vector<1x2x32xbf16> to vector<2x32xbf16>
    %c2_372 = arith.constant 2 : index
    %c0_373 = arith.constant 0 : index
    %c0_374 = arith.constant 0 : index
    %411 = vector.load %arg2[%c2_372, %c0_373, %c0_374] : memref<3x32x256xbf16, #tpu.memory_space<vmem>>, vector<1x32x256xbf16>
    %412 = vector.shape_cast %411 : vector<1x32x256xbf16> to vector<32x256xbf16>
    %cst_375 = arith.constant dense<0.000000e+00> : vector<2x256xf32>
    %413 = tpu.matmul %410, %412, %cst_375 {dimension_numbers = #tpu.dot_dimension_numbers<[1], [0], [0], [1], [0, 0, 1, 1], [], []>} : vector<2x32xbf16>, vector<32x256xbf16>, vector<2x256xf32> -> vector<2x256xf32>
    %414 = arith.addf %408, %413 : vector<2x256xf32>
    %c0_376 = arith.constant 0 : index
    %c0_377 = arith.constant 0 : index
    %415 = vector.load %arg3[%c0_376, %c0_377] : memref<1x256xf32, #tpu.memory_space<vmem>>, vector<1x256xf32>
    %416 = vector.broadcast %415 : vector<1x256xf32> to vector<2x256xf32>
    %417 = arith.addf %414, %416 : vector<2x256xf32>
    %cst_378 = arith.constant 0.000000e+00 : f32
    %418 = vector.broadcast %cst_378 : f32 to vector<2x256xf32>
    %419 = arith.cmpf ogt, %417, %418 : vector<2x256xf32>
    %cst_379 = arith.constant 2.000000e-01 : f32
    %420 = vector.broadcast %cst_379 : f32 to vector<2x256xf32>
    %421 = arith.mulf %420, %417 : vector<2x256xf32>
    %422 = arith.select %419, %417, %421 : vector<2x256xi1>, vector<2x256xf32>
    %423 = arith.truncf %422 : vector<2x256xf32> to vector<2x256xbf16>
    %c14_380 = arith.constant 14 : index
    %c0_381 = arith.constant 0 : index
    %c0_382 = arith.constant 0 : index
    %424 = vector.load %arg22[%c14_380, %c0_381, %c0_382] : memref<18x2x256xbf16, #tpu.memory_space<vmem>>, vector<1x2x256xbf16>
    %425 = vector.shape_cast %424 : vector<1x2x256xbf16> to vector<2x256xbf16>
    %426 = vector.shape_cast %423 : vector<2x256xbf16> to vector<1x2x256xbf16>
    tpu.vector_store %arg22[%c14_380, %c0_381, %c0_382], %426 {strides = array<i32>} : memref<18x2x256xbf16, #tpu.memory_space<vmem>>, vector<1x2x256xbf16>,
    %c28_383 = arith.constant 28 : index
    %c0_384 = arith.constant 0 : index
    %c0_385 = arith.constant 0 : index
    %427 = vector.load %arg1[%c28_383, %c0_384, %c0_385] : memref<34x2x32xbf16, #tpu.memory_space<vmem>>, vector<1x2x32xbf16>
    %428 = vector.shape_cast %427 : vector<1x2x32xbf16> to vector<2x32xbf16>
    %c0_386 = arith.constant 0 : index
    %c0_387 = arith.constant 0 : index
    %c0_388 = arith.constant 0 : index
    %429 = vector.load %arg2[%c0_386, %c0_387, %c0_388] : memref<3x32x256xbf16, #tpu.memory_space<vmem>>, vector<1x32x256xbf16>
    %430 = vector.shape_cast %429 : vector<1x32x256xbf16> to vector<32x256xbf16>
    %cst_389 = arith.constant dense<0.000000e+00> : vector<2x256xf32>
    %431 = tpu.matmul %428, %430, %cst_389 {dimension_numbers = #tpu.dot_dimension_numbers<[1], [0], [0], [1], [0, 0, 1, 1], [], []>} : vector<2x32xbf16>, vector<32x256xbf16>, vector<2x256xf32> -> vector<2x256xf32>
    %c29 = arith.constant 29 : index
    %c0_390 = arith.constant 0 : index
    %c0_391 = arith.constant 0 : index
    %432 = vector.load %arg1[%c29, %c0_390, %c0_391] : memref<34x2x32xbf16, #tpu.memory_space<vmem>>, vector<1x2x32xbf16>
    %433 = vector.shape_cast %432 : vector<1x2x32xbf16> to vector<2x32xbf16>
    %c1_392 = arith.constant 1 : index
    %c0_393 = arith.constant 0 : index
    %c0_394 = arith.constant 0 : index
    %434 = vector.load %arg2[%c1_392, %c0_393, %c0_394] : memref<3x32x256xbf16, #tpu.memory_space<vmem>>, vector<1x32x256xbf16>
    %435 = vector.shape_cast %434 : vector<1x32x256xbf16> to vector<32x256xbf16>
    %cst_395 = arith.constant dense<0.000000e+00> : vector<2x256xf32>
    %436 = tpu.matmul %433, %435, %cst_395 {dimension_numbers = #tpu.dot_dimension_numbers<[1], [0], [0], [1], [0, 0, 1, 1], [], []>} : vector<2x32xbf16>, vector<32x256xbf16>, vector<2x256xf32> -> vector<2x256xf32>
    %437 = arith.addf %431, %436 : vector<2x256xf32>
    %c30 = arith.constant 30 : index
    %c0_396 = arith.constant 0 : index
    %c0_397 = arith.constant 0 : index
    %438 = vector.load %arg1[%c30, %c0_396, %c0_397] : memref<34x2x32xbf16, #tpu.memory_space<vmem>>, vector<1x2x32xbf16>
    %439 = vector.shape_cast %438 : vector<1x2x32xbf16> to vector<2x32xbf16>
    %c2_398 = arith.constant 2 : index
    %c0_399 = arith.constant 0 : index
    %c0_400 = arith.constant 0 : index
    %440 = vector.load %arg2[%c2_398, %c0_399, %c0_400] : memref<3x32x256xbf16, #tpu.memory_space<vmem>>, vector<1x32x256xbf16>
    %441 = vector.shape_cast %440 : vector<1x32x256xbf16> to vector<32x256xbf16>
    %cst_401 = arith.constant dense<0.000000e+00> : vector<2x256xf32>
    %442 = tpu.matmul %439, %441, %cst_401 {dimension_numbers = #tpu.dot_dimension_numbers<[1], [0], [0], [1], [0, 0, 1, 1], [], []>} : vector<2x32xbf16>, vector<32x256xbf16>, vector<2x256xf32> -> vector<2x256xf32>
    %443 = arith.addf %437, %442 : vector<2x256xf32>
    %c0_402 = arith.constant 0 : index
    %c0_403 = arith.constant 0 : index
    %444 = vector.load %arg3[%c0_402, %c0_403] : memref<1x256xf32, #tpu.memory_space<vmem>>, vector<1x256xf32>
    %445 = vector.broadcast %444 : vector<1x256xf32> to vector<2x256xf32>
    %446 = arith.addf %443, %445 : vector<2x256xf32>
    %cst_404 = arith.constant 0.000000e+00 : f32
    %447 = vector.broadcast %cst_404 : f32 to vector<2x256xf32>
    %448 = arith.cmpf ogt, %446, %447 : vector<2x256xf32>
    %cst_405 = arith.constant 2.000000e-01 : f32
    %449 = vector.broadcast %cst_405 : f32 to vector<2x256xf32>
    %450 = arith.mulf %449, %446 : vector<2x256xf32>
    %451 = arith.select %448, %446, %450 : vector<2x256xi1>, vector<2x256xf32>
    %452 = arith.truncf %451 : vector<2x256xf32> to vector<2x256xbf16>
    %c15_406 = arith.constant 15 : index
    %c0_407 = arith.constant 0 : index
    %c0_408 = arith.constant 0 : index
    %453 = vector.load %arg22[%c15_406, %c0_407, %c0_408] : memref<18x2x256xbf16, #tpu.memory_space<vmem>>, vector<1x2x256xbf16>
    %454 = vector.shape_cast %453 : vector<1x2x256xbf16> to vector<2x256xbf16>
    %455 = vector.shape_cast %452 : vector<2x256xbf16> to vector<1x2x256xbf16>
    tpu.vector_store %arg22[%c15_406, %c0_407, %c0_408], %455 {strides = array<i32>} : memref<18x2x256xbf16, #tpu.memory_space<vmem>>, vector<1x2x256xbf16>,
    %c30_409 = arith.constant 30 : index
    %c0_410 = arith.constant 0 : index
    %c0_411 = arith.constant 0 : index
    %456 = vector.load %arg1[%c30_409, %c0_410, %c0_411] : memref<34x2x32xbf16, #tpu.memory_space<vmem>>, vector<1x2x32xbf16>
    %457 = vector.shape_cast %456 : vector<1x2x32xbf16> to vector<2x32xbf16>
    %c0_412 = arith.constant 0 : index
    %c0_413 = arith.constant 0 : index
    %c0_414 = arith.constant 0 : index
    %458 = vector.load %arg2[%c0_412, %c0_413, %c0_414] : memref<3x32x256xbf16, #tpu.memory_space<vmem>>, vector<1x32x256xbf16>
    %459 = vector.shape_cast %458 : vector<1x32x256xbf16> to vector<32x256xbf16>
    %cst_415 = arith.constant dense<0.000000e+00> : vector<2x256xf32>
    %460 = tpu.matmul %457, %459, %cst_415 {dimension_numbers = #tpu.dot_dimension_numbers<[1], [0], [0], [1], [0, 0, 1, 1], [], []>} : vector<2x32xbf16>, vector<32x256xbf16>, vector<2x256xf32> -> vector<2x256xf32>
    %c31 = arith.constant 31 : index
    %c0_416 = arith.constant 0 : index
    %c0_417 = arith.constant 0 : index
    %461 = vector.load %arg1[%c31, %c0_416, %c0_417] : memref<34x2x32xbf16, #tpu.memory_space<vmem>>, vector<1x2x32xbf16>
    %462 = vector.shape_cast %461 : vector<1x2x32xbf16> to vector<2x32xbf16>
    %c1_418 = arith.constant 1 : index
    %c0_419 = arith.constant 0 : index
    %c0_420 = arith.constant 0 : index
    %463 = vector.load %arg2[%c1_418, %c0_419, %c0_420] : memref<3x32x256xbf16, #tpu.memory_space<vmem>>, vector<1x32x256xbf16>
    %464 = vector.shape_cast %463 : vector<1x32x256xbf16> to vector<32x256xbf16>
    %cst_421 = arith.constant dense<0.000000e+00> : vector<2x256xf32>
    %465 = tpu.matmul %462, %464, %cst_421 {dimension_numbers = #tpu.dot_dimension_numbers<[1], [0], [0], [1], [0, 0, 1, 1], [], []>} : vector<2x32xbf16>, vector<32x256xbf16>, vector<2x256xf32> -> vector<2x256xf32>
    %466 = arith.addf %460, %465 : vector<2x256xf32>
    %c32 = arith.constant 32 : index
    %c0_422 = arith.constant 0 : index
    %c0_423 = arith.constant 0 : index
    %467 = vector.load %arg1[%c32, %c0_422, %c0_423] : memref<34x2x32xbf16, #tpu.memory_space<vmem>>, vector<1x2x32xbf16>
    %468 = vector.shape_cast %467 : vector<1x2x32xbf16> to vector<2x32xbf16>
    %c2_424 = arith.constant 2 : index
    %c0_425 = arith.constant 0 : index
    %c0_426 = arith.constant 0 : index
    %469 = vector.load %arg2[%c2_424, %c0_425, %c0_426] : memref<3x32x256xbf16, #tpu.memory_space<vmem>>, vector<1x32x256xbf16>
    %470 = vector.shape_cast %469 : vector<1x32x256xbf16> to vector<32x256xbf16>
    %cst_427 = arith.constant dense<0.000000e+00> : vector<2x256xf32>
    %471 = tpu.matmul %468, %470, %cst_427 {dimension_numbers = #tpu.dot_dimension_numbers<[1], [0], [0], [1], [0, 0, 1, 1], [], []>} : vector<2x32xbf16>, vector<32x256xbf16>, vector<2x256xf32> -> vector<2x256xf32>
    %472 = arith.addf %466, %471 : vector<2x256xf32>
    %c0_428 = arith.constant 0 : index
    %c0_429 = arith.constant 0 : index
    %473 = vector.load %arg3[%c0_428, %c0_429] : memref<1x256xf32, #tpu.memory_space<vmem>>, vector<1x256xf32>
    %474 = vector.broadcast %473 : vector<1x256xf32> to vector<2x256xf32>
    %475 = arith.addf %472, %474 : vector<2x256xf32>
    %cst_430 = arith.constant 0.000000e+00 : f32
    %476 = vector.broadcast %cst_430 : f32 to vector<2x256xf32>
    %477 = arith.cmpf ogt, %475, %476 : vector<2x256xf32>
    %cst_431 = arith.constant 2.000000e-01 : f32
    %478 = vector.broadcast %cst_431 : f32 to vector<2x256xf32>
    %479 = arith.mulf %478, %475 : vector<2x256xf32>
    %480 = arith.select %477, %475, %479 : vector<2x256xi1>, vector<2x256xf32>
    %481 = arith.truncf %480 : vector<2x256xf32> to vector<2x256xbf16>
    %c16_432 = arith.constant 16 : index
    %c0_433 = arith.constant 0 : index
    %c0_434 = arith.constant 0 : index
    %482 = vector.load %arg22[%c16_432, %c0_433, %c0_434] : memref<18x2x256xbf16, #tpu.memory_space<vmem>>, vector<1x2x256xbf16>
    %483 = vector.shape_cast %482 : vector<1x2x256xbf16> to vector<2x256xbf16>
    %484 = vector.shape_cast %481 : vector<2x256xbf16> to vector<1x2x256xbf16>
    tpu.vector_store %arg22[%c16_432, %c0_433, %c0_434], %484 {strides = array<i32>} : memref<18x2x256xbf16, #tpu.memory_space<vmem>>, vector<1x2x256xbf16>,
    %c0_435 = arith.constant 0 : index
    %c0_436 = arith.constant 0 : index
    %c0_437 = arith.constant 0 : index
    %485 = vector.load %arg22[%c0_435, %c0_436, %c0_437] : memref<18x2x256xbf16, #tpu.memory_space<vmem>>, vector<1x2x256xbf16>
    %486 = vector.shape_cast %485 : vector<1x2x256xbf16> to vector<2x256xbf16>
    %c0_438 = arith.constant 0 : index
    %c0_439 = arith.constant 0 : index
    %c0_440 = arith.constant 0 : index
    %487 = vector.load %arg4[%c0_438, %c0_439, %c0_440] : memref<3x256x256xbf16, #tpu.memory_space<vmem>>, vector<1x256x256xbf16>
    %488 = vector.shape_cast %487 : vector<1x256x256xbf16> to vector<256x256xbf16>
    %cst_441 = arith.constant dense<0.000000e+00> : vector<2x256xf32>
    %489 = tpu.matmul %486, %488, %cst_441 {dimension_numbers = #tpu.dot_dimension_numbers<[1], [0], [0], [1], [0, 0, 1, 1], [], []>} : vector<2x256xbf16>, vector<256x256xbf16>, vector<2x256xf32> -> vector<2x256xf32>
    %c1_442 = arith.constant 1 : index
    %c0_443 = arith.constant 0 : index
    %c0_444 = arith.constant 0 : index
    %490 = vector.load %arg22[%c1_442, %c0_443, %c0_444] : memref<18x2x256xbf16, #tpu.memory_space<vmem>>, vector<1x2x256xbf16>
    %491 = vector.shape_cast %490 : vector<1x2x256xbf16> to vector<2x256xbf16>
    %c1_445 = arith.constant 1 : index
    %c0_446 = arith.constant 0 : index
    %c0_447 = arith.constant 0 : index
    %492 = vector.load %arg4[%c1_445, %c0_446, %c0_447] : memref<3x256x256xbf16, #tpu.memory_space<vmem>>, vector<1x256x256xbf16>
    %493 = vector.shape_cast %492 : vector<1x256x256xbf16> to vector<256x256xbf16>
    %cst_448 = arith.constant dense<0.000000e+00> : vector<2x256xf32>
    %494 = tpu.matmul %491, %493, %cst_448 {dimension_numbers = #tpu.dot_dimension_numbers<[1], [0], [0], [1], [0, 0, 1, 1], [], []>} : vector<2x256xbf16>, vector<256x256xbf16>, vector<2x256xf32> -> vector<2x256xf32>
    %495 = arith.addf %489, %494 : vector<2x256xf32>
    %c2_449 = arith.constant 2 : index
    %c0_450 = arith.constant 0 : index
    %c0_451 = arith.constant 0 : index
    %496 = vector.load %arg22[%c2_449, %c0_450, %c0_451] : memref<18x2x256xbf16, #tpu.memory_space<vmem>>, vector<1x2x256xbf16>
    %497 = vector.shape_cast %496 : vector<1x2x256xbf16> to vector<2x256xbf16>
    %c2_452 = arith.constant 2 : index
    %c0_453 = arith.constant 0 : index
    %c0_454 = arith.constant 0 : index
    %498 = vector.load %arg4[%c2_452, %c0_453, %c0_454] : memref<3x256x256xbf16, #tpu.memory_space<vmem>>, vector<1x256x256xbf16>
    %499 = vector.shape_cast %498 : vector<1x256x256xbf16> to vector<256x256xbf16>
    %cst_455 = arith.constant dense<0.000000e+00> : vector<2x256xf32>
    %500 = tpu.matmul %497, %499, %cst_455 {dimension_numbers = #tpu.dot_dimension_numbers<[1], [0], [0], [1], [0, 0, 1, 1], [], []>} : vector<2x256xbf16>, vector<256x256xbf16>, vector<2x256xf32> -> vector<2x256xf32>
    %501 = arith.addf %495, %500 : vector<2x256xf32>
    %c0_456 = arith.constant 0 : index
    %c0_457 = arith.constant 0 : index
    %502 = vector.load %arg5[%c0_456, %c0_457] : memref<1x256xf32, #tpu.memory_space<vmem>>, vector<1x256xf32>
    %503 = vector.broadcast %502 : vector<1x256xf32> to vector<2x256xf32>
    %504 = arith.addf %501, %503 : vector<2x256xf32>
    %cst_458 = arith.constant 0.000000e+00 : f32
    %505 = vector.broadcast %cst_458 : f32 to vector<2x256xf32>
    %506 = arith.cmpf ogt, %504, %505 : vector<2x256xf32>
    %cst_459 = arith.constant 2.000000e-01 : f32
    %507 = vector.broadcast %cst_459 : f32 to vector<2x256xf32>
    %508 = arith.mulf %507, %504 : vector<2x256xf32>
    %509 = arith.select %506, %504, %508 : vector<2x256xi1>, vector<2x256xf32>
    %c0_460 = arith.constant 0 : index
    %c0_461 = arith.constant 0 : index
    %510 = vector.load %arg6[%c0_460, %c0_461] : memref<1x256xf32, #tpu.memory_space<vmem>>, vector<1x256xf32>
    %511 = vector.broadcast %510 : vector<1x256xf32> to vector<2x256xf32>
    %512 = arith.mulf %509, %511 : vector<2x256xf32>
    %c0_462 = arith.constant 0 : index
    %c0_463 = arith.constant 0 : index
    %513 = vector.load %arg7[%c0_462, %c0_463] : memref<1x256xf32, #tpu.memory_space<vmem>>, vector<1x256xf32>
    %514 = vector.broadcast %513 : vector<1x256xf32> to vector<2x256xf32>
    %515 = arith.addf %512, %514 : vector<2x256xf32>
    %516 = arith.truncf %515 : vector<2x256xf32> to vector<2x256xbf16>
    %c1_464 = arith.constant 1 : index
    %c0_465 = arith.constant 0 : index
    %c0_466 = arith.constant 0 : index
    %517 = vector.load %arg23[%c1_464, %c0_465, %c0_466] : memref<10x2x256xbf16, #tpu.memory_space<vmem>>, vector<1x2x256xbf16>
    %518 = vector.shape_cast %517 : vector<1x2x256xbf16> to vector<2x256xbf16>
    %519 = vector.shape_cast %516 : vector<2x256xbf16> to vector<1x2x256xbf16>
    tpu.vector_store %arg23[%c1_464, %c0_465, %c0_466], %519 {strides = array<i32>} : memref<10x2x256xbf16, #tpu.memory_space<vmem>>, vector<1x2x256xbf16>,
    %c2_467 = arith.constant 2 : index
    %c0_468 = arith.constant 0 : index
    %c0_469 = arith.constant 0 : index
    %520 = vector.load %arg22[%c2_467, %c0_468, %c0_469] : memref<18x2x256xbf16, #tpu.memory_space<vmem>>, vector<1x2x256xbf16>
    %521 = vector.shape_cast %520 : vector<1x2x256xbf16> to vector<2x256xbf16>
    %c0_470 = arith.constant 0 : index
    %c0_471 = arith.constant 0 : index
    %c0_472 = arith.constant 0 : index
    %522 = vector.load %arg4[%c0_470, %c0_471, %c0_472] : memref<3x256x256xbf16, #tpu.memory_space<vmem>>, vector<1x256x256xbf16>
    %523 = vector.shape_cast %522 : vector<1x256x256xbf16> to vector<256x256xbf16>
    %cst_473 = arith.constant dense<0.000000e+00> : vector<2x256xf32>
    %524 = tpu.matmul %521, %523, %cst_473 {dimension_numbers = #tpu.dot_dimension_numbers<[1], [0], [0], [1], [0, 0, 1, 1], [], []>} : vector<2x256xbf16>, vector<256x256xbf16>, vector<2x256xf32> -> vector<2x256xf32>
    %c3_474 = arith.constant 3 : index
    %c0_475 = arith.constant 0 : index
    %c0_476 = arith.constant 0 : index
    %525 = vector.load %arg22[%c3_474, %c0_475, %c0_476] : memref<18x2x256xbf16, #tpu.memory_space<vmem>>, vector<1x2x256xbf16>
    %526 = vector.shape_cast %525 : vector<1x2x256xbf16> to vector<2x256xbf16>
    %c1_477 = arith.constant 1 : index
    %c0_478 = arith.constant 0 : index
    %c0_479 = arith.constant 0 : index
    %527 = vector.load %arg4[%c1_477, %c0_478, %c0_479] : memref<3x256x256xbf16, #tpu.memory_space<vmem>>, vector<1x256x256xbf16>
    %528 = vector.shape_cast %527 : vector<1x256x256xbf16> to vector<256x256xbf16>
    %cst_480 = arith.constant dense<0.000000e+00> : vector<2x256xf32>
    %529 = tpu.matmul %526, %528, %cst_480 {dimension_numbers = #tpu.dot_dimension_numbers<[1], [0], [0], [1], [0, 0, 1, 1], [], []>} : vector<2x256xbf16>, vector<256x256xbf16>, vector<2x256xf32> -> vector<2x256xf32>
    %530 = arith.addf %524, %529 : vector<2x256xf32>
    %c4_481 = arith.constant 4 : index
    %c0_482 = arith.constant 0 : index
    %c0_483 = arith.constant 0 : index
    %531 = vector.load %arg22[%c4_481, %c0_482, %c0_483] : memref<18x2x256xbf16, #tpu.memory_space<vmem>>, vector<1x2x256xbf16>
    %532 = vector.shape_cast %531 : vector<1x2x256xbf16> to vector<2x256xbf16>
    %c2_484 = arith.constant 2 : index
    %c0_485 = arith.constant 0 : index
    %c0_486 = arith.constant 0 : index
    %533 = vector.load %arg4[%c2_484, %c0_485, %c0_486] : memref<3x256x256xbf16, #tpu.memory_space<vmem>>, vector<1x256x256xbf16>
    %534 = vector.shape_cast %533 : vector<1x256x256xbf16> to vector<256x256xbf16>
    %cst_487 = arith.constant dense<0.000000e+00> : vector<2x256xf32>
    %535 = tpu.matmul %532, %534, %cst_487 {dimension_numbers = #tpu.dot_dimension_numbers<[1], [0], [0], [1], [0, 0, 1, 1], [], []>} : vector<2x256xbf16>, vector<256x256xbf16>, vector<2x256xf32> -> vector<2x256xf32>
    %536 = arith.addf %530, %535 : vector<2x256xf32>
    %c0_488 = arith.constant 0 : index
    %c0_489 = arith.constant 0 : index
    %537 = vector.load %arg5[%c0_488, %c0_489] : memref<1x256xf32, #tpu.memory_space<vmem>>, vector<1x256xf32>
    %538 = vector.broadcast %537 : vector<1x256xf32> to vector<2x256xf32>
    %539 = arith.addf %536, %538 : vector<2x256xf32>
    %cst_490 = arith.constant 0.000000e+00 : f32
    %540 = vector.broadcast %cst_490 : f32 to vector<2x256xf32>
    %541 = arith.cmpf ogt, %539, %540 : vector<2x256xf32>
    %cst_491 = arith.constant 2.000000e-01 : f32
    %542 = vector.broadcast %cst_491 : f32 to vector<2x256xf32>
    %543 = arith.mulf %542, %539 : vector<2x256xf32>
    %544 = arith.select %541, %539, %543 : vector<2x256xi1>, vector<2x256xf32>
    %c0_492 = arith.constant 0 : index
    %c0_493 = arith.constant 0 : index
    %545 = vector.load %arg6[%c0_492, %c0_493] : memref<1x256xf32, #tpu.memory_space<vmem>>, vector<1x256xf32>
    %546 = vector.broadcast %545 : vector<1x256xf32> to vector<2x256xf32>
    %547 = arith.mulf %544, %546 : vector<2x256xf32>
    %c0_494 = arith.constant 0 : index
    %c0_495 = arith.constant 0 : index
    %548 = vector.load %arg7[%c0_494, %c0_495] : memref<1x256xf32, #tpu.memory_space<vmem>>, vector<1x256xf32>
    %549 = vector.broadcast %548 : vector<1x256xf32> to vector<2x256xf32>
    %550 = arith.addf %547, %549 : vector<2x256xf32>
    %551 = arith.truncf %550 : vector<2x256xf32> to vector<2x256xbf16>
    %c2_496 = arith.constant 2 : index
    %c0_497 = arith.constant 0 : index
    %c0_498 = arith.constant 0 : index
    %552 = vector.load %arg23[%c2_496, %c0_497, %c0_498] : memref<10x2x256xbf16, #tpu.memory_space<vmem>>, vector<1x2x256xbf16>
    %553 = vector.shape_cast %552 : vector<1x2x256xbf16> to vector<2x256xbf16>
    %554 = vector.shape_cast %551 : vector<2x256xbf16> to vector<1x2x256xbf16>
    tpu.vector_store %arg23[%c2_496, %c0_497, %c0_498], %554 {strides = array<i32>} : memref<10x2x256xbf16, #tpu.memory_space<vmem>>, vector<1x2x256xbf16>,
    %c4_499 = arith.constant 4 : index
    %c0_500 = arith.constant 0 : index
    %c0_501 = arith.constant 0 : index
    %555 = vector.load %arg22[%c4_499, %c0_500, %c0_501] : memref<18x2x256xbf16, #tpu.memory_space<vmem>>, vector<1x2x256xbf16>
    %556 = vector.shape_cast %555 : vector<1x2x256xbf16> to vector<2x256xbf16>
    %c0_502 = arith.constant 0 : index
    %c0_503 = arith.constant 0 : index
    %c0_504 = arith.constant 0 : index
    %557 = vector.load %arg4[%c0_502, %c0_503, %c0_504] : memref<3x256x256xbf16, #tpu.memory_space<vmem>>, vector<1x256x256xbf16>
    %558 = vector.shape_cast %557 : vector<1x256x256xbf16> to vector<256x256xbf16>
    %cst_505 = arith.constant dense<0.000000e+00> : vector<2x256xf32>
    %559 = tpu.matmul %556, %558, %cst_505 {dimension_numbers = #tpu.dot_dimension_numbers<[1], [0], [0], [1], [0, 0, 1, 1], [], []>} : vector<2x256xbf16>, vector<256x256xbf16>, vector<2x256xf32> -> vector<2x256xf32>
    %c5_506 = arith.constant 5 : index
    %c0_507 = arith.constant 0 : index
    %c0_508 = arith.constant 0 : index
    %560 = vector.load %arg22[%c5_506, %c0_507, %c0_508] : memref<18x2x256xbf16, #tpu.memory_space<vmem>>, vector<1x2x256xbf16>
    %561 = vector.shape_cast %560 : vector<1x2x256xbf16> to vector<2x256xbf16>
    %c1_509 = arith.constant 1 : index
    %c0_510 = arith.constant 0 : index
    %c0_511 = arith.constant 0 : index
    %562 = vector.load %arg4[%c1_509, %c0_510, %c0_511] : memref<3x256x256xbf16, #tpu.memory_space<vmem>>, vector<1x256x256xbf16>
    %563 = vector.shape_cast %562 : vector<1x256x256xbf16> to vector<256x256xbf16>
    %cst_512 = arith.constant dense<0.000000e+00> : vector<2x256xf32>
    %564 = tpu.matmul %561, %563, %cst_512 {dimension_numbers = #tpu.dot_dimension_numbers<[1], [0], [0], [1], [0, 0, 1, 1], [], []>} : vector<2x256xbf16>, vector<256x256xbf16>, vector<2x256xf32> -> vector<2x256xf32>
    %565 = arith.addf %559, %564 : vector<2x256xf32>
    %c6_513 = arith.constant 6 : index
    %c0_514 = arith.constant 0 : index
    %c0_515 = arith.constant 0 : index
    %566 = vector.load %arg22[%c6_513, %c0_514, %c0_515] : memref<18x2x256xbf16, #tpu.memory_space<vmem>>, vector<1x2x256xbf16>
    %567 = vector.shape_cast %566 : vector<1x2x256xbf16> to vector<2x256xbf16>
    %c2_516 = arith.constant 2 : index
    %c0_517 = arith.constant 0 : index
    %c0_518 = arith.constant 0 : index
    %568 = vector.load %arg4[%c2_516, %c0_517, %c0_518] : memref<3x256x256xbf16, #tpu.memory_space<vmem>>, vector<1x256x256xbf16>
    %569 = vector.shape_cast %568 : vector<1x256x256xbf16> to vector<256x256xbf16>
    %cst_519 = arith.constant dense<0.000000e+00> : vector<2x256xf32>
    %570 = tpu.matmul %567, %569, %cst_519 {dimension_numbers = #tpu.dot_dimension_numbers<[1], [0], [0], [1], [0, 0, 1, 1], [], []>} : vector<2x256xbf16>, vector<256x256xbf16>, vector<2x256xf32> -> vector<2x256xf32>
    %571 = arith.addf %565, %570 : vector<2x256xf32>
    %c0_520 = arith.constant 0 : index
    %c0_521 = arith.constant 0 : index
    %572 = vector.load %arg5[%c0_520, %c0_521] : memref<1x256xf32, #tpu.memory_space<vmem>>, vector<1x256xf32>
    %573 = vector.broadcast %572 : vector<1x256xf32> to vector<2x256xf32>
    %574 = arith.addf %571, %573 : vector<2x256xf32>
    %cst_522 = arith.constant 0.000000e+00 : f32
    %575 = vector.broadcast %cst_522 : f32 to vector<2x256xf32>
    %576 = arith.cmpf ogt, %574, %575 : vector<2x256xf32>
    %cst_523 = arith.constant 2.000000e-01 : f32
    %577 = vector.broadcast %cst_523 : f32 to vector<2x256xf32>
    %578 = arith.mulf %577, %574 : vector<2x256xf32>
    %579 = arith.select %576, %574, %578 : vector<2x256xi1>, vector<2x256xf32>
    %c0_524 = arith.constant 0 : index
    %c0_525 = arith.constant 0 : index
    %580 = vector.load %arg6[%c0_524, %c0_525] : memref<1x256xf32, #tpu.memory_space<vmem>>, vector<1x256xf32>
    %581 = vector.broadcast %580 : vector<1x256xf32> to vector<2x256xf32>
    %582 = arith.mulf %579, %581 : vector<2x256xf32>
    %c0_526 = arith.constant 0 : index
    %c0_527 = arith.constant 0 : index
    %583 = vector.load %arg7[%c0_526, %c0_527] : memref<1x256xf32, #tpu.memory_space<vmem>>, vector<1x256xf32>
    %584 = vector.broadcast %583 : vector<1x256xf32> to vector<2x256xf32>
    %585 = arith.addf %582, %584 : vector<2x256xf32>
    %586 = arith.truncf %585 : vector<2x256xf32> to vector<2x256xbf16>
    %c3_528 = arith.constant 3 : index
    %c0_529 = arith.constant 0 : index
    %c0_530 = arith.constant 0 : index
    %587 = vector.load %arg23[%c3_528, %c0_529, %c0_530] : memref<10x2x256xbf16, #tpu.memory_space<vmem>>, vector<1x2x256xbf16>
    %588 = vector.shape_cast %587 : vector<1x2x256xbf16> to vector<2x256xbf16>
    %589 = vector.shape_cast %586 : vector<2x256xbf16> to vector<1x2x256xbf16>
    tpu.vector_store %arg23[%c3_528, %c0_529, %c0_530], %589 {strides = array<i32>} : memref<10x2x256xbf16, #tpu.memory_space<vmem>>, vector<1x2x256xbf16>,
    %c6_531 = arith.constant 6 : index
    %c0_532 = arith.constant 0 : index
    %c0_533 = arith.constant 0 : index
    %590 = vector.load %arg22[%c6_531, %c0_532, %c0_533] : memref<18x2x256xbf16, #tpu.memory_space<vmem>>, vector<1x2x256xbf16>
    %591 = vector.shape_cast %590 : vector<1x2x256xbf16> to vector<2x256xbf16>
    %c0_534 = arith.constant 0 : index
    %c0_535 = arith.constant 0 : index
    %c0_536 = arith.constant 0 : index
    %592 = vector.load %arg4[%c0_534, %c0_535, %c0_536] : memref<3x256x256xbf16, #tpu.memory_space<vmem>>, vector<1x256x256xbf16>
    %593 = vector.shape_cast %592 : vector<1x256x256xbf16> to vector<256x256xbf16>
    %cst_537 = arith.constant dense<0.000000e+00> : vector<2x256xf32>
    %594 = tpu.matmul %591, %593, %cst_537 {dimension_numbers = #tpu.dot_dimension_numbers<[1], [0], [0], [1], [0, 0, 1, 1], [], []>} : vector<2x256xbf16>, vector<256x256xbf16>, vector<2x256xf32> -> vector<2x256xf32>
    %c7_538 = arith.constant 7 : index
    %c0_539 = arith.constant 0 : index
    %c0_540 = arith.constant 0 : index
    %595 = vector.load %arg22[%c7_538, %c0_539, %c0_540] : memref<18x2x256xbf16, #tpu.memory_space<vmem>>, vector<1x2x256xbf16>
    %596 = vector.shape_cast %595 : vector<1x2x256xbf16> to vector<2x256xbf16>
    %c1_541 = arith.constant 1 : index
    %c0_542 = arith.constant 0 : index
    %c0_543 = arith.constant 0 : index
    %597 = vector.load %arg4[%c1_541, %c0_542, %c0_543] : memref<3x256x256xbf16, #tpu.memory_space<vmem>>, vector<1x256x256xbf16>
    %598 = vector.shape_cast %597 : vector<1x256x256xbf16> to vector<256x256xbf16>
    %cst_544 = arith.constant dense<0.000000e+00> : vector<2x256xf32>
    %599 = tpu.matmul %596, %598, %cst_544 {dimension_numbers = #tpu.dot_dimension_numbers<[1], [0], [0], [1], [0, 0, 1, 1], [], []>} : vector<2x256xbf16>, vector<256x256xbf16>, vector<2x256xf32> -> vector<2x256xf32>
    %600 = arith.addf %594, %599 : vector<2x256xf32>
    %c8_545 = arith.constant 8 : index
    %c0_546 = arith.constant 0 : index
    %c0_547 = arith.constant 0 : index
    %601 = vector.load %arg22[%c8_545, %c0_546, %c0_547] : memref<18x2x256xbf16, #tpu.memory_space<vmem>>, vector<1x2x256xbf16>
    %602 = vector.shape_cast %601 : vector<1x2x256xbf16> to vector<2x256xbf16>
    %c2_548 = arith.constant 2 : index
    %c0_549 = arith.constant 0 : index
    %c0_550 = arith.constant 0 : index
    %603 = vector.load %arg4[%c2_548, %c0_549, %c0_550] : memref<3x256x256xbf16, #tpu.memory_space<vmem>>, vector<1x256x256xbf16>
    %604 = vector.shape_cast %603 : vector<1x256x256xbf16> to vector<256x256xbf16>
    %cst_551 = arith.constant dense<0.000000e+00> : vector<2x256xf32>
    %605 = tpu.matmul %602, %604, %cst_551 {dimension_numbers = #tpu.dot_dimension_numbers<[1], [0], [0], [1], [0, 0, 1, 1], [], []>} : vector<2x256xbf16>, vector<256x256xbf16>, vector<2x256xf32> -> vector<2x256xf32>
    %606 = arith.addf %600, %605 : vector<2x256xf32>
    %c0_552 = arith.constant 0 : index
    %c0_553 = arith.constant 0 : index
    %607 = vector.load %arg5[%c0_552, %c0_553] : memref<1x256xf32, #tpu.memory_space<vmem>>, vector<1x256xf32>
    %608 = vector.broadcast %607 : vector<1x256xf32> to vector<2x256xf32>
    %609 = arith.addf %606, %608 : vector<2x256xf32>
    %cst_554 = arith.constant 0.000000e+00 : f32
    %610 = vector.broadcast %cst_554 : f32 to vector<2x256xf32>
    %611 = arith.cmpf ogt, %609, %610 : vector<2x256xf32>
    %cst_555 = arith.constant 2.000000e-01 : f32
    %612 = vector.broadcast %cst_555 : f32 to vector<2x256xf32>
    %613 = arith.mulf %612, %609 : vector<2x256xf32>
    %614 = arith.select %611, %609, %613 : vector<2x256xi1>, vector<2x256xf32>
    %c0_556 = arith.constant 0 : index
    %c0_557 = arith.constant 0 : index
    %615 = vector.load %arg6[%c0_556, %c0_557] : memref<1x256xf32, #tpu.memory_space<vmem>>, vector<1x256xf32>
    %616 = vector.broadcast %615 : vector<1x256xf32> to vector<2x256xf32>
    %617 = arith.mulf %614, %616 : vector<2x256xf32>
    %c0_558 = arith.constant 0 : index
    %c0_559 = arith.constant 0 : index
    %618 = vector.load %arg7[%c0_558, %c0_559] : memref<1x256xf32, #tpu.memory_space<vmem>>, vector<1x256xf32>
    %619 = vector.broadcast %618 : vector<1x256xf32> to vector<2x256xf32>
    %620 = arith.addf %617, %619 : vector<2x256xf32>
    %621 = arith.truncf %620 : vector<2x256xf32> to vector<2x256xbf16>
    %c4_560 = arith.constant 4 : index
    %c0_561 = arith.constant 0 : index
    %c0_562 = arith.constant 0 : index
    %622 = vector.load %arg23[%c4_560, %c0_561, %c0_562] : memref<10x2x256xbf16, #tpu.memory_space<vmem>>, vector<1x2x256xbf16>
    %623 = vector.shape_cast %622 : vector<1x2x256xbf16> to vector<2x256xbf16>
    %624 = vector.shape_cast %621 : vector<2x256xbf16> to vector<1x2x256xbf16>
    tpu.vector_store %arg23[%c4_560, %c0_561, %c0_562], %624 {strides = array<i32>} : memref<10x2x256xbf16, #tpu.memory_space<vmem>>, vector<1x2x256xbf16>,
    %c8_563 = arith.constant 8 : index
    %c0_564 = arith.constant 0 : index
    %c0_565 = arith.constant 0 : index
    %625 = vector.load %arg22[%c8_563, %c0_564, %c0_565] : memref<18x2x256xbf16, #tpu.memory_space<vmem>>, vector<1x2x256xbf16>
    %626 = vector.shape_cast %625 : vector<1x2x256xbf16> to vector<2x256xbf16>
    %c0_566 = arith.constant 0 : index
    %c0_567 = arith.constant 0 : index
    %c0_568 = arith.constant 0 : index
    %627 = vector.load %arg4[%c0_566, %c0_567, %c0_568] : memref<3x256x256xbf16, #tpu.memory_space<vmem>>, vector<1x256x256xbf16>
    %628 = vector.shape_cast %627 : vector<1x256x256xbf16> to vector<256x256xbf16>
    %cst_569 = arith.constant dense<0.000000e+00> : vector<2x256xf32>
    %629 = tpu.matmul %626, %628, %cst_569 {dimension_numbers = #tpu.dot_dimension_numbers<[1], [0], [0], [1], [0, 0, 1, 1], [], []>} : vector<2x256xbf16>, vector<256x256xbf16>, vector<2x256xf32> -> vector<2x256xf32>
    %c9_570 = arith.constant 9 : index
    %c0_571 = arith.constant 0 : index
    %c0_572 = arith.constant 0 : index
    %630 = vector.load %arg22[%c9_570, %c0_571, %c0_572] : memref<18x2x256xbf16, #tpu.memory_space<vmem>>, vector<1x2x256xbf16>
    %631 = vector.shape_cast %630 : vector<1x2x256xbf16> to vector<2x256xbf16>
    %c1_573 = arith.constant 1 : index
    %c0_574 = arith.constant 0 : index
    %c0_575 = arith.constant 0 : index
    %632 = vector.load %arg4[%c1_573, %c0_574, %c0_575] : memref<3x256x256xbf16, #tpu.memory_space<vmem>>, vector<1x256x256xbf16>
    %633 = vector.shape_cast %632 : vector<1x256x256xbf16> to vector<256x256xbf16>
    %cst_576 = arith.constant dense<0.000000e+00> : vector<2x256xf32>
    %634 = tpu.matmul %631, %633, %cst_576 {dimension_numbers = #tpu.dot_dimension_numbers<[1], [0], [0], [1], [0, 0, 1, 1], [], []>} : vector<2x256xbf16>, vector<256x256xbf16>, vector<2x256xf32> -> vector<2x256xf32>
    %635 = arith.addf %629, %634 : vector<2x256xf32>
    %c10_577 = arith.constant 10 : index
    %c0_578 = arith.constant 0 : index
    %c0_579 = arith.constant 0 : index
    %636 = vector.load %arg22[%c10_577, %c0_578, %c0_579] : memref<18x2x256xbf16, #tpu.memory_space<vmem>>, vector<1x2x256xbf16>
    %637 = vector.shape_cast %636 : vector<1x2x256xbf16> to vector<2x256xbf16>
    %c2_580 = arith.constant 2 : index
    %c0_581 = arith.constant 0 : index
    %c0_582 = arith.constant 0 : index
    %638 = vector.load %arg4[%c2_580, %c0_581, %c0_582] : memref<3x256x256xbf16, #tpu.memory_space<vmem>>, vector<1x256x256xbf16>
    %639 = vector.shape_cast %638 : vector<1x256x256xbf16> to vector<256x256xbf16>
    %cst_583 = arith.constant dense<0.000000e+00> : vector<2x256xf32>
    %640 = tpu.matmul %637, %639, %cst_583 {dimension_numbers = #tpu.dot_dimension_numbers<[1], [0], [0], [1], [0, 0, 1, 1], [], []>} : vector<2x256xbf16>, vector<256x256xbf16>, vector<2x256xf32> -> vector<2x256xf32>
    %641 = arith.addf %635, %640 : vector<2x256xf32>
    %c0_584 = arith.constant 0 : index
    %c0_585 = arith.constant 0 : index
    %642 = vector.load %arg5[%c0_584, %c0_585] : memref<1x256xf32, #tpu.memory_space<vmem>>, vector<1x256xf32>
    %643 = vector.broadcast %642 : vector<1x256xf32> to vector<2x256xf32>
    %644 = arith.addf %641, %643 : vector<2x256xf32>
    %cst_586 = arith.constant 0.000000e+00 : f32
    %645 = vector.broadcast %cst_586 : f32 to vector<2x256xf32>
    %646 = arith.cmpf ogt, %644, %645 : vector<2x256xf32>
    %cst_587 = arith.constant 2.000000e-01 : f32
    %647 = vector.broadcast %cst_587 : f32 to vector<2x256xf32>
    %648 = arith.mulf %647, %644 : vector<2x256xf32>
    %649 = arith.select %646, %644, %648 : vector<2x256xi1>, vector<2x256xf32>
    %c0_588 = arith.constant 0 : index
    %c0_589 = arith.constant 0 : index
    %650 = vector.load %arg6[%c0_588, %c0_589] : memref<1x256xf32, #tpu.memory_space<vmem>>, vector<1x256xf32>
    %651 = vector.broadcast %650 : vector<1x256xf32> to vector<2x256xf32>
    %652 = arith.mulf %649, %651 : vector<2x256xf32>
    %c0_590 = arith.constant 0 : index
    %c0_591 = arith.constant 0 : index
    %653 = vector.load %arg7[%c0_590, %c0_591] : memref<1x256xf32, #tpu.memory_space<vmem>>, vector<1x256xf32>
    %654 = vector.broadcast %653 : vector<1x256xf32> to vector<2x256xf32>
    %655 = arith.addf %652, %654 : vector<2x256xf32>
    %656 = arith.truncf %655 : vector<2x256xf32> to vector<2x256xbf16>
    %c5_592 = arith.constant 5 : index
    %c0_593 = arith.constant 0 : index
    %c0_594 = arith.constant 0 : index
    %657 = vector.load %arg23[%c5_592, %c0_593, %c0_594] : memref<10x2x256xbf16, #tpu.memory_space<vmem>>, vector<1x2x256xbf16>
    %658 = vector.shape_cast %657 : vector<1x2x256xbf16> to vector<2x256xbf16>
    %659 = vector.shape_cast %656 : vector<2x256xbf16> to vector<1x2x256xbf16>
    tpu.vector_store %arg23[%c5_592, %c0_593, %c0_594], %659 {strides = array<i32>} : memref<10x2x256xbf16, #tpu.memory_space<vmem>>, vector<1x2x256xbf16>,
    %c10_595 = arith.constant 10 : index
    %c0_596 = arith.constant 0 : index
    %c0_597 = arith.constant 0 : index
    %660 = vector.load %arg22[%c10_595, %c0_596, %c0_597] : memref<18x2x256xbf16, #tpu.memory_space<vmem>>, vector<1x2x256xbf16>
    %661 = vector.shape_cast %660 : vector<1x2x256xbf16> to vector<2x256xbf16>
    %c0_598 = arith.constant 0 : index
    %c0_599 = arith.constant 0 : index
    %c0_600 = arith.constant 0 : index
    %662 = vector.load %arg4[%c0_598, %c0_599, %c0_600] : memref<3x256x256xbf16, #tpu.memory_space<vmem>>, vector<1x256x256xbf16>
    %663 = vector.shape_cast %662 : vector<1x256x256xbf16> to vector<256x256xbf16>
    %cst_601 = arith.constant dense<0.000000e+00> : vector<2x256xf32>
    %664 = tpu.matmul %661, %663, %cst_601 {dimension_numbers = #tpu.dot_dimension_numbers<[1], [0], [0], [1], [0, 0, 1, 1], [], []>} : vector<2x256xbf16>, vector<256x256xbf16>, vector<2x256xf32> -> vector<2x256xf32>
    %c11_602 = arith.constant 11 : index
    %c0_603 = arith.constant 0 : index
    %c0_604 = arith.constant 0 : index
    %665 = vector.load %arg22[%c11_602, %c0_603, %c0_604] : memref<18x2x256xbf16, #tpu.memory_space<vmem>>, vector<1x2x256xbf16>
    %666 = vector.shape_cast %665 : vector<1x2x256xbf16> to vector<2x256xbf16>
    %c1_605 = arith.constant 1 : index
    %c0_606 = arith.constant 0 : index
    %c0_607 = arith.constant 0 : index
    %667 = vector.load %arg4[%c1_605, %c0_606, %c0_607] : memref<3x256x256xbf16, #tpu.memory_space<vmem>>, vector<1x256x256xbf16>
    %668 = vector.shape_cast %667 : vector<1x256x256xbf16> to vector<256x256xbf16>
    %cst_608 = arith.constant dense<0.000000e+00> : vector<2x256xf32>
    %669 = tpu.matmul %666, %668, %cst_608 {dimension_numbers = #tpu.dot_dimension_numbers<[1], [0], [0], [1], [0, 0, 1, 1], [], []>} : vector<2x256xbf16>, vector<256x256xbf16>, vector<2x256xf32> -> vector<2x256xf32>
    %670 = arith.addf %664, %669 : vector<2x256xf32>
    %c12_609 = arith.constant 12 : index
    %c0_610 = arith.constant 0 : index
    %c0_611 = arith.constant 0 : index
    %671 = vector.load %arg22[%c12_609, %c0_610, %c0_611] : memref<18x2x256xbf16, #tpu.memory_space<vmem>>, vector<1x2x256xbf16>
    %672 = vector.shape_cast %671 : vector<1x2x256xbf16> to vector<2x256xbf16>
    %c2_612 = arith.constant 2 : index
    %c0_613 = arith.constant 0 : index
    %c0_614 = arith.constant 0 : index
    %673 = vector.load %arg4[%c2_612, %c0_613, %c0_614] : memref<3x256x256xbf16, #tpu.memory_space<vmem>>, vector<1x256x256xbf16>
    %674 = vector.shape_cast %673 : vector<1x256x256xbf16> to vector<256x256xbf16>
    %cst_615 = arith.constant dense<0.000000e+00> : vector<2x256xf32>
    %675 = tpu.matmul %672, %674, %cst_615 {dimension_numbers = #tpu.dot_dimension_numbers<[1], [0], [0], [1], [0, 0, 1, 1], [], []>} : vector<2x256xbf16>, vector<256x256xbf16>, vector<2x256xf32> -> vector<2x256xf32>
    %676 = arith.addf %670, %675 : vector<2x256xf32>
    %c0_616 = arith.constant 0 : index
    %c0_617 = arith.constant 0 : index
    %677 = vector.load %arg5[%c0_616, %c0_617] : memref<1x256xf32, #tpu.memory_space<vmem>>, vector<1x256xf32>
    %678 = vector.broadcast %677 : vector<1x256xf32> to vector<2x256xf32>
    %679 = arith.addf %676, %678 : vector<2x256xf32>
    %cst_618 = arith.constant 0.000000e+00 : f32
    %680 = vector.broadcast %cst_618 : f32 to vector<2x256xf32>
    %681 = arith.cmpf ogt, %679, %680 : vector<2x256xf32>
    %cst_619 = arith.constant 2.000000e-01 : f32
    %682 = vector.broadcast %cst_619 : f32 to vector<2x256xf32>
    %683 = arith.mulf %682, %679 : vector<2x256xf32>
    %684 = arith.select %681, %679, %683 : vector<2x256xi1>, vector<2x256xf32>
    %c0_620 = arith.constant 0 : index
    %c0_621 = arith.constant 0 : index
    %685 = vector.load %arg6[%c0_620, %c0_621] : memref<1x256xf32, #tpu.memory_space<vmem>>, vector<1x256xf32>
    %686 = vector.broadcast %685 : vector<1x256xf32> to vector<2x256xf32>
    %687 = arith.mulf %684, %686 : vector<2x256xf32>
    %c0_622 = arith.constant 0 : index
    %c0_623 = arith.constant 0 : index
    %688 = vector.load %arg7[%c0_622, %c0_623] : memref<1x256xf32, #tpu.memory_space<vmem>>, vector<1x256xf32>
    %689 = vector.broadcast %688 : vector<1x256xf32> to vector<2x256xf32>
    %690 = arith.addf %687, %689 : vector<2x256xf32>
    %691 = arith.truncf %690 : vector<2x256xf32> to vector<2x256xbf16>
    %c6_624 = arith.constant 6 : index
    %c0_625 = arith.constant 0 : index
    %c0_626 = arith.constant 0 : index
    %692 = vector.load %arg23[%c6_624, %c0_625, %c0_626] : memref<10x2x256xbf16, #tpu.memory_space<vmem>>, vector<1x2x256xbf16>
    %693 = vector.shape_cast %692 : vector<1x2x256xbf16> to vector<2x256xbf16>
    %694 = vector.shape_cast %691 : vector<2x256xbf16> to vector<1x2x256xbf16>
    tpu.vector_store %arg23[%c6_624, %c0_625, %c0_626], %694 {strides = array<i32>} : memref<10x2x256xbf16, #tpu.memory_space<vmem>>, vector<1x2x256xbf16>,
    %c12_627 = arith.constant 12 : index
    %c0_628 = arith.constant 0 : index
    %c0_629 = arith.constant 0 : index
    %695 = vector.load %arg22[%c12_627, %c0_628, %c0_629] : memref<18x2x256xbf16, #tpu.memory_space<vmem>>, vector<1x2x256xbf16>
    %696 = vector.shape_cast %695 : vector<1x2x256xbf16> to vector<2x256xbf16>
    %c0_630 = arith.constant 0 : index
    %c0_631 = arith.constant 0 : index
    %c0_632 = arith.constant 0 : index
    %697 = vector.load %arg4[%c0_630, %c0_631, %c0_632] : memref<3x256x256xbf16, #tpu.memory_space<vmem>>, vector<1x256x256xbf16>
    %698 = vector.shape_cast %697 : vector<1x256x256xbf16> to vector<256x256xbf16>
    %cst_633 = arith.constant dense<0.000000e+00> : vector<2x256xf32>
    %699 = tpu.matmul %696, %698, %cst_633 {dimension_numbers = #tpu.dot_dimension_numbers<[1], [0], [0], [1], [0, 0, 1, 1], [], []>} : vector<2x256xbf16>, vector<256x256xbf16>, vector<2x256xf32> -> vector<2x256xf32>
    %c13_634 = arith.constant 13 : index
    %c0_635 = arith.constant 0 : index
    %c0_636 = arith.constant 0 : index
    %700 = vector.load %arg22[%c13_634, %c0_635, %c0_636] : memref<18x2x256xbf16, #tpu.memory_space<vmem>>, vector<1x2x256xbf16>
    %701 = vector.shape_cast %700 : vector<1x2x256xbf16> to vector<2x256xbf16>
    %c1_637 = arith.constant 1 : index
    %c0_638 = arith.constant 0 : index
    %c0_639 = arith.constant 0 : index
    %702 = vector.load %arg4[%c1_637, %c0_638, %c0_639] : memref<3x256x256xbf16, #tpu.memory_space<vmem>>, vector<1x256x256xbf16>
    %703 = vector.shape_cast %702 : vector<1x256x256xbf16> to vector<256x256xbf16>
    %cst_640 = arith.constant dense<0.000000e+00> : vector<2x256xf32>
    %704 = tpu.matmul %701, %703, %cst_640 {dimension_numbers = #tpu.dot_dimension_numbers<[1], [0], [0], [1], [0, 0, 1, 1], [], []>} : vector<2x256xbf16>, vector<256x256xbf16>, vector<2x256xf32> -> vector<2x256xf32>
    %705 = arith.addf %699, %704 : vector<2x256xf32>
    %c14_641 = arith.constant 14 : index
    %c0_642 = arith.constant 0 : index
    %c0_643 = arith.constant 0 : index
    %706 = vector.load %arg22[%c14_641, %c0_642, %c0_643] : memref<18x2x256xbf16, #tpu.memory_space<vmem>>, vector<1x2x256xbf16>
    %707 = vector.shape_cast %706 : vector<1x2x256xbf16> to vector<2x256xbf16>
    %c2_644 = arith.constant 2 : index
    %c0_645 = arith.constant 0 : index
    %c0_646 = arith.constant 0 : index
    %708 = vector.load %arg4[%c2_644, %c0_645, %c0_646] : memref<3x256x256xbf16, #tpu.memory_space<vmem>>, vector<1x256x256xbf16>
    %709 = vector.shape_cast %708 : vector<1x256x256xbf16> to vector<256x256xbf16>
    %cst_647 = arith.constant dense<0.000000e+00> : vector<2x256xf32>
    %710 = tpu.matmul %707, %709, %cst_647 {dimension_numbers = #tpu.dot_dimension_numbers<[1], [0], [0], [1], [0, 0, 1, 1], [], []>} : vector<2x256xbf16>, vector<256x256xbf16>, vector<2x256xf32> -> vector<2x256xf32>
    %711 = arith.addf %705, %710 : vector<2x256xf32>
    %c0_648 = arith.constant 0 : index
    %c0_649 = arith.constant 0 : index
    %712 = vector.load %arg5[%c0_648, %c0_649] : memref<1x256xf32, #tpu.memory_space<vmem>>, vector<1x256xf32>
    %713 = vector.broadcast %712 : vector<1x256xf32> to vector<2x256xf32>
    %714 = arith.addf %711, %713 : vector<2x256xf32>
    %cst_650 = arith.constant 0.000000e+00 : f32
    %715 = vector.broadcast %cst_650 : f32 to vector<2x256xf32>
    %716 = arith.cmpf ogt, %714, %715 : vector<2x256xf32>
    %cst_651 = arith.constant 2.000000e-01 : f32
    %717 = vector.broadcast %cst_651 : f32 to vector<2x256xf32>
    %718 = arith.mulf %717, %714 : vector<2x256xf32>
    %719 = arith.select %716, %714, %718 : vector<2x256xi1>, vector<2x256xf32>
    %c0_652 = arith.constant 0 : index
    %c0_653 = arith.constant 0 : index
    %720 = vector.load %arg6[%c0_652, %c0_653] : memref<1x256xf32, #tpu.memory_space<vmem>>, vector<1x256xf32>
    %721 = vector.broadcast %720 : vector<1x256xf32> to vector<2x256xf32>
    %722 = arith.mulf %719, %721 : vector<2x256xf32>
    %c0_654 = arith.constant 0 : index
    %c0_655 = arith.constant 0 : index
    %723 = vector.load %arg7[%c0_654, %c0_655] : memref<1x256xf32, #tpu.memory_space<vmem>>, vector<1x256xf32>
    %724 = vector.broadcast %723 : vector<1x256xf32> to vector<2x256xf32>
    %725 = arith.addf %722, %724 : vector<2x256xf32>
    %726 = arith.truncf %725 : vector<2x256xf32> to vector<2x256xbf16>
    %c7_656 = arith.constant 7 : index
    %c0_657 = arith.constant 0 : index
    %c0_658 = arith.constant 0 : index
    %727 = vector.load %arg23[%c7_656, %c0_657, %c0_658] : memref<10x2x256xbf16, #tpu.memory_space<vmem>>, vector<1x2x256xbf16>
    %728 = vector.shape_cast %727 : vector<1x2x256xbf16> to vector<2x256xbf16>
    %729 = vector.shape_cast %726 : vector<2x256xbf16> to vector<1x2x256xbf16>
    tpu.vector_store %arg23[%c7_656, %c0_657, %c0_658], %729 {strides = array<i32>} : memref<10x2x256xbf16, #tpu.memory_space<vmem>>, vector<1x2x256xbf16>,
    %c14_659 = arith.constant 14 : index
    %c0_660 = arith.constant 0 : index
    %c0_661 = arith.constant 0 : index
    %730 = vector.load %arg22[%c14_659, %c0_660, %c0_661] : memref<18x2x256xbf16, #tpu.memory_space<vmem>>, vector<1x2x256xbf16>
    %731 = vector.shape_cast %730 : vector<1x2x256xbf16> to vector<2x256xbf16>
    %c0_662 = arith.constant 0 : index
    %c0_663 = arith.constant 0 : index
    %c0_664 = arith.constant 0 : index
    %732 = vector.load %arg4[%c0_662, %c0_663, %c0_664] : memref<3x256x256xbf16, #tpu.memory_space<vmem>>, vector<1x256x256xbf16>
    %733 = vector.shape_cast %732 : vector<1x256x256xbf16> to vector<256x256xbf16>
    %cst_665 = arith.constant dense<0.000000e+00> : vector<2x256xf32>
    %734 = tpu.matmul %731, %733, %cst_665 {dimension_numbers = #tpu.dot_dimension_numbers<[1], [0], [0], [1], [0, 0, 1, 1], [], []>} : vector<2x256xbf16>, vector<256x256xbf16>, vector<2x256xf32> -> vector<2x256xf32>
    %c15_666 = arith.constant 15 : index
    %c0_667 = arith.constant 0 : index
    %c0_668 = arith.constant 0 : index
    %735 = vector.load %arg22[%c15_666, %c0_667, %c0_668] : memref<18x2x256xbf16, #tpu.memory_space<vmem>>, vector<1x2x256xbf16>
    %736 = vector.shape_cast %735 : vector<1x2x256xbf16> to vector<2x256xbf16>
    %c1_669 = arith.constant 1 : index
    %c0_670 = arith.constant 0 : index
    %c0_671 = arith.constant 0 : index
    %737 = vector.load %arg4[%c1_669, %c0_670, %c0_671] : memref<3x256x256xbf16, #tpu.memory_space<vmem>>, vector<1x256x256xbf16>
    %738 = vector.shape_cast %737 : vector<1x256x256xbf16> to vector<256x256xbf16>
    %cst_672 = arith.constant dense<0.000000e+00> : vector<2x256xf32>
    %739 = tpu.matmul %736, %738, %cst_672 {dimension_numbers = #tpu.dot_dimension_numbers<[1], [0], [0], [1], [0, 0, 1, 1], [], []>} : vector<2x256xbf16>, vector<256x256xbf16>, vector<2x256xf32> -> vector<2x256xf32>
    %740 = arith.addf %734, %739 : vector<2x256xf32>
    %c16_673 = arith.constant 16 : index
    %c0_674 = arith.constant 0 : index
    %c0_675 = arith.constant 0 : index
    %741 = vector.load %arg22[%c16_673, %c0_674, %c0_675] : memref<18x2x256xbf16, #tpu.memory_space<vmem>>, vector<1x2x256xbf16>
    %742 = vector.shape_cast %741 : vector<1x2x256xbf16> to vector<2x256xbf16>
    %c2_676 = arith.constant 2 : index
    %c0_677 = arith.constant 0 : index
    %c0_678 = arith.constant 0 : index
    %743 = vector.load %arg4[%c2_676, %c0_677, %c0_678] : memref<3x256x256xbf16, #tpu.memory_space<vmem>>, vector<1x256x256xbf16>
    %744 = vector.shape_cast %743 : vector<1x256x256xbf16> to vector<256x256xbf16>
    %cst_679 = arith.constant dense<0.000000e+00> : vector<2x256xf32>
    %745 = tpu.matmul %742, %744, %cst_679 {dimension_numbers = #tpu.dot_dimension_numbers<[1], [0], [0], [1], [0, 0, 1, 1], [], []>} : vector<2x256xbf16>, vector<256x256xbf16>, vector<2x256xf32> -> vector<2x256xf32>
    %746 = arith.addf %740, %745 : vector<2x256xf32>
    %c0_680 = arith.constant 0 : index
    %c0_681 = arith.constant 0 : index
    %747 = vector.load %arg5[%c0_680, %c0_681] : memref<1x256xf32, #tpu.memory_space<vmem>>, vector<1x256xf32>
    %748 = vector.broadcast %747 : vector<1x256xf32> to vector<2x256xf32>
    %749 = arith.addf %746, %748 : vector<2x256xf32>
    %cst_682 = arith.constant 0.000000e+00 : f32
    %750 = vector.broadcast %cst_682 : f32 to vector<2x256xf32>
    %751 = arith.cmpf ogt, %749, %750 : vector<2x256xf32>
    %cst_683 = arith.constant 2.000000e-01 : f32
    %752 = vector.broadcast %cst_683 : f32 to vector<2x256xf32>
    %753 = arith.mulf %752, %749 : vector<2x256xf32>
    %754 = arith.select %751, %749, %753 : vector<2x256xi1>, vector<2x256xf32>
    %c0_684 = arith.constant 0 : index
    %c0_685 = arith.constant 0 : index
    %755 = vector.load %arg6[%c0_684, %c0_685] : memref<1x256xf32, #tpu.memory_space<vmem>>, vector<1x256xf32>
    %756 = vector.broadcast %755 : vector<1x256xf32> to vector<2x256xf32>
    %757 = arith.mulf %754, %756 : vector<2x256xf32>
    %c0_686 = arith.constant 0 : index
    %c0_687 = arith.constant 0 : index
    %758 = vector.load %arg7[%c0_686, %c0_687] : memref<1x256xf32, #tpu.memory_space<vmem>>, vector<1x256xf32>
    %759 = vector.broadcast %758 : vector<1x256xf32> to vector<2x256xf32>
    %760 = arith.addf %757, %759 : vector<2x256xf32>
    %761 = arith.truncf %760 : vector<2x256xf32> to vector<2x256xbf16>
    %c8_688 = arith.constant 8 : index
    %c0_689 = arith.constant 0 : index
    %c0_690 = arith.constant 0 : index
    %762 = vector.load %arg23[%c8_688, %c0_689, %c0_690] : memref<10x2x256xbf16, #tpu.memory_space<vmem>>, vector<1x2x256xbf16>
    %763 = vector.shape_cast %762 : vector<1x2x256xbf16> to vector<2x256xbf16>
    %764 = vector.shape_cast %761 : vector<2x256xbf16> to vector<1x2x256xbf16>
    tpu.vector_store %arg23[%c8_688, %c0_689, %c0_690], %764 {strides = array<i32>} : memref<10x2x256xbf16, #tpu.memory_space<vmem>>, vector<1x2x256xbf16>,
    %c0_691 = arith.constant 0 : index
    %c0_692 = arith.constant 0 : index
    %c0_693 = arith.constant 0 : index
    %765 = vector.load %arg23[%c0_691, %c0_692, %c0_693] : memref<10x2x256xbf16, #tpu.memory_space<vmem>>, vector<1x2x256xbf16>
    %766 = vector.shape_cast %765 : vector<1x2x256xbf16> to vector<2x256xbf16>
    %c0_694 = arith.constant 0 : index
    %c0_695 = arith.constant 0 : index
    %c0_696 = arith.constant 0 : index
    %767 = vector.load %arg8[%c0_694, %c0_695, %c0_696] : memref<3x256x256xbf16, #tpu.memory_space<vmem>>, vector<1x256x256xbf16>
    %768 = vector.shape_cast %767 : vector<1x256x256xbf16> to vector<256x256xbf16>
    %cst_697 = arith.constant dense<0.000000e+00> : vector<2x256xf32>
    %769 = tpu.matmul %766, %768, %cst_697 {dimension_numbers = #tpu.dot_dimension_numbers<[1], [0], [0], [1], [0, 0, 1, 1], [], []>} : vector<2x256xbf16>, vector<256x256xbf16>, vector<2x256xf32> -> vector<2x256xf32>
    %c1_698 = arith.constant 1 : index
    %c0_699 = arith.constant 0 : index
    %c0_700 = arith.constant 0 : index
    %770 = vector.load %arg23[%c1_698, %c0_699, %c0_700] : memref<10x2x256xbf16, #tpu.memory_space<vmem>>, vector<1x2x256xbf16>
    %771 = vector.shape_cast %770 : vector<1x2x256xbf16> to vector<2x256xbf16>
    %c1_701 = arith.constant 1 : index
    %c0_702 = arith.constant 0 : index
    %c0_703 = arith.constant 0 : index
    %772 = vector.load %arg8[%c1_701, %c0_702, %c0_703] : memref<3x256x256xbf16, #tpu.memory_space<vmem>>, vector<1x256x256xbf16>
    %773 = vector.shape_cast %772 : vector<1x256x256xbf16> to vector<256x256xbf16>
    %cst_704 = arith.constant dense<0.000000e+00> : vector<2x256xf32>
    %774 = tpu.matmul %771, %773, %cst_704 {dimension_numbers = #tpu.dot_dimension_numbers<[1], [0], [0], [1], [0, 0, 1, 1], [], []>} : vector<2x256xbf16>, vector<256x256xbf16>, vector<2x256xf32> -> vector<2x256xf32>
    %775 = arith.addf %769, %774 : vector<2x256xf32>
    %c2_705 = arith.constant 2 : index
    %c0_706 = arith.constant 0 : index
    %c0_707 = arith.constant 0 : index
    %776 = vector.load %arg23[%c2_705, %c0_706, %c0_707] : memref<10x2x256xbf16, #tpu.memory_space<vmem>>, vector<1x2x256xbf16>
    %777 = vector.shape_cast %776 : vector<1x2x256xbf16> to vector<2x256xbf16>
    %c2_708 = arith.constant 2 : index
    %c0_709 = arith.constant 0 : index
    %c0_710 = arith.constant 0 : index
    %778 = vector.load %arg8[%c2_708, %c0_709, %c0_710] : memref<3x256x256xbf16, #tpu.memory_space<vmem>>, vector<1x256x256xbf16>
    %779 = vector.shape_cast %778 : vector<1x256x256xbf16> to vector<256x256xbf16>
    %cst_711 = arith.constant dense<0.000000e+00> : vector<2x256xf32>
    %780 = tpu.matmul %777, %779, %cst_711 {dimension_numbers = #tpu.dot_dimension_numbers<[1], [0], [0], [1], [0, 0, 1, 1], [], []>} : vector<2x256xbf16>, vector<256x256xbf16>, vector<2x256xf32> -> vector<2x256xf32>
    %781 = arith.addf %775, %780 : vector<2x256xf32>
    %c0_712 = arith.constant 0 : index
    %c0_713 = arith.constant 0 : index
    %782 = vector.load %arg9[%c0_712, %c0_713] : memref<1x256xf32, #tpu.memory_space<vmem>>, vector<1x256xf32>
    %783 = vector.broadcast %782 : vector<1x256xf32> to vector<2x256xf32>
    %784 = arith.addf %781, %783 : vector<2x256xf32>
    %cst_714 = arith.constant 0.000000e+00 : f32
    %785 = vector.broadcast %cst_714 : f32 to vector<2x256xf32>
    %786 = arith.cmpf ogt, %784, %785 : vector<2x256xf32>
    %cst_715 = arith.constant 2.000000e-01 : f32
    %787 = vector.broadcast %cst_715 : f32 to vector<2x256xf32>
    %788 = arith.mulf %787, %784 : vector<2x256xf32>
    %789 = arith.select %786, %784, %788 : vector<2x256xi1>, vector<2x256xf32>
    %c0_716 = arith.constant 0 : index
    %c0_717 = arith.constant 0 : index
    %790 = vector.load %arg10[%c0_716, %c0_717] : memref<1x256xf32, #tpu.memory_space<vmem>>, vector<1x256xf32>
    %791 = vector.broadcast %790 : vector<1x256xf32> to vector<2x256xf32>
    %792 = arith.mulf %789, %791 : vector<2x256xf32>
    %c0_718 = arith.constant 0 : index
    %c0_719 = arith.constant 0 : index
    %793 = vector.load %arg11[%c0_718, %c0_719] : memref<1x256xf32, #tpu.memory_space<vmem>>, vector<1x256xf32>
    %794 = vector.broadcast %793 : vector<1x256xf32> to vector<2x256xf32>
    %795 = arith.addf %792, %794 : vector<2x256xf32>
    %796 = arith.truncf %795 : vector<2x256xf32> to vector<2x256xbf16>
    %c1_720 = arith.constant 1 : index
    %c0_721 = arith.constant 0 : index
    %c0_722 = arith.constant 0 : index
    %797 = vector.load %arg24[%c1_720, %c0_721, %c0_722] : memref<6x2x256xbf16, #tpu.memory_space<vmem>>, vector<1x2x256xbf16>
    %798 = vector.shape_cast %797 : vector<1x2x256xbf16> to vector<2x256xbf16>
    %799 = vector.shape_cast %796 : vector<2x256xbf16> to vector<1x2x256xbf16>
    tpu.vector_store %arg24[%c1_720, %c0_721, %c0_722], %799 {strides = array<i32>} : memref<6x2x256xbf16, #tpu.memory_space<vmem>>, vector<1x2x256xbf16>,
    %c2_723 = arith.constant 2 : index
    %c0_724 = arith.constant 0 : index
    %c0_725 = arith.constant 0 : index
    %800 = vector.load %arg23[%c2_723, %c0_724, %c0_725] : memref<10x2x256xbf16, #tpu.memory_space<vmem>>, vector<1x2x256xbf16>
    %801 = vector.shape_cast %800 : vector<1x2x256xbf16> to vector<2x256xbf16>
    %c0_726 = arith.constant 0 : index
    %c0_727 = arith.constant 0 : index
    %c0_728 = arith.constant 0 : index
    %802 = vector.load %arg8[%c0_726, %c0_727, %c0_728] : memref<3x256x256xbf16, #tpu.memory_space<vmem>>, vector<1x256x256xbf16>
    %803 = vector.shape_cast %802 : vector<1x256x256xbf16> to vector<256x256xbf16>
    %cst_729 = arith.constant dense<0.000000e+00> : vector<2x256xf32>
    %804 = tpu.matmul %801, %803, %cst_729 {dimension_numbers = #tpu.dot_dimension_numbers<[1], [0], [0], [1], [0, 0, 1, 1], [], []>} : vector<2x256xbf16>, vector<256x256xbf16>, vector<2x256xf32> -> vector<2x256xf32>
    %c3_730 = arith.constant 3 : index
    %c0_731 = arith.constant 0 : index
    %c0_732 = arith.constant 0 : index
    %805 = vector.load %arg23[%c3_730, %c0_731, %c0_732] : memref<10x2x256xbf16, #tpu.memory_space<vmem>>, vector<1x2x256xbf16>
    %806 = vector.shape_cast %805 : vector<1x2x256xbf16> to vector<2x256xbf16>
    %c1_733 = arith.constant 1 : index
    %c0_734 = arith.constant 0 : index
    %c0_735 = arith.constant 0 : index
    %807 = vector.load %arg8[%c1_733, %c0_734, %c0_735] : memref<3x256x256xbf16, #tpu.memory_space<vmem>>, vector<1x256x256xbf16>
    %808 = vector.shape_cast %807 : vector<1x256x256xbf16> to vector<256x256xbf16>
    %cst_736 = arith.constant dense<0.000000e+00> : vector<2x256xf32>
    %809 = tpu.matmul %806, %808, %cst_736 {dimension_numbers = #tpu.dot_dimension_numbers<[1], [0], [0], [1], [0, 0, 1, 1], [], []>} : vector<2x256xbf16>, vector<256x256xbf16>, vector<2x256xf32> -> vector<2x256xf32>
    %810 = arith.addf %804, %809 : vector<2x256xf32>
    %c4_737 = arith.constant 4 : index
    %c0_738 = arith.constant 0 : index
    %c0_739 = arith.constant 0 : index
    %811 = vector.load %arg23[%c4_737, %c0_738, %c0_739] : memref<10x2x256xbf16, #tpu.memory_space<vmem>>, vector<1x2x256xbf16>
    %812 = vector.shape_cast %811 : vector<1x2x256xbf16> to vector<2x256xbf16>
    %c2_740 = arith.constant 2 : index
    %c0_741 = arith.constant 0 : index
    %c0_742 = arith.constant 0 : index
    %813 = vector.load %arg8[%c2_740, %c0_741, %c0_742] : memref<3x256x256xbf16, #tpu.memory_space<vmem>>, vector<1x256x256xbf16>
    %814 = vector.shape_cast %813 : vector<1x256x256xbf16> to vector<256x256xbf16>
    %cst_743 = arith.constant dense<0.000000e+00> : vector<2x256xf32>
    %815 = tpu.matmul %812, %814, %cst_743 {dimension_numbers = #tpu.dot_dimension_numbers<[1], [0], [0], [1], [0, 0, 1, 1], [], []>} : vector<2x256xbf16>, vector<256x256xbf16>, vector<2x256xf32> -> vector<2x256xf32>
    %816 = arith.addf %810, %815 : vector<2x256xf32>
    %c0_744 = arith.constant 0 : index
    %c0_745 = arith.constant 0 : index
    %817 = vector.load %arg9[%c0_744, %c0_745] : memref<1x256xf32, #tpu.memory_space<vmem>>, vector<1x256xf32>
    %818 = vector.broadcast %817 : vector<1x256xf32> to vector<2x256xf32>
    %819 = arith.addf %816, %818 : vector<2x256xf32>
    %cst_746 = arith.constant 0.000000e+00 : f32
    %820 = vector.broadcast %cst_746 : f32 to vector<2x256xf32>
    %821 = arith.cmpf ogt, %819, %820 : vector<2x256xf32>
    %cst_747 = arith.constant 2.000000e-01 : f32
    %822 = vector.broadcast %cst_747 : f32 to vector<2x256xf32>
    %823 = arith.mulf %822, %819 : vector<2x256xf32>
    %824 = arith.select %821, %819, %823 : vector<2x256xi1>, vector<2x256xf32>
    %c0_748 = arith.constant 0 : index
    %c0_749 = arith.constant 0 : index
    %825 = vector.load %arg10[%c0_748, %c0_749] : memref<1x256xf32, #tpu.memory_space<vmem>>, vector<1x256xf32>
    %826 = vector.broadcast %825 : vector<1x256xf32> to vector<2x256xf32>
    %827 = arith.mulf %824, %826 : vector<2x256xf32>
    %c0_750 = arith.constant 0 : index
    %c0_751 = arith.constant 0 : index
    %828 = vector.load %arg11[%c0_750, %c0_751] : memref<1x256xf32, #tpu.memory_space<vmem>>, vector<1x256xf32>
    %829 = vector.broadcast %828 : vector<1x256xf32> to vector<2x256xf32>
    %830 = arith.addf %827, %829 : vector<2x256xf32>
    %831 = arith.truncf %830 : vector<2x256xf32> to vector<2x256xbf16>
    %c2_752 = arith.constant 2 : index
    %c0_753 = arith.constant 0 : index
    %c0_754 = arith.constant 0 : index
    %832 = vector.load %arg24[%c2_752, %c0_753, %c0_754] : memref<6x2x256xbf16, #tpu.memory_space<vmem>>, vector<1x2x256xbf16>
    %833 = vector.shape_cast %832 : vector<1x2x256xbf16> to vector<2x256xbf16>
    %834 = vector.shape_cast %831 : vector<2x256xbf16> to vector<1x2x256xbf16>
    tpu.vector_store %arg24[%c2_752, %c0_753, %c0_754], %834 {strides = array<i32>} : memref<6x2x256xbf16, #tpu.memory_space<vmem>>, vector<1x2x256xbf16>,
    %c4_755 = arith.constant 4 : index
    %c0_756 = arith.constant 0 : index
    %c0_757 = arith.constant 0 : index
    %835 = vector.load %arg23[%c4_755, %c0_756, %c0_757] : memref<10x2x256xbf16, #tpu.memory_space<vmem>>, vector<1x2x256xbf16>
    %836 = vector.shape_cast %835 : vector<1x2x256xbf16> to vector<2x256xbf16>
    %c0_758 = arith.constant 0 : index
    %c0_759 = arith.constant 0 : index
    %c0_760 = arith.constant 0 : index
    %837 = vector.load %arg8[%c0_758, %c0_759, %c0_760] : memref<3x256x256xbf16, #tpu.memory_space<vmem>>, vector<1x256x256xbf16>
    %838 = vector.shape_cast %837 : vector<1x256x256xbf16> to vector<256x256xbf16>
    %cst_761 = arith.constant dense<0.000000e+00> : vector<2x256xf32>
    %839 = tpu.matmul %836, %838, %cst_761 {dimension_numbers = #tpu.dot_dimension_numbers<[1], [0], [0], [1], [0, 0, 1, 1], [], []>} : vector<2x256xbf16>, vector<256x256xbf16>, vector<2x256xf32> -> vector<2x256xf32>
    %c5_762 = arith.constant 5 : index
    %c0_763 = arith.constant 0 : index
    %c0_764 = arith.constant 0 : index
    %840 = vector.load %arg23[%c5_762, %c0_763, %c0_764] : memref<10x2x256xbf16, #tpu.memory_space<vmem>>, vector<1x2x256xbf16>
    %841 = vector.shape_cast %840 : vector<1x2x256xbf16> to vector<2x256xbf16>
    %c1_765 = arith.constant 1 : index
    %c0_766 = arith.constant 0 : index
    %c0_767 = arith.constant 0 : index
    %842 = vector.load %arg8[%c1_765, %c0_766, %c0_767] : memref<3x256x256xbf16, #tpu.memory_space<vmem>>, vector<1x256x256xbf16>
    %843 = vector.shape_cast %842 : vector<1x256x256xbf16> to vector<256x256xbf16>
    %cst_768 = arith.constant dense<0.000000e+00> : vector<2x256xf32>
    %844 = tpu.matmul %841, %843, %cst_768 {dimension_numbers = #tpu.dot_dimension_numbers<[1], [0], [0], [1], [0, 0, 1, 1], [], []>} : vector<2x256xbf16>, vector<256x256xbf16>, vector<2x256xf32> -> vector<2x256xf32>
    %845 = arith.addf %839, %844 : vector<2x256xf32>
    %c6_769 = arith.constant 6 : index
    %c0_770 = arith.constant 0 : index
    %c0_771 = arith.constant 0 : index
    %846 = vector.load %arg23[%c6_769, %c0_770, %c0_771] : memref<10x2x256xbf16, #tpu.memory_space<vmem>>, vector<1x2x256xbf16>
    %847 = vector.shape_cast %846 : vector<1x2x256xbf16> to vector<2x256xbf16>
    %c2_772 = arith.constant 2 : index
    %c0_773 = arith.constant 0 : index
    %c0_774 = arith.constant 0 : index
    %848 = vector.load %arg8[%c2_772, %c0_773, %c0_774] : memref<3x256x256xbf16, #tpu.memory_space<vmem>>, vector<1x256x256xbf16>
    %849 = vector.shape_cast %848 : vector<1x256x256xbf16> to vector<256x256xbf16>
    %cst_775 = arith.constant dense<0.000000e+00> : vector<2x256xf32>
    %850 = tpu.matmul %847, %849, %cst_775 {dimension_numbers = #tpu.dot_dimension_numbers<[1], [0], [0], [1], [0, 0, 1, 1], [], []>} : vector<2x256xbf16>, vector<256x256xbf16>, vector<2x256xf32> -> vector<2x256xf32>
    %851 = arith.addf %845, %850 : vector<2x256xf32>
    %c0_776 = arith.constant 0 : index
    %c0_777 = arith.constant 0 : index
    %852 = vector.load %arg9[%c0_776, %c0_777] : memref<1x256xf32, #tpu.memory_space<vmem>>, vector<1x256xf32>
    %853 = vector.broadcast %852 : vector<1x256xf32> to vector<2x256xf32>
    %854 = arith.addf %851, %853 : vector<2x256xf32>
    %cst_778 = arith.constant 0.000000e+00 : f32
    %855 = vector.broadcast %cst_778 : f32 to vector<2x256xf32>
    %856 = arith.cmpf ogt, %854, %855 : vector<2x256xf32>
    %cst_779 = arith.constant 2.000000e-01 : f32
    %857 = vector.broadcast %cst_779 : f32 to vector<2x256xf32>
    %858 = arith.mulf %857, %854 : vector<2x256xf32>
    %859 = arith.select %856, %854, %858 : vector<2x256xi1>, vector<2x256xf32>
    %c0_780 = arith.constant 0 : index
    %c0_781 = arith.constant 0 : index
    %860 = vector.load %arg10[%c0_780, %c0_781] : memref<1x256xf32, #tpu.memory_space<vmem>>, vector<1x256xf32>
    %861 = vector.broadcast %860 : vector<1x256xf32> to vector<2x256xf32>
    %862 = arith.mulf %859, %861 : vector<2x256xf32>
    %c0_782 = arith.constant 0 : index
    %c0_783 = arith.constant 0 : index
    %863 = vector.load %arg11[%c0_782, %c0_783] : memref<1x256xf32, #tpu.memory_space<vmem>>, vector<1x256xf32>
    %864 = vector.broadcast %863 : vector<1x256xf32> to vector<2x256xf32>
    %865 = arith.addf %862, %864 : vector<2x256xf32>
    %866 = arith.truncf %865 : vector<2x256xf32> to vector<2x256xbf16>
    %c3_784 = arith.constant 3 : index
    %c0_785 = arith.constant 0 : index
    %c0_786 = arith.constant 0 : index
    %867 = vector.load %arg24[%c3_784, %c0_785, %c0_786] : memref<6x2x256xbf16, #tpu.memory_space<vmem>>, vector<1x2x256xbf16>
    %868 = vector.shape_cast %867 : vector<1x2x256xbf16> to vector<2x256xbf16>
    %869 = vector.shape_cast %866 : vector<2x256xbf16> to vector<1x2x256xbf16>
    tpu.vector_store %arg24[%c3_784, %c0_785, %c0_786], %869 {strides = array<i32>} : memref<6x2x256xbf16, #tpu.memory_space<vmem>>, vector<1x2x256xbf16>,
    %c6_787 = arith.constant 6 : index
    %c0_788 = arith.constant 0 : index
    %c0_789 = arith.constant 0 : index
    %870 = vector.load %arg23[%c6_787, %c0_788, %c0_789] : memref<10x2x256xbf16, #tpu.memory_space<vmem>>, vector<1x2x256xbf16>
    %871 = vector.shape_cast %870 : vector<1x2x256xbf16> to vector<2x256xbf16>
    %c0_790 = arith.constant 0 : index
    %c0_791 = arith.constant 0 : index
    %c0_792 = arith.constant 0 : index
    %872 = vector.load %arg8[%c0_790, %c0_791, %c0_792] : memref<3x256x256xbf16, #tpu.memory_space<vmem>>, vector<1x256x256xbf16>
    %873 = vector.shape_cast %872 : vector<1x256x256xbf16> to vector<256x256xbf16>
    %cst_793 = arith.constant dense<0.000000e+00> : vector<2x256xf32>
    %874 = tpu.matmul %871, %873, %cst_793 {dimension_numbers = #tpu.dot_dimension_numbers<[1], [0], [0], [1], [0, 0, 1, 1], [], []>} : vector<2x256xbf16>, vector<256x256xbf16>, vector<2x256xf32> -> vector<2x256xf32>
    %c7_794 = arith.constant 7 : index
    %c0_795 = arith.constant 0 : index
    %c0_796 = arith.constant 0 : index
    %875 = vector.load %arg23[%c7_794, %c0_795, %c0_796] : memref<10x2x256xbf16, #tpu.memory_space<vmem>>, vector<1x2x256xbf16>
    %876 = vector.shape_cast %875 : vector<1x2x256xbf16> to vector<2x256xbf16>
    %c1_797 = arith.constant 1 : index
    %c0_798 = arith.constant 0 : index
    %c0_799 = arith.constant 0 : index
    %877 = vector.load %arg8[%c1_797, %c0_798, %c0_799] : memref<3x256x256xbf16, #tpu.memory_space<vmem>>, vector<1x256x256xbf16>
    %878 = vector.shape_cast %877 : vector<1x256x256xbf16> to vector<256x256xbf16>
    %cst_800 = arith.constant dense<0.000000e+00> : vector<2x256xf32>
    %879 = tpu.matmul %876, %878, %cst_800 {dimension_numbers = #tpu.dot_dimension_numbers<[1], [0], [0], [1], [0, 0, 1, 1], [], []>} : vector<2x256xbf16>, vector<256x256xbf16>, vector<2x256xf32> -> vector<2x256xf32>
    %880 = arith.addf %874, %879 : vector<2x256xf32>
    %c8_801 = arith.constant 8 : index
    %c0_802 = arith.constant 0 : index
    %c0_803 = arith.constant 0 : index
    %881 = vector.load %arg23[%c8_801, %c0_802, %c0_803] : memref<10x2x256xbf16, #tpu.memory_space<vmem>>, vector<1x2x256xbf16>
    %882 = vector.shape_cast %881 : vector<1x2x256xbf16> to vector<2x256xbf16>
    %c2_804 = arith.constant 2 : index
    %c0_805 = arith.constant 0 : index
    %c0_806 = arith.constant 0 : index
    %883 = vector.load %arg8[%c2_804, %c0_805, %c0_806] : memref<3x256x256xbf16, #tpu.memory_space<vmem>>, vector<1x256x256xbf16>
    %884 = vector.shape_cast %883 : vector<1x256x256xbf16> to vector<256x256xbf16>
    %cst_807 = arith.constant dense<0.000000e+00> : vector<2x256xf32>
    %885 = tpu.matmul %882, %884, %cst_807 {dimension_numbers = #tpu.dot_dimension_numbers<[1], [0], [0], [1], [0, 0, 1, 1], [], []>} : vector<2x256xbf16>, vector<256x256xbf16>, vector<2x256xf32> -> vector<2x256xf32>
    %886 = arith.addf %880, %885 : vector<2x256xf32>
    %c0_808 = arith.constant 0 : index
    %c0_809 = arith.constant 0 : index
    %887 = vector.load %arg9[%c0_808, %c0_809] : memref<1x256xf32, #tpu.memory_space<vmem>>, vector<1x256xf32>
    %888 = vector.broadcast %887 : vector<1x256xf32> to vector<2x256xf32>
    %889 = arith.addf %886, %888 : vector<2x256xf32>
    %cst_810 = arith.constant 0.000000e+00 : f32
    %890 = vector.broadcast %cst_810 : f32 to vector<2x256xf32>
    %891 = arith.cmpf ogt, %889, %890 : vector<2x256xf32>
    %cst_811 = arith.constant 2.000000e-01 : f32
    %892 = vector.broadcast %cst_811 : f32 to vector<2x256xf32>
    %893 = arith.mulf %892, %889 : vector<2x256xf32>
    %894 = arith.select %891, %889, %893 : vector<2x256xi1>, vector<2x256xf32>
    %c0_812 = arith.constant 0 : index
    %c0_813 = arith.constant 0 : index
    %895 = vector.load %arg10[%c0_812, %c0_813] : memref<1x256xf32, #tpu.memory_space<vmem>>, vector<1x256xf32>
    %896 = vector.broadcast %895 : vector<1x256xf32> to vector<2x256xf32>
    %897 = arith.mulf %894, %896 : vector<2x256xf32>
    %c0_814 = arith.constant 0 : index
    %c0_815 = arith.constant 0 : index
    %898 = vector.load %arg11[%c0_814, %c0_815] : memref<1x256xf32, #tpu.memory_space<vmem>>, vector<1x256xf32>
    %899 = vector.broadcast %898 : vector<1x256xf32> to vector<2x256xf32>
    %900 = arith.addf %897, %899 : vector<2x256xf32>
    %901 = arith.truncf %900 : vector<2x256xf32> to vector<2x256xbf16>
    %c4_816 = arith.constant 4 : index
    %c0_817 = arith.constant 0 : index
    %c0_818 = arith.constant 0 : index
    %902 = vector.load %arg24[%c4_816, %c0_817, %c0_818] : memref<6x2x256xbf16, #tpu.memory_space<vmem>>, vector<1x2x256xbf16>
    %903 = vector.shape_cast %902 : vector<1x2x256xbf16> to vector<2x256xbf16>
    %904 = vector.shape_cast %901 : vector<2x256xbf16> to vector<1x2x256xbf16>
    tpu.vector_store %arg24[%c4_816, %c0_817, %c0_818], %904 {strides = array<i32>} : memref<6x2x256xbf16, #tpu.memory_space<vmem>>, vector<1x2x256xbf16>,
    %cst_819 = arith.constant 0.000000e+00 : f32
    %905 = vector.broadcast %cst_819 : f32 to vector<2x1xf32>
    %cst_820 = arith.constant 0.000000e+00 : f32
    %906 = vector.broadcast %cst_820 : f32 to vector<2x10xf32>
    %c0_821 = arith.constant 0 : index
    %c0_822 = arith.constant 0 : index
    %c0_823 = arith.constant 0 : index
    %907 = vector.load %arg24[%c0_821, %c0_822, %c0_823] : memref<6x2x256xbf16, #tpu.memory_space<vmem>>, vector<1x2x256xbf16>
    %908 = vector.shape_cast %907 : vector<1x2x256xbf16> to vector<2x256xbf16>
    %c0_824 = arith.constant 0 : index
    %c0_825 = arith.constant 0 : index
    %c0_826 = arith.constant 0 : index
    %909 = vector.load %arg12[%c0_824, %c0_825, %c0_826] : memref<3x256x256xbf16, #tpu.memory_space<vmem>>, vector<1x256x256xbf16>
    %910 = vector.shape_cast %909 : vector<1x256x256xbf16> to vector<256x256xbf16>
    %cst_827 = arith.constant dense<0.000000e+00> : vector<2x256xf32>
    %911 = tpu.matmul %908, %910, %cst_827 {dimension_numbers = #tpu.dot_dimension_numbers<[1], [0], [0], [1], [0, 0, 1, 1], [], []>} : vector<2x256xbf16>, vector<256x256xbf16>, vector<2x256xf32> -> vector<2x256xf32>
    %c1_828 = arith.constant 1 : index
    %c0_829 = arith.constant 0 : index
    %c0_830 = arith.constant 0 : index
    %912 = vector.load %arg24[%c1_828, %c0_829, %c0_830] : memref<6x2x256xbf16, #tpu.memory_space<vmem>>, vector<1x2x256xbf16>
    %913 = vector.shape_cast %912 : vector<1x2x256xbf16> to vector<2x256xbf16>
    %c1_831 = arith.constant 1 : index
    %c0_832 = arith.constant 0 : index
    %c0_833 = arith.constant 0 : index
    %914 = vector.load %arg12[%c1_831, %c0_832, %c0_833] : memref<3x256x256xbf16, #tpu.memory_space<vmem>>, vector<1x256x256xbf16>
    %915 = vector.shape_cast %914 : vector<1x256x256xbf16> to vector<256x256xbf16>
    %cst_834 = arith.constant dense<0.000000e+00> : vector<2x256xf32>
    %916 = tpu.matmul %913, %915, %cst_834 {dimension_numbers = #tpu.dot_dimension_numbers<[1], [0], [0], [1], [0, 0, 1, 1], [], []>} : vector<2x256xbf16>, vector<256x256xbf16>, vector<2x256xf32> -> vector<2x256xf32>
    %917 = arith.addf %911, %916 : vector<2x256xf32>
    %c2_835 = arith.constant 2 : index
    %c0_836 = arith.constant 0 : index
    %c0_837 = arith.constant 0 : index
    %918 = vector.load %arg24[%c2_835, %c0_836, %c0_837] : memref<6x2x256xbf16, #tpu.memory_space<vmem>>, vector<1x2x256xbf16>
    %919 = vector.shape_cast %918 : vector<1x2x256xbf16> to vector<2x256xbf16>
    %c2_838 = arith.constant 2 : index
    %c0_839 = arith.constant 0 : index
    %c0_840 = arith.constant 0 : index
    %920 = vector.load %arg12[%c2_838, %c0_839, %c0_840] : memref<3x256x256xbf16, #tpu.memory_space<vmem>>, vector<1x256x256xbf16>
    %921 = vector.shape_cast %920 : vector<1x256x256xbf16> to vector<256x256xbf16>
    %cst_841 = arith.constant dense<0.000000e+00> : vector<2x256xf32>
    %922 = tpu.matmul %919, %921, %cst_841 {dimension_numbers = #tpu.dot_dimension_numbers<[1], [0], [0], [1], [0, 0, 1, 1], [], []>} : vector<2x256xbf16>, vector<256x256xbf16>, vector<2x256xf32> -> vector<2x256xf32>
    %923 = arith.addf %917, %922 : vector<2x256xf32>
    %c0_842 = arith.constant 0 : index
    %c0_843 = arith.constant 0 : index
    %924 = vector.load %arg13[%c0_842, %c0_843] : memref<1x256xf32, #tpu.memory_space<vmem>>, vector<1x256xf32>
    %925 = vector.broadcast %924 : vector<1x256xf32> to vector<2x256xf32>
    %926 = arith.addf %923, %925 : vector<2x256xf32>
    %cst_844 = arith.constant 0.000000e+00 : f32
    %927 = vector.broadcast %cst_844 : f32 to vector<2x256xf32>
    %928 = arith.cmpf ogt, %926, %927 : vector<2x256xf32>
    %cst_845 = arith.constant 2.000000e-01 : f32
    %929 = vector.broadcast %cst_845 : f32 to vector<2x256xf32>
    %930 = arith.mulf %929, %926 : vector<2x256xf32>
    %931 = arith.select %928, %926, %930 : vector<2x256xi1>, vector<2x256xf32>
    %c0_846 = arith.constant 0 : index
    %c0_847 = arith.constant 0 : index
    %932 = vector.load %arg14[%c0_846, %c0_847] : memref<1x256xf32, #tpu.memory_space<vmem>>, vector<1x256xf32>
    %933 = vector.broadcast %932 : vector<1x256xf32> to vector<2x256xf32>
    %934 = arith.mulf %931, %933 : vector<2x256xf32>
    %c0_848 = arith.constant 0 : index
    %c0_849 = arith.constant 0 : index
    %935 = vector.load %arg15[%c0_848, %c0_849] : memref<1x256xf32, #tpu.memory_space<vmem>>, vector<1x256xf32>
    %936 = vector.broadcast %935 : vector<1x256xf32> to vector<2x256xf32>
    %937 = arith.addf %934, %936 : vector<2x256xf32>
    %c0_850 = arith.constant 0 : index
    %c0_851 = arith.constant 0 : index
    %938 = vector.load %arg16[%c0_850, %c0_851] : memref<512x1xf32, #tpu.memory_space<vmem>>, vector<256x1xf32>
    %cst_852 = arith.constant dense<0.000000e+00> : vector<2x1xf32>
    %939 = tpu.matmul %937, %938, %cst_852 {dimension_numbers = #tpu.dot_dimension_numbers<[1], [0], [0], [1], [0, 0, 1, 1], [], []>} : vector<2x256xf32>, vector<256x1xf32>, vector<2x1xf32> -> vector<2x1xf32>
    %940 = arith.addf %905, %939 : vector<2x1xf32>
    %c0_853 = arith.constant 0 : index
    %c0_854 = arith.constant 0 : index
    %941 = vector.load %arg18[%c0_853, %c0_854] : memref<512x10xf32, #tpu.memory_space<vmem>>, vector<256x10xf32>
    %cst_855 = arith.constant dense<0.000000e+00> : vector<2x10xf32>
    %942 = tpu.matmul %937, %941, %cst_855 {dimension_numbers = #tpu.dot_dimension_numbers<[1], [0], [0], [1], [0, 0, 1, 1], [], []>} : vector<2x256xf32>, vector<256x10xf32>, vector<2x10xf32> -> vector<2x10xf32>
    %943 = arith.addf %906, %942 : vector<2x10xf32>
    %c2_856 = arith.constant 2 : index
    %c0_857 = arith.constant 0 : index
    %c0_858 = arith.constant 0 : index
    %944 = vector.load %arg24[%c2_856, %c0_857, %c0_858] : memref<6x2x256xbf16, #tpu.memory_space<vmem>>, vector<1x2x256xbf16>
    %945 = vector.shape_cast %944 : vector<1x2x256xbf16> to vector<2x256xbf16>
    %c0_859 = arith.constant 0 : index
    %c0_860 = arith.constant 0 : index
    %c0_861 = arith.constant 0 : index
    %946 = vector.load %arg12[%c0_859, %c0_860, %c0_861] : memref<3x256x256xbf16, #tpu.memory_space<vmem>>, vector<1x256x256xbf16>
    %947 = vector.shape_cast %946 : vector<1x256x256xbf16> to vector<256x256xbf16>
    %cst_862 = arith.constant dense<0.000000e+00> : vector<2x256xf32>
    %948 = tpu.matmul %945, %947, %cst_862 {dimension_numbers = #tpu.dot_dimension_numbers<[1], [0], [0], [1], [0, 0, 1, 1], [], []>} : vector<2x256xbf16>, vector<256x256xbf16>, vector<2x256xf32> -> vector<2x256xf32>
    %c3_863 = arith.constant 3 : index
    %c0_864 = arith.constant 0 : index
    %c0_865 = arith.constant 0 : index
    %949 = vector.load %arg24[%c3_863, %c0_864, %c0_865] : memref<6x2x256xbf16, #tpu.memory_space<vmem>>, vector<1x2x256xbf16>
    %950 = vector.shape_cast %949 : vector<1x2x256xbf16> to vector<2x256xbf16>
    %c1_866 = arith.constant 1 : index
    %c0_867 = arith.constant 0 : index
    %c0_868 = arith.constant 0 : index
    %951 = vector.load %arg12[%c1_866, %c0_867, %c0_868] : memref<3x256x256xbf16, #tpu.memory_space<vmem>>, vector<1x256x256xbf16>
    %952 = vector.shape_cast %951 : vector<1x256x256xbf16> to vector<256x256xbf16>
    %cst_869 = arith.constant dense<0.000000e+00> : vector<2x256xf32>
    %953 = tpu.matmul %950, %952, %cst_869 {dimension_numbers = #tpu.dot_dimension_numbers<[1], [0], [0], [1], [0, 0, 1, 1], [], []>} : vector<2x256xbf16>, vector<256x256xbf16>, vector<2x256xf32> -> vector<2x256xf32>
    %954 = arith.addf %948, %953 : vector<2x256xf32>
    %c4_870 = arith.constant 4 : index
    %c0_871 = arith.constant 0 : index
    %c0_872 = arith.constant 0 : index
    %955 = vector.load %arg24[%c4_870, %c0_871, %c0_872] : memref<6x2x256xbf16, #tpu.memory_space<vmem>>, vector<1x2x256xbf16>
    %956 = vector.shape_cast %955 : vector<1x2x256xbf16> to vector<2x256xbf16>
    %c2_873 = arith.constant 2 : index
    %c0_874 = arith.constant 0 : index
    %c0_875 = arith.constant 0 : index
    %957 = vector.load %arg12[%c2_873, %c0_874, %c0_875] : memref<3x256x256xbf16, #tpu.memory_space<vmem>>, vector<1x256x256xbf16>
    %958 = vector.shape_cast %957 : vector<1x256x256xbf16> to vector<256x256xbf16>
    %cst_876 = arith.constant dense<0.000000e+00> : vector<2x256xf32>
    %959 = tpu.matmul %956, %958, %cst_876 {dimension_numbers = #tpu.dot_dimension_numbers<[1], [0], [0], [1], [0, 0, 1, 1], [], []>} : vector<2x256xbf16>, vector<256x256xbf16>, vector<2x256xf32> -> vector<2x256xf32>
    %960 = arith.addf %954, %959 : vector<2x256xf32>
    %c0_877 = arith.constant 0 : index
    %c0_878 = arith.constant 0 : index
    %961 = vector.load %arg13[%c0_877, %c0_878] : memref<1x256xf32, #tpu.memory_space<vmem>>, vector<1x256xf32>
    %962 = vector.broadcast %961 : vector<1x256xf32> to vector<2x256xf32>
    %963 = arith.addf %960, %962 : vector<2x256xf32>
    %cst_879 = arith.constant 0.000000e+00 : f32
    %964 = vector.broadcast %cst_879 : f32 to vector<2x256xf32>
    %965 = arith.cmpf ogt, %963, %964 : vector<2x256xf32>
    %cst_880 = arith.constant 2.000000e-01 : f32
    %966 = vector.broadcast %cst_880 : f32 to vector<2x256xf32>
    %967 = arith.mulf %966, %963 : vector<2x256xf32>
    %968 = arith.select %965, %963, %967 : vector<2x256xi1>, vector<2x256xf32>
    %c0_881 = arith.constant 0 : index
    %c0_882 = arith.constant 0 : index
    %969 = vector.load %arg14[%c0_881, %c0_882] : memref<1x256xf32, #tpu.memory_space<vmem>>, vector<1x256xf32>
    %970 = vector.broadcast %969 : vector<1x256xf32> to vector<2x256xf32>
    %971 = arith.mulf %968, %970 : vector<2x256xf32>
    %c0_883 = arith.constant 0 : index
    %c0_884 = arith.constant 0 : index
    %972 = vector.load %arg15[%c0_883, %c0_884] : memref<1x256xf32, #tpu.memory_space<vmem>>, vector<1x256xf32>
    %973 = vector.broadcast %972 : vector<1x256xf32> to vector<2x256xf32>
    %974 = arith.addf %971, %973 : vector<2x256xf32>
    %c256 = arith.constant 256 : index
    %c0_885 = arith.constant 0 : index
    %975 = vector.load %arg16[%c256, %c0_885] : memref<512x1xf32, #tpu.memory_space<vmem>>, vector<256x1xf32>
    %cst_886 = arith.constant dense<0.000000e+00> : vector<2x1xf32>
    %976 = tpu.matmul %974, %975, %cst_886 {dimension_numbers = #tpu.dot_dimension_numbers<[1], [0], [0], [1], [0, 0, 1, 1], [], []>} : vector<2x256xf32>, vector<256x1xf32>, vector<2x1xf32> -> vector<2x1xf32>
    %977 = arith.addf %940, %976 : vector<2x1xf32>
    %c256_887 = arith.constant 256 : index
    %c0_888 = arith.constant 0 : index
    %978 = vector.load %arg18[%c256_887, %c0_888] : memref<512x10xf32, #tpu.memory_space<vmem>>, vector<256x10xf32>
    %cst_889 = arith.constant dense<0.000000e+00> : vector<2x10xf32>
    %979 = tpu.matmul %974, %978, %cst_889 {dimension_numbers = #tpu.dot_dimension_numbers<[1], [0], [0], [1], [0, 0, 1, 1], [], []>} : vector<2x256xf32>, vector<256x10xf32>, vector<2x10xf32> -> vector<2x10xf32>
    %980 = arith.addf %943, %979 : vector<2x10xf32>
    %c0_890 = arith.constant 0 : index
    %c0_891 = arith.constant 0 : index
    %981 = vector.load %arg17[%c0_890, %c0_891] : memref<1x1xf32, #tpu.memory_space<vmem>>, vector<1x1xf32>
    %982 = vector.broadcast %981 : vector<1x1xf32> to vector<2x1xf32>
    %983 = arith.addf %977, %982 : vector<2x1xf32>
    %cst_892 = arith.constant 0.000000e+00 : f32
    %984 = vector.broadcast %cst_892 : f32 to vector<2x1xf32>
    %985 = arith.subf %984, %983 : vector<2x1xf32>
    %986 = math.exp %985 : vector<2x1xf32>
    %cst_893 = arith.constant 1.000000e+00 : f32
    %987 = vector.broadcast %cst_893 : f32 to vector<2x1xf32>
    %988 = arith.addf %987, %986 : vector<2x1xf32>
    %cst_894 = arith.constant 1.000000e+00 : f32
    %989 = vector.broadcast %cst_894 : f32 to vector<2x1xf32>
    %990 = arith.divf %989, %988 : vector<2x1xf32>
    %c0_895 = arith.constant 0 : index
    %c0_896 = arith.constant 0 : index
    %991 = vector.load %arg20[%c0_895, %c0_896] : memref<2x1xf32, #tpu.memory_space<vmem>>, vector<2x1xf32>
    tpu.vector_store %arg20[%c0_895, %c0_896], %990 {strides = array<i32>} : memref<2x1xf32, #tpu.memory_space<vmem>>, vector<2x1xf32>,
    %c0_897 = arith.constant 0 : index
    %c0_898 = arith.constant 0 : index
    %992 = vector.load %arg19[%c0_897, %c0_898] : memref<1x10xf32, #tpu.memory_space<vmem>>, vector<1x10xf32>
    %993 = vector.broadcast %992 : vector<1x10xf32> to vector<2x10xf32>
    %994 = arith.addf %980, %993 : vector<2x10xf32>
    %cst_899 = arith.constant dense<0xFF800000> : vector<2xf32>
    %995 = vector.multi_reduction <maximumf>, %994, %cst_899 [1] : vector<2x10xf32> to vector<2xf32>
    %996 = vector.shape_cast %995 : vector<2xf32> to vector<2x1xf32>
    %997 = vector.broadcast %996 : vector<2x1xf32> to vector<2x10xf32>
    %998 = arith.subf %994, %997 : vector<2x10xf32>
    %999 = math.exp %998 : vector<2x10xf32>
    %cst_900 = arith.constant dense<0.000000e+00> : vector<2xf32>
    %1000 = vector.multi_reduction <add>, %999, %cst_900 [1] : vector<2x10xf32> to vector<2xf32>
    %1001 = vector.shape_cast %1000 : vector<2xf32> to vector<2x1xf32>
    %1002 = vector.broadcast %1001 : vector<2x1xf32> to vector<2x10xf32>
    %1003 = arith.divf %999, %1002 : vector<2x10xf32>
    %c0_901 = arith.constant 0 : index
    %c0_902 = arith.constant 0 : index
    %1004 = vector.load %arg21[%c0_901, %c0_902] : memref<2x10xf32, #tpu.memory_space<vmem>>, vector<2x10xf32>
    tpu.vector_store %arg21[%c0_901, %c0_902], %1003 {strides = array<i32>} : memref<2x10xf32, #tpu.memory_space<vmem>>, vector<2x10xf32>,
    return
  }
  func.func @transform_0(%arg0: i32) -> (i32, i32, i32) {
    %c0_i32 = arith.constant 0 : i32
    %c0_i32_0 = arith.constant 0 : i32
    %c0_i32_1 = arith.constant 0 : i32
    %c0_i32_2 = arith.constant 0 : i32
    return %c0_i32, %c0_i32_0, %c0_i32_1 : i32, i32, i32
  }
  func.func @transform_1(%arg0: i32) -> (i32, i32, i32) {
    %c0_i32 = arith.constant 0 : i32
    %c0_i32_0 = arith.constant 0 : i32
    %c0_i32_1 = arith.constant 0 : i32
    %c0_i32_2 = arith.constant 0 : i32
    return %c0_i32, %c0_i32_0, %c0_i32_1 : i32, i32, i32
  }
  func.func @transform_2(%arg0: i32) -> (i32, i32) {
    %c0_i32 = arith.constant 0 : i32
    %c0_i32_0 = arith.constant 0 : i32
    %c0_i32_1 = arith.constant 0 : i32
    return %c0_i32, %c0_i32_0 : i32, i32
  }
  func.func @transform_3(%arg0: i32) -> (i32, i32, i32) {
    %c0_i32 = arith.constant 0 : i32
    %c0_i32_0 = arith.constant 0 : i32
    %c0_i32_1 = arith.constant 0 : i32
    %c0_i32_2 = arith.constant 0 : i32
    return %c0_i32, %c0_i32_0, %c0_i32_1 : i32, i32, i32
  }
  func.func @transform_4(%arg0: i32) -> (i32, i32) {
    %c0_i32 = arith.constant 0 : i32
    %c0_i32_0 = arith.constant 0 : i32
    %c0_i32_1 = arith.constant 0 : i32
    return %c0_i32, %c0_i32_0 : i32, i32
  }
  func.func @transform_5(%arg0: i32) -> (i32, i32) {
    %c0_i32 = arith.constant 0 : i32
    %c0_i32_0 = arith.constant 0 : i32
    %c0_i32_1 = arith.constant 0 : i32
    return %c0_i32, %c0_i32_0 : i32, i32
  }
  func.func @transform_6(%arg0: i32) -> (i32, i32) {
    %c0_i32 = arith.constant 0 : i32
    %c0_i32_0 = arith.constant 0 : i32
    %c0_i32_1 = arith.constant 0 : i32
    return %c0_i32, %c0_i32_0 : i32, i32
  }
  func.func @transform_7(%arg0: i32) -> (i32, i32, i32) {
    %c0_i32 = arith.constant 0 : i32
    %c0_i32_0 = arith.constant 0 : i32
    %c0_i32_1 = arith.constant 0 : i32
    %c0_i32_2 = arith.constant 0 : i32
    return %c0_i32, %c0_i32_0, %c0_i32_1 : i32, i32, i32
  }
  func.func @transform_8(%arg0: i32) -> (i32, i32) {
    %c0_i32 = arith.constant 0 : i32
    %c0_i32_0 = arith.constant 0 : i32
    %c0_i32_1 = arith.constant 0 : i32
    return %c0_i32, %c0_i32_0 : i32, i32
  }
  func.func @transform_9(%arg0: i32) -> (i32, i32) {
    %c0_i32 = arith.constant 0 : i32
    %c0_i32_0 = arith.constant 0 : i32
    %c0_i32_1 = arith.constant 0 : i32
    return %c0_i32, %c0_i32_0 : i32, i32
  }
  func.func @transform_10(%arg0: i32) -> (i32, i32) {
    %c0_i32 = arith.constant 0 : i32
    %c0_i32_0 = arith.constant 0 : i32
    %c0_i32_1 = arith.constant 0 : i32
    return %c0_i32, %c0_i32_0 : i32, i32
  }
  func.func @transform_11(%arg0: i32) -> (i32, i32, i32) {
    %c0_i32 = arith.constant 0 : i32
    %c0_i32_0 = arith.constant 0 : i32
    %c0_i32_1 = arith.constant 0 : i32
    %c0_i32_2 = arith.constant 0 : i32
    return %c0_i32, %c0_i32_0, %c0_i32_1 : i32, i32, i32
  }
  func.func @transform_12(%arg0: i32) -> (i32, i32) {
    %c0_i32 = arith.constant 0 : i32
    %c0_i32_0 = arith.constant 0 : i32
    %c0_i32_1 = arith.constant 0 : i32
    return %c0_i32, %c0_i32_0 : i32, i32
  }
  func.func @transform_13(%arg0: i32) -> (i32, i32) {
    %c0_i32 = arith.constant 0 : i32
    %c0_i32_0 = arith.constant 0 : i32
    %c0_i32_1 = arith.constant 0 : i32
    return %c0_i32, %c0_i32_0 : i32, i32
  }
  func.func @transform_14(%arg0: i32) -> (i32, i32) {
    %c0_i32 = arith.constant 0 : i32
    %c0_i32_0 = arith.constant 0 : i32
    %c0_i32_1 = arith.constant 0 : i32
    return %c0_i32, %c0_i32_0 : i32, i32
  }
  func.func @transform_15(%arg0: i32) -> (i32, i32) {
    %c0_i32 = arith.constant 0 : i32
    %c0_i32_0 = arith.constant 0 : i32
    %c0_i32_1 = arith.constant 0 : i32
    return %c0_i32, %c0_i32_0 : i32, i32
  }
  func.func @transform_16(%arg0: i32) -> (i32, i32) {
    %c0_i32 = arith.constant 0 : i32
    %c0_i32_0 = arith.constant 0 : i32
    %c0_i32_1 = arith.constant 0 : i32
    return %c0_i32, %c0_i32_0 : i32, i32
  }
  func.func @transform_17(%arg0: i32) -> (i32, i32) {
    %c0_i32 = arith.constant 0 : i32
    %c0_i32_0 = arith.constant 0 : i32
    %c0_i32_1 = arith.constant 0 : i32
    return %c0_i32, %c0_i32_0 : i32, i32
  }
  func.func @transform_18(%arg0: i32) -> (i32, i32) {
    %c0_i32 = arith.constant 0 : i32
    %c0_i32_0 = arith.constant 0 : i32
    %c0_i32_1 = arith.constant 0 : i32
    return %c0_i32, %c0_i32_0 : i32, i32
  }
  func.func @transform_19(%arg0: i32) -> (i32, i32) {
    %c0_i32 = arith.constant 0 : i32
    %c0_i32_0 = arith.constant 0 : i32
    %c0_i32_1 = arith.constant 0 : i32
    return %c0_i32, %c0_i32_0 : i32, i32
  }
  func.func @transform_20(%arg0: i32) -> (i32, i32) {
    %c0_i32 = arith.constant 0 : i32
    %c0_i32_0 = arith.constant 0 : i32
    %c0_i32_1 = arith.constant 0 : i32
    return %c0_i32, %c0_i32_0 : i32, i32
  }
}

</mosaic_0001>

<bundles_post_ra>
// kernel: discriminator_forward.1
= control target key start
LH: loop header
LB: loop body
LE: loop exit
PB: predicated region body
PF: predicated region fallthrough
CT: control target
= control target key end

     0   :  { %s25057_s0 = inlined_call_operand.vmem [shape: bf16[34,2,32], index: 0, kind: input, shape index: {}]   ;;  %s25058_s1 = inlined_call_operand.vmem [shape: bf16[3,32,256], index: 1, kind: input, shape index: {}]   ;;  %s25059_s2 = inlined_call_operand.vmem [shape: f32[1,256], index: 2, kind: input, shape index: {}]   ;;  %s25060_s3 = inlined_call_operand.vmem [shape: bf16[3,256,256], index: 3, kind: input, shape index: {}]   ;;  %s25061_s4 = inlined_call_operand.vmem [shape: f32[1,256], index: 4, kind: input, shape index: {}]   ;;  %s25062_s5 = inlined_call_operand.vmem [shape: f32[1,256], index: 5, kind: input, shape index: {}]   ;;  %s25063_s6 = inlined_call_operand.vmem [shape: f32[1,256], index: 6, kind: input, shape index: {}]   ;;  %s25064_s7 = inlined_call_operand.hbm [shape: bf16[3,256,256], index: 7, kind: input, shape index: {}]   ;;  %s25065_s8 = inlined_call_operand.vmem [shape: f32[1,256], index: 8, kind: input, shape index: {}]   ;;  %s25066_s9 = inlined_call_operand.vmem [shape: f32[1,256], index: 9, kind: input, shape index: {}]   ;;  %s25067_s10 = inlined_call_operand.vmem [shape: f32[1,256], index: 10, kind: input, shape index: {}]   ;;  %s25068_s11 = inlined_call_operand.hbm [shape: bf16[3,256,256], index: 11, kind: input, shape index: {}]   ;;  %s25069_s12 = inlined_call_operand.vmem [shape: f32[1,256], index: 12, kind: input, shape index: {}]   ;;  %s25070_s13 = inlined_call_operand.vmem [shape: f32[1,256], index: 13, kind: input, shape index: {}]   ;;  %s25071_s14 = inlined_call_operand.vmem [shape: f32[1,256], index: 14, kind: input, shape index: {}]   ;;  %s25072_s15 = inlined_call_operand.vmem [shape: f32[512,1], index: 15, kind: input, shape index: {}]   ;;  %s25073_s16 = inlined_call_operand.<no memory space> [shape: f32[1,1], index: 16, kind: input, shape index: {}]   ;;  %s25074_s17 = inlined_call_operand.vmem [shape: f32[512,10], index: 17, kind: input, shape index: {}]   ;;  %s25075_s18 = inlined_call_operand.vmem [shape: f32[1,10], index: 18, kind: input, shape index: {}]   ;;  %s25076_s19 = inlined_call_operand.vmem [shape: f32[2,1], index: 19, kind: output, shape index: {0}]   ;;  %s25077_s20 = inlined_call_operand.hbm [shape: f32[2,10], index: 20, kind: output, shape index: {1}]  }
   0x1   :  { %25142 = sst [smem:[#allocation35_spill]] %s25057_s0  ;;  %v26_v0 = vstv %s25073_s16 }
   0x2   :  { %25143 = sst [smem:[#allocation36_spill]] %s25058_s1  ;;  %27 = vst [vmem:[#allocation5] sm:$0x1] %v26_v0 }
   0x3   :  { %25144 = sst [smem:[#allocation37_spill]] %s25059_s2 }
   0x4   :  { %25145 = sst [smem:[#allocation38_spill]] %s25060_s3 }
   0x5   :  { %25146 = sst [smem:[#allocation39_spill]] %s25061_s4 }
   0x6   :  { %28 = vsyncpa [#allocation7], 0 }
   0x7   :  { %29 = vsyncpa [#allocation10], 0 }
   0x8   :  { %30 = vsyncpa [#allocation8], 0  ;;  %s19421_s23 = smov [#allocation6]  }
   0x9   :  { %s50_s24 = sshll.u32 %s19421_s23, 4  ;;  %s51_s24 = int_to_ptr.vmem [resolvable:$true] %s50_s24 }
   0xa   :  { %s19363_s2 = scalar_lea.vmem %s51_s24, 12288  ;;  %p19368_p1 = scmp.lt.s32.totalorder %s51_s24, %s51_s24 }
   0xb   :  { %p19364_p0 = scmp.ne.s32.totalorder %s51_s24, %s19363_s2  ;;  %p19369_p2 = scmp.lt.s32.totalorder %s19363_s2, %s19363_s2 }
   0xd   :  { %p19370_p3 = por %p19369_p2, %p19368_p1 }
   0xf   :  { %p19371_p4 = pnand %p19370_p3, %p19364_p0 }
  0x11   :  { %19374 = shalt.err (!%p19371_p4)
}
  0x12   :  { %s19422_s25 = smov 128   ;;  %s19423_s3 = smov 8  }
  0x13   :  { %56 = dma.hbm_to_vmem [thread:$0]  %s25064_s7, 12288, %s51_s24, [#allocation7], %s19422_s25, %s19422_s25, %s19423_s3  }
  0x14   :  { %s19424_s16 = smov [#allocation9]  }
  0x15   :  { %s68_s28 = sshll.u32 %s19424_s16, 4  ;;  %s69_s28 = int_to_ptr.vmem [resolvable:$true] %s68_s28 }
  0x16   :  { %s19383_s4 = scalar_lea.vmem %s69_s28, 12288  ;;  %p19388_p6 = scmp.lt.s32.totalorder %s69_s28, %s69_s28 }
  0x17   :  { %p19384_p5 = scmp.ne.s32.totalorder %s69_s28, %s19383_s4  ;;  %p19389_p7 = scmp.lt.s32.totalorder %s19383_s4, %s19383_s4 }
  0x19   :  { %p19390_p8 = por %p19389_p7, %p19388_p6 }
  0x1b   :  { %p19391_p9 = pnand %p19390_p8, %p19384_p5 }
  0x1d   :  { %19394 = shalt.err (!%p19391_p9)
}
  0x1e   :  { %74 = dma.hbm_to_vmem [thread:$0]  %s25068_s11, 12288, %s69_s28, [#allocation10], %s19422_s25, %s19422_s25, %s19423_s3  }
  0x1f   :  { %19415 = dma.done.wait [#allocation7], 12288  }
  0x20   :  { %19416 = vsyncadd [#allocation7], 4294955008 }
  0x21   :  { %19417 = dma.done.wait [#allocation10], 12288  }
  0x22   :  { %19418 = vsyncadd [#allocation10], 4294955008  ;;  %v19425_v1 = vmov 0   ;;  %s25147_s21 = sld [smem:[#allocation36_spill]]  ;;  %vm137_vm0 = vcmask 261120  }
  0x23   :  { %96 = vst [vmem:[#allocation2] sm:$0x3] %v19425_v1  ;;  %99 = vst [vmem:[#allocation3] sm:$0x3] %v19425_v1  ;;  %173 = vmatprep.mubr.bf16.mxu0 %v19425_v1  ;;  %237 = vmatprep.mubr.bf16.mxu1 %v19425_v1  ;;  %s25148_s1 = sld [smem:[#allocation35_spill]] }
  0x24   :  { %102 = vst [vmem:[#allocation4] sm:$0x3] %v19425_v1  ;;  %s25149_s11 = sld [smem:[#allocation38_spill]] }
  0x25   :  { %s25150_s3 = sld [smem:[#allocation37_spill]] }
  0x28   :  { %v19550_v2 = vld [vmem:[%s25147_s21 + $0x34] ss:$8 sps:$4 sm:$0xff]   ;;  %v19561_v4 = vld [vmem:[%s25147_s21 + $0x30] ss:$8 sps:$4 sm:$0xff]   ;;  %v19572_v6 = vld [vmem:[%s25147_s21 + $0x24] ss:$8 sps:$4 sm:$0xff]  }
  0x29   :  { %v19555_v3 = vld [vmem:[%s25147_s21 + $0x14] ss:$8 sps:$4 sm:$0xff]   ;;  %153 = vmatprep.subr.bf16.mxu0 %v19550_v2  ;;  %v19566_v5 = vld [vmem:[%s25147_s21 + $0x10] ss:$8 sps:$4 sm:$0xff]   ;;  %v19579_v7 = vld [vmem:[%s25147_s21 + $0x4] ss:$8 sps:$4 sm:$0xff]  }
  0x2a   :  { %217 = vmatprep.subr.bf16.mxu1 %v19555_v3  ;;  %154 = vmatpush1.bf16.msra.mxu0 %v19561_v4  ;;  %v19584_v8 = vld [vmem:[%s25147_s21 + $0x20] ss:$8 sps:$4 sm:$0xff]   ;;  %v19596_v10 = vld [vmem:[%s25147_s21 + $0x54] ss:$8 sps:$4 sm:$0xff]   ;;  %v19609_v13 = vld [vmem:[%s25147_s21 + $0x50] ss:$8 sps:$4 sm:$0xff]  }
  0x2b   :  { %218 = vmatpush1.bf16.msra.mxu1 %v19566_v5  ;;  %155 = vmatprep.subr.bf16.mxu0 %v19572_v6  ;;  %v19590_v9 = vld [vmem:[%s25147_s21] ss:$8 sps:$4 sm:$0xff]   ;;  %v19616_v14 = vld [vmem:[%s25147_s21 + $0x44] ss:$8 sps:$4 sm:$0xff]   ;;  %v16042_v37 = vld [vmem:[%s25148_s1 + $0x10] sm:$0x1] }
  0x2c   :  { %219 = vmatprep.subr.bf16.mxu1 %v19579_v7  ;;  %v15831_v11 = vld [vmem:[%s25148_s1 + $0x1] sm:$0x1]  ;;  %v105_v12 = vld [vmem:[%s25148_s1] sm:$0x1]  ;;  %v15846_v16 = vld [vmem:[%s25148_s1 + $0x2] sm:$0x1] }
  0x2d   :  { %v19625_v15 = vld [vmem:[%s25147_s21 + $0x40] ss:$8 sps:$4 sm:$0xff]   ;;  %v15874_v19 = vld [vmem:[%s25148_s1 + $0x4] sm:$0x1]  ;;  %v15887_v20 = vld [vmem:[%s25148_s1 + $0x5] sm:$0x1] }
  0x2e   :  { %156 = vmatpush1.bf16.msra.mxu0 %v19584_v8  ;;  %v15859_v17 = vld [vmem:[%s25148_s1 + $0x3] sm:$0x1]  ;;  %v15858_v18 = vld [vmem:[%s25148_s1 + $0x2] sm:$0x1]  ;;  %v15886_v21 = vld [vmem:[%s25148_s1 + $0x4] sm:$0x1] }
  0x2f   :  { %220 = vmatpush1.bf16.msra.mxu1 %v19590_v9  ;;  %288 = vmatprep.subr.bf16.mxu0 %v19596_v10  ;;  %v15902_v22 = vld [vmem:[%s25148_s1 + $0x6] sm:$0x1]  ;;  %v15915_v23 = vld [vmem:[%s25148_s1 + $0x7] sm:$0x1]  ;;  %v15930_v25 = vld [vmem:[%s25148_s1 + $0x8] sm:$0x1] }
  0x30   :  { %407 = vmatprep.subr.bf16.mxu1 %v19550_v2  ;;  %v15914_v24 = vld [vmem:[%s25148_s1 + $0x6] sm:$0x1]  ;;  %v15943_v26 = vld [vmem:[%s25148_s1 + $0x9] sm:$0x1]  ;;  %v15942_v27 = vld [vmem:[%s25148_s1 + $0x8] sm:$0x1] }
  0x31   :  { %15840 = vmatmul.mubr.msk.bf16.vlgmr.msra.gmra.mxu0 %vm137_vm0, %v15831_v11  ;;  %v15958_v28 = vld [vmem:[%s25148_s1 + $0xa] sm:$0x1]  ;;  %v15971_v29 = vld [vmem:[%s25148_s1 + $0xb] sm:$0x1]  ;;  %v15986_v31 = vld [vmem:[%s25148_s1 + $0xc] sm:$0x1] }
  0x32   :  { %15845 = vmatmul.mubr.msk.bf16.vlgmr.msra.gmra.mxu1 %vm137_vm0, %v105_v12  ;;  %289 = vmatpush1.bf16.msra.mxu0 %v19609_v13  ;;  %v15970_v30 = vld [vmem:[%s25148_s1 + $0xa] sm:$0x1]  ;;  %v15999_v32 = vld [vmem:[%s25148_s1 + $0xd] sm:$0x1]  ;;  %v15998_v33 = vld [vmem:[%s25148_s1 + $0xc] sm:$0x1] }
  0x33   :  { %408 = vmatpush1.bf16.msra.mxu1 %v19561_v4  ;;  %290 = vmatprep.subr.bf16.mxu0 %v19616_v14  ;;  %v16014_v34 = vld [vmem:[%s25148_s1 + $0xe] sm:$0x1]  ;;  %v16027_v35 = vld [vmem:[%s25148_s1 + $0xf] sm:$0x1]  ;;  %v16055_v38 = vld [vmem:[%s25148_s1 + $0x11] sm:$0x1] }
  0x34   :  { %409 = vmatprep.subr.bf16.mxu1 %v19572_v6  ;;  %308 = vmatprep.mubr.bf16.mxu0 %v19425_v1  ;;  %v16026_v36 = vld [vmem:[%s25148_s1 + $0xe] sm:$0x1]  ;;  %v16054_v39 = vld [vmem:[%s25148_s1 + $0x10] sm:$0x1]  ;;  %v16070_v40 = vld [vmem:[%s25148_s1 + $0x12] sm:$0x1] }
  0x35   :  { %427 = vmatprep.mubr.bf16.mxu1 %v19425_v1  ;;  %v16083_v41 = vld [vmem:[%s25148_s1 + $0x13] sm:$0x1]  ;;  %v16082_v42 = vld [vmem:[%s25148_s1 + $0x12] sm:$0x1]  ;;  %v16098_v43 = vld [vmem:[%s25148_s1 + $0x14] sm:$0x1] }
  0x36   :  { %291 = vmatpush1.bf16.msra.mxu0 %v19625_v15  ;;  %v16111_v44 = vld [vmem:[%s25148_s1 + $0x15] sm:$0x1]  ;;  %v16110_v45 = vld [vmem:[%s25148_s1 + $0x14] sm:$0x1]  ;;  %v16126_v46 = vld [vmem:[%s25148_s1 + $0x16] sm:$0x1] }
  0x37   :  { %410 = vmatpush1.bf16.msra.mxu1 %v19584_v8  ;;  %471 = vmatprep.subr.bf16.mxu0 %v19555_v3  ;;  %v16139_v47 = vld [vmem:[%s25148_s1 + $0x17] sm:$0x1]  ;;  %v19352_v50 = vld [vmem:[%s25147_s21 + $0x10] ss:$8 sps:$4 sm:$0xff]   ;;  %v19353_v51 = vld [vmem:[%s25147_s21 + $0x4] ss:$8 sps:$4 sm:$0xff]  }
  0x38   :  { %541 = vmatprep.subr.bf16.mxu1 %v19596_v10  ;;  %v19916_v48 = vld [vmem:[%s25147_s21 + $0x34] ss:$8 sps:$4 sm:$0xff]   ;;  %v16154_v53 = vld [vmem:[%s25148_s1 + $0x18] sm:$0x1]  ;;  %v19952_v56 = vld [vmem:[%s25147_s21 + $0x24] ss:$8 sps:$4 sm:$0xff]  }
  0x39   :  { %15855 = vmatmul.mubr.msk.bf16.vlgmr.msra.gmra.mxu0 %vm137_vm0, %v15846_v16  ;;  %v19921_v49 = vld [vmem:[%s25147_s21 + $0x14] ss:$8 sps:$4 sm:$0xff]   ;;  %v19942_v54 = vld [vmem:[%s25147_s21 + $0x30] ss:$8 sps:$4 sm:$0xff]   ;;  %v19957_v57 = vld [vmem:[%s25147_s21 + $0x4] ss:$8 sps:$4 sm:$0xff]  }
  0x3a   :  { %15868 = vmatmul.mubr.msk.bf16.vlgmr.msra.gmra.mxu1 %vm137_vm0, %v15859_v17  ;;  %472 = vmatpush1.bf16.msra.mxu0 %v19566_v5  ;;  %v16138_v52 = vld [vmem:[%s25148_s1 + $0x16] sm:$0x1]  ;;  %v19947_v55 = vld [vmem:[%s25147_s21 + $0x10] ss:$8 sps:$4 sm:$0xff]   ;;  %v19354_v58 = vld [vmem:[%s25147_s21] ss:$8 sps:$4 sm:$0xff]  }
  0x3b   :  { %542 = vmatpush1.bf16.msra.mxu1 %v19609_v13  ;;  %473 = vmatprep.subr.bf16.mxu0 %v19579_v7  ;;  %v19968_v59 = vld [vmem:[%s25147_s21 + $0x20] ss:$8 sps:$4 sm:$0xff]   ;;  %v19980_v61 = vld [vmem:[%s25147_s21 + $0x54] ss:$8 sps:$4 sm:$0xff]   ;;  %v16167_v62 = vld [vmem:[%s25148_s1 + $0x19] sm:$0x1] }
  0x3c   :  { %543 = vmatprep.subr.bf16.mxu1 %v19616_v14  ;;  %491 = vmatprep.mubr.bf16.mxu0 %v19425_v1  ;;  %v19973_v60 = vld [vmem:[%s25147_s21] ss:$8 sps:$4 sm:$0xff]   ;;  %v16166_v63 = vld [vmem:[%s25148_s1 + $0x18] sm:$0x1]  ;;  %v16251_v11 = vld [vmem:[%s25148_s1 + $0x1f] sm:$0x1] }
  0x3d   :  { %561 = vmatprep.mubr.bf16.mxu1 %v19425_v1  ;;  %v19997_v0 = vld [vmem:[%s25147_s21 + $0x50] ss:$8 sps:$4 sm:$0xff]   ;;  %v19426_v12 = vmov 1966171168   ;;  %v18293_v16 = vld [vmem:[%s25149_s11 + $0x74] ss:$8 sps:$4 sm:$0xff]  }
  0x3e   :  { %474 = vmatpush1.bf16.msra.mxu0 %v19590_v9  ;;  %v20095_v17 = vld.sshfl [vmem:[#allocation2] sm:$0x11 pattern:$0x75316420] }
  0x3f   :  { %544 = vmatpush1.bf16.msra.mxu1 %v19625_v15  ;;  %660 = vmatprep.subr.bf16.mxu0 %v19550_v2 }
  0x40   :  { %724 = vmatprep.subr.bf16.mxu1 %v19555_v3 }
  0x41   :  { %15873 = vmatmul.mubr.msk.bf16.vlgmr.msra.gmra.mxu0 %vm137_vm0, %v15858_v18 }
  0x42   :  { %15883 = vmatmul.mubr.msk.bf16.vlgmr.msra.gmra.mxu1 %vm137_vm0, %v15874_v19  ;;  %661 = vmatpush1.bf16.msra.mxu0 %v19561_v4  ;;  %v16250_v19 = vld [vmem:[%s25148_s1 + $0x1e] sm:$0x1] }
  0x43   :  { %725 = vmatpush1.bf16.msra.mxu1 %v19566_v5  ;;  %662 = vmatprep.subr.bf16.mxu0 %v19572_v6 }
  0x44   :  { %726 = vmatprep.subr.bf16.mxu1 %v19579_v7  ;;  %680 = vmatprep.mubr.bf16.mxu0 %v19425_v1 }
  0x45   :  { %744 = vmatprep.mubr.bf16.mxu1 %v19425_v1 }
  0x46   :  { %663 = vmatpush1.bf16.msra.mxu0 %v19584_v8 }
  0x47   :  { %727 = vmatpush1.bf16.msra.mxu1 %v19590_v9  ;;  %794 = vmatprep.subr.bf16.mxu0 %v19596_v10 }
  0x48   :  { %913 = vmatprep.subr.bf16.mxu1 %v19550_v2 }
  0x49   :  { %15896 = vmatmul.mubr.msk.bf16.vlgmr.msra.gmra.mxu0 %vm137_vm0, %v15887_v20  ;;  %v16266_v20 = vld [vmem:[%s25148_s1 + $0x20] sm:$0x1] }
  0x4a   :  { %15901 = vmatmul.mubr.msk.bf16.vlgmr.msra.gmra.mxu1 %vm137_vm0, %v15886_v21  ;;  %795 = vmatpush1.bf16.msra.mxu0 %v19609_v13  ;;  %v20112_v21 = vld [vmem:[%s25149_s11 + $0x170] ss:$8 sps:$4 sm:$0xff]  }
  0x4b   :  { %914 = vmatpush1.bf16.msra.mxu1 %v19561_v4  ;;  %796 = vmatprep.subr.bf16.mxu0 %v19616_v14 }
  0x4c   :  { %915 = vmatprep.subr.bf16.mxu1 %v19572_v6  ;;  %814 = vmatprep.mubr.bf16.mxu0 %v19425_v1 }
  0x4d   :  { %933 = vmatprep.mubr.bf16.mxu1 %v19425_v1 }
  0x4e   :  { %797 = vmatpush1.bf16.msra.mxu0 %v19625_v15 }
  0x4f   :  { %916 = vmatpush1.bf16.msra.mxu1 %v19584_v8  ;;  %977 = vmatprep.subr.bf16.mxu0 %v19555_v3 }
  0x50   :  { %1047 = vmatprep.subr.bf16.mxu1 %v19596_v10 }
  0x51   :  { %15911 = vmatmul.mubr.msk.bf16.vlgmr.msra.gmra.mxu0 %vm137_vm0, %v15902_v22  ;;  %v18291_v22 = vld [vmem:[%s25149_s11 + $0x70] ss:$8 sps:$4 sm:$0xff]  }
  0x52   :  { %15924 = vmatmul.mubr.msk.bf16.vlgmr.msra.gmra.mxu1 %vm137_vm0, %v15915_v23  ;;  %978 = vmatpush1.bf16.msra.mxu0 %v19566_v5 }
  0x53   :  { %1048 = vmatpush1.bf16.msra.mxu1 %v19609_v13  ;;  %979 = vmatprep.subr.bf16.mxu0 %v19579_v7 }
  0x54   :  { %1049 = vmatprep.subr.bf16.mxu1 %v19616_v14  ;;  %997 = vmatprep.mubr.bf16.mxu0 %v19425_v1 }
  0x55   :  { %1067 = vmatprep.mubr.bf16.mxu1 %v19425_v1 }
  0x56   :  { %980 = vmatpush1.bf16.msra.mxu0 %v19590_v9 }
  0x57   :  { %1050 = vmatpush1.bf16.msra.mxu1 %v19625_v15  ;;  %1166 = vmatprep.subr.bf16.mxu0 %v19550_v2 }
  0x58   :  { %1230 = vmatprep.subr.bf16.mxu1 %v19555_v3 }
  0x59   :  { %15929 = vmatmul.mubr.msk.bf16.vlgmr.msra.gmra.mxu0 %vm137_vm0, %v15914_v24  ;;  %v20122_v24 = vld [vmem:[%s25149_s11 + $0x164] ss:$8 sps:$4 sm:$0xff]  }
  0x5a   :  { %15939 = vmatmul.mubr.msk.bf16.vlgmr.msra.gmra.mxu1 %vm137_vm0, %v15930_v25  ;;  %1167 = vmatpush1.bf16.msra.mxu0 %v19561_v4  ;;  %v18299_v25 = vld [vmem:[%s25149_s11 + $0x64] ss:$8 sps:$4 sm:$0xff]  }
  0x5b   :  { %1231 = vmatpush1.bf16.msra.mxu1 %v19566_v5  ;;  %1168 = vmatprep.subr.bf16.mxu0 %v19572_v6 }
  0x5c   :  { %1232 = vmatprep.subr.bf16.mxu1 %v19579_v7  ;;  %1186 = vmatprep.mubr.bf16.mxu0 %v19425_v1 }
  0x5d   :  { %1250 = vmatprep.mubr.bf16.mxu1 %v19425_v1 }
  0x5e   :  { %1169 = vmatpush1.bf16.msra.mxu0 %v19584_v8 }
  0x5f   :  { %1233 = vmatpush1.bf16.msra.mxu1 %v19590_v9  ;;  %1300 = vmatprep.subr.bf16.mxu0 %v19596_v10 }
  0x60   :  { %1419 = vmatprep.subr.bf16.mxu1 %v19550_v2 }
  0x61   :  { %15952 = vmatmul.mubr.msk.bf16.vlgmr.msra.gmra.mxu0 %vm137_vm0, %v15943_v26 }
  0x62   :  { %15957 = vmatmul.mubr.msk.bf16.vlgmr.msra.gmra.mxu1 %vm137_vm0, %v15942_v27  ;;  %1301 = vmatpush1.bf16.msra.mxu0 %v19609_v13  ;;  %v20135_v27 = vld [vmem:[%s25149_s11 + $0x160] ss:$8 sps:$4 sm:$0xff]  }
  0x63   :  { %1420 = vmatpush1.bf16.msra.mxu1 %v19561_v4  ;;  %1302 = vmatprep.subr.bf16.mxu0 %v19616_v14 }
  0x64   :  { %1421 = vmatprep.subr.bf16.mxu1 %v19572_v6  ;;  %1320 = vmatprep.mubr.bf16.mxu0 %v19425_v1 }
  0x65   :  { %1439 = vmatprep.mubr.bf16.mxu1 %v19425_v1 }
  0x66   :  { %1303 = vmatpush1.bf16.msra.mxu0 %v19625_v15 }
  0x67   :  { %1422 = vmatpush1.bf16.msra.mxu1 %v19584_v8  ;;  %1483 = vmatprep.subr.bf16.mxu0 %v19555_v3 }
  0x68   :  { %1553 = vmatprep.subr.bf16.mxu1 %v19596_v10 }
  0x69   :  { %15967 = vmatmul.mubr.msk.bf16.vlgmr.msra.gmra.mxu0 %vm137_vm0, %v15958_v28  ;;  %v18297_v28 = vld [vmem:[%s25149_s11 + $0x60] ss:$8 sps:$4 sm:$0xff]  }
  0x6a   :  { %15980 = vmatmul.mubr.msk.bf16.vlgmr.msra.gmra.mxu1 %vm137_vm0, %v15971_v29  ;;  %1484 = vmatpush1.bf16.msra.mxu0 %v19566_v5 }
  0x6b   :  { %1554 = vmatpush1.bf16.msra.mxu1 %v19609_v13  ;;  %1485 = vmatprep.subr.bf16.mxu0 %v19579_v7 }
  0x6c   :  { %1555 = vmatprep.subr.bf16.mxu1 %v19616_v14  ;;  %1503 = vmatprep.mubr.bf16.mxu0 %v19425_v1 }
  0x6d   :  { %1573 = vmatprep.mubr.bf16.mxu1 %v19425_v1 }
  0x6e   :  { %1486 = vmatpush1.bf16.msra.mxu0 %v19590_v9 }
  0x6f   :  { %1556 = vmatpush1.bf16.msra.mxu1 %v19625_v15  ;;  %1672 = vmatprep.subr.bf16.mxu0 %v19550_v2 }
  0x70   :  { %1736 = vmatprep.subr.bf16.mxu1 %v19555_v3 }
  0x71   :  { %15985 = vmatmul.mubr.msk.bf16.vlgmr.msra.gmra.mxu0 %vm137_vm0, %v15970_v30  ;;  %v20146_v30 = vld [vmem:[%s25149_s11 + $0x154] ss:$8 sps:$4 sm:$0xff]  }
  0x72   :  { %15995 = vmatmul.mubr.msk.bf16.vlgmr.msra.gmra.mxu1 %vm137_vm0, %v15986_v31  ;;  %1673 = vmatpush1.bf16.msra.mxu0 %v19561_v4  ;;  %v18305_v31 = vld [vmem:[%s25149_s11 + $0x54] ss:$8 sps:$4 sm:$0xff]  }
  0x73   :  { %1737 = vmatpush1.bf16.msra.mxu1 %v19566_v5  ;;  %1674 = vmatprep.subr.bf16.mxu0 %v19572_v6 }
  0x74   :  { %1738 = vmatprep.subr.bf16.mxu1 %v19579_v7  ;;  %1692 = vmatprep.mubr.bf16.mxu0 %v19425_v1 }
  0x75   :  { %1756 = vmatprep.mubr.bf16.mxu1 %v19425_v1 }
  0x76   :  { %1675 = vmatpush1.bf16.msra.mxu0 %v19584_v8 }
  0x77   :  { %1739 = vmatpush1.bf16.msra.mxu1 %v19590_v9  ;;  %1806 = vmatprep.subr.bf16.mxu0 %v19596_v10 }
  0x78   :  { %1925 = vmatprep.subr.bf16.mxu1 %v19550_v2 }
  0x79   :  { %16008 = vmatmul.mubr.msk.bf16.vlgmr.msra.gmra.mxu0 %vm137_vm0, %v15999_v32  ;;  %v20156_v32 = vld [vmem:[%s25149_s11 + $0x150] ss:$8 sps:$4 sm:$0xff]  }
  0x7a   :  { %16013 = vmatmul.mubr.msk.bf16.vlgmr.msra.gmra.mxu1 %vm137_vm0, %v15998_v33  ;;  %1807 = vmatpush1.bf16.msra.mxu0 %v19609_v13  ;;  %v18303_v33 = vld [vmem:[%s25149_s11 + $0x50] ss:$8 sps:$4 sm:$0xff]  }
  0x7b   :  { %1926 = vmatpush1.bf16.msra.mxu1 %v19561_v4  ;;  %1808 = vmatprep.subr.bf16.mxu0 %v19616_v14 }
  0x7c   :  { %1927 = vmatprep.subr.bf16.mxu1 %v19572_v6  ;;  %1826 = vmatprep.mubr.bf16.mxu0 %v19425_v1 }
  0x7d   :  { %1945 = vmatprep.mubr.bf16.mxu1 %v19425_v1 }
  0x7e   :  { %1809 = vmatpush1.bf16.msra.mxu0 %v19625_v15 }
  0x7f   :  { %1928 = vmatpush1.bf16.msra.mxu1 %v19584_v8  ;;  %1989 = vmatprep.subr.bf16.mxu0 %v19555_v3 }
  0x80   :  { %2059 = vmatprep.subr.bf16.mxu1 %v19596_v10 }
  0x81   :  { %16023 = vmatmul.mubr.msk.bf16.vlgmr.msra.gmra.mxu0 %vm137_vm0, %v16014_v34  ;;  %v20164_v34 = vld [vmem:[%s25149_s11 + $0x144] ss:$8 sps:$4 sm:$0xff]  }
  0x82   :  { %16036 = vmatmul.mubr.msk.bf16.vlgmr.msra.gmra.mxu1 %vm137_vm0, %v16027_v35  ;;  %1990 = vmatpush1.bf16.msra.mxu0 %v19566_v5  ;;  %v18311_v35 = vld [vmem:[%s25149_s11 + $0x44] ss:$8 sps:$4 sm:$0xff]  }
  0x83   :  { %2060 = vmatpush1.bf16.msra.mxu1 %v19609_v13  ;;  %1991 = vmatprep.subr.bf16.mxu0 %v19579_v7 }
  0x84   :  { %2061 = vmatprep.subr.bf16.mxu1 %v19616_v14  ;;  %2009 = vmatprep.mubr.bf16.mxu0 %v19425_v1 }
  0x85   :  { %2079 = vmatprep.mubr.bf16.mxu1 %v19425_v1 }
  0x86   :  { %1992 = vmatpush1.bf16.msra.mxu0 %v19590_v9 }
  0x87   :  { %2062 = vmatpush1.bf16.msra.mxu1 %v19625_v15  ;;  %2178 = vmatprep.subr.bf16.mxu0 %v19550_v2 }
  0x88   :  { %2242 = vmatprep.subr.bf16.mxu1 %v19555_v3 }
  0x89   :  { %16041 = vmatmul.mubr.msk.bf16.vlgmr.msra.gmra.mxu0 %vm137_vm0, %v16026_v36  ;;  %v20174_v36 = vld [vmem:[%s25149_s11 + $0x140] ss:$8 sps:$4 sm:$0xff]  }
  0x8a   :  { %16051 = vmatmul.mubr.msk.bf16.vlgmr.msra.gmra.mxu1 %vm137_vm0, %v16042_v37  ;;  %2179 = vmatpush1.bf16.msra.mxu0 %v19561_v4 }
  0x8b   :  { %2243 = vmatpush1.bf16.msra.mxu1 %v19566_v5  ;;  %2180 = vmatprep.subr.bf16.mxu0 %v19572_v6 }
  0x8c   :  { %2244 = vmatprep.subr.bf16.mxu1 %v19579_v7  ;;  %2198 = vmatprep.mubr.bf16.mxu0 %v19425_v1 }
  0x8d   :  { %2262 = vmatprep.mubr.bf16.mxu1 %v19425_v1 }
  0x8e   :  { %2181 = vmatpush1.bf16.msra.mxu0 %v19584_v8 }
  0x8f   :  { %2245 = vmatpush1.bf16.msra.mxu1 %v19590_v9  ;;  %2312 = vmatprep.subr.bf16.mxu0 %v19596_v10 }
  0x90   :  { %2431 = vmatprep.subr.bf16.mxu1 %v19550_v2 }
  0x91   :  { %16064 = vmatmul.mubr.msk.bf16.vlgmr.msra.gmra.mxu0 %vm137_vm0, %v16055_v38 }
  0x92   :  { %16069 = vmatmul.mubr.msk.bf16.vlgmr.msra.gmra.mxu1 %vm137_vm0, %v16054_v39  ;;  %2313 = vmatpush1.bf16.msra.mxu0 %v19609_v13  ;;  %v18309_v39 = vld [vmem:[%s25149_s11 + $0x40] ss:$8 sps:$4 sm:$0xff]  }
  0x93   :  { %2432 = vmatpush1.bf16.msra.mxu1 %v19561_v4  ;;  %2314 = vmatprep.subr.bf16.mxu0 %v19616_v14 }
  0x94   :  { %2433 = vmatprep.subr.bf16.mxu1 %v19572_v6  ;;  %2332 = vmatprep.mubr.bf16.mxu0 %v19425_v1 }
  0x95   :  { %2451 = vmatprep.mubr.bf16.mxu1 %v19425_v1 }
  0x96   :  { %2315 = vmatpush1.bf16.msra.mxu0 %v19625_v15 }
  0x97   :  { %2434 = vmatpush1.bf16.msra.mxu1 %v19584_v8  ;;  %2495 = vmatprep.subr.bf16.mxu0 %v19555_v3 }
  0x98   :  { %2565 = vmatprep.subr.bf16.mxu1 %v19596_v10 }
  0x99   :  { %16079 = vmatmul.mubr.msk.bf16.vlgmr.msra.gmra.mxu0 %vm137_vm0, %v16070_v40  ;;  %v20183_v40 = vld [vmem:[%s25149_s11 + $0x134] ss:$8 sps:$4 sm:$0xff]  }
  0x9a   :  { %16092 = vmatmul.mubr.msk.bf16.vlgmr.msra.gmra.mxu1 %vm137_vm0, %v16083_v41  ;;  %2496 = vmatpush1.bf16.msra.mxu0 %v19566_v5  ;;  %v18317_v41 = vld [vmem:[%s25149_s11 + $0x34] ss:$8 sps:$4 sm:$0xff]  }
  0x9b   :  { %2566 = vmatpush1.bf16.msra.mxu1 %v19609_v13  ;;  %2497 = vmatprep.subr.bf16.mxu0 %v19579_v7 }
  0x9c   :  { %2567 = vmatprep.subr.bf16.mxu1 %v19616_v14  ;;  %2515 = vmatprep.mubr.bf16.mxu0 %v19425_v1 }
  0x9d   :  { %2585 = vmatprep.mubr.bf16.mxu1 %v19425_v1 }
  0x9e   :  { %2498 = vmatpush1.bf16.msra.mxu0 %v19590_v9 }
  0x9f   :  { %2568 = vmatpush1.bf16.msra.mxu1 %v19625_v15  ;;  %2684 = vmatprep.subr.bf16.mxu0 %v19550_v2 }
  0xa0   :  { %2748 = vmatprep.subr.bf16.mxu1 %v19555_v3 }
  0xa1   :  { %16097 = vmatmul.mubr.msk.bf16.vlgmr.msra.gmra.mxu0 %vm137_vm0, %v16082_v42 }
  0xa2   :  { %16107 = vmatmul.mubr.msk.bf16.vlgmr.msra.gmra.mxu1 %vm137_vm0, %v16098_v43  ;;  %2685 = vmatpush1.bf16.msra.mxu0 %v19561_v4 }
  0xa3   :  { %2749 = vmatpush1.bf16.msra.mxu1 %v19566_v5  ;;  %2686 = vmatprep.subr.bf16.mxu0 %v19572_v6  ;;  %v16195_v5 = vld [vmem:[%s25148_s1 + $0x1b] sm:$0x1] }
  0xa4   :  { %2750 = vmatprep.subr.bf16.mxu1 %v19579_v7  ;;  %2704 = vmatprep.mubr.bf16.mxu0 %v19425_v1  ;;  %v16210_v7 = vld [vmem:[%s25148_s1 + $0x1c] sm:$0x1] }
  0xa5   :  { %2768 = vmatprep.mubr.bf16.mxu1 %v19425_v1 }
  0xa6   :  { %2687 = vmatpush1.bf16.msra.mxu0 %v19584_v8 }
  0xa7   :  { %2751 = vmatpush1.bf16.msra.mxu1 %v19590_v9  ;;  %2818 = vmatprep.subr.bf16.mxu0 %v19596_v10  ;;  %v16222_v9 = vld [vmem:[%s25148_s1 + $0x1c] sm:$0x1] }
  0xa8   :  { %2937 = vmatprep.subr.bf16.mxu1 %v19550_v2  ;;  %v20002_v2 = vld [vmem:[%s25147_s21 + $0x44] ss:$8 sps:$4 sm:$0xff]  }
  0xa9   :  { %16120 = vmatmul.mubr.msk.bf16.vlgmr.msra.gmra.mxu0 %vm137_vm0, %v16111_v44  ;;  %v319_v44 = vld [vmem:[%s25150_s3] sm:$0x3] }
  0xaa   :  { %16125 = vmatmul.mubr.msk.bf16.vlgmr.msra.gmra.mxu1 %vm137_vm0, %v16110_v45  ;;  %2819 = vmatpush1.bf16.msra.mxu0 %v19609_v13 }
  0xab   :  { %2938 = vmatpush1.bf16.msra.mxu1 %v19561_v4  ;;  %2820 = vmatprep.subr.bf16.mxu0 %v19616_v14  ;;  %v16182_v4 = vld [vmem:[%s25148_s1 + $0x1a] sm:$0x1] }
  0xac   :  { %2939 = vmatprep.subr.bf16.mxu1 %v19572_v6  ;;  %2838 = vmatprep.mubr.bf16.mxu0 %v19425_v1  ;;  %v16194_v6 = vld [vmem:[%s25148_s1 + $0x1a] sm:$0x1] }
  0xad   :  { %2957 = vmatprep.mubr.bf16.mxu1 %v19425_v1 }
  0xae   :  { %2821 = vmatpush1.bf16.msra.mxu0 %v19625_v15 }
  0xaf   :  { %2940 = vmatpush1.bf16.msra.mxu1 %v19584_v8  ;;  %3001 = vmatprep.subr.bf16.mxu0 %v19555_v3  ;;  %v20015_v3 = vld [vmem:[%s25147_s21 + $0x40] ss:$8 sps:$4 sm:$0xff]   ;;  %v16223_v8 = vld [vmem:[%s25148_s1 + $0x1d] sm:$0x1] }
  0xb0   :  { %3071 = vmatprep.subr.bf16.mxu1 %v19596_v10  ;;  %v16238_v10 = vld [vmem:[%s25148_s1 + $0x1e] sm:$0x1]  ;;  %s25151_s1 = sld [smem:[#allocation39_spill]] }
  0xb1   :  { %16135 = vmatmul.mubr.msk.bf16.vlgmr.msra.gmra.mxu0 %vm137_vm0, %v16126_v46  ;;  %v20197_v46 = vld [vmem:[%s25149_s11 + $0x130] ss:$8 sps:$4 sm:$0xff]  }
  0xb2   :  { %16148 = vmatmul.mubr.msk.bf16.vlgmr.msra.gmra.mxu1 %vm137_vm0, %v16139_v47  ;;  %3002 = vmatpush1.bf16.msra.mxu0 %v19352_v50  ;;  %v18315_v47 = vld [vmem:[%s25149_s11 + $0x30] ss:$8 sps:$4 sm:$0xff]   ;;  %v20205_v50 = vld [vmem:[%s25149_s11 + $0x124] ss:$8 sps:$4 sm:$0xff]  }
  0xb3   :  { %3072 = vmatpush1.bf16.msra.mxu1 %v19609_v13  ;;  %3003 = vmatprep.subr.bf16.mxu0 %v19353_v51  ;;  %v345_v13 = vunpack.c.l.s4 %v19426_v12  ;;  %v20248_v12 = vld [vmem:[%s25149_s11 + $0x104] ss:$8 sps:$4 sm:$0xff]  }
  0xb4   :  { %3073 = vmatprep.subr.bf16.mxu1 %v19616_v14  ;;  %3021 = vmatprep.mubr.bf16.mxu0 %v19425_v1  ;;  %v321_v14 = vlaneseq }
  0xb5   :  { %3091 = vmatprep.mubr.bf16.mxu1 %v19425_v1  ;;  %v346_v18 = vunpack.c.0.s8 %v345_v13 }
  0xb6   :  { %3004 = vmatpush1.bf16.msra.mxu0 %v19354_v58  ;;  %v322_v23 = vshrl.u32 %v321_v14, 7  ;;  %v18321_v58 = vld [vmem:[%s25149_s11 + $0x20] ss:$8 sps:$4 sm:$0xff]  }
  0xb7   :  { %3074 = vmatpush1.bf16.msra.mxu1 %v19625_v15  ;;  %3190 = vmatprep.subr.bf16.mxu0 %v19916_v48  ;;  %v20090_v15 = vld [vmem:[%s25149_s11 + $0x174] ss:$8 sps:$4 sm:$0xff]  }
  0xb8   :  { %3254 = vmatprep.subr.bf16.mxu1 %v19921_v49  ;;  %v20129_v26 = vsub.s32 %v346_v18, %v322_v23  ;;  %v20192_v45 = vsub.s32 0, %v322_v23  ;;  %v20208_v51 = vsub.s32 1, %v322_v23  ;;  %v18333_v23 = vld [vmem:[%s25149_s11] ss:$8 sps:$4 sm:$0xff]  }
  0xb9   :  { %16153 = vmatmul.mubr.msk.bf16.vlgmr.msra.gmra.mxu0 %vm137_vm0, %v16138_v52  ;;  %v18323_v52 = vld [vmem:[%s25149_s11 + $0x24] ss:$8 sps:$4 sm:$0xff]  }
  0xba   :  { %16163 = vmatmul.mubr.msk.bf16.vlgmr.msra.gmra.mxu1 %vm137_vm0, %v16154_v53  ;;  %3191 = vmatpush1.bf16.msra.mxu0 %v19942_v54 }
  0xbb   :  { %3255 = vmatpush1.bf16.msra.mxu1 %v19947_v55  ;;  %3192 = vmatprep.subr.bf16.mxu0 %v19952_v56 }
  0xbc   :  { %3256 = vmatprep.subr.bf16.mxu1 %v19957_v57  ;;  %3210 = vmatprep.mubr.bf16.mxu0 %v19425_v1 }
  0xbd   :  { %3274 = vmatprep.mubr.bf16.mxu1 %v19425_v1 }
  0xbe   :  { %3193 = vmatpush1.bf16.msra.mxu0 %v19968_v59 }
  0xbf   :  { %3257 = vmatpush1.bf16.msra.mxu1 %v19973_v60  ;;  %3324 = vmatprep.subr.bf16.mxu0 %v19980_v61 }
  0xc0   :  { %3443 = vmatprep.subr.bf16.mxu1 %v19916_v48 }
  0xc1   :  { %16176 = vmatmul.mubr.msk.bf16.vlgmr.msra.gmra.mxu0 %vm137_vm0, %v16167_v62 }
  0xc2   :  { %16181 = vmatmul.mubr.msk.bf16.vlgmr.msra.gmra.mxu1 %vm137_vm0, %v16166_v63  ;;  %3325 = vmatpush1.bf16.msra.mxu0 %v19997_v0 }
  0xc3   :  { %3444 = vmatpush1.bf16.msra.mxu1 %v19942_v54  ;;  %3326 = vmatprep.subr.bf16.mxu0 %v20002_v2 }
  0xc4   :  { %3445 = vmatprep.subr.bf16.mxu1 %v19952_v56  ;;  %3344 = vmatprep.mubr.bf16.mxu0 %v19425_v1 }
  0xc5   :  { %3463 = vmatprep.mubr.bf16.mxu1 %v19425_v1 }
  0xc6   :  { %3327 = vmatpush1.bf16.msra.mxu0 %v20015_v3 }
  0xc7   :  { %3446 = vmatpush1.bf16.msra.mxu1 %v19968_v59  ;;  %3507 = vmatprep.subr.bf16.mxu0 %v19921_v49 }
  0xc8   :  { %3577 = vmatprep.subr.bf16.mxu1 %v19980_v61 }
  0xc9   :  { %16191 = vmatmul.mubr.msk.bf16.vlgmr.msra.gmra.mxu0 %vm137_vm0, %v16182_v4 }
  0xca   :  { %16204 = vmatmul.mubr.msk.bf16.vlgmr.msra.gmra.mxu1 %vm137_vm0, %v16195_v5  ;;  %3508 = vmatpush1.bf16.msra.mxu0 %v19947_v55 }
  0xcb   :  { %3578 = vmatpush1.bf16.msra.mxu1 %v19997_v0  ;;  %3509 = vmatprep.subr.bf16.mxu0 %v19957_v57 }
  0xcc   :  { %3579 = vmatprep.subr.bf16.mxu1 %v20002_v2  ;;  %3527 = vmatprep.mubr.bf16.mxu0 %v19425_v1 }
  0xcd   :  { %3597 = vmatprep.mubr.bf16.mxu1 %v19425_v1 }
  0xce   :  { %3510 = vmatpush1.bf16.msra.mxu0 %v19973_v60 }
  0xcf   :  { %3580 = vmatpush1.bf16.msra.mxu1 %v20015_v3  ;;  %3696 = vmatprep.subr.bf16.mxu0 %v19916_v48 }
  0xd0   :  { %3760 = vmatprep.subr.bf16.mxu1 %v19921_v49 }
  0xd1   :  { %16209 = vmatmul.mubr.msk.bf16.vlgmr.msra.gmra.mxu0 %vm137_vm0, %v16194_v6 }
  0xd2   :  { %16219 = vmatmul.mubr.msk.bf16.vlgmr.msra.gmra.mxu1 %vm137_vm0, %v16210_v7  ;;  %3697 = vmatpush1.bf16.msra.mxu0 %v19942_v54  ;;  %v20237_v7 = vld [vmem:[%s25149_s11 + $0x110] ss:$8 sps:$4 sm:$0xff]  }
  0xd3   :  { %3761 = vmatpush1.bf16.msra.mxu1 %v19947_v55  ;;  %3698 = vmatprep.subr.bf16.mxu0 %v19952_v56 }
  0xd4   :  { %3762 = vmatprep.subr.bf16.mxu1 %v19957_v57  ;;  %3716 = vmatprep.mubr.bf16.mxu0 %v19425_v1 }
  0xd5   :  { %3780 = vmatprep.mubr.bf16.mxu1 %v19425_v1 }
  0xd6   :  { %3699 = vmatpush1.bf16.msra.mxu0 %v19968_v59 }
  0xd7   :  { %3763 = vmatpush1.bf16.msra.mxu1 %v19973_v60  ;;  %3830 = vmatprep.subr.bf16.mxu0 %v19980_v61 }
  0xd8   :  { %3949 = vmatprep.subr.bf16.mxu1 %v19916_v48 }
  0xd9   :  { %16232 = vmatmul.mubr.msk.bf16.vlgmr.msra.gmra.mxu0 %vm137_vm0, %v16223_v8  ;;  %v18327_v8 = vld [vmem:[%s25149_s11 + $0x10] ss:$8 sps:$4 sm:$0xff]  }
  0xda   :  { %16237 = vmatmul.mubr.msk.bf16.vlgmr.msra.gmra.mxu1 %vm137_vm0, %v16222_v9  ;;  %3831 = vmatpush1.bf16.msra.mxu0 %v19997_v0 }
  0xdb   :  { %3950 = vmatpush1.bf16.msra.mxu1 %v19942_v54  ;;  %3832 = vmatprep.subr.bf16.mxu0 %v20002_v2 }
  0xdc   :  { %3951 = vmatprep.subr.bf16.mxu1 %v19952_v56  ;;  %3850 = vmatprep.mubr.bf16.mxu0 %v19425_v1  ;;  %v324_v56 = vrot.slane %v319_v44, %v20192_v45 }
  0xdd   :  { %3969 = vmatprep.mubr.bf16.mxu1 %v19425_v1 }
  0xde   :  { %3833 = vmatpush1.bf16.msra.mxu0 %v20015_v3 }
  0xdf   :  { %3952 = vmatpush1.bf16.msra.mxu1 %v19968_v59  ;;  %4013 = vmatprep.subr.bf16.mxu0 %v19921_v49 }
  0xe0   :  { %4083 = vmatprep.subr.bf16.mxu1 %v19980_v61  ;;  %v20226_v61 = vld [vmem:[%s25149_s11 + $0x114] ss:$8 sps:$4 sm:$0xff]  }
  0xe1   :  { %16247 = vmatmul.mubr.msk.bf16.vlgmr.msra.gmra.mxu0 %vm137_vm0, %v16238_v10 }
  0xe2   :  { %16260 = vmatmul.mubr.msk.bf16.vlgmr.msra.gmra.mxu1 %vm137_vm0, %v16251_v11  ;;  %4014 = vmatpush1.bf16.msra.mxu0 %v19947_v55  ;;  %v572_v11 = vld [vmem:[%s25150_s3] sm:$0x3] }
  0xe3   :  { %4084 = vmatpush1.bf16.msra.mxu1 %v19997_v0  ;;  %4015 = vmatprep.subr.bf16.mxu0 %v19957_v57  ;;  %v20218_v57 = vld [vmem:[%s25149_s11 + $0x120] ss:$8 sps:$4 sm:$0xff]   ;;  %v328_v0 = vrot.slane %v319_v44, %v20208_v51  ;;  %v581_v44 = vrot.slane %v572_v11, %v20208_v51 }
  0xe4   :  { %4085 = vmatprep.subr.bf16.mxu1 %v20002_v2  ;;  %4033 = vmatprep.mubr.bf16.mxu0 %v19425_v1  ;;  %v18329_v2 = vld [vmem:[%s25149_s11 + $0x14] ss:$8 sps:$4 sm:$0xff]  }
  0xe5   :  { %4103 = vmatprep.mubr.bf16.mxu1 %v19425_v1  ;;  %v4457_v1 = vcombine.high %v20095_v17, %v20095_v17 }
  0xe6   :  { %4016 = vmatpush1.bf16.msra.mxu0 %v19973_v60 }
  0xe7   :  { %4086 = vmatpush1.bf16.msra.mxu1 %v20015_v3  ;;  %4408 = vmatprep.subr.bf16.mxu0 %v20090_v15  ;;  %v4471_v29 = vrot.slane %v4457_v1, %v20129_v26 }
  0xe8   :  { %4634 = vmatprep.subr.bf16.mxu1 %v18293_v16  ;;  %v18335_v16 = vld [vmem:[%s25149_s11 + $0x4] ss:$8 sps:$4 sm:$0xff]  }
  0xe9   :  { %16265 = vmatmul.mubr.msk.bf16.vlgmr.msra.gmra.mxu0 %vm137_vm0, %v16250_v19 }
  0xea   :  { %16275 = vmatmul.mubr.msk.bf16.vlgmr.msra.gmra.mxu1 %vm137_vm0, %v16266_v20  ;;  %4409 = vmatpush1.bf16.msra.mxu0 %v20112_v21 }
  0xeb   :  { %4635 = vmatpush1.bf16.msra.mxu1 %v18291_v22  ;;  %4410 = vmatprep.subr.bf16.mxu0 %v20122_v24  ;;  %v20258_v22 = vld [vmem:[%s25149_s11 + $0x100] ss:$8 sps:$4 sm:$0xff]  }
  0xec   :  { %4636 = vmatprep.subr.bf16.mxu1 %v18299_v25  ;;  %4666 = vmatprep.mubr.bf16.mxu1 %v4471_v29  ;;  %v20267_v29 = vld [vmem:[%s25149_s11 + $0x1f4] ss:$8 sps:$4 sm:$0xff]  }
  0xee   :  { %4411 = vmatpush1.bf16.msra.mxu0 %v20135_v27 }
  0xef   :  { %4637 = vmatpush1.bf16.msra.mxu1 %v18297_v28  ;;  %4412 = vmatprep.subr.bf16.mxu0 %v20146_v30  ;;  %v577_v28 = vrot.slane %v572_v11, %v20192_v45  ;;  %v825_v11 = vld [vmem:[%s25150_s3] sm:$0x3] }
  0xf0   :  { %4638 = vmatprep.subr.bf16.mxu1 %v18305_v31 }
  0xf1   :  { %v175_v37 = vpop.f32.mrf.mxu0 }
  0xf2   :  { %v239_v38 = vpop.f32.mrf.mxu1  ;;  %4413 = vmatpush1.bf16.msra.mxu0 %v20156_v32 }
  0xf3   :  { %4639 = vmatpush1.bf16.msra.mxu1 %v18303_v33  ;;  %v177_v42 = vpop.f32.mrf.mxu0  ;;  %4414 = vmatprep.subr.bf16.mxu0 %v20164_v34  ;;  %v240_v55 = vadd.f32 %v239_v38, %v175_v37  ;;  %v18341_v37 = vld [vmem:[%s25149_s11 + $0xf4] ss:$8 sps:$4 sm:$0xff]  }
  0xf4   :  { %v241_v43 = vpop.f32.mrf.mxu1  ;;  %4640 = vmatprep.subr.bf16.mxu1 %v18311_v35 }
  0xf5   :  { %v179_v48 = vpop.f32.mrf.mxu0  ;;  %v242_v62 = vadd.f32 %v241_v43, %v177_v42 }
  0xf6   :  { %v243_v49 = vpop.f32.mrf.mxu1  ;;  %4415 = vmatpush1.bf16.msra.mxu0 %v20174_v36  ;;  %v18339_v48 = vld [vmem:[%s25149_s11 + $0xf0] ss:$8 sps:$4 sm:$0xff]  }
  0xf7   :  { %4641 = vmatpush1.bf16.msra.mxu1 %v18309_v39  ;;  %v180_v53 = vpop.f32.mrf.mxu0  ;;  %4416 = vmatprep.subr.bf16.mxu0 %v20183_v40 }
  0xf8   :  { %v244_v54 = vpop.f32.mrf.mxu1  ;;  %4642 = vmatprep.subr.bf16.mxu1 %v18317_v41 }
  0xf9   :  { %v310_v59 = vpop.f32.mrf.mxu0  ;;  %v20287_v54 = vld [vmem:[%s25149_s11 + $0x1e4] ss:$8 sps:$4 sm:$0xff]  }
  0xfa   :  { %v429_v60 = vpop.f32.mrf.mxu1  ;;  %v317_v63 = vadd.f32 %v310_v59, %v240_v55  ;;  %4417 = vmatpush1.bf16.msra.mxu0 %v20197_v46 }
  0xfb   :  { %4643 = vmatpush1.bf16.msra.mxu1 %v18315_v47  ;;  %v312_v3 = vpop.f32.mrf.mxu0  ;;  %4418 = vmatprep.subr.bf16.mxu0 %v20205_v50  ;;  %v20278_v47 = vld [vmem:[%s25149_s11 + $0x1f0] ss:$8 sps:$4 sm:$0xff]  }
  0xfc   :  { %v431_v4 = vpop.f32.mrf.mxu1  ;;  %4644 = vmatprep.subr.bf16.mxu1 %v18323_v52  ;;  %v331_v5 = vadd.f32 %v324_v56, %v317_v63  ;;  %v318_v6 = vadd.f32 %v312_v3, %v242_v62 }
  0xfd   :  { %v314_v9 = vpop.f32.mrf.mxu0 }
  0xfe   :  { %v433_v10 = vpop.f32.mrf.mxu1  ;;  %v335_v13 = vmul.f32 0.2, %v331_v5  ;;  %v332_v14 = vadd.f32 %v328_v0, %v318_v6  ;;  %4419 = vmatpush1.bf16.msra.mxu0 %v20218_v57  ;;  %vm333_vm1 = vcmp.gt.f32.partialorder %v331_v5, 0.0  ;;  %v20297_v0 = vld [vmem:[%s25149_s11 + $0x1e0] ss:$8 sps:$4 sm:$0xff]  }
  0xff   :  { %4645 = vmatpush1.bf16.msra.mxu1 %v18321_v58  ;;  %v315_v18 = vpop.f32.mrf.mxu0  ;;  %4420 = vmatprep.subr.bf16.mxu0 %v20226_v61  ;;  %v18347_v58 = vld [vmem:[%s25149_s11 + $0xe4] ss:$8 sps:$4 sm:$0xff]  }
 0x100   :  { %v434_v19 = vpop.f32.mrf.mxu1  ;;  %4646 = vmatprep.subr.bf16.mxu1 %v18329_v2  ;;  %vm334_vm2 = vcmp.gt.f32.partialorder %v332_v14, 0.0  ;;  %v336_v20 = vmul.f32 0.2, %v332_v14  ;;  %v337_v31 = vsel %vm333_vm1, %v331_v5, %v335_v13  ;;  %v18345_v2 = vld [vmem:[%s25149_s11 + $0xe0] ss:$8 sps:$4 sm:$0xff]  }
 0x101   :  { %v493_v1 = vpop.f32.mrf.mxu0  ;;  %v20305_v5 = vld [vmem:[%s25149_s11 + $0x1d4] ss:$8 sps:$4 sm:$0xff]   ;;  %v18351_v18 = vld [vmem:[%s25149_s11 + $0xd0] ss:$8 sps:$4 sm:$0xff]  }
 0x102   :  { %v563_v25 = vpop.f32.mrf.mxu1  ;;  %v338_v33 = vsel %vm334_vm2, %v332_v14, %v336_v20  ;;  %v494_v35 = vadd.f32 %v493_v1, %v429_v60  ;;  %4421 = vmatpush1.bf16.msra.mxu0 %v20237_v7  ;;  %v20326_v1 = vld [vmem:[%s25149_s11 + $0x1c4] ss:$8 sps:$4 sm:$0xff]  }
 0x103   :  { %4647 = vmatpush1.bf16.msra.mxu1 %v18327_v8  ;;  %v15856_v38 = vpack.c.bf16 %v338_v33, %v337_v31  ;;  %v495_v39 = vpop.f32.mrf.mxu0  ;;  %4422 = vmatprep.subr.bf16.mxu0 %v20248_v12  ;;  %v18353_v8 = vld [vmem:[%s25149_s11 + $0xd4] ss:$8 sps:$4 sm:$0xff]  }
 0x104   :  { %v565_v41 = vpop.f32.mrf.mxu1  ;;  %4648 = vmatprep.subr.bf16.mxu1 %v18335_v16  ;;  %v570_v42 = vadd.f32 %v563_v25, %v494_v35  ;;  %v496_v43 = vadd.f32 %v495_v39, %v431_v4  ;;  %v20318_v16 = vld [vmem:[%s25149_s11 + $0x1d0] ss:$8 sps:$4 sm:$0xff]   ;;  %v830_v39 = vrot.slane %v825_v11, %v20192_v45 }
 0x105   :  { %v350_v49 = vrot.slane %v15856_v38, %v20129_v26  ;;  %v497_v52 = vpop.f32.mrf.mxu0 }
 0x106   :  { %v567_v53 = vpop.f32.mrf.mxu1  ;;  %v584_v55 = vadd.f32 %v577_v28, %v570_v42  ;;  %v571_v56 = vadd.f32 %v565_v41, %v496_v43  ;;  %4423 = vmatpush1.bf16.msra.mxu0 %v20258_v22  ;;  %v18359_v28 = vld [vmem:[%s25149_s11 + $0xc4] ss:$8 sps:$4 sm:$0xff]   ;;  %v20342_v41 = vld [vmem:[%s25149_s11 + $0x1c0] ss:$8 sps:$4 sm:$0xff]  }
 0x107   :  { %4649 = vmatpush1.bf16.msra.mxu1 %v18333_v23  ;;  %15857 = vst.sshfl [vmem:[#allocation2 + $0x2] sm:$0x5 pattern:$0x73625140] %v350_v49  ;;  %v498_v59 = vpop.f32.mrf.mxu0  ;;  %4424 = vmatprep.subr.bf16.mxu0 %v20267_v29  ;;  %v18357_v42 = vld [vmem:[%s25149_s11 + $0xc0] ss:$8 sps:$4 sm:$0xff]  }
 0x108   :  { %v568_v60 = vpop.f32.mrf.mxu1  ;;  %4650 = vmatprep.subr.bf16.mxu1 %v18341_v37  ;;  %v588_v62 = vmul.f32 0.2, %v584_v55  ;;  %v585_v63 = vadd.f32 %v581_v44, %v571_v56  ;;  %vm586_vm3 = vcmp.gt.f32.partialorder %v584_v55, 0.0  ;;  %v20351_v49 = vld [vmem:[%s25149_s11 + $0x1b4] ss:$8 sps:$4 sm:$0xff]  }
 0x109   :  { %v682_v3 = vpop.f32.mrf.mxu0  ;;  %v18365_v56 = vld [vmem:[%s25149_s11 + $0xb4] ss:$8 sps:$4 sm:$0xff]  }
 0x10a   :  { %v746_v4 = vpop.f32.mrf.mxu1  ;;  %vm587_vm4 = vcmp.gt.f32.partialorder %v585_v63, 0.0  ;;  %v589_v6 = vmul.f32 0.2, %v585_v63  ;;  %4425 = vmatpush2.bf16.msra.mxu0 %v20278_v47  ;;  %v590_v13 = vsel %vm586_vm3, %v584_v55, %v588_v62  ;;  %v834_v55 = vrot.slane %v825_v11, %v20208_v51  ;;  %v18371_v11 = vld [vmem:[%s25149_s11 + $0xa4] ss:$8 sps:$4 sm:$0xff]  }
 0x10b   :  { %4651 = vmatpush2.bf16.msra.mxu1 %v18339_v48  ;;  %v684_v9 = vpop.f32.mrf.mxu0  ;;  %4426 = vmatprep.subr.bf16.mxu0 %v20287_v54  ;;  %v747_v38 = vadd.f32 %v746_v4, %v682_v3 }
 0x10c   :  { %v748_v10 = vpop.f32.mrf.mxu1  ;;  %4652 = vmatprep.subr.bf16.mxu1 %v18347_v58  ;;  %v591_v14 = vsel %vm587_vm4, %v585_v63, %v589_v6  ;;  %v20362_v63 = vld [vmem:[%s25149_s11 + $0x1b0] ss:$8 sps:$4 sm:$0xff]   ;;  %v1078_v6 = vld [vmem:[%s25150_s3] sm:$0x3] }
 0x10d   :  { %v15884_v19 = vpack.c.bf16 %v591_v14, %v590_v13  ;;  %v686_v20 = vpop.f32.mrf.mxu0  ;;  %v749_v52 = vadd.f32 %v748_v10, %v684_v9 }
 0x10e   :  { %v750_v23 = vpop.f32.mrf.mxu1  ;;  %4427 = vmatpush2.bf16.msra.mxu0 %v20297_v0  ;;  %v20329_v25 = vld.sshfl [vmem:[#allocation2 + $0x2] sm:$0x11 pattern:$0x75316420] }
 0x10f   :  { %4653 = vmatpush2.bf16.msra.mxu1 %v18345_v2  ;;  %v603_v31 = vrot.slane %v15884_v19, %v20129_v26  ;;  %v687_v33 = vpop.f32.mrf.mxu0  ;;  %4428 = vmatprep.subr.bf16.mxu0 %v20305_v5  ;;  %v4231_v37 = vcombine.high %v20329_v25, %v20329_v25  ;;  %v18363_v2 = vld [vmem:[%s25149_s11 + $0xb0] ss:$8 sps:$4 sm:$0xff]   ;;  %v1083_v23 = vrot.slane %v1078_v6, %v20192_v45 }
 0x110   :  { %v751_v35 = vpop.f32.mrf.mxu1  ;;  %4654 = vmatprep.subr.bf16.mxu1 %v18353_v8  ;;  %v20373_v8 = vld [vmem:[%s25149_s11 + $0x1a4] ss:$8 sps:$4 sm:$0xff]   ;;  %v20392_v33 = vld [vmem:[%s25149_s11 + $0x194] ss:$8 sps:$4 sm:$0xff]  }
 0x111   :  { %15885 = vst.sshfl [vmem:[#allocation2 + $0x4] sm:$0x5 pattern:$0x73625140] %v603_v31  ;;  %v816_v43 = vpop.f32.mrf.mxu0  ;;  %v4245_v48 = vrot.slane %v4231_v37, %v20129_v26  ;;  %v18369_v31 = vld [vmem:[%s25149_s11 + $0xa0] ss:$8 sps:$4 sm:$0xff]  }
 0x112   :  { %v935_v44 = vpop.f32.mrf.mxu1  ;;  %v823_v53 = vadd.f32 %v816_v43, %v747_v38  ;;  %4429 = vmatpush2.bf16.msra.mxu0 %v20318_v16 }
 0x113   :  { %4655 = vmatpush2.bf16.msra.mxu1 %v18351_v18  ;;  %v818_v58 = vpop.f32.mrf.mxu0  ;;  %4440 = vmatprep.mubr.bf16.mxu0 %v4245_v48 }
 0x114   :  { %v937_v59 = vpop.f32.mrf.mxu1  ;;  %4430 = vmatprep.subr.bf16.mxu0 %v20326_v1  ;;  %v837_v60 = vadd.f32 %v830_v39, %v823_v53  ;;  %v824_v62 = vadd.f32 %v818_v58, %v749_v52  ;;  %4656 = vmatprep.subr.bf16.mxu1 %v18359_v28  ;;  %v20384_v28 = vld [vmem:[%s25149_s11 + $0x1a0] ss:$8 sps:$4 sm:$0xff]   ;;  %v18377_v39 = vld [vmem:[%s25149_s11 + $0x94] ss:$8 sps:$4 sm:$0xff]  }
 0x115   :  { %v820_v3 = vpop.f32.mrf.mxu0 }
 0x116   :  { %v939_v4 = vpop.f32.mrf.mxu1  ;;  %v841_v9 = vmul.f32 0.2, %v837_v60  ;;  %v838_v10 = vadd.f32 %v834_v55, %v824_v62  ;;  %4431 = vmatpush2.bf16.msra.mxu0 %v20342_v41  ;;  %vm839_vm5 = vcmp.gt.f32.partialorder %v837_v60, 0.0  ;;  %v1087_v55 = vrot.slane %v1078_v6, %v20208_v51 }
 0x117   :  { %4657 = vmatpush2.bf16.msra.mxu1 %v18357_v42  ;;  %v821_v13 = vpop.f32.mrf.mxu0  ;;  %4432 = vmatprep.subr.bf16.mxu0 %v20351_v49  ;;  %v18383_v4 = vld [vmem:[%s25149_s11 + $0x84] ss:$8 sps:$4 sm:$0xff]  }
 0x118   :  { %v940_v14 = vpop.f32.mrf.mxu1  ;;  %4658 = vmatprep.subr.bf16.mxu1 %v18365_v56  ;;  %vm840_vm6 = vcmp.gt.f32.partialorder %v838_v10, 0.0  ;;  %v842_v18 = vmul.f32 0.2, %v838_v10  ;;  %v843_v35 = vsel %vm839_vm5, %v837_v60, %v841_v9  ;;  %v18375_v56 = vld [vmem:[%s25149_s11 + $0x90] ss:$8 sps:$4 sm:$0xff]  }
 0x119   :  { %v999_v19 = vpop.f32.mrf.mxu0 }
 0x11a   :  { %v1069_v20 = vpop.f32.mrf.mxu1  ;;  %v844_v37 = vsel %vm840_vm6, %v838_v10, %v842_v18  ;;  %v1000_v38 = vadd.f32 %v999_v19, %v935_v44  ;;  %4433 = vmatpush2.bf16.msra.mxu0 %v20362_v63  ;;  %v20403_v44 = vld [vmem:[%s25149_s11 + $0x190] ss:$8 sps:$4 sm:$0xff]   ;;  %v20419_v10 = vld.sshfl [vmem:[#allocation2 + $0x4] sm:$0x11 pattern:$0x75316420] }
 0x11b   :  { %4659 = vmatpush2.bf16.msra.mxu1 %v18363_v2  ;;  %v15912_v42 = vpack.c.bf16 %v844_v37, %v843_v35  ;;  %v1001_v43 = vpop.f32.mrf.mxu0  ;;  %4434 = vmatprep.subr.bf16.mxu0 %v20373_v8  ;;  %v20412_v2 = vld [vmem:[%s25149_s11 + $0x184] ss:$8 sps:$4 sm:$0xff]   ;;  %v20424_v19 = vld [vmem:[%s25149_s11 + $0x180] ss:$8 sps:$4 sm:$0xff]   ;;  %v20434_v37 = vld [vmem:[%s25149_s11 + $0x274] ss:$8 sps:$4 sm:$0xff]  }
 0x11c   :  { %v1071_v48 = vpop.f32.mrf.mxu1  ;;  %4660 = vmatprep.subr.bf16.mxu1 %v18371_v11  ;;  %v1076_v52 = vadd.f32 %v1069_v20, %v1000_v38  ;;  %v1002_v53 = vadd.f32 %v1001_v43, %v937_v59  ;;  %v4717_v43 = vcombine.high %v20419_v10, %v20419_v10 }
 0x11d   :  { %v856_v58 = vrot.slane %v15912_v42, %v20129_v26  ;;  %v1003_v60 = vpop.f32.mrf.mxu0  ;;  %v20439_v42 = vld [vmem:[%s25149_s11 + $0x270] ss:$8 sps:$4 sm:$0xff]  }
 0x11e   :  { %v1073_v62 = vpop.f32.mrf.mxu1  ;;  %v1090_v59 = vadd.f32 %v1083_v23, %v1076_v52  ;;  %v1077_v3 = vadd.f32 %v1071_v48, %v1002_v53  ;;  %4435 = vmatpush2.bf16.msra.mxu0 %v20384_v28  ;;  %v18381_v23 = vld [vmem:[%s25149_s11 + $0x80] ss:$8 sps:$4 sm:$0xff]   ;;  %v20454_v60 = vld [vmem:[%s25149_s11 + $0x264] ss:$8 sps:$4 sm:$0xff]  }
 0x11f   :  { %4661 = vmatpush2.bf16.msra.mxu1 %v18369_v31  ;;  %15913 = vst.sshfl [vmem:[#allocation2 + $0x6] sm:$0x5 pattern:$0x73625140] %v856_v58  ;;  %v1004_v6 = vpop.f32.mrf.mxu0  ;;  %4436 = vmatprep.subr.bf16.mxu0 %v20392_v33 }
 0x120   :  { %v1074_v9 = vpop.f32.mrf.mxu1  ;;  %4662 = vmatprep.subr.bf16.mxu1 %v18377_v39  ;;  %v1094_v11 = vmul.f32 0.2, %v1090_v59  ;;  %v1091_v13 = vadd.f32 %v1087_v55, %v1077_v3  ;;  %vm1092_vm7 = vcmp.gt.f32.partialorder %v1090_v59, 0.0  ;;  %v1331_v55 = vld [vmem:[%s25150_s3] sm:$0x3] }
 0x121   :  { %v1188_v14 = vpop.f32.mrf.mxu0  ;;  %v1336_v9 = vrot.slane %v1331_v55, %v20192_v45 }
 0x122   :  { %v1252_v18 = vpop.f32.mrf.mxu1  ;;  %vm1093_vm8 = vcmp.gt.f32.partialorder %v1091_v13, 0.0  ;;  %v1095_v20 = vmul.f32 0.2, %v1091_v13  ;;  %4437 = vmatpush2.bf16.msra.mxu0 %v20403_v44  ;;  %v1096_v38 = vsel %vm1092_vm7, %v1090_v59, %v1094_v11  ;;  %v20465_v11 = vrot.slane %v4717_v43, %v20129_v26 }
 0x123   :  { %4663 = vmatpush2.bf16.msra.mxu1 %v18375_v56  ;;  %v1190_v31 = vpop.f32.mrf.mxu0  ;;  %4438 = vmatprep.subr.bf16.mxu0 %v20412_v2  ;;  %v4464_v56 = vrot.slane %v20095_v17, %v20129_v26  ;;  %v1253_v6 = vadd.f32 %v1252_v18, %v1188_v14  ;;  %v1340_v14 = vrot.slane %v1331_v55, %v20208_v51  ;;  %v20479_v18 = vld [vmem:[%s25149_s11 + $0x254] ss:$8 sps:$4 sm:$0xff]   ;;  %v20490_v55 = vld [vmem:[%s25149_s11 + $0x250] ss:$8 sps:$4 sm:$0xff]  }
 0x124   :  { %v1254_v35 = vpop.f32.mrf.mxu1  ;;  %4664 = vmatprep.subr.bf16.mxu1 %v18383_v4  ;;  %v1097_v39 = vsel %vm1093_vm8, %v1091_v13, %v1095_v20  ;;  %v4238_v4 = vrot.slane %v20329_v25, %v20129_v26 }
 0x125   :  { %v15940_v48 = vpack.c.bf16 %v1097_v39, %v1096_v38  ;;  %v1192_v52 = vpop.f32.mrf.mxu0 }
 0x126   :  { %v1256_v53 = vpop.f32.mrf.mxu1  ;;  %4439 = vmatpush2.bf16.msra.mxu0 %v20424_v19  ;;  %v20449_v58 = vld.sshfl [vmem:[#allocation2 + $0x6] sm:$0x11 pattern:$0x75316420] }
 0x127   :  { %4665 = vmatpush2.bf16.msra.mxu1 %v18381_v23  ;;  %v1109_v62 = vrot.slane %v15940_v48, %v20129_v26  ;;  %v1193_v59 = vpop.f32.mrf.mxu0  ;;  %4894 = vmatprep.subr.bf16.mxu0 %v20434_v37  ;;  %v5081_v17 = vcombine.high %v20449_v58, %v20449_v58  ;;  %v1255_v23 = vadd.f32 %v1254_v35, %v1190_v31  ;;  %v1584_v53 = vld [vmem:[%s25150_s3] sm:$0x3] }
 0x128   :  { %v1257_v3 = vpop.f32.mrf.mxu1  ;;  %5258 = vmatprep.subr.bf16.mxu1 %v20090_v15  ;;  %v20471_v15 = vld [vmem:[%s25149_s11 + $0x260] ss:$8 sps:$4 sm:$0xff]  }
 0x129   :  { %15941 = vst.sshfl [vmem:[#allocation2 + $0x8] sm:$0x5 pattern:$0x73625140] %v1109_v62  ;;  %v1322_v13 = vpop.f32.mrf.mxu0  ;;  %4441 = vmatmul.mubr.bf16.vlgmr.msra.gmra.mxu0 %v4238_v4  ;;  %v5095_v25 = vrot.slane %v5081_v17, %v20129_v26  ;;  %v20496_v62 = vld [vmem:[%s25149_s11 + $0x244] ss:$8 sps:$4 sm:$0xff]  }
 0x12a   :  { %v1441_v20 = vpop.f32.mrf.mxu1  ;;  %4667 = vmatmul.mubr.bf16.vlgmr.msra.gmra.mxu1 %v4464_v56  ;;  %v1329_v38 = vadd.f32 %v1322_v13, %v1253_v6  ;;  %4895 = vmatpush1.bf16.msra.mxu0 %v20439_v42  ;;  %v20504_v6 = vld [vmem:[%s25149_s11 + $0x240] ss:$8 sps:$4 sm:$0xff]  }
 0x12b   :  { %4926 = vmatprep.mubr.bf16.mxu0 %v20465_v11  ;;  %5259 = vmatpush1.bf16.msra.mxu1 %v20112_v21  ;;  %v1324_v39 = vpop.f32.mrf.mxu0 }
 0x12c   :  { %v1443_v43 = vpop.f32.mrf.mxu1  ;;  %5290 = vmatprep.mubr.bf16.mxu1 %v5095_v25  ;;  %v1343_v48 = vadd.f32 %v1336_v9, %v1329_v38  ;;  %v1330_v52 = vadd.f32 %v1324_v39, %v1255_v23  ;;  %4896 = vmatprep.subr.bf16.mxu0 %v20454_v60  ;;  %v20511_v23 = vld [vmem:[%s25149_s11 + $0x234] ss:$8 sps:$4 sm:$0xff]  }
 0x12d   :  { %5260 = vmatprep.subr.bf16.mxu1 %v20122_v24  ;;  %v1326_v31 = vpop.f32.mrf.mxu0 }
 0x12e   :  { %v1445_v35 = vpop.f32.mrf.mxu1  ;;  %v1347_v21 = vmul.f32 0.2, %v1343_v48  ;;  %v1344_v56 = vadd.f32 %v1340_v14, %v1330_v52  ;;  %4897 = vmatpush1.bf16.msra.mxu0 %v20471_v15  ;;  %vm1345_vm9 = vcmp.gt.f32.partialorder %v1343_v48, 0.0 }
 0x12f   :  { %5261 = vmatpush1.bf16.msra.mxu1 %v20135_v27  ;;  %v1327_v24 = vpop.f32.mrf.mxu0  ;;  %4898 = vmatprep.subr.bf16.mxu0 %v20479_v18  ;;  %v1589_v27 = vrot.slane %v1584_v53, %v20192_v45 }
 0x130   :  { %v1446_v59 = vpop.f32.mrf.mxu1  ;;  %vm1346_vm10 = vcmp.gt.f32.partialorder %v1344_v56, 0.0  ;;  %v1348_v3 = vmul.f32 0.2, %v1344_v56  ;;  %5262 = vmatprep.subr.bf16.mxu1 %v20146_v30  ;;  %v1349_v9 = vsel %vm1345_vm9, %v1343_v48, %v1347_v21  ;;  %v20521_v21 = vld [vmem:[%s25149_s11 + $0x230] ss:$8 sps:$4 sm:$0xff]  }
 0x131   :  { %v1505_v4 = vpop.f32.mrf.mxu0 }
 0x132   :  { %v1575_v17 = vpop.f32.mrf.mxu1  ;;  %v1350_v13 = vsel %vm1346_vm10, %v1344_v56, %v1348_v3  ;;  %v1506_v25 = vadd.f32 %v1505_v4, %v1441_v20  ;;  %4899 = vmatpush1.bf16.msra.mxu0 %v20490_v55  ;;  %v1593_v20 = vrot.slane %v1584_v53, %v20208_v51 }
 0x133   :  { %v15968_v30 = vpack.c.bf16 %v1350_v13, %v1349_v9  ;;  %5263 = vmatpush1.bf16.msra.mxu1 %v20156_v32  ;;  %v1507_v38 = vpop.f32.mrf.mxu0  ;;  %4900 = vmatprep.subr.bf16.mxu0 %v20496_v62 }
 0x134   :  { %v1577_v14 = vpop.f32.mrf.mxu1  ;;  %v1582_v39 = vadd.f32 %v1575_v17, %v1506_v25  ;;  %v1508_v48 = vadd.f32 %v1507_v38, %v1443_v43  ;;  %5264 = vmatprep.subr.bf16.mxu1 %v20164_v34  ;;  %v20527_v43 = vld [vmem:[%s25149_s11 + $0x224] ss:$8 sps:$4 sm:$0xff]   ;;  %v20535_v17 = vld [vmem:[%s25149_s11 + $0x220] ss:$8 sps:$4 sm:$0xff]   ;;  %v20546_v25 = vld [vmem:[%s25149_s11 + $0x214] ss:$8 sps:$4 sm:$0xff]  }
 0x135   :  { %v1362_v52 = vrot.slane %v15968_v30, %v20129_v26  ;;  %v1509_v31 = vpop.f32.mrf.mxu0 }
 0x136   :  { %v1579_v35 = vpop.f32.mrf.mxu1  ;;  %v1596_v32 = vadd.f32 %v1589_v27, %v1582_v39  ;;  %v1583_v56 = vadd.f32 %v1577_v14, %v1508_v48  ;;  %4901 = vmatpush1.bf16.msra.mxu0 %v20504_v6  ;;  %v20553_v39 = vld [vmem:[%s25149_s11 + $0x210] ss:$8 sps:$4 sm:$0xff]  }
 0x137   :  { %15969 = vst.sshfl [vmem:[#allocation2 + $0xa] sm:$0x5 pattern:$0x73625140] %v1362_v52  ;;  %5265 = vmatpush1.bf16.msra.mxu1 %v20174_v36  ;;  %v1510_v34 = vpop.f32.mrf.mxu0  ;;  %4902 = vmatprep.subr.bf16.mxu0 %v20511_v23 }
 0x138   :  { %v1580_v53 = vpop.f32.mrf.mxu1  ;;  %v1600_v24 = vmul.f32 0.2, %v1596_v32  ;;  %v1597_v59 = vadd.f32 %v1593_v20, %v1583_v56  ;;  %5266 = vmatprep.subr.bf16.mxu1 %v20183_v40  ;;  %vm1598_vm11 = vcmp.gt.f32.partialorder %v1596_v32, 0.0  ;;  %v1837_v40 = vld [vmem:[%s25150_s3] sm:$0x3] }
 0x139   :  { %v1694_v3 = vpop.f32.mrf.mxu0  ;;  %v1842_v35 = vrot.slane %v1837_v40, %v20192_v45 }
 0x13a   :  { %v1758_v4 = vpop.f32.mrf.mxu1  ;;  %vm1599_vm12 = vcmp.gt.f32.partialorder %v1597_v59, 0.0  ;;  %v1601_v9 = vmul.f32 0.2, %v1597_v59  ;;  %4903 = vmatpush1.bf16.msra.mxu0 %v20521_v21  ;;  %v1602_v27 = vsel %vm1598_vm11, %v1596_v32, %v1600_v24  ;;  %v20568_v32 = vld [vmem:[%s25149_s11 + $0x200] ss:$8 sps:$4 sm:$0xff]   ;;  %v1846_v24 = vrot.slane %v1837_v40, %v20208_v51 }
 0x13b   :  { %5267 = vmatpush1.bf16.msra.mxu1 %v20197_v46  ;;  %v1696_v36 = vpop.f32.mrf.mxu0  ;;  %4904 = vmatprep.subr.bf16.mxu0 %v20527_v43  ;;  %v1759_v31 = vadd.f32 %v1758_v4, %v1694_v3 }
 0x13c   :  { %v1760_v13 = vpop.f32.mrf.mxu1  ;;  %v1603_v30 = vsel %vm1599_vm12, %v1597_v59, %v1601_v9  ;;  %5268 = vmatprep.subr.bf16.mxu1 %v20205_v50  ;;  %v20561_v50 = vld [vmem:[%s25149_s11 + $0x204] ss:$8 sps:$4 sm:$0xff]  }
 0x13d   :  { %v15996_v38 = vpack.c.bf16 %v1603_v30, %v1602_v27  ;;  %v1698_v14 = vpop.f32.mrf.mxu0  ;;  %v1761_v34 = vadd.f32 %v1760_v13, %v1696_v36  ;;  %v20583_v36 = vld [vmem:[%s25149_s11 + $0x2f0] ss:$8 sps:$4 sm:$0xff]  }
 0x13e   :  { %v1762_v46 = vpop.f32.mrf.mxu1  ;;  %4905 = vmatpush1.bf16.msra.mxu0 %v20535_v17  ;;  %v20594_v14 = vld [vmem:[%s25149_s11 + $0x2e4] ss:$8 sps:$4 sm:$0xff]  }
 0x13f   :  { %v1615_v48 = vrot.slane %v15996_v38, %v20129_v26  ;;  %5269 = vmatpush1.bf16.msra.mxu1 %v20218_v57  ;;  %v1699_v20 = vpop.f32.mrf.mxu0  ;;  %4906 = vmatprep.subr.bf16.mxu0 %v20546_v25 }
 0x140   :  { %v1763_v52 = vpop.f32.mrf.mxu1  ;;  %5270 = vmatprep.subr.bf16.mxu1 %v20226_v61  ;;  %v20577_v61 = vld [vmem:[%s25149_s11 + $0x2f4] ss:$8 sps:$4 sm:$0xff]  }
 0x141   :  { %15997 = vst.sshfl [vmem:[#allocation2 + $0xc] sm:$0x5 pattern:$0x73625140] %v1615_v48  ;;  %v1828_v57 = vpop.f32.mrf.mxu0 }
 0x142   :  { %v1947_v56 = vpop.f32.mrf.mxu1  ;;  %v1835_v53 = vadd.f32 %v1828_v57, %v1759_v31  ;;  %4907 = vmatpush1.bf16.msra.mxu0 %v20553_v39 }
 0x143   :  { %5271 = vmatpush1.bf16.msra.mxu1 %v20237_v7  ;;  %v1830_v59 = vpop.f32.mrf.mxu0  ;;  %4908 = vmatprep.subr.bf16.mxu0 %v20561_v50 }
 0x144   :  { %v1949_v3 = vpop.f32.mrf.mxu1  ;;  %v1849_v4 = vadd.f32 %v1842_v35, %v1835_v53  ;;  %v1836_v9 = vadd.f32 %v1830_v59, %v1761_v34  ;;  %5272 = vmatprep.subr.bf16.mxu1 %v20248_v12  ;;  %v2090_v12 = vld [vmem:[%s25150_s3] sm:$0x3] }
 0x145   :  { %v1832_v13 = vpop.f32.mrf.mxu0  ;;  %v2095_v57 = vrot.slane %v2090_v12, %v20192_v45 }
 0x146   :  { %v1951_v7 = vpop.f32.mrf.mxu1  ;;  %v1853_v40 = vmul.f32 0.2, %v1849_v4  ;;  %v1850_v27 = vadd.f32 %v1846_v24, %v1836_v9  ;;  %4909 = vmatpush1.bf16.msra.mxu0 %v20568_v32  ;;  %vm1851_vm13 = vcmp.gt.f32.partialorder %v1849_v4, 0.0  ;;  %v20616_v9 = vld [vmem:[%s25149_s11 + $0x2d0] ss:$8 sps:$4 sm:$0xff]  }
 0x147   :  { %5273 = vmatpush1.bf16.msra.mxu1 %v20258_v22  ;;  %v1833_v30 = vpop.f32.mrf.mxu0  ;;  %4910 = vmatprep.subr.bf16.mxu0 %v20577_v61  ;;  %v20600_v22 = vld [vmem:[%s25149_s11 + $0x2e0] ss:$8 sps:$4 sm:$0xff]  }
 0x148   :  { %v1952_v38 = vpop.f32.mrf.mxu1  ;;  %vm1852_vm14 = vcmp.gt.f32.partialorder %v1850_v27, 0.0  ;;  %v1854_v46 = vmul.f32 0.2, %v1850_v27  ;;  %5274 = vmatprep.subr.bf16.mxu1 %v20267_v29  ;;  %v1855_v52 = vsel %vm1851_vm13, %v1849_v4, %v1853_v40  ;;  %v20609_v29 = vld [vmem:[%s25149_s11 + $0x2d4] ss:$8 sps:$4 sm:$0xff]  }
 0x149   :  { %v2011_v48 = vpop.f32.mrf.mxu0 }
 0x14a   :  { %v2081_v20 = vpop.f32.mrf.mxu1  ;;  %v1856_v31 = vsel %vm1852_vm14, %v1850_v27, %v1854_v46  ;;  %v2012_v35 = vadd.f32 %v2011_v48, %v1947_v56  ;;  %4911 = vmatpush2.bf16.msra.mxu0 %v20583_v36  ;;  %v2099_v56 = vrot.slane %v2090_v12, %v20208_v51  ;;  %v20631_v46 = vld [vmem:[%s25149_s11 + $0x2c0] ss:$8 sps:$4 sm:$0xff]  }
 0x14b   :  { %v16024_v34 = vpack.c.bf16 %v1856_v31, %v1855_v52  ;;  %5275 = vmatpush2.bf16.msra.mxu1 %v20278_v47  ;;  %v2013_v53 = vpop.f32.mrf.mxu0  ;;  %4912 = vmatprep.subr.bf16.mxu0 %v20594_v14 }
 0x14c   :  { %v2083_v24 = vpop.f32.mrf.mxu1  ;;  %v2088_v59 = vadd.f32 %v2081_v20, %v2012_v35  ;;  %v2014_v4 = vadd.f32 %v2013_v53, %v1949_v3  ;;  %5276 = vmatprep.subr.bf16.mxu1 %v20287_v54  ;;  %v20625_v54 = vld [vmem:[%s25149_s11 + $0x2c4] ss:$8 sps:$4 sm:$0xff]   ;;  %v20642_v35 = vld [vmem:[%s25149_s11 + $0x2b4] ss:$8 sps:$4 sm:$0xff]  }
 0x14d   :  { %v1868_v47 = vrot.slane %v16024_v34, %v20129_v26  ;;  %v2015_v13 = vpop.f32.mrf.mxu0 }
 0x14e   :  { %v2085_v7 = vpop.f32.mrf.mxu1  ;;  %v2102_v40 = vadd.f32 %v2095_v57, %v2088_v59  ;;  %v2089_v27 = vadd.f32 %v2083_v24, %v2014_v4  ;;  %4913 = vmatpush2.bf16.msra.mxu0 %v20600_v22  ;;  %v20649_v59 = vld [vmem:[%s25149_s11 + $0x2b0] ss:$8 sps:$4 sm:$0xff]  }
 0x14f   :  { %16025 = vst.sshfl [vmem:[#allocation2 + $0xe] sm:$0x5 pattern:$0x73625140] %v1868_v47  ;;  %5277 = vmatpush2.bf16.msra.mxu1 %v20297_v0  ;;  %v2016_v3 = vpop.f32.mrf.mxu0  ;;  %4914 = vmatprep.subr.bf16.mxu0 %v20609_v29 }
 0x150   :  { %v2086_v30 = vpop.f32.mrf.mxu1  ;;  %v2106_v38 = vmul.f32 0.2, %v2102_v40  ;;  %v2103_v12 = vadd.f32 %v2099_v56, %v2089_v27  ;;  %5278 = vmatprep.subr.bf16.mxu1 %v20305_v5  ;;  %vm2104_vm15 = vcmp.gt.f32.partialorder %v2102_v40, 0.0  ;;  %v2343_v5 = vld [vmem:[%s25150_s3] sm:$0x3] }
 0x151   :  { %v2200_v0 = vpop.f32.mrf.mxu0  ;;  %v2348_v7 = vrot.slane %v2343_v5, %v20192_v45 }
 0x152   :  { %v2264_v48 = vpop.f32.mrf.mxu1  ;;  %vm2105_vm0 = vcmp.gt.f32.partialorder %v2103_v12, 0.0  ;;  %v2107_v20 = vmul.f32 0.2, %v2103_v12  ;;  %4915 = vmatpush2.bf16.msra.mxu0 %v20616_v9  ;;  %v2108_v57 = vsel %vm2104_vm15, %v2102_v40, %v2106_v38  ;;  %v20664_v40 = vld [vmem:[%s25149_s11 + $0x2a0] ss:$8 sps:$4 sm:$0xff]   ;;  %v2352_v38 = vrot.slane %v2343_v5, %v20208_v51 }
 0x153   :  { %5279 = vmatpush2.bf16.msra.mxu1 %v20318_v16  ;;  %v2202_v52 = vpop.f32.mrf.mxu0  ;;  %4916 = vmatprep.subr.bf16.mxu0 %v20625_v54  ;;  %v2265_v13 = vadd.f32 %v2264_v48, %v2200_v0 }
 0x154   :  { %v2266_v31 = vpop.f32.mrf.mxu1  ;;  %v2109_v34 = vsel %vm2105_vm0, %v2103_v12, %v2107_v20  ;;  %5280 = vmatprep.subr.bf16.mxu1 %v20326_v1  ;;  %v20657_v1 = vld [vmem:[%s25149_s11 + $0x2a4] ss:$8 sps:$4 sm:$0xff]  }
 0x155   :  { %v16052_v53 = vpack.c.bf16 %v2109_v34, %v2108_v57  ;;  %v2204_v24 = vpop.f32.mrf.mxu0  ;;  %v2267_v3 = vadd.f32 %v2266_v31, %v2202_v52  ;;  %v20679_v52 = vld [vmem:[%s25149_s11 + $0x290] ss:$8 sps:$4 sm:$0xff]  }
 0x156   :  { %v2268_v16 = vpop.f32.mrf.mxu1  ;;  %4917 = vmatpush2.bf16.msra.mxu0 %v20631_v46  ;;  %v20690_v24 = vld [vmem:[%s25149_s11 + $0x284] ss:$8 sps:$4 sm:$0xff]  }
 0x157   :  { %v2121_v4 = vrot.slane %v16052_v53, %v20129_v26  ;;  %5281 = vmatpush2.bf16.msra.mxu1 %v20342_v41  ;;  %v2205_v56 = vpop.f32.mrf.mxu0  ;;  %4918 = vmatprep.subr.bf16.mxu0 %v20642_v35 }
 0x158   :  { %v2269_v47 = vpop.f32.mrf.mxu1  ;;  %5282 = vmatprep.subr.bf16.mxu1 %v20351_v49  ;;  %v20673_v49 = vld [vmem:[%s25149_s11 + $0x294] ss:$8 sps:$4 sm:$0xff]  }
 0x159   :  { %16053 = vst.sshfl [vmem:[#allocation2 + $0x10] sm:$0x5 pattern:$0x73625140] %v2121_v4  ;;  %v2334_v41 = vpop.f32.mrf.mxu0  ;;  %v20701_v47 = vld [vmem:[%s25149_s11 + $0x74] ss:$8 sps:$4 sm:$0xff]  }
 0x15a   :  { %v2453_v27 = vpop.f32.mrf.mxu1  ;;  %v2341_v30 = vadd.f32 %v2334_v41, %v2265_v13  ;;  %4919 = vmatpush2.bf16.msra.mxu0 %v20649_v59 }
 0x15b   :  { %5283 = vmatpush2.bf16.msra.mxu1 %v20362_v63  ;;  %v2336_v12 = vpop.f32.mrf.mxu0  ;;  %4920 = vmatprep.subr.bf16.mxu0 %v20657_v1 }
 0x15c   :  { %v2455_v0 = vpop.f32.mrf.mxu1  ;;  %v2355_v48 = vadd.f32 %v2348_v7, %v2341_v30  ;;  %v2342_v20 = vadd.f32 %v2336_v12, %v2267_v3  ;;  %5284 = vmatprep.subr.bf16.mxu1 %v20373_v8  ;;  %v2596_v8 = vld [vmem:[%s25150_s3] sm:$0x3]  ;;  %v20707_v12 = vld.sshfl [vmem:[#allocation2 + $0x8] sm:$0x11 pattern:$0x75316420] }
 0x15d   :  { %v2338_v31 = vpop.f32.mrf.mxu0  ;;  %v2601_v3 = vrot.slane %v2596_v8, %v20192_v45 }
 0x15e   :  { %v2457_v63 = vpop.f32.mrf.mxu1  ;;  %v2359_v5 = vmul.f32 0.2, %v2355_v48  ;;  %v2356_v57 = vadd.f32 %v2352_v38, %v2342_v20  ;;  %4921 = vmatpush2.bf16.msra.mxu0 %v20664_v40  ;;  %vm2357_vm1 = vcmp.gt.f32.partialorder %v2355_v48, 0.0 }
 0x15f   :  { %5285 = vmatpush2.bf16.msra.mxu1 %v20384_v28  ;;  %v2339_v34 = vpop.f32.mrf.mxu0  ;;  %4922 = vmatprep.subr.bf16.mxu0 %v20673_v49  ;;  %v20696_v28 = vld [vmem:[%s25149_s11 + $0x280] ss:$8 sps:$4 sm:$0xff]   ;;  %v2605_v63 = vrot.slane %v2596_v8, %v20208_v51 }
 0x160   :  { %v2458_v53 = vpop.f32.mrf.mxu1  ;;  %vm2358_vm2 = vcmp.gt.f32.partialorder %v2356_v57, 0.0  ;;  %v2360_v16 = vmul.f32 0.2, %v2356_v57  ;;  %5286 = vmatprep.subr.bf16.mxu1 %v20392_v33  ;;  %v2361_v13 = vsel %vm2357_vm1, %v2355_v48, %v2359_v5 }
 0x161   :  { %v2517_v4 = vpop.f32.mrf.mxu0 }
 0x162   :  { %v2587_v56 = vpop.f32.mrf.mxu1  ;;  %v2362_v7 = vsel %vm2358_vm2, %v2356_v57, %v2360_v16  ;;  %v2518_v41 = vadd.f32 %v2517_v4, %v2453_v27  ;;  %4923 = vmatpush2.bf16.msra.mxu0 %v20679_v52  ;;  %v20714_v27 = vld [vmem:[%s25149_s11 + $0x70] ss:$8 sps:$4 sm:$0xff]   ;;  %v20728_v16 = vrot.slane %v20419_v10, %v20129_v26 }
 0x163   :  { %v16080_v33 = vpack.c.bf16 %v2362_v7, %v2361_v13  ;;  %5287 = vmatpush2.bf16.msra.mxu1 %v20403_v44  ;;  %v2519_v30 = vpop.f32.mrf.mxu0  ;;  %4924 = vmatprep.subr.bf16.mxu0 %v20690_v24  ;;  %v5088_v13 = vrot.slane %v20449_v58, %v20129_v26 }
 0x164   :  { %v2589_v38 = vpop.f32.mrf.mxu1  ;;  %v2594_v20 = vadd.f32 %v2587_v56, %v2518_v41  ;;  %v2520_v31 = vadd.f32 %v2519_v30, %v2455_v0  ;;  %5288 = vmatprep.subr.bf16.mxu1 %v20412_v2  ;;  %v5566_v0 = vcombine.high %v20707_v12, %v20707_v12  ;;  %v20723_v2 = vld [vmem:[%s25149_s11 + $0x64] ss:$8 sps:$4 sm:$0xff]  }
 0x165   :  { %v2374_v48 = vrot.slane %v16080_v33, %v20129_v26  ;;  %v2521_v44 = vpop.f32.mrf.mxu0 }
 0x166   :  { %v2591_v5 = vpop.f32.mrf.mxu1  ;;  %v2608_v57 = vadd.f32 %v2601_v3, %v2594_v20  ;;  %v2595_v34 = vadd.f32 %v2589_v38, %v2520_v31  ;;  %4925 = vmatpush2.bf16.msra.mxu0 %v20696_v28  ;;  %v20742_v3 = vrot.slane %v5566_v0, %v20129_v26  ;;  %v20776_v0 = vld [vmem:[%s25149_s11 + $0x40] ss:$8 sps:$4 sm:$0xff]  }
 0x167   :  { %16081 = vst.sshfl [vmem:[#allocation2 + $0x12] sm:$0x5 pattern:$0x73625140] %v2374_v48  ;;  %5289 = vmatpush2.bf16.msra.mxu1 %v20424_v19  ;;  %v2522_v53 = vpop.f32.mrf.mxu0  ;;  %5484 = vmatprep.subr.bf16.mxu0 %v20701_v47  ;;  %v20738_v19 = vld [vmem:[%s25149_s11 + $0x60] ss:$8 sps:$4 sm:$0xff]  }
 0x168   :  { %v2592_v8 = vpop.f32.mrf.mxu1  ;;  %v2612_v4 = vmul.f32 0.2, %v2608_v57  ;;  %v2609_v56 = vadd.f32 %v2605_v63, %v2595_v34  ;;  %5743 = vmatprep.subr.bf16.mxu1 %v20434_v37  ;;  %vm2610_vm3 = vcmp.gt.f32.partialorder %v2608_v57, 0.0  ;;  %v20747_v37 = vld [vmem:[%s25149_s11 + $0x54] ss:$8 sps:$4 sm:$0xff]  }
 0x169   :  { %v2706_v7 = vpop.f32.mrf.mxu0  ;;  %4927 = vmatmul.mubr.bf16.vlgmr.msra.gmra.mxu0 %v20728_v16  ;;  %v2849_v48 = vld [vmem:[%s25150_s3] sm:$0x3] }
 0x16a   :  { %v2770_v41 = vpop.f32.mrf.mxu1  ;;  %vm2611_vm4 = vcmp.gt.f32.partialorder %v2609_v56, 0.0  ;;  %v2613_v10 = vmul.f32 0.2, %v2609_v56  ;;  %5291 = vmatmul.mubr.bf16.vlgmr.msra.gmra.mxu1 %v5088_v13  ;;  %5485 = vmatpush1.bf16.msra.mxu0 %v20714_v27  ;;  %v2614_v30 = vsel %vm2610_vm3, %v2608_v57, %v2612_v4  ;;  %v2854_v34 = vrot.slane %v2849_v48, %v20192_v45 }
 0x16b   :  { %5516 = vmatprep.mubr.bf16.mxu0 %v20465_v11  ;;  %5744 = vmatpush1.bf16.msra.mxu1 %v20439_v42  ;;  %v2708_v58 = vpop.f32.mrf.mxu0  ;;  %v20761_v42 = vld [vmem:[%s25149_s11 + $0x50] ss:$8 sps:$4 sm:$0xff]   ;;  %v2771_v57 = vadd.f32 %v2770_v41, %v2706_v7 }
 0x16c   :  { %v2772_v33 = vpop.f32.mrf.mxu1  ;;  %v2615_v38 = vsel %vm2611_vm4, %v2609_v56, %v2613_v10  ;;  %5775 = vmatprep.mubr.bf16.mxu1 %v20742_v3  ;;  %5486 = vmatprep.subr.bf16.mxu0 %v20723_v2  ;;  %v2858_v56 = vrot.slane %v2849_v48, %v20208_v51 }
 0x16d   :  { %v16108_v20 = vpack.c.bf16 %v2615_v38, %v2614_v30  ;;  %v2710_v31 = vpop.f32.mrf.mxu0  ;;  %5745 = vmatprep.subr.bf16.mxu1 %v20454_v60  ;;  %v20769_v60 = vld [vmem:[%s25149_s11 + $0x44] ss:$8 sps:$4 sm:$0xff]   ;;  %v2773_v8 = vadd.f32 %v2772_v33, %v2708_v58 }
 0x16e   :  { %v2774_v63 = vpop.f32.mrf.mxu1  ;;  %5487 = vmatpush1.bf16.msra.mxu0 %v20738_v19 }
 0x16f   :  { %v2627_v11 = vrot.slane %v16108_v20, %v20129_v26  ;;  %5746 = vmatpush1.bf16.msra.mxu1 %v20471_v15  ;;  %v2711_v44 = vpop.f32.mrf.mxu0  ;;  %5488 = vmatprep.subr.bf16.mxu0 %v20747_v37  ;;  %v20802_v63 = vld [vmem:[%s25149_s11 + $0x24] ss:$8 sps:$4 sm:$0xff]  }
 0x170   :  { %v2775_v5 = vpop.f32.mrf.mxu1  ;;  %5747 = vmatprep.subr.bf16.mxu1 %v20479_v18  ;;  %v20785_v18 = vld [vmem:[%s25149_s11 + $0x34] ss:$8 sps:$4 sm:$0xff]  }
 0x171   :  { %16109 = vst.sshfl [vmem:[#allocation2 + $0x14] sm:$0x5 pattern:$0x73625140] %v2627_v11  ;;  %v2840_v15 = vpop.f32.mrf.mxu0 }
 0x172   :  { %v2959_v53 = vpop.f32.mrf.mxu1  ;;  %v2847_v4 = vadd.f32 %v2840_v15, %v2771_v57  ;;  %5489 = vmatpush1.bf16.msra.mxu0 %v20761_v42  ;;  %v20810_v15 = vld [vmem:[%s25149_s11 + $0x20] ss:$8 sps:$4 sm:$0xff]  }
 0x173   :  { %5748 = vmatpush1.bf16.msra.mxu1 %v20490_v55  ;;  %v2842_v13 = vpop.f32.mrf.mxu0  ;;  %5490 = vmatprep.subr.bf16.mxu0 %v20769_v60  ;;  %v20792_v55 = vld [vmem:[%s25149_s11 + $0x30] ss:$8 sps:$4 sm:$0xff]  }
 0x174   :  { %v2961_v7 = vpop.f32.mrf.mxu1  ;;  %v2861_v41 = vadd.f32 %v2854_v34, %v2847_v4  ;;  %v2848_v10 = vadd.f32 %v2842_v13, %v2773_v8  ;;  %5749 = vmatprep.subr.bf16.mxu1 %v20496_v62  ;;  %v3102_v62 = vld [vmem:[%s25150_s3] sm:$0x3] }
 0x175   :  { %v2844_v58 = vpop.f32.mrf.mxu0  ;;  %v3107_v34 = vrot.slane %v3102_v62, %v20192_v45 }
 0x176   :  { %v2963_v33 = vpop.f32.mrf.mxu1  ;;  %v2865_v30 = vmul.f32 0.2, %v2861_v41  ;;  %v2862_v38 = vadd.f32 %v2858_v56, %v2848_v10  ;;  %5491 = vmatpush1.bf16.msra.mxu0 %v20776_v0  ;;  %vm2863_vm5 = vcmp.gt.f32.partialorder %v2861_v41, 0.0 }
 0x177   :  { %5750 = vmatpush1.bf16.msra.mxu1 %v20504_v6  ;;  %v2845_v20 = vpop.f32.mrf.mxu0  ;;  %5492 = vmatprep.subr.bf16.mxu0 %v20785_v18 }
 0x178   :  { %v2964_v31 = vpop.f32.mrf.mxu1  ;;  %vm2864_vm6 = vcmp.gt.f32.partialorder %v2862_v38, 0.0  ;;  %v2866_v48 = vmul.f32 0.2, %v2862_v38  ;;  %5751 = vmatprep.subr.bf16.mxu1 %v20511_v23  ;;  %v2867_v6 = vsel %vm2863_vm5, %v2861_v41, %v2865_v30  ;;  %v20817_v23 = vld [vmem:[%s25149_s11 + $0x14] ss:$8 sps:$4 sm:$0xff]   ;;  %v3111_v41 = vrot.slane %v3102_v62, %v20208_v51 }
 0x179   :  { %v3023_v11 = vpop.f32.mrf.mxu0 }
 0x17a   :  { %v3093_v44 = vpop.f32.mrf.mxu1  ;;  %v2868_v5 = vsel %vm2864_vm6, %v2862_v38, %v2866_v48  ;;  %v3024_v57 = vadd.f32 %v3023_v11, %v2959_v53  ;;  %5493 = vmatpush1.bf16.msra.mxu0 %v20792_v55  ;;  %v20826_v38 = vld [vmem:[%s25149_s11 + $0x10] ss:$8 sps:$4 sm:$0xff]  }
 0x17b   :  { %v16136_v8 = vpack.c.bf16 %v2868_v5, %v2867_v6  ;;  %5752 = vmatpush1.bf16.msra.mxu1 %v20521_v21  ;;  %v3025_v4 = vpop.f32.mrf.mxu0  ;;  %5494 = vmatprep.subr.bf16.mxu0 %v20802_v63 }
 0x17c   :  { %v3095_v56 = vpop.f32.mrf.mxu1  ;;  %v3100_v53 = vadd.f32 %v3093_v44, %v3024_v57  ;;  %v3026_v13 = vadd.f32 %v3025_v4, %v2961_v7  ;;  %5753 = vmatprep.subr.bf16.mxu1 %v20527_v43  ;;  %v20833_v43 = vld [vmem:[%s25149_s11 + $0x4] ss:$8 sps:$4 sm:$0xff]  }
 0x17d   :  { %v2880_v10 = vrot.slane %v16136_v8, %v20129_v26  ;;  %v3027_v58 = vpop.f32.mrf.mxu0 }
 0x17e   :  { %v3097_v33 = vpop.f32.mrf.mxu1  ;;  %v3114_v21 = vadd.f32 %v3107_v34, %v3100_v53  ;;  %v3101_v30 = vadd.f32 %v3095_v56, %v3026_v13  ;;  %5495 = vmatpush1.bf16.msra.mxu0 %v20810_v15  ;;  %v20857_v53 = vld [vmem:[%s25149_s11 + $0xf0] ss:$8 sps:$4 sm:$0xff]  }
 0x17f   :  { %16137 = vst.sshfl [vmem:[#allocation2 + $0x16] sm:$0x5 pattern:$0x73625140] %v2880_v10  ;;  %5754 = vmatpush1.bf16.msra.mxu1 %v20535_v17  ;;  %v3028_v7 = vpop.f32.mrf.mxu0  ;;  %5496 = vmatprep.subr.bf16.mxu0 %v20817_v23  ;;  %v20840_v17 = vld [vmem:[%s25149_s11] ss:$8 sps:$4 sm:$0xff]  }
 0x180   :  { %v3098_v20 = vpop.f32.mrf.mxu1  ;;  %v3118_v31 = vmul.f32 0.2, %v3114_v21  ;;  %v3115_v62 = vadd.f32 %v3111_v41, %v3101_v30  ;;  %5755 = vmatprep.subr.bf16.mxu1 %v20546_v25  ;;  %vm3116_vm7 = vcmp.gt.f32.partialorder %v3114_v21, 0.0  ;;  %v20847_v25 = vld [vmem:[%s25149_s11 + $0xf4] ss:$8 sps:$4 sm:$0xff]  }
 0x181   :  { %v3212_v48 = vpop.f32.mrf.mxu0  ;;  %v20865_v10 = vld [vmem:[%s25149_s11 + $0xe4] ss:$8 sps:$4 sm:$0xff]  }
 0x182   :  { %v3276_v11 = vpop.f32.mrf.mxu1  ;;  %vm3117_vm8 = vcmp.gt.f32.partialorder %v3115_v62, 0.0  ;;  %v3119_v44 = vmul.f32 0.2, %v3115_v62  ;;  %5497 = vmatpush1.bf16.msra.mxu0 %v20826_v38  ;;  %v3120_v57 = vsel %vm3116_vm7, %v3114_v21, %v3118_v31  ;;  %v20874_v31 = vld [vmem:[%s25149_s11 + $0xe0] ss:$8 sps:$4 sm:$0xff]  }
 0x183   :  { %5756 = vmatpush1.bf16.msra.mxu1 %v20553_v39  ;;  %v3214_v6 = vpop.f32.mrf.mxu0  ;;  %5498 = vmatprep.subr.bf16.mxu0 %v20833_v43  ;;  %v3355_v39 = vld [vmem:[%s25150_s3] sm:$0x3]  ;;  %v3277_v58 = vadd.f32 %v3276_v11, %v3212_v48 }
 0x184   :  { %v3278_v5 = vpop.f32.mrf.mxu1  ;;  %v3121_v34 = vsel %vm3117_vm8, %v3115_v62, %v3119_v44  ;;  %5757 = vmatprep.subr.bf16.mxu1 %v20561_v50  ;;  %v3360_v33 = vrot.slane %v3355_v39, %v20192_v45 }
 0x185   :  { %v16164_v8 = vpack.c.bf16 %v3121_v34, %v3120_v57  ;;  %v3216_v4 = vpop.f32.mrf.mxu0  ;;  %v3279_v7 = vadd.f32 %v3278_v5, %v3214_v6 }
 0x186   :  { %v3280_v56 = vpop.f32.mrf.mxu1  ;;  %5499 = vmatpush1.bf16.msra.mxu0 %v20840_v17 }
 0x187   :  { %v3133_v13 = vrot.slane %v16164_v8, %v20129_v26  ;;  %5758 = vmatpush1.bf16.msra.mxu1 %v20568_v32  ;;  %v3217_v41 = vpop.f32.mrf.mxu0  ;;  %5500 = vmatprep.subr.bf16.mxu0 %v20847_v25  ;;  %v3364_v32 = vrot.slane %v3355_v39, %v20208_v51  ;;  %v20898_v56 = vld [vmem:[%s25149_s11 + $0xc4] ss:$8 sps:$4 sm:$0xff]  }
 0x188   :  { %v3281_v50 = vpop.f32.mrf.mxu1  ;;  %5759 = vmatprep.subr.bf16.mxu1 %v20577_v61  ;;  %v20881_v61 = vld [vmem:[%s25149_s11 + $0xd4] ss:$8 sps:$4 sm:$0xff]  }
 0x189   :  { %16165 = vst.sshfl [vmem:[#allocation2 + $0x18] sm:$0x5 pattern:$0x73625140] %v3133_v13  ;;  %v3346_v21 = vpop.f32.mrf.mxu0 }
 0x18a   :  { %v3465_v30 = vpop.f32.mrf.mxu1  ;;  %v3353_v20 = vadd.f32 %v3346_v21, %v3277_v58  ;;  %5501 = vmatpush2.bf16.msra.mxu0 %v20857_v53  ;;  %v20906_v21 = vld [vmem:[%s25149_s11 + $0xc0] ss:$8 sps:$4 sm:$0xff]  }
 0x18b   :  { %5760 = vmatpush2.bf16.msra.mxu1 %v20583_v36  ;;  %v3348_v62 = vpop.f32.mrf.mxu0  ;;  %5502 = vmatprep.subr.bf16.mxu0 %v20865_v10  ;;  %v20888_v36 = vld [vmem:[%s25149_s11 + $0xd0] ss:$8 sps:$4 sm:$0xff]  }
 0x18c   :  { %v3467_v48 = vpop.f32.mrf.mxu1  ;;  %v3367_v11 = vadd.f32 %v3360_v33, %v3353_v20  ;;  %v3354_v44 = vadd.f32 %v3348_v62, %v3279_v7  ;;  %5761 = vmatprep.subr.bf16.mxu1 %v20594_v14  ;;  %v3608_v14 = vld [vmem:[%s25150_s3] sm:$0x3] }
 0x18d   :  { %v3350_v6 = vpop.f32.mrf.mxu0  ;;  %v3613_v33 = vrot.slane %v3608_v14, %v20192_v45 }
 0x18e   :  { %v3469_v5 = vpop.f32.mrf.mxu1  ;;  %v3371_v57 = vmul.f32 0.2, %v3367_v11  ;;  %v3368_v34 = vadd.f32 %v3364_v32, %v3354_v44  ;;  %5503 = vmatpush2.bf16.msra.mxu0 %v20874_v31  ;;  %vm3369_vm9 = vcmp.gt.f32.partialorder %v3367_v11, 0.0 }
 0x18f   :  { %5762 = vmatpush2.bf16.msra.mxu1 %v20600_v22  ;;  %v3351_v8 = vpop.f32.mrf.mxu0  ;;  %5504 = vmatprep.subr.bf16.mxu0 %v20881_v61 }
 0x190   :  { %v3470_v4 = vpop.f32.mrf.mxu1  ;;  %vm3370_vm10 = vcmp.gt.f32.partialorder %v3368_v34, 0.0  ;;  %v3372_v39 = vmul.f32 0.2, %v3368_v34  ;;  %5763 = vmatprep.subr.bf16.mxu1 %v20609_v29  ;;  %v3373_v22 = vsel %vm3369_vm9, %v3367_v11, %v3371_v57  ;;  %v20913_v29 = vld [vmem:[%s25149_s11 + $0xb4] ss:$8 sps:$4 sm:$0xff]   ;;  %v3617_v11 = vrot.slane %v3608_v14, %v20208_v51 }
 0x191   :  { %v3529_v13 = vpop.f32.mrf.mxu0 }
 0x192   :  { %v3599_v41 = vpop.f32.mrf.mxu1  ;;  %v3374_v50 = vsel %vm3370_vm10, %v3368_v34, %v3372_v39  ;;  %v3530_v58 = vadd.f32 %v3529_v13, %v3465_v30  ;;  %5505 = vmatpush2.bf16.msra.mxu0 %v20888_v36  ;;  %v20922_v34 = vld [vmem:[%s25149_s11 + $0xb0] ss:$8 sps:$4 sm:$0xff]  }
 0x193   :  { %v16192_v7 = vpack.c.bf16 %v3374_v50, %v3373_v22  ;;  %5764 = vmatpush2.bf16.msra.mxu1 %v20616_v9  ;;  %v3531_v20 = vpop.f32.mrf.mxu0  ;;  %5506 = vmatprep.subr.bf16.mxu0 %v20898_v56 }
 0x194   :  { %v3601_v32 = vpop.f32.mrf.mxu1  ;;  %v3606_v30 = vadd.f32 %v3599_v41, %v3530_v58  ;;  %v3532_v62 = vadd.f32 %v3531_v20, %v3467_v48  ;;  %5765 = vmatprep.subr.bf16.mxu1 %v20625_v54  ;;  %v20929_v54 = vld [vmem:[%s25149_s11 + $0xa4] ss:$8 sps:$4 sm:$0xff]  }
 0x195   :  { %v3386_v44 = vrot.slane %v16192_v7, %v20129_v26  ;;  %v3533_v6 = vpop.f32.mrf.mxu0 }
 0x196   :  { %v3603_v5 = vpop.f32.mrf.mxu1  ;;  %v3620_v9 = vadd.f32 %v3613_v33, %v3606_v30  ;;  %v3607_v57 = vadd.f32 %v3601_v32, %v3532_v62  ;;  %5507 = vmatpush2.bf16.msra.mxu0 %v20906_v21  ;;  %v20953_v30 = vld [vmem:[%s25149_s11 + $0x90] ss:$8 sps:$4 sm:$0xff]  }
 0x197   :  { %16193 = vst.sshfl [vmem:[#allocation2 + $0x1a] sm:$0x5 pattern:$0x73625140] %v3386_v44  ;;  %5766 = vmatpush2.bf16.msra.mxu1 %v20631_v46  ;;  %v3534_v48 = vpop.f32.mrf.mxu0  ;;  %5508 = vmatprep.subr.bf16.mxu0 %v20913_v29  ;;  %v20936_v46 = vld [vmem:[%s25149_s11 + $0xa0] ss:$8 sps:$4 sm:$0xff]  }
 0x198   :  { %v3604_v8 = vpop.f32.mrf.mxu1  ;;  %v3624_v4 = vmul.f32 0.2, %v3620_v9  ;;  %v3621_v14 = vadd.f32 %v3617_v11, %v3607_v57  ;;  %5767 = vmatprep.subr.bf16.mxu1 %v20642_v35  ;;  %vm3622_vm11 = vcmp.gt.f32.partialorder %v3620_v9, 0.0  ;;  %v20943_v35 = vld [vmem:[%s25149_s11 + $0x94] ss:$8 sps:$4 sm:$0xff]  }
 0x199   :  { %v3718_v39 = vpop.f32.mrf.mxu0  ;;  %v20961_v44 = vld [vmem:[%s25149_s11 + $0x84] ss:$8 sps:$4 sm:$0xff]  }
 0x19a   :  { %v3782_v13 = vpop.f32.mrf.mxu1  ;;  %vm3623_vm12 = vcmp.gt.f32.partialorder %v3621_v14, 0.0  ;;  %v3625_v41 = vmul.f32 0.2, %v3621_v14  ;;  %5509 = vmatpush2.bf16.msra.mxu0 %v20922_v34  ;;  %v3626_v58 = vsel %vm3622_vm11, %v3620_v9, %v3624_v4  ;;  %v20970_v4 = vld [vmem:[%s25149_s11 + $0x80] ss:$8 sps:$4 sm:$0xff]  }
 0x19b   :  { %5768 = vmatpush2.bf16.msra.mxu1 %v20649_v59  ;;  %v3720_v22 = vpop.f32.mrf.mxu0  ;;  %5510 = vmatprep.subr.bf16.mxu0 %v20929_v54  ;;  %v3861_v59 = vld [vmem:[%s25150_s3] sm:$0x3]  ;;  %v3783_v6 = vadd.f32 %v3782_v13, %v3718_v39  ;;  %v20979_v13 = vld [vmem:[%s25149_s11 + $0x174] ss:$8 sps:$4 sm:$0xff]  }
 0x19c   :  { %v3784_v50 = vpop.f32.mrf.mxu1  ;;  %v3627_v33 = vsel %vm3623_vm12, %v3621_v14, %v3625_v41  ;;  %5769 = vmatprep.subr.bf16.mxu1 %v20657_v1  ;;  %v3866_v5 = vrot.slane %v3861_v59, %v20192_v45  ;;  %v20972_v14 = vld.sshfl [vmem:[#allocation2 + $0xa] sm:$0x11 pattern:$0x75316420] }
 0x19d   :  { %v16220_v7 = vpack.c.bf16 %v3627_v33, %v3626_v58  ;;  %v3722_v20 = vpop.f32.mrf.mxu0  ;;  %v3785_v48 = vadd.f32 %v3784_v50, %v3720_v22  ;;  %v5930_v33 = vcombine.high %v20972_v14, %v20972_v14 }
 0x19e   :  { %v3786_v32 = vpop.f32.mrf.mxu1  ;;  %5511 = vmatpush2.bf16.msra.mxu0 %v20936_v46  ;;  %v4114_v20 = vld [vmem:[%s25150_s3] sm:$0x3] }
 0x19f   :  { %v3639_v62 = vrot.slane %v16220_v7, %v20129_v26  ;;  %5770 = vmatpush2.bf16.msra.mxu1 %v20664_v40  ;;  %v3723_v11 = vpop.f32.mrf.mxu0  ;;  %5512 = vmatprep.subr.bf16.mxu0 %v20943_v35  ;;  %v3870_v40 = vrot.slane %v3861_v59, %v20208_v51  ;;  %v20991_v32 = vld [vmem:[%s25149_s11 + $0x170] ss:$8 sps:$4 sm:$0xff]  }
 0x1a0   :  { %v3787_v1 = vpop.f32.mrf.mxu1  ;;  %5771 = vmatprep.subr.bf16.mxu1 %v20673_v49  ;;  %v20997_v11 = vrot.slane %v20707_v12, %v20129_v26 }
 0x1a1   :  { %16221 = vst.sshfl [vmem:[#allocation2 + $0x1c] sm:$0x5 pattern:$0x73625140] %v3639_v62  ;;  %v3852_v9 = vpop.f32.mrf.mxu0  ;;  %v21003_v1 = vld [vmem:[%s25149_s11 + $0x164] ss:$8 sps:$4 sm:$0xff]  }
 0x1a2   :  { %v3971_v57 = vpop.f32.mrf.mxu1  ;;  %v3859_v8 = vadd.f32 %v3852_v9, %v3783_v6  ;;  %5513 = vmatpush2.bf16.msra.mxu0 %v20953_v30  ;;  %v5944_v9 = vrot.slane %v5930_v33, %v20129_v26 }
 0x1a3   :  { %5772 = vmatpush2.bf16.msra.mxu1 %v20679_v52  ;;  %v3854_v39 = vpop.f32.mrf.mxu0  ;;  %5514 = vmatprep.subr.bf16.mxu0 %v20961_v44 }
 0x1a4   :  { %v3973_v49 = vpop.f32.mrf.mxu1  ;;  %v3873_v41 = vadd.f32 %v3866_v5, %v3859_v8  ;;  %v3860_v22 = vadd.f32 %v3854_v39, %v3785_v48  ;;  %5773 = vmatprep.subr.bf16.mxu1 %v20690_v24 }
 0x1a5   :  { %v3856_v50 = vpop.f32.mrf.mxu0 }
 0x1a6   :  { %v3975_v58 = vpop.f32.mrf.mxu1  ;;  %v3877_v7 = vmul.f32 0.2, %v3873_v41  ;;  %v3874_v52 = vadd.f32 %v3870_v40, %v3860_v22  ;;  %5515 = vmatpush2.bf16.msra.mxu0 %v20970_v4  ;;  %vm3875_vm13 = vcmp.gt.f32.partialorder %v3873_v41, 0.0  ;;  %v4123_v50 = vrot.slane %v4114_v20, %v20208_v51 }
 0x1a7   :  { %5774 = vmatpush2.bf16.msra.mxu1 %v20696_v28  ;;  %v3857_v24 = vpop.f32.mrf.mxu0  ;;  %6107 = vmatprep.subr.bf16.mxu0 %v20979_v13  ;;  %v4119_v28 = vrot.slane %v4114_v20, %v20192_v45 }
 0x1a8   :  { %v3976_v59 = vpop.f32.mrf.mxu1  ;;  %vm3876_vm14 = vcmp.gt.f32.partialorder %v3874_v52, 0.0  ;;  %v3878_v62 = vmul.f32 0.2, %v3874_v52  ;;  %6333 = vmatprep.subr.bf16.mxu1 %v20701_v47  ;;  %v3879_v48 = vsel %vm3875_vm13, %v3873_v41, %v3877_v7  ;;  %v21013_v47 = vld [vmem:[%s25149_s11 + $0x160] ss:$8 sps:$4 sm:$0xff]  }
 0x1a9   :  { %v4035_v6 = vpop.f32.mrf.mxu0  ;;  %5517 = vmatmul.mubr.bf16.vlgmr.msra.gmra.mxu0 %v20728_v16  ;;  %v21019_v41 = vld [vmem:[%s25149_s11 + $0x154] ss:$8 sps:$4 sm:$0xff]   ;;  %v21030_v24 = vld [vmem:[%s25149_s11 + $0x150] ss:$8 sps:$4 sm:$0xff]  }
 0x1aa   :  { %v4105_v5 = vpop.f32.mrf.mxu1  ;;  %v3880_v8 = vsel %vm3876_vm14, %v3874_v52, %v3878_v62  ;;  %v4036_v40 = vadd.f32 %v4035_v6, %v3971_v57  ;;  %5776 = vmatmul.mubr.bf16.vlgmr.msra.gmra.mxu1 %v20997_v11  ;;  %6108 = vmatpush1.bf16.msra.mxu0 %v20991_v32  ;;  %v21051_v6 = vld [vmem:[%s25149_s11 + $0x134] ss:$8 sps:$4 sm:$0xff]  }
 0x1ab   :  { %v16248_v12 = vpack.c.bf16 %v3880_v8, %v3879_v48  ;;  %6139 = vmatprep.mubr.bf16.mxu0 %v5944_v9  ;;  %6334 = vmatpush1.bf16.msra.mxu1 %v20714_v27  ;;  %v4037_v39 = vpop.f32.mrf.mxu0  ;;  %v21058_v9 = vld [vmem:[%s25149_s11 + $0x130] ss:$8 sps:$4 sm:$0xff]   ;;  %v21066_v48 = vld [vmem:[%s25149_s11 + $0x124] ss:$8 sps:$4 sm:$0xff]  }
 0x1ac   :  { %v4107_v16 = vpop.f32.mrf.mxu1  ;;  %v4112_v57 = vadd.f32 %v4105_v5, %v4036_v40  ;;  %6365 = vmatprep.mubr.bf16.mxu1 %v20742_v3  ;;  %v4038_v22 = vadd.f32 %v4037_v39, %v3973_v49  ;;  %6109 = vmatprep.subr.bf16.mxu0 %v21003_v1  ;;  %v21215_v8 = vld.sshfl [vmem:[#allocation2 + $0xc] sm:$0x11 pattern:$0x75316420]  ;;  %v5937_v39 = vrot.slane %v20972_v14, %v20129_v26  ;;  %v21258_v14 = vld [vmem:[%s25149_s11 + $0x260] ss:$8 sps:$4 sm:$0xff]  }
 0x1ad   :  { %v3892_v58 = vrot.slane %v16248_v12, %v20129_v26  ;;  %v4039_v33 = vpop.f32.mrf.mxu0  ;;  %6335 = vmatprep.subr.bf16.mxu1 %v20723_v2  ;;  %v21037_v2 = vld [vmem:[%s25149_s11 + $0x144] ss:$8 sps:$4 sm:$0xff]  }
 0x1ae   :  { %v4109_v7 = vpop.f32.mrf.mxu1  ;;  %v4126_v27 = vadd.f32 %v4119_v28, %v4112_v57  ;;  %v4113_v52 = vadd.f32 %v4107_v16, %v4038_v22  ;;  %6110 = vmatpush1.bf16.msra.mxu0 %v21013_v47  ;;  %v21224_v40 = vld.sshfl [vmem:[#allocation2 + $0xe] sm:$0x11 pattern:$0x75316420] }
 0x1af   :  { %16249 = vst.sshfl [vmem:[#allocation2 + $0x1e] sm:$0x5 pattern:$0x73625140] %v3892_v58  ;;  %6336 = vmatpush1.bf16.msra.mxu1 %v20738_v19  ;;  %v4040_v3 = vpop.f32.mrf.mxu0  ;;  %6111 = vmatprep.subr.bf16.mxu0 %v21019_v41  ;;  %v21044_v19 = vld [vmem:[%s25149_s11 + $0x140] ss:$8 sps:$4 sm:$0xff]   ;;  %v6779_v12 = vcombine.high %v21224_v40, %v21224_v40 }
 0x1b0   :  { %v4110_v49 = vpop.f32.mrf.mxu1  ;;  %v4130_v20 = vmul.f32 0.2, %v4126_v27  ;;  %v4127_v59 = vadd.f32 %v4123_v50, %v4113_v52  ;;  %6337 = vmatprep.subr.bf16.mxu1 %v20747_v37  ;;  %vm4128_vm15 = vcmp.gt.f32.partialorder %v4126_v27, 0.0  ;;  %v21284_v3 = vld [vmem:[%s25149_s11 + $0x244] ss:$8 sps:$4 sm:$0xff]  }
 0x1b1   :  { %v21319_v49 = vld [vmem:[%s25149_s11 + $0x220] ss:$8 sps:$4 sm:$0xff]  }
 0x1b2   :  { %vm4129_vm0 = vcmp.gt.f32.partialorder %v4127_v59, 0.0  ;;  %v4131_v62 = vmul.f32 0.2, %v4127_v59  ;;  %6112 = vmatpush1.bf16.msra.mxu0 %v21030_v24  ;;  %v4132_v37 = vsel %vm4128_vm15, %v4126_v27, %v4130_v20  ;;  %v21333_v20 = vld [vmem:[%s25149_s11 + $0x210] ss:$8 sps:$4 sm:$0xff]  }
 0x1b3   :  { %6338 = vmatpush1.bf16.msra.mxu1 %v20761_v42  ;;  %6113 = vmatprep.subr.bf16.mxu0 %v21037_v2 }
 0x1b4   :  { %v4133_v5 = vsel %vm4129_vm0, %v4127_v59, %v4131_v62  ;;  %6339 = vmatprep.subr.bf16.mxu1 %v20769_v60  ;;  %v21073_v60 = vld [vmem:[%s25149_s11 + $0x120] ss:$8 sps:$4 sm:$0xff]   ;;  %v21340_v59 = vld [vmem:[%s25149_s11 + $0x204] ss:$8 sps:$4 sm:$0xff]  }
 0x1b5   :  { %v16276_v28 = vpack.c.bf16 %v4133_v5, %v4132_v37  ;;  %v21347_v62 = vld [vmem:[%s25149_s11 + $0x200] ss:$8 sps:$4 sm:$0xff]   ;;  %v21368_v37 = vld [vmem:[%s25149_s11 + $0x2e4] ss:$8 sps:$4 sm:$0xff]  }
 0x1b6   :  { %6114 = vmatpush1.bf16.msra.mxu0 %v21044_v19  ;;  %v21375_v5 = vld [vmem:[%s25149_s11 + $0x2e0] ss:$8 sps:$4 sm:$0xff]  }
 0x1b7   :  { %v4145_v42 = vrot.slane %v16276_v28, %v20129_v26  ;;  %6340 = vmatpush1.bf16.msra.mxu1 %v20776_v0  ;;  %6115 = vmatprep.subr.bf16.mxu0 %v21051_v6  ;;  %v21080_v0 = vld [vmem:[%s25149_s11 + $0x114] ss:$8 sps:$4 sm:$0xff]  }
 0x1b8   :  { %6341 = vmatprep.subr.bf16.mxu1 %v20785_v18  ;;  %v21087_v18 = vld [vmem:[%s25149_s11 + $0x110] ss:$8 sps:$4 sm:$0xff]   ;;  %v21382_v28 = vld [vmem:[%s25149_s11 + $0x2d4] ss:$8 sps:$4 sm:$0xff]  }
 0x1b9   :  { %16277 = vst.sshfl [vmem:[#allocation2 + $0x20] sm:$0x5 pattern:$0x73625140] %v4145_v42  ;;  %v21396_v42 = vld [vmem:[%s25149_s11 + $0x2c4] ss:$8 sps:$4 sm:$0xff]  }
 0x1ba   :  { %6116 = vmatpush1.bf16.msra.mxu0 %v21058_v9 }
 0x1bb   :  { %6342 = vmatpush1.bf16.msra.mxu1 %v20792_v55  ;;  %6117 = vmatprep.subr.bf16.mxu0 %v21066_v48  ;;  %v21094_v55 = vld [vmem:[%s25149_s11 + $0x104] ss:$8 sps:$4 sm:$0xff]  }
 0x1bc   :  { %6343 = vmatprep.subr.bf16.mxu1 %v20802_v63  ;;  %v21101_v63 = vld [vmem:[%s25149_s11 + $0x100] ss:$8 sps:$4 sm:$0xff]  }
 0x1be   :  { %6118 = vmatpush1.bf16.msra.mxu0 %v21073_v60 }
 0x1bf   :  { %6344 = vmatpush1.bf16.msra.mxu1 %v20810_v15  ;;  %6119 = vmatprep.subr.bf16.mxu0 %v21080_v0  ;;  %v21108_v15 = vld [vmem:[%s25149_s11 + $0x1f4] ss:$8 sps:$4 sm:$0xff]  }
 0x1c0   :  { %6345 = vmatprep.subr.bf16.mxu1 %v20817_v23  ;;  %v21115_v23 = vld [vmem:[%s25149_s11 + $0x1f0] ss:$8 sps:$4 sm:$0xff]  }
 0x1c2   :  { %6120 = vmatpush1.bf16.msra.mxu0 %v21087_v18 }
 0x1c3   :  { %6346 = vmatpush1.bf16.msra.mxu1 %v20826_v38  ;;  %6121 = vmatprep.subr.bf16.mxu0 %v21094_v55  ;;  %v21122_v38 = vld [vmem:[%s25149_s11 + $0x1e4] ss:$8 sps:$4 sm:$0xff]  }
 0x1c4   :  { %6347 = vmatprep.subr.bf16.mxu1 %v20833_v43  ;;  %v21129_v43 = vld [vmem:[%s25149_s11 + $0x1e0] ss:$8 sps:$4 sm:$0xff]  }
 0x1c6   :  { %6122 = vmatpush1.bf16.msra.mxu0 %v21101_v63 }
 0x1c7   :  { %6348 = vmatpush1.bf16.msra.mxu1 %v20840_v17  ;;  %6123 = vmatprep.subr.bf16.mxu0 %v21108_v15  ;;  %v21136_v17 = vld [vmem:[%s25149_s11 + $0x1d4] ss:$8 sps:$4 sm:$0xff]  }
 0x1c8   :  { %6349 = vmatprep.subr.bf16.mxu1 %v20847_v25  ;;  %v21143_v25 = vld [vmem:[%s25149_s11 + $0x1d0] ss:$8 sps:$4 sm:$0xff]  }
 0x1ca   :  { %6124 = vmatpush2.bf16.msra.mxu0 %v21115_v23 }
 0x1cb   :  { %6350 = vmatpush2.bf16.msra.mxu1 %v20857_v53  ;;  %6125 = vmatprep.subr.bf16.mxu0 %v21122_v38  ;;  %v21150_v53 = vld [vmem:[%s25149_s11 + $0x1c4] ss:$8 sps:$4 sm:$0xff]  }
 0x1cc   :  { %6351 = vmatprep.subr.bf16.mxu1 %v20865_v10  ;;  %v21157_v10 = vld [vmem:[%s25149_s11 + $0x1c0] ss:$8 sps:$4 sm:$0xff]  }
 0x1ce   :  { %6126 = vmatpush2.bf16.msra.mxu0 %v21129_v43 }
 0x1cf   :  { %6352 = vmatpush2.bf16.msra.mxu1 %v20874_v31  ;;  %6127 = vmatprep.subr.bf16.mxu0 %v21136_v17  ;;  %v21164_v31 = vld [vmem:[%s25149_s11 + $0x1b4] ss:$8 sps:$4 sm:$0xff]  }
 0x1d0   :  { %6353 = vmatprep.subr.bf16.mxu1 %v20881_v61  ;;  %v21171_v61 = vld [vmem:[%s25149_s11 + $0x1b0] ss:$8 sps:$4 sm:$0xff]  }
 0x1d2   :  { %6128 = vmatpush2.bf16.msra.mxu0 %v21143_v25 }
 0x1d3   :  { %6354 = vmatpush2.bf16.msra.mxu1 %v20888_v36  ;;  %6129 = vmatprep.subr.bf16.mxu0 %v21150_v53  ;;  %v21178_v36 = vld [vmem:[%s25149_s11 + $0x1a4] ss:$8 sps:$4 sm:$0xff]  }
 0x1d4   :  { %6355 = vmatprep.subr.bf16.mxu1 %v20898_v56  ;;  %v21185_v56 = vld [vmem:[%s25149_s11 + $0x1a0] ss:$8 sps:$4 sm:$0xff]  }
 0x1d6   :  { %6130 = vmatpush2.bf16.msra.mxu0 %v21157_v10 }
 0x1d7   :  { %6356 = vmatpush2.bf16.msra.mxu1 %v20906_v21  ;;  %6131 = vmatprep.subr.bf16.mxu0 %v21164_v31  ;;  %v21192_v21 = vld [vmem:[%s25149_s11 + $0x194] ss:$8 sps:$4 sm:$0xff]  }
 0x1d8   :  { %6357 = vmatprep.subr.bf16.mxu1 %v20913_v29  ;;  %v21199_v29 = vld [vmem:[%s25149_s11 + $0x190] ss:$8 sps:$4 sm:$0xff]  }
 0x1da   :  { %6132 = vmatpush2.bf16.msra.mxu0 %v21171_v61 }
 0x1db   :  { %6358 = vmatpush2.bf16.msra.mxu1 %v20922_v34  ;;  %6133 = vmatprep.subr.bf16.mxu0 %v21178_v36  ;;  %v21206_v34 = vld [vmem:[%s25149_s11 + $0x184] ss:$8 sps:$4 sm:$0xff]  }
 0x1dc   :  { %6359 = vmatprep.subr.bf16.mxu1 %v20929_v54  ;;  %v21213_v54 = vld [vmem:[%s25149_s11 + $0x180] ss:$8 sps:$4 sm:$0xff]  }
 0x1de   :  { %6134 = vmatpush2.bf16.msra.mxu0 %v21185_v56 }
 0x1df   :  { %6360 = vmatpush2.bf16.msra.mxu1 %v20936_v46  ;;  %6135 = vmatprep.subr.bf16.mxu0 %v21192_v21  ;;  %v21222_v46 = vld [vmem:[%s25149_s11 + $0x274] ss:$8 sps:$4 sm:$0xff]  }
 0x1e0   :  { %6361 = vmatprep.subr.bf16.mxu1 %v20943_v35  ;;  %v6415_v35 = vcombine.high %v21215_v8, %v21215_v8 }
 0x1e2   :  { %6136 = vmatpush2.bf16.msra.mxu0 %v21199_v29  ;;  %v21248_v22 = vrot.slane %v6415_v35, %v20129_v26  ;;  %v21514_v35 = vld [vmem:[%s25149_s11 + $0x60] ss:$8 sps:$4 sm:$0xff]  }
 0x1e3   :  { %6362 = vmatpush2.bf16.msra.mxu1 %v20953_v30  ;;  %6137 = vmatprep.subr.bf16.mxu0 %v21206_v34  ;;  %v21233_v30 = vld [vmem:[%s25149_s11 + $0x270] ss:$8 sps:$4 sm:$0xff]  }
 0x1e4   :  { %6363 = vmatprep.subr.bf16.mxu1 %v20961_v44  ;;  %v21245_v44 = vld [vmem:[%s25149_s11 + $0x264] ss:$8 sps:$4 sm:$0xff]  }
 0x1e6   :  { %6138 = vmatpush2.bf16.msra.mxu0 %v21213_v54 }
 0x1e7   :  { %6364 = vmatpush2.bf16.msra.mxu1 %v20970_v4  ;;  %6592 = vmatprep.subr.bf16.mxu0 %v21222_v46  ;;  %v6793_v4 = vrot.slane %v6779_v12, %v20129_v26 }
 0x1e8   :  { %6956 = vmatprep.subr.bf16.mxu1 %v20979_v13 }
 0x1e9   :  { %v4442_v16 = vpop.f32.mrf.mxu0  ;;  %6140 = vmatmul.mubr.bf16.vlgmr.msra.gmra.mxu0 %v5937_v39  ;;  %v21521_v39 = vld [vmem:[%s25149_s11 + $0x54] ss:$8 sps:$4 sm:$0xff]  }
 0x1ea   :  { %v4668_v57 = vpop.f32.mrf.mxu1  ;;  %6366 = vmatmul.mubr.bf16.vlgmr.msra.gmra.mxu1 %v20997_v11  ;;  %6593 = vmatpush1.bf16.msra.mxu0 %v21233_v30  ;;  %v21269_v11 = vld [vmem:[%s25149_s11 + $0x254] ss:$8 sps:$4 sm:$0xff]  }
 0x1eb   :  { %v21250_v50 = vadd.f32 %v4668_v57, %v4442_v16  ;;  %6624 = vmatprep.mubr.bf16.mxu0 %v21248_v22  ;;  %6957 = vmatpush1.bf16.msra.mxu1 %v20991_v32  ;;  %v21262_v13 = vpop.f32.mrf.mxu0  ;;  %v21277_v32 = vld [vmem:[%s25149_s11 + $0x250] ss:$8 sps:$4 sm:$0xff]  }
 0x1ec   :  { %v21264_v58 = vpop.f32.mrf.mxu1  ;;  %6988 = vmatprep.mubr.bf16.mxu1 %v6793_v4  ;;  %6594 = vmatprep.subr.bf16.mxu0 %v21245_v44 }
 0x1ed   :  { %v4446_v33 = vpop.f32.mrf.mxu0  ;;  %6958 = vmatprep.subr.bf16.mxu1 %v21003_v1  ;;  %v21291_v1 = vld [vmem:[%s25149_s11 + $0x240] ss:$8 sps:$4 sm:$0xff]  }
 0x1ee   :  { %v4672_v7 = vpop.f32.mrf.mxu1  ;;  %6595 = vmatpush1.bf16.msra.mxu0 %v21258_v14 }
 0x1ef   :  { %6959 = vmatpush1.bf16.msra.mxu1 %v21013_v47  ;;  %v4447_v27 = vpop.f32.mrf.mxu0  ;;  %6596 = vmatprep.subr.bf16.mxu0 %v21269_v11  ;;  %v21298_v47 = vld [vmem:[%s25149_s11 + $0x234] ss:$8 sps:$4 sm:$0xff]   ;;  %v21536_v7 = vld [vmem:[%s25149_s11 + $0x50] ss:$8 sps:$4 sm:$0xff]  }
 0x1f0   :  { %v4673_v52 = vpop.f32.mrf.mxu1  ;;  %6960 = vmatprep.subr.bf16.mxu1 %v21019_v41  ;;  %v21305_v41 = vld [vmem:[%s25149_s11 + $0x230] ss:$8 sps:$4 sm:$0xff]  }
 0x1f2   :  { %6597 = vmatpush1.bf16.msra.mxu0 %v21277_v32 }
 0x1f3   :  { %6961 = vmatpush1.bf16.msra.mxu1 %v21030_v24  ;;  %6598 = vmatprep.subr.bf16.mxu0 %v21284_v3  ;;  %v21312_v24 = vld [vmem:[%s25149_s11 + $0x224] ss:$8 sps:$4 sm:$0xff]  }
 0x1f4   :  { %6962 = vmatprep.subr.bf16.mxu1 %v21037_v2  ;;  %v21326_v2 = vld [vmem:[%s25149_s11 + $0x214] ss:$8 sps:$4 sm:$0xff]  }
 0x1f6   :  { %6599 = vmatpush1.bf16.msra.mxu0 %v21291_v1 }
 0x1f7   :  { %6963 = vmatpush1.bf16.msra.mxu1 %v21044_v19  ;;  %6600 = vmatprep.subr.bf16.mxu0 %v21298_v47  ;;  %v21354_v19 = vld [vmem:[%s25149_s11 + $0x2f4] ss:$8 sps:$4 sm:$0xff]  }
 0x1f8   :  { %6964 = vmatprep.subr.bf16.mxu1 %v21051_v6  ;;  %v21361_v6 = vld [vmem:[%s25149_s11 + $0x2f0] ss:$8 sps:$4 sm:$0xff]  }
 0x1fa   :  { %6601 = vmatpush1.bf16.msra.mxu0 %v21305_v41 }
 0x1fb   :  { %6965 = vmatpush1.bf16.msra.mxu1 %v21058_v9  ;;  %6602 = vmatprep.subr.bf16.mxu0 %v21312_v24  ;;  %v21389_v9 = vld [vmem:[%s25149_s11 + $0x2d0] ss:$8 sps:$4 sm:$0xff]  }
 0x1fc   :  { %6966 = vmatprep.subr.bf16.mxu1 %v21066_v48  ;;  %v21403_v48 = vld [vmem:[%s25149_s11 + $0x2c0] ss:$8 sps:$4 sm:$0xff]  }
 0x1fe   :  { %6603 = vmatpush1.bf16.msra.mxu0 %v21319_v49 }
 0x1ff   :  { %6967 = vmatpush1.bf16.msra.mxu1 %v21073_v60  ;;  %6604 = vmatprep.subr.bf16.mxu0 %v21326_v2  ;;  %v21410_v60 = vld [vmem:[%s25149_s11 + $0x2b4] ss:$8 sps:$4 sm:$0xff]  }
 0x200   :  { %6968 = vmatprep.subr.bf16.mxu1 %v21080_v0  ;;  %v21417_v0 = vld [vmem:[%s25149_s11 + $0x2b0] ss:$8 sps:$4 sm:$0xff]  }
 0x202   :  { %6605 = vmatpush1.bf16.msra.mxu0 %v21333_v20 }
 0x203   :  { %6969 = vmatpush1.bf16.msra.mxu1 %v21087_v18  ;;  %6606 = vmatprep.subr.bf16.mxu0 %v21340_v59  ;;  %v21424_v18 = vld [vmem:[%s25149_s11 + $0x2a4] ss:$8 sps:$4 sm:$0xff]  }
 0x204   :  { %6970 = vmatprep.subr.bf16.mxu1 %v21094_v55  ;;  %v21431_v55 = vld [vmem:[%s25149_s11 + $0x2a0] ss:$8 sps:$4 sm:$0xff]  }
 0x206   :  { %6607 = vmatpush1.bf16.msra.mxu0 %v21347_v62 }
 0x207   :  { %6971 = vmatpush1.bf16.msra.mxu1 %v21101_v63  ;;  %6608 = vmatprep.subr.bf16.mxu0 %v21354_v19  ;;  %v21438_v63 = vld [vmem:[%s25149_s11 + $0x294] ss:$8 sps:$4 sm:$0xff]  }
 0x208   :  { %6972 = vmatprep.subr.bf16.mxu1 %v21108_v15  ;;  %v21445_v15 = vld [vmem:[%s25149_s11 + $0x290] ss:$8 sps:$4 sm:$0xff]  }
 0x20a   :  { %6609 = vmatpush2.bf16.msra.mxu0 %v21361_v6 }
 0x20b   :  { %6973 = vmatpush2.bf16.msra.mxu1 %v21115_v23  ;;  %6610 = vmatprep.subr.bf16.mxu0 %v21368_v37  ;;  %v21452_v23 = vld [vmem:[%s25149_s11 + $0x284] ss:$8 sps:$4 sm:$0xff]  }
 0x20c   :  { %6974 = vmatprep.subr.bf16.mxu1 %v21122_v38  ;;  %v21459_v38 = vld [vmem:[%s25149_s11 + $0x280] ss:$8 sps:$4 sm:$0xff]  }
 0x20e   :  { %6611 = vmatpush2.bf16.msra.mxu0 %v21375_v5 }
 0x20f   :  { %6975 = vmatpush2.bf16.msra.mxu1 %v21129_v43  ;;  %6612 = vmatprep.subr.bf16.mxu0 %v21382_v28  ;;  %v21461_v43 = vld.sshfl [vmem:[#allocation2 + $0x10] sm:$0x11 pattern:$0x75316420] }
 0x210   :  { %6976 = vmatprep.subr.bf16.mxu1 %v21136_v17  ;;  %v21468_v17 = vld [vmem:[%s25149_s11 + $0x74] ss:$8 sps:$4 sm:$0xff]  }
 0x212   :  { %6613 = vmatpush2.bf16.msra.mxu0 %v21389_v9 }
 0x213   :  { %6977 = vmatpush2.bf16.msra.mxu1 %v21143_v25  ;;  %6614 = vmatprep.subr.bf16.mxu0 %v21396_v42  ;;  %v4937_v25 = vld [vmem:[%s25151_s1] sm:$0x3] }
 0x214   :  { %6978 = vmatprep.subr.bf16.mxu1 %v21150_v53  ;;  %v7264_v53 = vcombine.high %v21461_v43, %v21461_v43 }
 0x216   :  { %6615 = vmatpush2.bf16.msra.mxu0 %v21403_v48 }
 0x217   :  { %6979 = vmatpush2.bf16.msra.mxu1 %v21157_v10  ;;  %6616 = vmatprep.subr.bf16.mxu0 %v21410_v60  ;;  %v21480_v10 = vld [vmem:[%s25149_s11 + $0x70] ss:$8 sps:$4 sm:$0xff]  }
 0x218   :  { %6980 = vmatprep.subr.bf16.mxu1 %v21164_v31  ;;  %v21484_v31 = vrot.slane %v21215_v8, %v20129_v26  ;;  %v4957_v8 = vld [vmem:[%s25062_s5] sm:$0x3] }
 0x219   :  { %v4962_v4 = vrot.slane %v4957_v8, %v20192_v45  ;;  %v4966_v27 = vrot.slane %v4957_v8, %v20208_v51 }
 0x21a   :  { %6617 = vmatpush2.bf16.msra.mxu0 %v21417_v0 }
 0x21b   :  { %6981 = vmatpush2.bf16.msra.mxu1 %v21171_v61  ;;  %6618 = vmatprep.subr.bf16.mxu0 %v21424_v18  ;;  %v6786_v61 = vrot.slane %v21224_v40, %v20129_v26  ;;  %v4946_v40 = vrot.slane %v4937_v25, %v20208_v51 }
 0x21c   :  { %6982 = vmatprep.subr.bf16.mxu1 %v21178_v36  ;;  %v4942_v36 = vrot.slane %v4937_v25, %v20192_v45 }
 0x21e   :  { %6619 = vmatpush2.bf16.msra.mxu0 %v21431_v55 }
 0x21f   :  { %6983 = vmatpush2.bf16.msra.mxu1 %v21185_v56  ;;  %6620 = vmatprep.subr.bf16.mxu0 %v21438_v63  ;;  %v21495_v56 = vld [vmem:[%s25149_s11 + $0x64] ss:$8 sps:$4 sm:$0xff]  }
 0x220   :  { %6984 = vmatprep.subr.bf16.mxu1 %v21192_v21 }
 0x222   :  { %6621 = vmatpush2.bf16.msra.mxu0 %v21445_v15 }
 0x223   :  { %6985 = vmatpush2.bf16.msra.mxu1 %v21199_v29  ;;  %6622 = vmatprep.subr.bf16.mxu0 %v21452_v23  ;;  %v21499_v29 = vrot.slane %v7264_v53, %v20129_v26 }
 0x224   :  { %6986 = vmatprep.subr.bf16.mxu1 %v21206_v34  ;;  %v4671_v34 = vadd.f32 %v21264_v58, %v21262_v13 }
 0x226   :  { %6623 = vmatpush2.bf16.msra.mxu0 %v21459_v38 }
 0x227   :  { %6987 = vmatpush2.bf16.msra.mxu1 %v21213_v54  ;;  %7182 = vmatprep.subr.bf16.mxu0 %v21468_v17 }
 0x228   :  { %7441 = vmatprep.subr.bf16.mxu1 %v21222_v46 }
 0x229   :  { %v4928_v21 = vpop.f32.mrf.mxu0  ;;  %6625 = vmatmul.mubr.bf16.vlgmr.msra.gmra.mxu0 %v21484_v31 }
 0x22a   :  { %v4935_v54 = vadd.f32 %v4928_v21, %v21250_v50  ;;  %v21507_v46 = vpop.f32.mrf.mxu1  ;;  %6989 = vmatmul.mubr.bf16.vlgmr.msra.gmra.mxu1 %v6786_v61  ;;  %7183 = vmatpush1.bf16.msra.mxu0 %v21480_v10 }
 0x22b   :  { %7214 = vmatprep.mubr.bf16.mxu0 %v21248_v22  ;;  %7442 = vmatpush1.bf16.msra.mxu1 %v21233_v30  ;;  %v4930_v12 = vpop.f32.mrf.mxu0  ;;  %v4971_v30 = vld [vmem:[%s25063_s6] sm:$0x3] }
 0x22c   :  { %v4949_v16 = vadd.f32 %v4942_v36, %v4935_v54  ;;  %7473 = vmatprep.mubr.bf16.mxu1 %v21499_v29  ;;  %v4936_v57 = vadd.f32 %v4930_v12, %v4671_v34  ;;  %v21524_v50 = vpop.f32.mrf.mxu1  ;;  %7184 = vmatprep.subr.bf16.mxu0 %v21495_v56  ;;  %v4976_v21 = vrot.slane %v4971_v30, %v20192_v45  ;;  %v21553_v54 = vld [vmem:[%s25149_s11 + $0x40] ss:$8 sps:$4 sm:$0xff]  }
 0x22d   :  { %v4932_v22 = vpop.f32.mrf.mxu0  ;;  %7443 = vmatprep.subr.bf16.mxu1 %v21245_v44  ;;  %v21544_v44 = vld [vmem:[%s25149_s11 + $0x44] ss:$8 sps:$4 sm:$0xff]   ;;  %v4980_v34 = vrot.slane %v4971_v30, %v20208_v51  ;;  %v21724_v30 = vld.sshfl [vmem:[#allocation2 + $0x12] sm:$0x11 pattern:$0x75316420] }
 0x22e   :  { %vm4951_vm1 = vcmp.gt.f32.partialorder %v4949_v16, 0.0  ;;  %v4953_v13 = vmul.f32 0.2, %v4949_v16  ;;  %v4950_v58 = vadd.f32 %v4946_v40, %v4936_v57  ;;  %v5296_v33 = vpop.f32.mrf.mxu1  ;;  %7185 = vmatpush1.bf16.msra.mxu0 %v21514_v35  ;;  %v21740_v22 = vld [vmem:[%s25149_s11 + $0x170] ss:$8 sps:$4 sm:$0xff]  }
 0x22f   :  { %7444 = vmatpush1.bf16.msra.mxu1 %v21258_v14  ;;  %v4933_v52 = vpop.f32.mrf.mxu0  ;;  %7186 = vmatprep.subr.bf16.mxu0 %v21521_v39 }
 0x230   :  { %v4955_v25 = vsel %vm4951_vm1, %v4949_v16, %v4953_v13  ;;  %vm4952_vm2 = vcmp.gt.f32.partialorder %v4950_v58, 0.0  ;;  %v4954_v53 = vmul.f32 0.2, %v4950_v58  ;;  %v5297_v61 = vpop.f32.mrf.mxu1  ;;  %7445 = vmatprep.subr.bf16.mxu1 %v21269_v11  ;;  %v21560_v11 = vld [vmem:[%s25149_s11 + $0x34] ss:$8 sps:$4 sm:$0xff]  }
 0x231   :  { %v4969_v36 = vmul.f32 %v4962_v4, %v4955_v25  ;;  %v21567_v16 = vld [vmem:[%s25149_s11 + $0x30] ss:$8 sps:$4 sm:$0xff]   ;;  %v21582_v4 = vld [vmem:[%s25149_s11 + $0x20] ss:$8 sps:$4 sm:$0xff]   ;;  %v21755_v13 = vld [vmem:[%s25149_s11 + $0x164] ss:$8 sps:$4 sm:$0xff]  }
 0x232   :  { %v4956_v14 = vsel %vm4952_vm2, %v4950_v58, %v4954_v53  ;;  %7187 = vmatpush1.bf16.msra.mxu0 %v21536_v7  ;;  %v5806_v25 = vld [vmem:[%s25062_s5] sm:$0x3] }
 0x233   :  { %v4970_v8 = vmul.f32 %v4966_v27, %v4956_v14  ;;  %7446 = vmatpush1.bf16.msra.mxu1 %v21277_v32  ;;  %7188 = vmatprep.subr.bf16.mxu0 %v21544_v44  ;;  %v4983_v40 = vadd.f32 %v4976_v21, %v4969_v36  ;;  %v21574_v32 = vld [vmem:[%s25149_s11 + $0x24] ss:$8 sps:$4 sm:$0xff]  }
 0x234   :  { %7447 = vmatprep.subr.bf16.mxu1 %v21284_v3 }
 0x235   :  { %v4984_v12 = vadd.f32 %v4980_v34, %v4970_v8  ;;  %v21786_v8 = vld [vmem:[%s25149_s11 + $0x150] ss:$8 sps:$4 sm:$0xff]  }
 0x236   :  { %7189 = vmatpush1.bf16.msra.mxu0 %v21553_v54 }
 0x237   :  { %v16441_v57 = vpack.c.bf16 %v4984_v12, %v4983_v40  ;;  %7448 = vmatpush1.bf16.msra.mxu1 %v21291_v1  ;;  %7190 = vmatprep.subr.bf16.mxu0 %v21560_v11  ;;  %v21589_v1 = vld [vmem:[%s25149_s11 + $0x14] ss:$8 sps:$4 sm:$0xff]   ;;  %v5820_v12 = vld [vmem:[%s25063_s6] sm:$0x3] }
 0x238   :  { %7449 = vmatprep.subr.bf16.mxu1 %v21298_v47  ;;  %v21596_v47 = vld [vmem:[%s25149_s11 + $0x10] ss:$8 sps:$4 sm:$0xff]  }
 0x239   :  { %v4996_v3 = vrot.slane %v16441_v57, %v20129_v26 }
 0x23a   :  { %7191 = vmatpush1.bf16.msra.mxu0 %v21567_v16 }
 0x23b   :  { %16442 = vst.sshfl [vmem:[#allocation3 + $0x2] sm:$0x5 pattern:$0x73625140] %v4996_v3  ;;  %7450 = vmatpush1.bf16.msra.mxu1 %v21305_v41  ;;  %7192 = vmatprep.subr.bf16.mxu0 %v21574_v32  ;;  %v21603_v41 = vld [vmem:[%s25149_s11 + $0x4] ss:$8 sps:$4 sm:$0xff]  }
 0x23c   :  { %7451 = vmatprep.subr.bf16.mxu1 %v21312_v24  ;;  %v21610_v24 = vld [vmem:[%s25149_s11] ss:$8 sps:$4 sm:$0xff]  }
 0x23e   :  { %7193 = vmatpush1.bf16.msra.mxu0 %v21582_v4 }
 0x23f   :  { %7452 = vmatpush1.bf16.msra.mxu1 %v21319_v49  ;;  %7194 = vmatprep.subr.bf16.mxu0 %v21589_v1  ;;  %v21617_v49 = vld [vmem:[%s25149_s11 + $0xf4] ss:$8 sps:$4 sm:$0xff]  }
 0x240   :  { %7453 = vmatprep.subr.bf16.mxu1 %v21326_v2  ;;  %v21624_v2 = vld [vmem:[%s25149_s11 + $0xf0] ss:$8 sps:$4 sm:$0xff]  }
 0x242   :  { %7195 = vmatpush1.bf16.msra.mxu0 %v21596_v47 }
 0x243   :  { %7454 = vmatpush1.bf16.msra.mxu1 %v21333_v20  ;;  %7196 = vmatprep.subr.bf16.mxu0 %v21603_v41  ;;  %v21631_v20 = vld [vmem:[%s25149_s11 + $0xe4] ss:$8 sps:$4 sm:$0xff]  }
 0x244   :  { %7455 = vmatprep.subr.bf16.mxu1 %v21340_v59  ;;  %v21638_v59 = vld [vmem:[%s25149_s11 + $0xe0] ss:$8 sps:$4 sm:$0xff]  }
 0x246   :  { %7197 = vmatpush1.bf16.msra.mxu0 %v21610_v24 }
 0x247   :  { %7456 = vmatpush1.bf16.msra.mxu1 %v21347_v62  ;;  %7198 = vmatprep.subr.bf16.mxu0 %v21617_v49  ;;  %v21645_v62 = vld [vmem:[%s25149_s11 + $0xd4] ss:$8 sps:$4 sm:$0xff]  }
 0x248   :  { %7457 = vmatprep.subr.bf16.mxu1 %v21354_v19  ;;  %v21652_v19 = vld [vmem:[%s25149_s11 + $0xd0] ss:$8 sps:$4 sm:$0xff]  }
 0x24a   :  { %7199 = vmatpush2.bf16.msra.mxu0 %v21624_v2 }
 0x24b   :  { %7458 = vmatpush2.bf16.msra.mxu1 %v21361_v6  ;;  %7200 = vmatprep.subr.bf16.mxu0 %v21631_v20  ;;  %v21659_v6 = vld [vmem:[%s25149_s11 + $0xc4] ss:$8 sps:$4 sm:$0xff]  }
 0x24c   :  { %7459 = vmatprep.subr.bf16.mxu1 %v21368_v37  ;;  %v21666_v37 = vld [vmem:[%s25149_s11 + $0xc0] ss:$8 sps:$4 sm:$0xff]  }
 0x24e   :  { %7201 = vmatpush2.bf16.msra.mxu0 %v21638_v59 }
 0x24f   :  { %7460 = vmatpush2.bf16.msra.mxu1 %v21375_v5  ;;  %7202 = vmatprep.subr.bf16.mxu0 %v21645_v62  ;;  %v21673_v5 = vld [vmem:[%s25149_s11 + $0xb4] ss:$8 sps:$4 sm:$0xff]  }
 0x250   :  { %7461 = vmatprep.subr.bf16.mxu1 %v21382_v28  ;;  %v21680_v28 = vld [vmem:[%s25149_s11 + $0xb0] ss:$8 sps:$4 sm:$0xff]  }
 0x252   :  { %7203 = vmatpush2.bf16.msra.mxu0 %v21652_v19 }
 0x253   :  { %7462 = vmatpush2.bf16.msra.mxu1 %v21389_v9  ;;  %7204 = vmatprep.subr.bf16.mxu0 %v21659_v6  ;;  %v21687_v9 = vld [vmem:[%s25149_s11 + $0xa4] ss:$8 sps:$4 sm:$0xff]  }
 0x254   :  { %7463 = vmatprep.subr.bf16.mxu1 %v21396_v42  ;;  %v21694_v42 = vld [vmem:[%s25149_s11 + $0xa0] ss:$8 sps:$4 sm:$0xff]  }
 0x256   :  { %7205 = vmatpush2.bf16.msra.mxu0 %v21666_v37 }
 0x257   :  { %7464 = vmatpush2.bf16.msra.mxu1 %v21403_v48  ;;  %7206 = vmatprep.subr.bf16.mxu0 %v21673_v5  ;;  %v21701_v48 = vld [vmem:[%s25149_s11 + $0x94] ss:$8 sps:$4 sm:$0xff]  }
 0x258   :  { %7465 = vmatprep.subr.bf16.mxu1 %v21410_v60  ;;  %v21708_v60 = vld [vmem:[%s25149_s11 + $0x90] ss:$8 sps:$4 sm:$0xff]  }
 0x25a   :  { %7207 = vmatpush2.bf16.msra.mxu0 %v21680_v28 }
 0x25b   :  { %7466 = vmatpush2.bf16.msra.mxu1 %v21417_v0  ;;  %7208 = vmatprep.subr.bf16.mxu0 %v21687_v9  ;;  %v21715_v0 = vld [vmem:[%s25149_s11 + $0x84] ss:$8 sps:$4 sm:$0xff]  }
 0x25c   :  { %7467 = vmatprep.subr.bf16.mxu1 %v21424_v18  ;;  %v21722_v18 = vld [vmem:[%s25149_s11 + $0x80] ss:$8 sps:$4 sm:$0xff]  }
 0x25e   :  { %7209 = vmatpush2.bf16.msra.mxu0 %v21694_v42 }
 0x25f   :  { %7468 = vmatpush2.bf16.msra.mxu1 %v21431_v55  ;;  %7210 = vmatprep.subr.bf16.mxu0 %v21701_v48  ;;  %v21731_v55 = vld [vmem:[%s25149_s11 + $0x174] ss:$8 sps:$4 sm:$0xff]  }
 0x260   :  { %7469 = vmatprep.subr.bf16.mxu1 %v21438_v63  ;;  %v7628_v63 = vcombine.high %v21724_v30, %v21724_v30 }
 0x262   :  { %7211 = vmatpush2.bf16.msra.mxu0 %v21708_v60 }
 0x263   :  { %7470 = vmatpush2.bf16.msra.mxu1 %v21445_v15  ;;  %7212 = vmatprep.subr.bf16.mxu0 %v21715_v0  ;;  %v5786_v15 = vld [vmem:[%s25151_s1] sm:$0x3] }
 0x264   :  { %7471 = vmatprep.subr.bf16.mxu1 %v21452_v23  ;;  %v21749_v23 = vrot.slane %v21461_v43, %v20129_v26  ;;  %v5791_v52 = vrot.slane %v5786_v15, %v20192_v45  ;;  %v21766_v43 = vld [vmem:[%s25149_s11 + $0x160] ss:$8 sps:$4 sm:$0xff]   ;;  %v5795_v36 = vrot.slane %v5786_v15, %v20208_v51 }
 0x266   :  { %7213 = vmatpush2.bf16.msra.mxu0 %v21722_v18 }
 0x267   :  { %7472 = vmatpush2.bf16.msra.mxu1 %v21459_v38  ;;  %7805 = vmatprep.subr.bf16.mxu0 %v21731_v55  ;;  %v7642_v38 = vrot.slane %v7628_v63, %v20129_v26 }
 0x268   :  { %8031 = vmatprep.subr.bf16.mxu1 %v21468_v17 }
 0x269   :  { %v5518_v58 = vpop.f32.mrf.mxu0  ;;  %7215 = vmatmul.mubr.bf16.vlgmr.msra.gmra.mxu0 %v21484_v31  ;;  %v21772_v31 = vld [vmem:[%s25149_s11 + $0x154] ss:$8 sps:$4 sm:$0xff]  }
 0x26a   :  { %v5519_v33 = vadd.f32 %v5518_v58, %v21507_v46  ;;  %v5777_v27 = vpop.f32.mrf.mxu1  ;;  %7474 = vmatmul.mubr.bf16.vlgmr.msra.gmra.mxu1 %v21749_v23  ;;  %7806 = vmatpush1.bf16.msra.mxu0 %v21740_v22  ;;  %v21805_v58 = vld [vmem:[%s25149_s11 + $0x140] ss:$8 sps:$4 sm:$0xff]  }
 0x26b   :  { %7837 = vmatprep.mubr.bf16.mxu0 %v7642_v38  ;;  %8032 = vmatpush1.bf16.msra.mxu1 %v21480_v10  ;;  %v5520_v17 = vpop.f32.mrf.mxu0 }
 0x26c   :  { %v5784_v46 = vadd.f32 %v5777_v27, %v5519_v33  ;;  %8063 = vmatprep.mubr.bf16.mxu1 %v21499_v29  ;;  %v5521_v53 = vadd.f32 %v5520_v17, %v21524_v50  ;;  %v5779_v61 = vpop.f32.mrf.mxu1  ;;  %7807 = vmatprep.subr.bf16.mxu0 %v21755_v13  ;;  %v5811_v29 = vrot.slane %v5806_v25, %v20192_v45 }
 0x26d   :  { %v5522_v10 = vpop.f32.mrf.mxu0  ;;  %8033 = vmatprep.subr.bf16.mxu1 %v21495_v56  ;;  %v21794_v56 = vld [vmem:[%s25149_s11 + $0x144] ss:$8 sps:$4 sm:$0xff]   ;;  %v5825_v33 = vrot.slane %v5820_v12, %v20192_v45  ;;  %v5829_v27 = vrot.slane %v5820_v12, %v20208_v51  ;;  %v22032_v12 = vld [vmem:[%s25149_s11 + $0x254] ss:$8 sps:$4 sm:$0xff]  }
 0x26e   :  { %v5798_v21 = vadd.f32 %v5791_v52, %v5784_v46  ;;  %v5785_v34 = vadd.f32 %v5779_v61, %v5521_v53  ;;  %v5781_v14 = vpop.f32.mrf.mxu1  ;;  %7808 = vmatpush1.bf16.msra.mxu0 %v21766_v43  ;;  %v21821_v46 = vld [vmem:[%s25149_s11 + $0x130] ss:$8 sps:$4 sm:$0xff]   ;;  %v21828_v53 = vld [vmem:[%s25149_s11 + $0x124] ss:$8 sps:$4 sm:$0xff]   ;;  %v21835_v61 = vld [vmem:[%s25149_s11 + $0x120] ss:$8 sps:$4 sm:$0xff]  }
 0x26f   :  { %8034 = vmatpush1.bf16.msra.mxu1 %v21514_v35  ;;  %v5523_v50 = vpop.f32.mrf.mxu0  ;;  %7809 = vmatprep.subr.bf16.mxu0 %v21772_v31  ;;  %v5815_v35 = vrot.slane %v5806_v25, %v20208_v51  ;;  %v21978_v10 = vld.sshfl [vmem:[#allocation2 + $0x14] sm:$0x11 pattern:$0x75316420]  ;;  %v7635_v14 = vrot.slane %v21724_v30, %v20129_v26  ;;  %v22023_v30 = vld [vmem:[%s25149_s11 + $0x260] ss:$8 sps:$4 sm:$0xff]  }
 0x270   :  { %vm5800_vm3 = vcmp.gt.f32.partialorder %v5798_v21, 0.0  ;;  %v5802_v40 = vmul.f32 0.2, %v5798_v21  ;;  %v5799_v57 = vadd.f32 %v5795_v36, %v5785_v34  ;;  %v5782_v3 = vpop.f32.mrf.mxu1  ;;  %8035 = vmatprep.subr.bf16.mxu1 %v21521_v39  ;;  %v21814_v39 = vld [vmem:[%s25149_s11 + $0x134] ss:$8 sps:$4 sm:$0xff]  }
 0x272   :  { %v5804_v63 = vsel %vm5800_vm3, %v5798_v21, %v5802_v40  ;;  %vm5801_vm4 = vcmp.gt.f32.partialorder %v5799_v57, 0.0  ;;  %v5803_v15 = vmul.f32 0.2, %v5799_v57  ;;  %7810 = vmatpush1.bf16.msra.mxu0 %v21786_v8 }
 0x273   :  { %v5818_v38 = vmul.f32 %v5811_v29, %v5804_v63  ;;  %8036 = vmatpush1.bf16.msra.mxu1 %v21536_v7  ;;  %7811 = vmatprep.subr.bf16.mxu0 %v21794_v56  ;;  %v21987_v21 = vld.sshfl [vmem:[#allocation2 + $0x16] sm:$0x11 pattern:$0x75316420]  ;;  %v22049_v63 = vld [vmem:[%s25149_s11 + $0x244] ss:$8 sps:$4 sm:$0xff]  }
 0x274   :  { %v5805_v52 = vsel %vm5801_vm4, %v5799_v57, %v5803_v15  ;;  %8037 = vmatprep.subr.bf16.mxu1 %v21544_v44  ;;  %v8477_v34 = vcombine.high %v21987_v21, %v21987_v21 }
 0x275   :  { %v5819_v17 = vmul.f32 %v5815_v35, %v5805_v52  ;;  %v5832_v25 = vadd.f32 %v5825_v33, %v5818_v38  ;;  %v22098_v38 = vld [vmem:[%s25149_s11 + $0x210] ss:$8 sps:$4 sm:$0xff]   ;;  %v22105_v33 = vld [vmem:[%s25149_s11 + $0x204] ss:$8 sps:$4 sm:$0xff]  }
 0x276   :  { %7812 = vmatpush1.bf16.msra.mxu0 %v21805_v58  ;;  %v22126_v52 = vld [vmem:[%s25149_s11 + $0x2f0] ss:$8 sps:$4 sm:$0xff]  }
 0x277   :  { %v5833_v7 = vadd.f32 %v5829_v27, %v5819_v17  ;;  %8038 = vmatpush1.bf16.msra.mxu1 %v21553_v54  ;;  %7813 = vmatprep.subr.bf16.mxu0 %v21814_v39  ;;  %v21843_v54 = vld [vmem:[%s25149_s11 + $0x114] ss:$8 sps:$4 sm:$0xff]   ;;  %v22112_v27 = vld [vmem:[%s25149_s11 + $0x200] ss:$8 sps:$4 sm:$0xff]   ;;  %v22133_v17 = vld [vmem:[%s25149_s11 + $0x2e4] ss:$8 sps:$4 sm:$0xff]  }
 0x278   :  { %8039 = vmatprep.subr.bf16.mxu1 %v21560_v11  ;;  %v21850_v11 = vld [vmem:[%s25149_s11 + $0x110] ss:$8 sps:$4 sm:$0xff]  }
 0x279   :  { %v16606_v44 = vpack.c.bf16 %v5833_v7, %v5832_v25  ;;  %v22147_v25 = vld [vmem:[%s25149_s11 + $0x2d4] ss:$8 sps:$4 sm:$0xff]   ;;  %v22154_v7 = vld [vmem:[%s25149_s11 + $0x2d0] ss:$8 sps:$4 sm:$0xff]  }
 0x27a   :  { %7814 = vmatpush1.bf16.msra.mxu0 %v21821_v46 }
 0x27b   :  { %v5845_v36 = vrot.slane %v16606_v44, %v20129_v26  ;;  %8040 = vmatpush1.bf16.msra.mxu1 %v21567_v16  ;;  %7815 = vmatprep.subr.bf16.mxu0 %v21828_v53  ;;  %v21857_v16 = vld [vmem:[%s25149_s11 + $0x104] ss:$8 sps:$4 sm:$0xff]   ;;  %v22168_v44 = vld [vmem:[%s25149_s11 + $0x2c0] ss:$8 sps:$4 sm:$0xff]  }
 0x27c   :  { %8041 = vmatprep.subr.bf16.mxu1 %v21574_v32  ;;  %v21864_v32 = vld [vmem:[%s25149_s11 + $0x100] ss:$8 sps:$4 sm:$0xff]  }
 0x27d   :  { %16607 = vst.sshfl [vmem:[#allocation3 + $0x4] sm:$0x5 pattern:$0x73625140] %v5845_v36  ;;  %v22182_v36 = vld [vmem:[%s25149_s11 + $0x2b0] ss:$8 sps:$4 sm:$0xff]  }
 0x27e   :  { %7816 = vmatpush1.bf16.msra.mxu0 %v21835_v61 }
 0x27f   :  { %8042 = vmatpush1.bf16.msra.mxu1 %v21582_v4  ;;  %7817 = vmatprep.subr.bf16.mxu0 %v21843_v54  ;;  %v21871_v4 = vld [vmem:[%s25149_s11 + $0x1f4] ss:$8 sps:$4 sm:$0xff]  }
 0x280   :  { %8043 = vmatprep.subr.bf16.mxu1 %v21589_v1  ;;  %v21878_v1 = vld [vmem:[%s25149_s11 + $0x1f0] ss:$8 sps:$4 sm:$0xff]  }
 0x282   :  { %7818 = vmatpush1.bf16.msra.mxu0 %v21850_v11 }
 0x283   :  { %8044 = vmatpush1.bf16.msra.mxu1 %v21596_v47  ;;  %7819 = vmatprep.subr.bf16.mxu0 %v21857_v16  ;;  %v21885_v47 = vld [vmem:[%s25149_s11 + $0x1e4] ss:$8 sps:$4 sm:$0xff]  }
 0x284   :  { %8045 = vmatprep.subr.bf16.mxu1 %v21603_v41  ;;  %v21892_v41 = vld [vmem:[%s25149_s11 + $0x1e0] ss:$8 sps:$4 sm:$0xff]  }
 0x286   :  { %7820 = vmatpush1.bf16.msra.mxu0 %v21864_v32 }
 0x287   :  { %8046 = vmatpush1.bf16.msra.mxu1 %v21610_v24  ;;  %7821 = vmatprep.subr.bf16.mxu0 %v21871_v4  ;;  %v21899_v24 = vld [vmem:[%s25149_s11 + $0x1d4] ss:$8 sps:$4 sm:$0xff]  }
 0x288   :  { %8047 = vmatprep.subr.bf16.mxu1 %v21617_v49  ;;  %v21906_v49 = vld [vmem:[%s25149_s11 + $0x1d0] ss:$8 sps:$4 sm:$0xff]  }
 0x28a   :  { %7822 = vmatpush2.bf16.msra.mxu0 %v21878_v1 }
 0x28b   :  { %8048 = vmatpush2.bf16.msra.mxu1 %v21624_v2  ;;  %7823 = vmatprep.subr.bf16.mxu0 %v21885_v47  ;;  %v21913_v2 = vld [vmem:[%s25149_s11 + $0x1c4] ss:$8 sps:$4 sm:$0xff]  }
 0x28c   :  { %8049 = vmatprep.subr.bf16.mxu1 %v21631_v20  ;;  %v21920_v20 = vld [vmem:[%s25149_s11 + $0x1c0] ss:$8 sps:$4 sm:$0xff]  }
 0x28e   :  { %7824 = vmatpush2.bf16.msra.mxu0 %v21892_v41 }
 0x28f   :  { %8050 = vmatpush2.bf16.msra.mxu1 %v21638_v59  ;;  %7825 = vmatprep.subr.bf16.mxu0 %v21899_v24  ;;  %v21927_v59 = vld [vmem:[%s25149_s11 + $0x1b4] ss:$8 sps:$4 sm:$0xff]  }
 0x290   :  { %8051 = vmatprep.subr.bf16.mxu1 %v21645_v62  ;;  %v21934_v62 = vld [vmem:[%s25149_s11 + $0x1b0] ss:$8 sps:$4 sm:$0xff]  }
 0x292   :  { %7826 = vmatpush2.bf16.msra.mxu0 %v21906_v49 }
 0x293   :  { %8052 = vmatpush2.bf16.msra.mxu1 %v21652_v19  ;;  %7827 = vmatprep.subr.bf16.mxu0 %v21913_v2  ;;  %v21941_v19 = vld [vmem:[%s25149_s11 + $0x1a4] ss:$8 sps:$4 sm:$0xff]  }
 0x294   :  { %8053 = vmatprep.subr.bf16.mxu1 %v21659_v6  ;;  %v21948_v6 = vld [vmem:[%s25149_s11 + $0x1a0] ss:$8 sps:$4 sm:$0xff]  }
 0x296   :  { %7828 = vmatpush2.bf16.msra.mxu0 %v21920_v20 }
 0x297   :  { %8054 = vmatpush2.bf16.msra.mxu1 %v21666_v37  ;;  %7829 = vmatprep.subr.bf16.mxu0 %v21927_v59  ;;  %v21955_v37 = vld [vmem:[%s25149_s11 + $0x194] ss:$8 sps:$4 sm:$0xff]  }
 0x298   :  { %8055 = vmatprep.subr.bf16.mxu1 %v21673_v5  ;;  %v21962_v5 = vld [vmem:[%s25149_s11 + $0x190] ss:$8 sps:$4 sm:$0xff]  }
 0x29a   :  { %7830 = vmatpush2.bf16.msra.mxu0 %v21934_v62 }
 0x29b   :  { %8056 = vmatpush2.bf16.msra.mxu1 %v21680_v28  ;;  %7831 = vmatprep.subr.bf16.mxu0 %v21941_v19  ;;  %v21969_v28 = vld [vmem:[%s25149_s11 + $0x184] ss:$8 sps:$4 sm:$0xff]  }
 0x29c   :  { %8057 = vmatprep.subr.bf16.mxu1 %v21687_v9  ;;  %v21976_v9 = vld [vmem:[%s25149_s11 + $0x180] ss:$8 sps:$4 sm:$0xff]  }
 0x29e   :  { %7832 = vmatpush2.bf16.msra.mxu0 %v21948_v6 }
 0x29f   :  { %8058 = vmatpush2.bf16.msra.mxu1 %v21694_v42  ;;  %7833 = vmatprep.subr.bf16.mxu0 %v21955_v37  ;;  %v21985_v42 = vld [vmem:[%s25149_s11 + $0x274] ss:$8 sps:$4 sm:$0xff]  }
 0x2a0   :  { %8059 = vmatprep.subr.bf16.mxu1 %v21701_v48  ;;  %v8113_v48 = vcombine.high %v21978_v10, %v21978_v10 }
 0x2a2   :  { %7834 = vmatpush2.bf16.msra.mxu0 %v21962_v5  ;;  %v22013_v50 = vrot.slane %v8113_v48, %v20129_v26  ;;  %v22280_v48 = vld [vmem:[%s25149_s11 + $0x60] ss:$8 sps:$4 sm:$0xff]  }
 0x2a3   :  { %8060 = vmatpush2.bf16.msra.mxu1 %v21708_v60  ;;  %7835 = vmatprep.subr.bf16.mxu0 %v21969_v28  ;;  %v21996_v60 = vld [vmem:[%s25149_s11 + $0x270] ss:$8 sps:$4 sm:$0xff]  }
 0x2a4   :  { %8061 = vmatprep.subr.bf16.mxu1 %v21715_v0  ;;  %v22008_v0 = vld [vmem:[%s25149_s11 + $0x264] ss:$8 sps:$4 sm:$0xff]  }
 0x2a6   :  { %7836 = vmatpush2.bf16.msra.mxu0 %v21976_v9 }
 0x2a7   :  { %8062 = vmatpush2.bf16.msra.mxu1 %v21722_v18  ;;  %8290 = vmatprep.subr.bf16.mxu0 %v21985_v42  ;;  %v8491_v18 = vrot.slane %v8477_v34, %v20129_v26 }
 0x2a8   :  { %8654 = vmatprep.subr.bf16.mxu1 %v21731_v55 }
 0x2a9   :  { %v22010_v29 = vpop.f32.mrf.mxu0  ;;  %7838 = vmatmul.mubr.bf16.vlgmr.msra.gmra.mxu0 %v7635_v14  ;;  %v22287_v14 = vld [vmem:[%s25149_s11 + $0x54] ss:$8 sps:$4 sm:$0xff]  }
 0x2aa   :  { %v22015_v40 = vpop.f32.mrf.mxu1  ;;  %8064 = vmatmul.mubr.bf16.vlgmr.msra.gmra.mxu1 %v21749_v23  ;;  %8291 = vmatpush1.bf16.msra.mxu0 %v21996_v60 }
 0x2ab   :  { %8322 = vmatprep.mubr.bf16.mxu0 %v22013_v50  ;;  %8655 = vmatpush1.bf16.msra.mxu1 %v21740_v22  ;;  %v22027_v55 = vpop.f32.mrf.mxu0  ;;  %v22042_v22 = vld [vmem:[%s25149_s11 + $0x250] ss:$8 sps:$4 sm:$0xff]  }
 0x2ac   :  { %8686 = vmatprep.mubr.bf16.mxu1 %v8491_v18  ;;  %v22034_v23 = vpop.f32.mrf.mxu1  ;;  %8292 = vmatprep.subr.bf16.mxu0 %v22008_v0 }
 0x2ad   :  { %v6145_v57 = vpop.f32.mrf.mxu0  ;;  %8656 = vmatprep.subr.bf16.mxu1 %v21755_v13  ;;  %v22056_v13 = vld [vmem:[%s25149_s11 + $0x240] ss:$8 sps:$4 sm:$0xff]  }
 0x2ae   :  { %v6371_v3 = vpop.f32.mrf.mxu1  ;;  %8293 = vmatpush1.bf16.msra.mxu0 %v22023_v30 }
 0x2af   :  { %8657 = vmatpush1.bf16.msra.mxu1 %v21766_v43  ;;  %v6146_v35 = vpop.f32.mrf.mxu0  ;;  %8294 = vmatprep.subr.bf16.mxu0 %v22032_v12  ;;  %v22063_v43 = vld [vmem:[%s25149_s11 + $0x234] ss:$8 sps:$4 sm:$0xff]  }
 0x2b0   :  { %v6372_v15 = vpop.f32.mrf.mxu1  ;;  %8658 = vmatprep.subr.bf16.mxu1 %v21772_v31  ;;  %v22070_v31 = vld [vmem:[%s25149_s11 + $0x230] ss:$8 sps:$4 sm:$0xff]  }
 0x2b1   :  { %v22302_v35 = vld [vmem:[%s25149_s11 + $0x50] ss:$8 sps:$4 sm:$0xff]  }
 0x2b2   :  { %8295 = vmatpush1.bf16.msra.mxu0 %v22042_v22 }
 0x2b3   :  { %8659 = vmatpush1.bf16.msra.mxu1 %v21786_v8  ;;  %8296 = vmatprep.subr.bf16.mxu0 %v22049_v63  ;;  %v22077_v8 = vld [vmem:[%s25149_s11 + $0x224] ss:$8 sps:$4 sm:$0xff]  }
 0x2b4   :  { %8660 = vmatprep.subr.bf16.mxu1 %v21794_v56  ;;  %v22084_v56 = vld [vmem:[%s25149_s11 + $0x220] ss:$8 sps:$4 sm:$0xff]  }
 0x2b6   :  { %8297 = vmatpush1.bf16.msra.mxu0 %v22056_v13 }
 0x2b7   :  { %8661 = vmatpush1.bf16.msra.mxu1 %v21805_v58  ;;  %8298 = vmatprep.subr.bf16.mxu0 %v22063_v43  ;;  %v22091_v58 = vld [vmem:[%s25149_s11 + $0x214] ss:$8 sps:$4 sm:$0xff]  }
 0x2b8   :  { %8662 = vmatprep.subr.bf16.mxu1 %v21814_v39  ;;  %v22119_v39 = vld [vmem:[%s25149_s11 + $0x2f4] ss:$8 sps:$4 sm:$0xff]  }
 0x2ba   :  { %8299 = vmatpush1.bf16.msra.mxu0 %v22070_v31 }
 0x2bb   :  { %8663 = vmatpush1.bf16.msra.mxu1 %v21821_v46  ;;  %8300 = vmatprep.subr.bf16.mxu0 %v22077_v8  ;;  %v22140_v46 = vld [vmem:[%s25149_s11 + $0x2e0] ss:$8 sps:$4 sm:$0xff]  }
 0x2bc   :  { %8664 = vmatprep.subr.bf16.mxu1 %v21828_v53  ;;  %v22161_v53 = vld [vmem:[%s25149_s11 + $0x2c4] ss:$8 sps:$4 sm:$0xff]  }
 0x2be   :  { %8301 = vmatpush1.bf16.msra.mxu0 %v22084_v56 }
 0x2bf   :  { %8665 = vmatpush1.bf16.msra.mxu1 %v21835_v61  ;;  %8302 = vmatprep.subr.bf16.mxu0 %v22091_v58  ;;  %v22175_v61 = vld [vmem:[%s25149_s11 + $0x2b4] ss:$8 sps:$4 sm:$0xff]  }
 0x2c0   :  { %8666 = vmatprep.subr.bf16.mxu1 %v21843_v54  ;;  %v22189_v54 = vld [vmem:[%s25149_s11 + $0x2a4] ss:$8 sps:$4 sm:$0xff]  }
 0x2c2   :  { %8303 = vmatpush1.bf16.msra.mxu0 %v22098_v38 }
 0x2c3   :  { %8667 = vmatpush1.bf16.msra.mxu1 %v21850_v11  ;;  %8304 = vmatprep.subr.bf16.mxu0 %v22105_v33  ;;  %v22196_v11 = vld [vmem:[%s25149_s11 + $0x2a0] ss:$8 sps:$4 sm:$0xff]  }
 0x2c4   :  { %8668 = vmatprep.subr.bf16.mxu1 %v21857_v16  ;;  %v22203_v16 = vld [vmem:[%s25149_s11 + $0x294] ss:$8 sps:$4 sm:$0xff]  }
 0x2c6   :  { %8305 = vmatpush1.bf16.msra.mxu0 %v22112_v27 }
 0x2c7   :  { %8669 = vmatpush1.bf16.msra.mxu1 %v21864_v32  ;;  %8306 = vmatprep.subr.bf16.mxu0 %v22119_v39  ;;  %v22210_v32 = vld [vmem:[%s25149_s11 + $0x290] ss:$8 sps:$4 sm:$0xff]  }
 0x2c8   :  { %8670 = vmatprep.subr.bf16.mxu1 %v21871_v4  ;;  %v22217_v4 = vld [vmem:[%s25149_s11 + $0x284] ss:$8 sps:$4 sm:$0xff]  }
 0x2ca   :  { %8307 = vmatpush2.bf16.msra.mxu0 %v22126_v52 }
 0x2cb   :  { %8671 = vmatpush2.bf16.msra.mxu1 %v21878_v1  ;;  %8308 = vmatprep.subr.bf16.mxu0 %v22133_v17  ;;  %v22224_v1 = vld [vmem:[%s25149_s11 + $0x280] ss:$8 sps:$4 sm:$0xff]  }
 0x2cc   :  { %8672 = vmatprep.subr.bf16.mxu1 %v21885_v47  ;;  %v22226_v47 = vld.sshfl [vmem:[#allocation2 + $0x18] sm:$0x11 pattern:$0x75316420] }
 0x2ce   :  { %8309 = vmatpush2.bf16.msra.mxu0 %v22140_v46 }
 0x2cf   :  { %8673 = vmatpush2.bf16.msra.mxu1 %v21892_v41  ;;  %8310 = vmatprep.subr.bf16.mxu0 %v22147_v25  ;;  %v22233_v41 = vld [vmem:[%s25149_s11 + $0x74] ss:$8 sps:$4 sm:$0xff]  }
 0x2d0   :  { %8674 = vmatprep.subr.bf16.mxu1 %v21899_v24  ;;  %v6635_v24 = vld [vmem:[%s25151_s1] sm:$0x3] }
 0x2d2   :  { %8311 = vmatpush2.bf16.msra.mxu0 %v22154_v7 }
 0x2d3   :  { %8675 = vmatpush2.bf16.msra.mxu1 %v21906_v49  ;;  %8312 = vmatprep.subr.bf16.mxu0 %v22161_v53  ;;  %v8962_v49 = vcombine.high %v22226_v47, %v22226_v47 }
 0x2d4   :  { %8676 = vmatprep.subr.bf16.mxu1 %v21913_v2  ;;  %v22245_v2 = vld [vmem:[%s25149_s11 + $0x70] ss:$8 sps:$4 sm:$0xff]  }
 0x2d6   :  { %8313 = vmatpush2.bf16.msra.mxu0 %v22168_v44 }
 0x2d7   :  { %8677 = vmatpush2.bf16.msra.mxu1 %v21920_v20  ;;  %8314 = vmatprep.subr.bf16.mxu0 %v22175_v61  ;;  %v22249_v20 = vrot.slane %v21978_v10, %v20129_v26  ;;  %v6655_v10 = vld [vmem:[%s25062_s5] sm:$0x3] }
 0x2d8   :  { %8678 = vmatprep.subr.bf16.mxu1 %v21927_v59  ;;  %v6368_v59 = vadd.f32 %v22015_v40, %v22010_v29  ;;  %v6664_v15 = vrot.slane %v6655_v10, %v20208_v51 }
 0x2da   :  { %8315 = vmatpush2.bf16.msra.mxu0 %v22182_v36 }
 0x2db   :  { %8679 = vmatpush2.bf16.msra.mxu1 %v21934_v62  ;;  %8316 = vmatprep.subr.bf16.mxu0 %v22189_v54  ;;  %v8484_v62 = vrot.slane %v21987_v21, %v20129_v26  ;;  %v6644_v21 = vrot.slane %v6635_v24, %v20208_v51 }
 0x2dc   :  { %8680 = vmatprep.subr.bf16.mxu1 %v21941_v19  ;;  %v6640_v19 = vrot.slane %v6635_v24, %v20192_v45 }
 0x2de   :  { %8317 = vmatpush2.bf16.msra.mxu0 %v22196_v11 }
 0x2df   :  { %8681 = vmatpush2.bf16.msra.mxu1 %v21948_v6  ;;  %8318 = vmatprep.subr.bf16.mxu0 %v22203_v16  ;;  %v22262_v6 = vld [vmem:[%s25149_s11 + $0x64] ss:$8 sps:$4 sm:$0xff]  }
 0x2e0   :  { %8682 = vmatprep.subr.bf16.mxu1 %v21955_v37 }
 0x2e2   :  { %8319 = vmatpush2.bf16.msra.mxu0 %v22210_v32 }
 0x2e3   :  { %8683 = vmatpush2.bf16.msra.mxu1 %v21962_v5  ;;  %8320 = vmatprep.subr.bf16.mxu0 %v22217_v4  ;;  %v22266_v5 = vrot.slane %v8962_v49, %v20129_v26 }
 0x2e4   :  { %8684 = vmatprep.subr.bf16.mxu1 %v21969_v28  ;;  %v6370_v28 = vadd.f32 %v22034_v23, %v22027_v55  ;;  %v6660_v55 = vrot.slane %v6655_v10, %v20192_v45 }
 0x2e6   :  { %8321 = vmatpush2.bf16.msra.mxu0 %v22224_v1 }
 0x2e7   :  { %8685 = vmatpush2.bf16.msra.mxu1 %v21976_v9  ;;  %8880 = vmatprep.subr.bf16.mxu0 %v22233_v41 }
 0x2e8   :  { %9139 = vmatprep.subr.bf16.mxu1 %v21985_v42 }
 0x2e9   :  { %v6626_v37 = vpop.f32.mrf.mxu0  ;;  %8323 = vmatmul.mubr.bf16.vlgmr.msra.gmra.mxu0 %v22249_v20 }
 0x2ea   :  { %v6633_v9 = vadd.f32 %v6626_v37, %v6368_v59  ;;  %v22273_v42 = vpop.f32.mrf.mxu1  ;;  %8687 = vmatmul.mubr.bf16.vlgmr.msra.gmra.mxu1 %v8484_v62  ;;  %8881 = vmatpush1.bf16.msra.mxu0 %v22245_v2 }
 0x2eb   :  { %8912 = vmatprep.mubr.bf16.mxu0 %v22013_v50  ;;  %9140 = vmatpush1.bf16.msra.mxu1 %v21996_v60  ;;  %v6628_v34 = vpop.f32.mrf.mxu0  ;;  %v6669_v60 = vld [vmem:[%s25063_s6] sm:$0x3] }
 0x2ec   :  { %v6647_v29 = vadd.f32 %v6640_v19, %v6633_v9  ;;  %9171 = vmatprep.mubr.bf16.mxu1 %v22266_v5  ;;  %v6634_v40 = vadd.f32 %v6628_v34, %v6370_v28  ;;  %v22290_v18 = vpop.f32.mrf.mxu1  ;;  %8882 = vmatprep.subr.bf16.mxu0 %v22262_v6  ;;  %v6674_v37 = vrot.slane %v6669_v60, %v20192_v45  ;;  %v22319_v9 = vld [vmem:[%s25149_s11 + $0x40] ss:$8 sps:$4 sm:$0xff]  }
 0x2ed   :  { %v6630_v50 = vpop.f32.mrf.mxu0  ;;  %9141 = vmatprep.subr.bf16.mxu1 %v22008_v0  ;;  %v22310_v0 = vld [vmem:[%s25149_s11 + $0x44] ss:$8 sps:$4 sm:$0xff]   ;;  %v6678_v28 = vrot.slane %v6669_v60, %v20208_v51  ;;  %v22490_v60 = vld.sshfl [vmem:[#allocation2 + $0x1a] sm:$0x11 pattern:$0x75316420] }
 0x2ee   :  { %vm6649_vm5 = vcmp.gt.f32.partialorder %v6647_v29, 0.0  ;;  %v6651_v23 = vmul.f32 0.2, %v6647_v29  ;;  %v6648_v57 = vadd.f32 %v6644_v21, %v6634_v40  ;;  %v6994_v3 = vpop.f32.mrf.mxu1  ;;  %8883 = vmatpush1.bf16.msra.mxu0 %v22280_v48  ;;  %v22506_v50 = vld [vmem:[%s25149_s11 + $0x170] ss:$8 sps:$4 sm:$0xff]  }
 0x2ef   :  { %9142 = vmatpush1.bf16.msra.mxu1 %v22023_v30  ;;  %v6631_v24 = vpop.f32.mrf.mxu0  ;;  %8884 = vmatprep.subr.bf16.mxu0 %v22287_v14 }
 0x2f0   :  { %v6653_v49 = vsel %vm6649_vm5, %v6647_v29, %v6651_v23  ;;  %vm6650_vm6 = vcmp.gt.f32.partialorder %v6648_v57, 0.0  ;;  %v6652_v59 = vmul.f32 0.2, %v6648_v57  ;;  %v6995_v62 = vpop.f32.mrf.mxu1  ;;  %9143 = vmatprep.subr.bf16.mxu1 %v22032_v12  ;;  %v22326_v12 = vld [vmem:[%s25149_s11 + $0x34] ss:$8 sps:$4 sm:$0xff]  }
 0x2f1   :  { %v6667_v19 = vmul.f32 %v6660_v55, %v6653_v49  ;;  %v22333_v29 = vld [vmem:[%s25149_s11 + $0x30] ss:$8 sps:$4 sm:$0xff]   ;;  %v22348_v55 = vld [vmem:[%s25149_s11 + $0x20] ss:$8 sps:$4 sm:$0xff]   ;;  %v22521_v23 = vld [vmem:[%s25149_s11 + $0x164] ss:$8 sps:$4 sm:$0xff]  }
 0x2f2   :  { %v6654_v30 = vsel %vm6650_vm6, %v6648_v57, %v6652_v59  ;;  %8885 = vmatpush1.bf16.msra.mxu0 %v22302_v35  ;;  %v7504_v49 = vld [vmem:[%s25062_s5] sm:$0x3] }
 0x2f3   :  { %v6668_v10 = vmul.f32 %v6664_v15, %v6654_v30  ;;  %9144 = vmatpush1.bf16.msra.mxu1 %v22042_v22  ;;  %8886 = vmatprep.subr.bf16.mxu0 %v22310_v0  ;;  %v6681_v21 = vadd.f32 %v6674_v37, %v6667_v19  ;;  %v22340_v22 = vld [vmem:[%s25149_s11 + $0x24] ss:$8 sps:$4 sm:$0xff]  }
 0x2f4   :  { %9145 = vmatprep.subr.bf16.mxu1 %v22049_v63 }
 0x2f5   :  { %v6682_v34 = vadd.f32 %v6678_v28, %v6668_v10  ;;  %v22552_v10 = vld [vmem:[%s25149_s11 + $0x150] ss:$8 sps:$4 sm:$0xff]  }
 0x2f6   :  { %8887 = vmatpush1.bf16.msra.mxu0 %v22319_v9 }
 0x2f7   :  { %v16771_v40 = vpack.c.bf16 %v6682_v34, %v6681_v21  ;;  %9146 = vmatpush1.bf16.msra.mxu1 %v22056_v13  ;;  %8888 = vmatprep.subr.bf16.mxu0 %v22326_v12  ;;  %v22355_v13 = vld [vmem:[%s25149_s11 + $0x14] ss:$8 sps:$4 sm:$0xff]   ;;  %v7518_v34 = vld [vmem:[%s25063_s6] sm:$0x3] }
 0x2f8   :  { %9147 = vmatprep.subr.bf16.mxu1 %v22063_v43  ;;  %v22362_v43 = vld [vmem:[%s25149_s11 + $0x10] ss:$8 sps:$4 sm:$0xff]  }
 0x2f9   :  { %v6694_v63 = vrot.slane %v16771_v40, %v20129_v26 }
 0x2fa   :  { %8889 = vmatpush1.bf16.msra.mxu0 %v22333_v29 }
 0x2fb   :  { %16772 = vst.sshfl [vmem:[#allocation3 + $0x6] sm:$0x5 pattern:$0x73625140] %v6694_v63  ;;  %9148 = vmatpush1.bf16.msra.mxu1 %v22070_v31  ;;  %8890 = vmatprep.subr.bf16.mxu0 %v22340_v22  ;;  %v22369_v31 = vld [vmem:[%s25149_s11 + $0x4] ss:$8 sps:$4 sm:$0xff]  }
 0x2fc   :  { %9149 = vmatprep.subr.bf16.mxu1 %v22077_v8  ;;  %v22376_v8 = vld [vmem:[%s25149_s11] ss:$8 sps:$4 sm:$0xff]  }
 0x2fe   :  { %8891 = vmatpush1.bf16.msra.mxu0 %v22348_v55 }
 0x2ff   :  { %9150 = vmatpush1.bf16.msra.mxu1 %v22084_v56  ;;  %8892 = vmatprep.subr.bf16.mxu0 %v22355_v13  ;;  %v22383_v56 = vld [vmem:[%s25149_s11 + $0xf4] ss:$8 sps:$4 sm:$0xff]  }
 0x300   :  { %9151 = vmatprep.subr.bf16.mxu1 %v22091_v58  ;;  %v22390_v58 = vld [vmem:[%s25149_s11 + $0xf0] ss:$8 sps:$4 sm:$0xff]  }
 0x302   :  { %8893 = vmatpush1.bf16.msra.mxu0 %v22362_v43 }
 0x303   :  { %9152 = vmatpush1.bf16.msra.mxu1 %v22098_v38  ;;  %8894 = vmatprep.subr.bf16.mxu0 %v22369_v31  ;;  %v22397_v38 = vld [vmem:[%s25149_s11 + $0xe4] ss:$8 sps:$4 sm:$0xff]  }
 0x304   :  { %9153 = vmatprep.subr.bf16.mxu1 %v22105_v33  ;;  %v22404_v33 = vld [vmem:[%s25149_s11 + $0xe0] ss:$8 sps:$4 sm:$0xff]  }
 0x306   :  { %8895 = vmatpush1.bf16.msra.mxu0 %v22376_v8 }
 0x307   :  { %9154 = vmatpush1.bf16.msra.mxu1 %v22112_v27  ;;  %8896 = vmatprep.subr.bf16.mxu0 %v22383_v56  ;;  %v22411_v27 = vld [vmem:[%s25149_s11 + $0xd4] ss:$8 sps:$4 sm:$0xff]  }
 0x308   :  { %9155 = vmatprep.subr.bf16.mxu1 %v22119_v39  ;;  %v22418_v39 = vld [vmem:[%s25149_s11 + $0xd0] ss:$8 sps:$4 sm:$0xff]  }
 0x30a   :  { %8897 = vmatpush2.bf16.msra.mxu0 %v22390_v58 }
 0x30b   :  { %9156 = vmatpush2.bf16.msra.mxu1 %v22126_v52  ;;  %8898 = vmatprep.subr.bf16.mxu0 %v22397_v38  ;;  %v22425_v52 = vld [vmem:[%s25149_s11 + $0xc4] ss:$8 sps:$4 sm:$0xff]  }
 0x30c   :  { %9157 = vmatprep.subr.bf16.mxu1 %v22133_v17  ;;  %v22432_v17 = vld [vmem:[%s25149_s11 + $0xc0] ss:$8 sps:$4 sm:$0xff]  }
 0x30e   :  { %8899 = vmatpush2.bf16.msra.mxu0 %v22404_v33 }
 0x30f   :  { %9158 = vmatpush2.bf16.msra.mxu1 %v22140_v46  ;;  %8900 = vmatprep.subr.bf16.mxu0 %v22411_v27  ;;  %v22439_v46 = vld [vmem:[%s25149_s11 + $0xb4] ss:$8 sps:$4 sm:$0xff]  }
 0x310   :  { %9159 = vmatprep.subr.bf16.mxu1 %v22147_v25  ;;  %v22446_v25 = vld [vmem:[%s25149_s11 + $0xb0] ss:$8 sps:$4 sm:$0xff]  }
 0x312   :  { %8901 = vmatpush2.bf16.msra.mxu0 %v22418_v39 }
 0x313   :  { %9160 = vmatpush2.bf16.msra.mxu1 %v22154_v7  ;;  %8902 = vmatprep.subr.bf16.mxu0 %v22425_v52  ;;  %v22453_v7 = vld [vmem:[%s25149_s11 + $0xa4] ss:$8 sps:$4 sm:$0xff]  }
 0x314   :  { %9161 = vmatprep.subr.bf16.mxu1 %v22161_v53  ;;  %v22460_v53 = vld [vmem:[%s25149_s11 + $0xa0] ss:$8 sps:$4 sm:$0xff]  }
 0x316   :  { %8903 = vmatpush2.bf16.msra.mxu0 %v22432_v17 }
 0x317   :  { %9162 = vmatpush2.bf16.msra.mxu1 %v22168_v44  ;;  %8904 = vmatprep.subr.bf16.mxu0 %v22439_v46  ;;  %v22467_v44 = vld [vmem:[%s25149_s11 + $0x94] ss:$8 sps:$4 sm:$0xff]  }
 0x318   :  { %9163 = vmatprep.subr.bf16.mxu1 %v22175_v61  ;;  %v22474_v61 = vld [vmem:[%s25149_s11 + $0x90] ss:$8 sps:$4 sm:$0xff]  }
 0x31a   :  { %8905 = vmatpush2.bf16.msra.mxu0 %v22446_v25 }
 0x31b   :  { %9164 = vmatpush2.bf16.msra.mxu1 %v22182_v36  ;;  %8906 = vmatprep.subr.bf16.mxu0 %v22453_v7  ;;  %v22481_v36 = vld [vmem:[%s25149_s11 + $0x84] ss:$8 sps:$4 sm:$0xff]  }
 0x31c   :  { %9165 = vmatprep.subr.bf16.mxu1 %v22189_v54  ;;  %v22488_v54 = vld [vmem:[%s25149_s11 + $0x80] ss:$8 sps:$4 sm:$0xff]  }
 0x31e   :  { %8907 = vmatpush2.bf16.msra.mxu0 %v22460_v53 }
 0x31f   :  { %9166 = vmatpush2.bf16.msra.mxu1 %v22196_v11  ;;  %8908 = vmatprep.subr.bf16.mxu0 %v22467_v44  ;;  %v22497_v11 = vld [vmem:[%s25149_s11 + $0x174] ss:$8 sps:$4 sm:$0xff]  }
 0x320   :  { %9167 = vmatprep.subr.bf16.mxu1 %v22203_v16  ;;  %v9326_v16 = vcombine.high %v22490_v60, %v22490_v60 }
 0x322   :  { %8909 = vmatpush2.bf16.msra.mxu0 %v22474_v61 }
 0x323   :  { %9168 = vmatpush2.bf16.msra.mxu1 %v22210_v32  ;;  %8910 = vmatprep.subr.bf16.mxu0 %v22481_v36  ;;  %v7484_v32 = vld [vmem:[%s25151_s1] sm:$0x3] }
 0x324   :  { %9169 = vmatprep.subr.bf16.mxu1 %v22217_v4  ;;  %v22515_v4 = vrot.slane %v22226_v47, %v20129_v26  ;;  %v7489_v24 = vrot.slane %v7484_v32, %v20192_v45  ;;  %v22532_v47 = vld [vmem:[%s25149_s11 + $0x160] ss:$8 sps:$4 sm:$0xff]   ;;  %v7493_v19 = vrot.slane %v7484_v32, %v20208_v51 }
 0x326   :  { %8911 = vmatpush2.bf16.msra.mxu0 %v22488_v54 }
 0x327   :  { %9170 = vmatpush2.bf16.msra.mxu1 %v22224_v1  ;;  %9503 = vmatprep.subr.bf16.mxu0 %v22497_v11  ;;  %v9340_v1 = vrot.slane %v9326_v16, %v20129_v26 }
 0x328   :  { %9729 = vmatprep.subr.bf16.mxu1 %v22233_v41 }
 0x329   :  { %v7216_v57 = vpop.f32.mrf.mxu0  ;;  %8913 = vmatmul.mubr.bf16.vlgmr.msra.gmra.mxu0 %v22249_v20  ;;  %v22538_v20 = vld [vmem:[%s25149_s11 + $0x154] ss:$8 sps:$4 sm:$0xff]  }
 0x32a   :  { %v7217_v3 = vadd.f32 %v7216_v57, %v22273_v42  ;;  %v7475_v15 = vpop.f32.mrf.mxu1  ;;  %9172 = vmatmul.mubr.bf16.vlgmr.msra.gmra.mxu1 %v22515_v4  ;;  %9504 = vmatpush1.bf16.msra.mxu0 %v22506_v50  ;;  %v22571_v57 = vld [vmem:[%s25149_s11 + $0x140] ss:$8 sps:$4 sm:$0xff]  }
 0x32b   :  { %9535 = vmatprep.mubr.bf16.mxu0 %v9340_v1  ;;  %9730 = vmatpush1.bf16.msra.mxu1 %v22245_v2  ;;  %v7218_v41 = vpop.f32.mrf.mxu0 }
 0x32c   :  { %v7482_v42 = vadd.f32 %v7475_v15, %v7217_v3  ;;  %9761 = vmatprep.mubr.bf16.mxu1 %v22266_v5  ;;  %v7219_v59 = vadd.f32 %v7218_v41, %v22290_v18  ;;  %v7477_v62 = vpop.f32.mrf.mxu1  ;;  %9505 = vmatprep.subr.bf16.mxu0 %v22521_v23  ;;  %v7509_v5 = vrot.slane %v7504_v49, %v20192_v45 }
 0x32d   :  { %v7220_v2 = vpop.f32.mrf.mxu0  ;;  %9731 = vmatprep.subr.bf16.mxu1 %v22262_v6  ;;  %v22560_v6 = vld [vmem:[%s25149_s11 + $0x144] ss:$8 sps:$4 sm:$0xff]   ;;  %v7523_v3 = vrot.slane %v7518_v34, %v20192_v45  ;;  %v7527_v15 = vrot.slane %v7518_v34, %v20208_v51  ;;  %v22798_v34 = vld [vmem:[%s25149_s11 + $0x254] ss:$8 sps:$4 sm:$0xff]  }
 0x32e   :  { %v7496_v37 = vadd.f32 %v7489_v24, %v7482_v42  ;;  %v7483_v28 = vadd.f32 %v7477_v62, %v7219_v59  ;;  %v7479_v30 = vpop.f32.mrf.mxu1  ;;  %9506 = vmatpush1.bf16.msra.mxu0 %v22532_v47  ;;  %v22587_v42 = vld [vmem:[%s25149_s11 + $0x130] ss:$8 sps:$4 sm:$0xff]   ;;  %v22594_v59 = vld [vmem:[%s25149_s11 + $0x124] ss:$8 sps:$4 sm:$0xff]   ;;  %v22601_v62 = vld [vmem:[%s25149_s11 + $0x120] ss:$8 sps:$4 sm:$0xff]  }
 0x32f   :  { %9732 = vmatpush1.bf16.msra.mxu1 %v22280_v48  ;;  %v7221_v18 = vpop.f32.mrf.mxu0  ;;  %9507 = vmatprep.subr.bf16.mxu0 %v22538_v20  ;;  %v7513_v48 = vrot.slane %v7504_v49, %v20208_v51  ;;  %v22744_v2 = vld.sshfl [vmem:[#allocation2 + $0x1c] sm:$0x11 pattern:$0x75316420]  ;;  %v9333_v30 = vrot.slane %v22490_v60, %v20129_v26  ;;  %v22789_v60 = vld [vmem:[%s25149_s11 + $0x260] ss:$8 sps:$4 sm:$0xff]  }
 0x330   :  { %vm7498_vm7 = vcmp.gt.f32.partialorder %v7496_v37, 0.0  ;;  %v7500_v21 = vmul.f32 0.2, %v7496_v37  ;;  %v7497_v40 = vadd.f32 %v7493_v19, %v7483_v28  ;;  %v7480_v63 = vpop.f32.mrf.mxu1  ;;  %9733 = vmatprep.subr.bf16.mxu1 %v22287_v14  ;;  %v22580_v14 = vld [vmem:[%s25149_s11 + $0x134] ss:$8 sps:$4 sm:$0xff]  }
 0x332   :  { %v7502_v16 = vsel %vm7498_vm7, %v7496_v37, %v7500_v21  ;;  %vm7499_vm8 = vcmp.gt.f32.partialorder %v7497_v40, 0.0  ;;  %v7501_v32 = vmul.f32 0.2, %v7497_v40  ;;  %9508 = vmatpush1.bf16.msra.mxu0 %v22552_v10 }
 0x333   :  { %v7516_v1 = vmul.f32 %v7509_v5, %v7502_v16  ;;  %9734 = vmatpush1.bf16.msra.mxu1 %v22302_v35  ;;  %9509 = vmatprep.subr.bf16.mxu0 %v22560_v6  ;;  %v22753_v37 = vld.sshfl [vmem:[#allocation2 + $0x1e] sm:$0x11 pattern:$0x75316420]  ;;  %v22815_v16 = vld [vmem:[%s25149_s11 + $0x244] ss:$8 sps:$4 sm:$0xff]  }
 0x334   :  { %v7503_v24 = vsel %vm7499_vm8, %v7497_v40, %v7501_v32  ;;  %9735 = vmatprep.subr.bf16.mxu1 %v22310_v0  ;;  %v10175_v28 = vcombine.high %v22753_v37, %v22753_v37 }
 0x335   :  { %v7517_v41 = vmul.f32 %v7513_v48, %v7503_v24  ;;  %v7530_v49 = vadd.f32 %v7523_v3, %v7516_v1  ;;  %v22864_v1 = vld [vmem:[%s25149_s11 + $0x210] ss:$8 sps:$4 sm:$0xff]   ;;  %v22871_v3 = vld [vmem:[%s25149_s11 + $0x204] ss:$8 sps:$4 sm:$0xff]  }
 0x336   :  { %9510 = vmatpush1.bf16.msra.mxu0 %v22571_v57  ;;  %v22892_v24 = vld [vmem:[%s25149_s11 + $0x2f0] ss:$8 sps:$4 sm:$0xff]  }
 0x337   :  { %v7531_v35 = vadd.f32 %v7527_v15, %v7517_v41  ;;  %9736 = vmatpush1.bf16.msra.mxu1 %v22319_v9  ;;  %9511 = vmatprep.subr.bf16.mxu0 %v22580_v14  ;;  %v22609_v9 = vld [vmem:[%s25149_s11 + $0x114] ss:$8 sps:$4 sm:$0xff]   ;;  %v22878_v15 = vld [vmem:[%s25149_s11 + $0x200] ss:$8 sps:$4 sm:$0xff]   ;;  %v22899_v41 = vld [vmem:[%s25149_s11 + $0x2e4] ss:$8 sps:$4 sm:$0xff]  }
 0x338   :  { %9737 = vmatprep.subr.bf16.mxu1 %v22326_v12  ;;  %v22616_v12 = vld [vmem:[%s25149_s11 + $0x110] ss:$8 sps:$4 sm:$0xff]  }
 0x339   :  { %v16936_v0 = vpack.c.bf16 %v7531_v35, %v7530_v49  ;;  %v22913_v49 = vld [vmem:[%s25149_s11 + $0x2d4] ss:$8 sps:$4 sm:$0xff]   ;;  %v22920_v35 = vld [vmem:[%s25149_s11 + $0x2d0] ss:$8 sps:$4 sm:$0xff]  }
 0x33a   :  { %9512 = vmatpush1.bf16.msra.mxu0 %v22587_v42 }
 0x33b   :  { %v7543_v19 = vrot.slane %v16936_v0, %v20129_v26  ;;  %9738 = vmatpush1.bf16.msra.mxu1 %v22333_v29  ;;  %9513 = vmatprep.subr.bf16.mxu0 %v22594_v59  ;;  %v22623_v29 = vld [vmem:[%s25149_s11 + $0x104] ss:$8 sps:$4 sm:$0xff]   ;;  %v22934_v0 = vld [vmem:[%s25149_s11 + $0x2c0] ss:$8 sps:$4 sm:$0xff]  }
 0x33c   :  { %9739 = vmatprep.subr.bf16.mxu1 %v22340_v22  ;;  %v22630_v22 = vld [vmem:[%s25149_s11 + $0x100] ss:$8 sps:$4 sm:$0xff]  }
 0x33d   :  { %16937 = vst.sshfl [vmem:[#allocation3 + $0x8] sm:$0x5 pattern:$0x73625140] %v7543_v19  ;;  %v22948_v19 = vld [vmem:[%s25149_s11 + $0x2b0] ss:$8 sps:$4 sm:$0xff]  }
 0x33e   :  { %9514 = vmatpush1.bf16.msra.mxu0 %v22601_v62 }
 0x33f   :  { %9740 = vmatpush1.bf16.msra.mxu1 %v22348_v55  ;;  %9515 = vmatprep.subr.bf16.mxu0 %v22609_v9  ;;  %v22637_v55 = vld [vmem:[%s25149_s11 + $0x1f4] ss:$8 sps:$4 sm:$0xff]  }
 0x340   :  { %9741 = vmatprep.subr.bf16.mxu1 %v22355_v13  ;;  %v22644_v13 = vld [vmem:[%s25149_s11 + $0x1f0] ss:$8 sps:$4 sm:$0xff]  }
 0x342   :  { %9516 = vmatpush1.bf16.msra.mxu0 %v22616_v12 }
 0x343   :  { %9742 = vmatpush1.bf16.msra.mxu1 %v22362_v43  ;;  %9517 = vmatprep.subr.bf16.mxu0 %v22623_v29  ;;  %v22651_v43 = vld [vmem:[%s25149_s11 + $0x1e4] ss:$8 sps:$4 sm:$0xff]  }
 0x344   :  { %9743 = vmatprep.subr.bf16.mxu1 %v22369_v31  ;;  %v22658_v31 = vld [vmem:[%s25149_s11 + $0x1e0] ss:$8 sps:$4 sm:$0xff]  }
 0x346   :  { %9518 = vmatpush1.bf16.msra.mxu0 %v22630_v22 }
 0x347   :  { %9744 = vmatpush1.bf16.msra.mxu1 %v22376_v8  ;;  %9519 = vmatprep.subr.bf16.mxu0 %v22637_v55  ;;  %v22665_v8 = vld [vmem:[%s25149_s11 + $0x1d4] ss:$8 sps:$4 sm:$0xff]  }
 0x348   :  { %9745 = vmatprep.subr.bf16.mxu1 %v22383_v56  ;;  %v22672_v56 = vld [vmem:[%s25149_s11 + $0x1d0] ss:$8 sps:$4 sm:$0xff]  }
 0x34a   :  { %9520 = vmatpush2.bf16.msra.mxu0 %v22644_v13 }
 0x34b   :  { %9746 = vmatpush2.bf16.msra.mxu1 %v22390_v58  ;;  %9521 = vmatprep.subr.bf16.mxu0 %v22651_v43  ;;  %v22679_v58 = vld [vmem:[%s25149_s11 + $0x1c4] ss:$8 sps:$4 sm:$0xff]  }
 0x34c   :  { %9747 = vmatprep.subr.bf16.mxu1 %v22397_v38  ;;  %v22686_v38 = vld [vmem:[%s25149_s11 + $0x1c0] ss:$8 sps:$4 sm:$0xff]  }
 0x34e   :  { %9522 = vmatpush2.bf16.msra.mxu0 %v22658_v31 }
 0x34f   :  { %9748 = vmatpush2.bf16.msra.mxu1 %v22404_v33  ;;  %9523 = vmatprep.subr.bf16.mxu0 %v22665_v8  ;;  %v22693_v33 = vld [vmem:[%s25149_s11 + $0x1b4] ss:$8 sps:$4 sm:$0xff]  }
 0x350   :  { %9749 = vmatprep.subr.bf16.mxu1 %v22411_v27  ;;  %v22700_v27 = vld [vmem:[%s25149_s11 + $0x1b0] ss:$8 sps:$4 sm:$0xff]  }
 0x352   :  { %9524 = vmatpush2.bf16.msra.mxu0 %v22672_v56 }
 0x353   :  { %9750 = vmatpush2.bf16.msra.mxu1 %v22418_v39  ;;  %9525 = vmatprep.subr.bf16.mxu0 %v22679_v58  ;;  %v22707_v39 = vld [vmem:[%s25149_s11 + $0x1a4] ss:$8 sps:$4 sm:$0xff]  }
 0x354   :  { %9751 = vmatprep.subr.bf16.mxu1 %v22425_v52  ;;  %v22714_v52 = vld [vmem:[%s25149_s11 + $0x1a0] ss:$8 sps:$4 sm:$0xff]  }
 0x356   :  { %9526 = vmatpush2.bf16.msra.mxu0 %v22686_v38 }
 0x357   :  { %9752 = vmatpush2.bf16.msra.mxu1 %v22432_v17  ;;  %9527 = vmatprep.subr.bf16.mxu0 %v22693_v33  ;;  %v22721_v17 = vld [vmem:[%s25149_s11 + $0x194] ss:$8 sps:$4 sm:$0xff]  }
 0x358   :  { %9753 = vmatprep.subr.bf16.mxu1 %v22439_v46  ;;  %v22728_v46 = vld [vmem:[%s25149_s11 + $0x190] ss:$8 sps:$4 sm:$0xff]  }
 0x35a   :  { %9528 = vmatpush2.bf16.msra.mxu0 %v22700_v27 }
 0x35b   :  { %9754 = vmatpush2.bf16.msra.mxu1 %v22446_v25  ;;  %9529 = vmatprep.subr.bf16.mxu0 %v22707_v39  ;;  %v22735_v25 = vld [vmem:[%s25149_s11 + $0x184] ss:$8 sps:$4 sm:$0xff]  }
 0x35c   :  { %9755 = vmatprep.subr.bf16.mxu1 %v22453_v7  ;;  %v22742_v7 = vld [vmem:[%s25149_s11 + $0x180] ss:$8 sps:$4 sm:$0xff]  }
 0x35e   :  { %9530 = vmatpush2.bf16.msra.mxu0 %v22714_v52 }
 0x35f   :  { %9756 = vmatpush2.bf16.msra.mxu1 %v22460_v53  ;;  %9531 = vmatprep.subr.bf16.mxu0 %v22721_v17  ;;  %v22751_v53 = vld [vmem:[%s25149_s11 + $0x274] ss:$8 sps:$4 sm:$0xff]  }
 0x360   :  { %9757 = vmatprep.subr.bf16.mxu1 %v22467_v44  ;;  %v9811_v44 = vcombine.high %v22744_v2, %v22744_v2 }
 0x362   :  { %9532 = vmatpush2.bf16.msra.mxu0 %v22728_v46  ;;  %v22779_v18 = vrot.slane %v9811_v44, %v20129_v26  ;;  %v18867_v44 = vld [vmem:[%s25149_s11 + $0x60] ss:$8 sps:$4 sm:$0xff]  }
 0x363   :  { %9758 = vmatpush2.bf16.msra.mxu1 %v22474_v61  ;;  %9533 = vmatprep.subr.bf16.mxu0 %v22735_v25  ;;  %v22762_v61 = vld [vmem:[%s25149_s11 + $0x270] ss:$8 sps:$4 sm:$0xff]  }
 0x364   :  { %9759 = vmatprep.subr.bf16.mxu1 %v22481_v36  ;;  %v22774_v36 = vld [vmem:[%s25149_s11 + $0x264] ss:$8 sps:$4 sm:$0xff]  }
 0x366   :  { %9534 = vmatpush2.bf16.msra.mxu0 %v22742_v7 }
 0x367   :  { %9760 = vmatpush2.bf16.msra.mxu1 %v22488_v54  ;;  %9988 = vmatprep.subr.bf16.mxu0 %v22751_v53  ;;  %v10189_v54 = vrot.slane %v10175_v28, %v20129_v26 }
 0x368   :  { %10352 = vmatprep.subr.bf16.mxu1 %v22497_v11 }
 0x369   :  { %v22776_v5 = vpop.f32.mrf.mxu0  ;;  %9536 = vmatmul.mubr.bf16.vlgmr.msra.gmra.mxu0 %v9333_v30  ;;  %v18872_v30 = vld [vmem:[%s25149_s11 + $0x54] ss:$8 sps:$4 sm:$0xff]  }
 0x36a   :  { %v22781_v21 = vpop.f32.mrf.mxu1  ;;  %9762 = vmatmul.mubr.bf16.vlgmr.msra.gmra.mxu1 %v22515_v4  ;;  %9989 = vmatpush1.bf16.msra.mxu0 %v22762_v61 }
 0x36b   :  { %10020 = vmatprep.mubr.bf16.mxu0 %v22779_v18  ;;  %10353 = vmatpush1.bf16.msra.mxu1 %v22506_v50  ;;  %v22793_v11 = vpop.f32.mrf.mxu0  ;;  %v22808_v50 = vld [vmem:[%s25149_s11 + $0x250] ss:$8 sps:$4 sm:$0xff]  }
 0x36c   :  { %10384 = vmatprep.mubr.bf16.mxu1 %v10189_v54  ;;  %v22800_v4 = vpop.f32.mrf.mxu1  ;;  %9990 = vmatprep.subr.bf16.mxu0 %v22774_v36 }
 0x36d   :  { %v7843_v40 = vpop.f32.mrf.mxu0  ;;  %10354 = vmatprep.subr.bf16.mxu1 %v22521_v23  ;;  %v22822_v23 = vld [vmem:[%s25149_s11 + $0x240] ss:$8 sps:$4 sm:$0xff]  }
 0x36e   :  { %v8069_v63 = vpop.f32.mrf.mxu1  ;;  %9991 = vmatpush1.bf16.msra.mxu0 %v22789_v60 }
 0x36f   :  { %10355 = vmatpush1.bf16.msra.mxu1 %v22532_v47  ;;  %v7844_v48 = vpop.f32.mrf.mxu0  ;;  %9992 = vmatprep.subr.bf16.mxu0 %v22798_v34  ;;  %v22829_v47 = vld [vmem:[%s25149_s11 + $0x234] ss:$8 sps:$4 sm:$0xff]  }
 0x370   :  { %v8070_v32 = vpop.f32.mrf.mxu1  ;;  %10356 = vmatprep.subr.bf16.mxu1 %v22538_v20  ;;  %v22836_v20 = vld [vmem:[%s25149_s11 + $0x230] ss:$8 sps:$4 sm:$0xff]  }
 0x371   :  { %v18870_v48 = vld [vmem:[%s25149_s11 + $0x50] ss:$8 sps:$4 sm:$0xff]  }
 0x372   :  { %9993 = vmatpush1.bf16.msra.mxu0 %v22808_v50 }
 0x373   :  { %10357 = vmatpush1.bf16.msra.mxu1 %v22552_v10  ;;  %9994 = vmatprep.subr.bf16.mxu0 %v22815_v16  ;;  %v22843_v10 = vld [vmem:[%s25149_s11 + $0x224] ss:$8 sps:$4 sm:$0xff]  }
 0x374   :  { %10358 = vmatprep.subr.bf16.mxu1 %v22560_v6  ;;  %v22850_v6 = vld [vmem:[%s25149_s11 + $0x220] ss:$8 sps:$4 sm:$0xff]  }
 0x376   :  { %9995 = vmatpush1.bf16.msra.mxu0 %v22822_v23 }
 0x377   :  { %10359 = vmatpush1.bf16.msra.mxu1 %v22571_v57  ;;  %9996 = vmatprep.subr.bf16.mxu0 %v22829_v47  ;;  %v22857_v57 = vld [vmem:[%s25149_s11 + $0x214] ss:$8 sps:$4 sm:$0xff]  }
 0x378   :  { %10360 = vmatprep.subr.bf16.mxu1 %v22580_v14  ;;  %v22885_v14 = vld [vmem:[%s25149_s11 + $0x2f4] ss:$8 sps:$4 sm:$0xff]  }
 0x37a   :  { %9997 = vmatpush1.bf16.msra.mxu0 %v22836_v20 }
 0x37b   :  { %10361 = vmatpush1.bf16.msra.mxu1 %v22587_v42  ;;  %9998 = vmatprep.subr.bf16.mxu0 %v22843_v10  ;;  %v22906_v42 = vld [vmem:[%s25149_s11 + $0x2e0] ss:$8 sps:$4 sm:$0xff]  }
 0x37c   :  { %10362 = vmatprep.subr.bf16.mxu1 %v22594_v59  ;;  %v22927_v59 = vld [vmem:[%s25149_s11 + $0x2c4] ss:$8 sps:$4 sm:$0xff]  }
 0x37e   :  { %9999 = vmatpush1.bf16.msra.mxu0 %v22850_v6 }
 0x37f   :  { %10363 = vmatpush1.bf16.msra.mxu1 %v22601_v62  ;;  %10000 = vmatprep.subr.bf16.mxu0 %v22857_v57  ;;  %v22941_v62 = vld [vmem:[%s25149_s11 + $0x2b4] ss:$8 sps:$4 sm:$0xff]  }
 0x380   :  { %10364 = vmatprep.subr.bf16.mxu1 %v22609_v9  ;;  %v22955_v9 = vld [vmem:[%s25149_s11 + $0x2a4] ss:$8 sps:$4 sm:$0xff]  }
 0x382   :  { %10001 = vmatpush1.bf16.msra.mxu0 %v22864_v1 }
 0x383   :  { %10365 = vmatpush1.bf16.msra.mxu1 %v22616_v12  ;;  %10002 = vmatprep.subr.bf16.mxu0 %v22871_v3  ;;  %v22962_v12 = vld [vmem:[%s25149_s11 + $0x2a0] ss:$8 sps:$4 sm:$0xff]  }
 0x384   :  { %10366 = vmatprep.subr.bf16.mxu1 %v22623_v29  ;;  %v22969_v29 = vld [vmem:[%s25149_s11 + $0x294] ss:$8 sps:$4 sm:$0xff]  }
 0x386   :  { %10003 = vmatpush1.bf16.msra.mxu0 %v22878_v15 }
 0x387   :  { %10367 = vmatpush1.bf16.msra.mxu1 %v22630_v22  ;;  %10004 = vmatprep.subr.bf16.mxu0 %v22885_v14  ;;  %v22976_v22 = vld [vmem:[%s25149_s11 + $0x290] ss:$8 sps:$4 sm:$0xff]  }
 0x388   :  { %10368 = vmatprep.subr.bf16.mxu1 %v22637_v55  ;;  %v22983_v55 = vld [vmem:[%s25149_s11 + $0x284] ss:$8 sps:$4 sm:$0xff]  }
 0x38a   :  { %10005 = vmatpush2.bf16.msra.mxu0 %v22892_v24 }
 0x38b   :  { %10369 = vmatpush2.bf16.msra.mxu1 %v22644_v13  ;;  %10006 = vmatprep.subr.bf16.mxu0 %v22899_v41  ;;  %v22990_v13 = vld [vmem:[%s25149_s11 + $0x280] ss:$8 sps:$4 sm:$0xff]  }
 0x38c   :  { %10370 = vmatprep.subr.bf16.mxu1 %v22651_v43  ;;  %v22992_v43 = vld.sshfl [vmem:[#allocation2 + $0x20] sm:$0x11 pattern:$0x75316420] }
 0x38e   :  { %10007 = vmatpush2.bf16.msra.mxu0 %v22906_v42 }
 0x38f   :  { %10371 = vmatpush2.bf16.msra.mxu1 %v22658_v31  ;;  %10008 = vmatprep.subr.bf16.mxu0 %v22913_v49  ;;  %v18866_v31 = vld [vmem:[%s25149_s11 + $0x74] ss:$8 sps:$4 sm:$0xff]  }
 0x390   :  { %10372 = vmatprep.subr.bf16.mxu1 %v22665_v8  ;;  %v8333_v8 = vld [vmem:[%s25151_s1] sm:$0x3] }
 0x392   :  { %10009 = vmatpush2.bf16.msra.mxu0 %v22920_v35 }
 0x393   :  { %10373 = vmatpush2.bf16.msra.mxu1 %v22672_v56  ;;  %10010 = vmatprep.subr.bf16.mxu0 %v22927_v59  ;;  %v10660_v56 = vcombine.high %v22992_v43, %v22992_v43 }
 0x394   :  { %10374 = vmatprep.subr.bf16.mxu1 %v22679_v58  ;;  %v18864_v58 = vld [vmem:[%s25149_s11 + $0x70] ss:$8 sps:$4 sm:$0xff]  }
 0x396   :  { %10011 = vmatpush2.bf16.msra.mxu0 %v22934_v0 }
 0x397   :  { %10375 = vmatpush2.bf16.msra.mxu1 %v22686_v38  ;;  %10012 = vmatprep.subr.bf16.mxu0 %v22941_v62  ;;  %v23011_v38 = vrot.slane %v22744_v2, %v20129_v26  ;;  %v8353_v2 = vld [vmem:[%s25062_s5] sm:$0x3] }
 0x398   :  { %10376 = vmatprep.subr.bf16.mxu1 %v22693_v33  ;;  %v8066_v33 = vadd.f32 %v22781_v21, %v22776_v5  ;;  %v8362_v32 = vrot.slane %v8353_v2, %v20208_v51 }
 0x39a   :  { %10013 = vmatpush2.bf16.msra.mxu0 %v22948_v19 }
 0x39b   :  { %10377 = vmatpush2.bf16.msra.mxu1 %v22700_v27  ;;  %10014 = vmatprep.subr.bf16.mxu0 %v22955_v9  ;;  %v10182_v27 = vrot.slane %v22753_v37, %v20129_v26 }
 0x39c   :  { %10378 = vmatprep.subr.bf16.mxu1 %v22707_v39  ;;  %v8338_v39 = vrot.slane %v8333_v8, %v20192_v45 }
 0x39e   :  { %10015 = vmatpush2.bf16.msra.mxu0 %v22962_v12 }
 0x39f   :  { %10379 = vmatpush2.bf16.msra.mxu1 %v22714_v52  ;;  %10016 = vmatprep.subr.bf16.mxu0 %v22969_v29  ;;  %v18869_v52 = vld [vmem:[%s25149_s11 + $0x64] ss:$8 sps:$4 sm:$0xff]  }
 0x3a0   :  { %10380 = vmatprep.subr.bf16.mxu1 %v22721_v17 }
 0x3a2   :  { %10017 = vmatpush2.bf16.msra.mxu0 %v22976_v22 }
 0x3a3   :  { %10381 = vmatpush2.bf16.msra.mxu1 %v22728_v46  ;;  %10018 = vmatprep.subr.bf16.mxu0 %v22983_v55  ;;  %v10674_v46 = vrot.slane %v10660_v56, %v20129_v26 }
 0x3a4   :  { %10382 = vmatprep.subr.bf16.mxu1 %v22735_v25  ;;  %v8068_v25 = vadd.f32 %v22800_v4, %v22793_v11  ;;  %v8358_v11 = vrot.slane %v8353_v2, %v20192_v45  ;;  %v8367_v4 = vld [vmem:[%s25063_s6] sm:$0x3] }
 0x3a6   :  { %10019 = vmatpush2.bf16.msra.mxu0 %v22990_v13 }
 0x3a7   :  { %10383 = vmatpush2.bf16.msra.mxu1 %v22742_v7  ;;  %10578 = vmatprep.subr.bf16.mxu0 %v18866_v31 }
 0x3a8   :  { %10837 = vmatprep.subr.bf16.mxu1 %v22751_v53  ;;  %v8342_v53 = vrot.slane %v8333_v8, %v20208_v51  ;;  %v18875_v8 = vld [vmem:[%s25149_s11 + $0x44] ss:$8 sps:$4 sm:$0xff]  }
 0x3a9   :  { %v8324_v17 = vpop.f32.mrf.mxu0  ;;  %10021 = vmatmul.mubr.bf16.vlgmr.msra.gmra.mxu0 %v23011_v38 }
 0x3aa   :  { %v8331_v7 = vadd.f32 %v8324_v17, %v8066_v33  ;;  %v23030_v37 = vpop.f32.mrf.mxu1  ;;  %10385 = vmatmul.mubr.bf16.vlgmr.msra.gmra.mxu1 %v10182_v27  ;;  %10579 = vmatpush1.bf16.msra.mxu0 %v18864_v58  ;;  %v8372_v27 = vrot.slane %v8367_v4, %v20192_v45 }
 0x3ab   :  { %10610 = vmatprep.mubr.bf16.mxu0 %v22779_v18  ;;  %10838 = vmatpush1.bf16.msra.mxu1 %v22762_v61  ;;  %v8326_v28 = vpop.f32.mrf.mxu0 }
 0x3ac   :  { %v8345_v5 = vadd.f32 %v8338_v39, %v8331_v7  ;;  %10869 = vmatprep.mubr.bf16.mxu1 %v10674_v46  ;;  %v8332_v21 = vadd.f32 %v8326_v28, %v8068_v25  ;;  %v23041_v54 = vpop.f32.mrf.mxu1  ;;  %10580 = vmatprep.subr.bf16.mxu0 %v18869_v52  ;;  %v8376_v39 = vrot.slane %v8367_v4, %v20208_v51  ;;  %v18878_v46 = vld [vmem:[%s25149_s11 + $0x34] ss:$8 sps:$4 sm:$0xff]   ;;  %v18876_v7 = vld [vmem:[%s25149_s11 + $0x30] ss:$8 sps:$4 sm:$0xff]  }
 0x3ad   :  { %v8328_v18 = vpop.f32.mrf.mxu0  ;;  %10839 = vmatprep.subr.bf16.mxu1 %v22774_v36  ;;  %v23161_v28 = vld.sshfl [vmem:[#allocation3] sm:$0x11 pattern:$0x75316420]  ;;  %v23185_v4 = vld [vmem:[#allocation6 + $0x164] ss:$8 sps:$4 sm:$0xff]  }
 0x3ae   :  { %vm8347_vm9 = vcmp.gt.f32.partialorder %v8345_v5, 0.0  ;;  %v8349_v61 = vmul.f32 0.2, %v8345_v5  ;;  %v8346_v40 = vadd.f32 %v8342_v53, %v8332_v21  ;;  %v8692_v63 = vpop.f32.mrf.mxu1  ;;  %10581 = vmatpush1.bf16.msra.mxu0 %v18867_v44  ;;  %v18887_v44 = vld [vmem:[%s25149_s11 + $0x4] ss:$8 sps:$4 sm:$0xff]  }
 0x3af   :  { %10840 = vmatpush1.bf16.msra.mxu1 %v22789_v60  ;;  %v8329_v31 = vpop.f32.mrf.mxu0  ;;  %10582 = vmatprep.subr.bf16.mxu0 %v18872_v30  ;;  %v18873_v60 = vld [vmem:[%s25149_s11 + $0x40] ss:$8 sps:$4 sm:$0xff]  }
 0x3b0   :  { %v8351_v36 = vsel %vm8347_vm9, %v8345_v5, %v8349_v61  ;;  %vm8348_vm10 = vcmp.gt.f32.partialorder %v8346_v40, 0.0  ;;  %v8350_v56 = vmul.f32 0.2, %v8346_v40  ;;  %v8693_v58 = vpop.f32.mrf.mxu1  ;;  %10841 = vmatprep.subr.bf16.mxu1 %v22798_v34  ;;  %v23167_v30 = vld [vmem:[#allocation6 + $0x74] ss:$8 sps:$4 sm:$0xff]   ;;  %v11251_v5 = vcombine.high %v23161_v28, %v23161_v28 }
 0x3b1   :  { %v8365_v33 = vmul.f32 %v8358_v11, %v8351_v36  ;;  %v23173_v21 = vld [vmem:[#allocation6 + $0x170] ss:$8 sps:$4 sm:$0xff]   ;;  %v10667_v11 = vrot.slane %v22992_v43, %v20129_v26  ;;  %v23187_v18 = vld [vmem:[#allocation6 + $0x64] ss:$8 sps:$4 sm:$0xff]   ;;  %v23195_v43 = vld [vmem:[#allocation6 + $0x160] ss:$8 sps:$4 sm:$0xff]  }
 0x3b2   :  { %v8352_v52 = vsel %vm8348_vm10, %v8346_v40, %v8350_v56  ;;  %10583 = vmatpush1.bf16.msra.mxu0 %v18870_v48  ;;  %v11265_v40 = vrot.slane %v11251_v5, %v20129_v26 }
 0x3b3   :  { %v8366_v17 = vmul.f32 %v8362_v32, %v8352_v52  ;;  %10842 = vmatpush1.bf16.msra.mxu1 %v22808_v50  ;;  %10584 = vmatprep.subr.bf16.mxu0 %v18875_v8  ;;  %v8379_v34 = vadd.f32 %v8372_v27, %v8365_v33  ;;  %v18881_v50 = vld [vmem:[%s25149_s11 + $0x24] ss:$8 sps:$4 sm:$0xff]  }
 0x3b4   :  { %10843 = vmatprep.subr.bf16.mxu1 %v22815_v16  ;;  %v18879_v16 = vld [vmem:[%s25149_s11 + $0x20] ss:$8 sps:$4 sm:$0xff]  }
 0x3b5   :  { %v8380_v25 = vadd.f32 %v8376_v39, %v8366_v17  ;;  %v23198_v8 = vld [vmem:[#allocation6 + $0x60] ss:$8 sps:$4 sm:$0xff]   ;;  %v23209_v27 = vld [vmem:[#allocation6 + $0x54] ss:$8 sps:$4 sm:$0xff]  }
 0x3b6   :  { %10585 = vmatpush1.bf16.msra.mxu0 %v18873_v60 }
 0x3b7   :  { %v17101_v2 = vpack.c.bf16 %v8380_v25, %v8379_v34  ;;  %10844 = vmatpush1.bf16.msra.mxu1 %v22822_v23  ;;  %10586 = vmatprep.subr.bf16.mxu0 %v18878_v46  ;;  %v18884_v23 = vld [vmem:[%s25149_s11 + $0x14] ss:$8 sps:$4 sm:$0xff]   ;;  %v9216_v34 = vld [vmem:[%s25063_s6] sm:$0x3] }
 0x3b8   :  { %10845 = vmatprep.subr.bf16.mxu1 %v22829_v47  ;;  %v18882_v47 = vld [vmem:[%s25149_s11 + $0x10] ss:$8 sps:$4 sm:$0xff]  }
 0x3b9   :  { %v8392_v53 = vrot.slane %v17101_v2, %v20129_v26  ;;  %v23212_v46 = vld [vmem:[#allocation6 + $0x150] ss:$8 sps:$4 sm:$0xff]   ;;  %v23222_v2 = vld [vmem:[#allocation6 + $0x144] ss:$8 sps:$4 sm:$0xff]  }
 0x3ba   :  { %10587 = vmatpush1.bf16.msra.mxu0 %v18876_v7  ;;  %v23220_v7 = vld [vmem:[#allocation6 + $0x50] ss:$8 sps:$4 sm:$0xff]  }
 0x3bb   :  { %17102 = vst.sshfl [vmem:[#allocation3 + $0xa] sm:$0x5 pattern:$0x73625140] %v8392_v53  ;;  %10846 = vmatpush1.bf16.msra.mxu1 %v22836_v20  ;;  %10588 = vmatprep.subr.bf16.mxu0 %v18881_v50  ;;  %v18885_v20 = vld [vmem:[%s25149_s11] ss:$8 sps:$4 sm:$0xff]  }
 0x3bc   :  { %10847 = vmatprep.subr.bf16.mxu1 %v22843_v10  ;;  %v18890_v10 = vld [vmem:[%s25149_s11 + $0xf4] ss:$8 sps:$4 sm:$0xff]  }
 0x3be   :  { %10589 = vmatpush1.bf16.msra.mxu0 %v18879_v16 }
 0x3bf   :  { %10848 = vmatpush1.bf16.msra.mxu1 %v22850_v6  ;;  %10590 = vmatprep.subr.bf16.mxu0 %v18884_v23  ;;  %v18888_v6 = vld [vmem:[%s25149_s11 + $0xf0] ss:$8 sps:$4 sm:$0xff]  }
 0x3c0   :  { %10849 = vmatprep.subr.bf16.mxu1 %v22857_v57  ;;  %v18893_v57 = vld [vmem:[%s25149_s11 + $0xe4] ss:$8 sps:$4 sm:$0xff]  }
 0x3c1   :  { %v23225_v23 = vld [vmem:[#allocation6 + $0x44] ss:$8 sps:$4 sm:$0xff]  }
 0x3c2   :  { %10591 = vmatpush1.bf16.msra.mxu0 %v18882_v47 }
 0x3c3   :  { %10850 = vmatpush1.bf16.msra.mxu1 %v22864_v1  ;;  %10592 = vmatprep.subr.bf16.mxu0 %v18887_v44  ;;  %v18891_v1 = vld [vmem:[%s25149_s11 + $0xe0] ss:$8 sps:$4 sm:$0xff]  }
 0x3c4   :  { %10851 = vmatprep.subr.bf16.mxu1 %v22871_v3  ;;  %v18896_v3 = vld [vmem:[%s25149_s11 + $0xd4] ss:$8 sps:$4 sm:$0xff]  }
 0x3c6   :  { %10593 = vmatpush1.bf16.msra.mxu0 %v18885_v20 }
 0x3c7   :  { %10852 = vmatpush1.bf16.msra.mxu1 %v22878_v15  ;;  %10594 = vmatprep.subr.bf16.mxu0 %v18890_v10  ;;  %v18894_v15 = vld [vmem:[%s25149_s11 + $0xd0] ss:$8 sps:$4 sm:$0xff]  }
 0x3c8   :  { %10853 = vmatprep.subr.bf16.mxu1 %v22885_v14  ;;  %v18899_v14 = vld [vmem:[%s25149_s11 + $0xc4] ss:$8 sps:$4 sm:$0xff]  }
 0x3c9   :  { %v23229_v10 = vld [vmem:[#allocation6 + $0x140] ss:$8 sps:$4 sm:$0xff]  }
 0x3ca   :  { %10595 = vmatpush2.bf16.msra.mxu0 %v18888_v6 }
 0x3cb   :  { %10854 = vmatpush2.bf16.msra.mxu1 %v22892_v24  ;;  %10596 = vmatprep.subr.bf16.mxu0 %v18893_v57  ;;  %v18897_v24 = vld [vmem:[%s25149_s11 + $0xc0] ss:$8 sps:$4 sm:$0xff]   ;;  %v9221_v57 = vrot.slane %v9216_v34, %v20192_v45 }
 0x3cc   :  { %10855 = vmatprep.subr.bf16.mxu1 %v22899_v41  ;;  %v18902_v41 = vld [vmem:[%s25149_s11 + $0xb4] ss:$8 sps:$4 sm:$0xff]  }
 0x3ce   :  { %10597 = vmatpush2.bf16.msra.mxu0 %v18891_v1  ;;  %v9225_v1 = vrot.slane %v9216_v34, %v20208_v51  ;;  %v23316_v34 = vld [vmem:[#allocation6 + $0x1d0] ss:$8 sps:$4 sm:$0xff]  }
 0x3cf   :  { %10856 = vmatpush2.bf16.msra.mxu1 %v22906_v42  ;;  %10598 = vmatprep.subr.bf16.mxu0 %v18896_v3  ;;  %v18900_v42 = vld [vmem:[%s25149_s11 + $0xb0] ss:$8 sps:$4 sm:$0xff]  }
 0x3d0   :  { %10857 = vmatprep.subr.bf16.mxu1 %v22913_v49  ;;  %v18905_v49 = vld [vmem:[%s25149_s11 + $0xa4] ss:$8 sps:$4 sm:$0xff]  }
 0x3d1   :  { %v23235_v3 = vld [vmem:[#allocation6 + $0x40] ss:$8 sps:$4 sm:$0xff]  }
 0x3d2   :  { %10599 = vmatpush2.bf16.msra.mxu0 %v18894_v15  ;;  %v23237_v15 = vld [vmem:[#allocation6 + $0x134] ss:$8 sps:$4 sm:$0xff]  }
 0x3d3   :  { %10858 = vmatpush2.bf16.msra.mxu1 %v22920_v35  ;;  %10600 = vmatprep.subr.bf16.mxu0 %v18899_v14  ;;  %v18903_v35 = vld [vmem:[%s25149_s11 + $0xa0] ss:$8 sps:$4 sm:$0xff]  }
 0x3d4   :  { %10859 = vmatprep.subr.bf16.mxu1 %v22927_v59  ;;  %v18908_v59 = vld [vmem:[%s25149_s11 + $0x94] ss:$8 sps:$4 sm:$0xff]  }
 0x3d6   :  { %10601 = vmatpush2.bf16.msra.mxu0 %v18897_v24  ;;  %v23240_v24 = vld [vmem:[#allocation6 + $0x34] ss:$8 sps:$4 sm:$0xff]  }
 0x3d7   :  { %10860 = vmatpush2.bf16.msra.mxu1 %v22934_v0  ;;  %10602 = vmatprep.subr.bf16.mxu0 %v18902_v41  ;;  %v18906_v0 = vld [vmem:[%s25149_s11 + $0x90] ss:$8 sps:$4 sm:$0xff]  }
 0x3d8   :  { %10861 = vmatprep.subr.bf16.mxu1 %v22941_v62  ;;  %v18911_v62 = vld [vmem:[%s25149_s11 + $0x84] ss:$8 sps:$4 sm:$0xff]  }
 0x3da   :  { %10603 = vmatpush2.bf16.msra.mxu0 %v18900_v42  ;;  %v23243_v42 = vld [vmem:[#allocation6 + $0x130] ss:$8 sps:$4 sm:$0xff]  }
 0x3db   :  { %10862 = vmatpush2.bf16.msra.mxu1 %v22948_v19  ;;  %10604 = vmatprep.subr.bf16.mxu0 %v18905_v49  ;;  %v23156_v19 = vld.sshfl [vmem:[#allocation3 + $0x2] sm:$0x11 pattern:$0x75316420] }
 0x3dc   :  { %10863 = vmatprep.subr.bf16.mxu1 %v22955_v9  ;;  %v18909_v9 = vld [vmem:[%s25149_s11 + $0x80] ss:$8 sps:$4 sm:$0xff]  }
 0x3de   :  { %10605 = vmatpush2.bf16.msra.mxu0 %v18903_v35 }
 0x3df   :  { %10864 = vmatpush2.bf16.msra.mxu1 %v22962_v12  ;;  %10606 = vmatprep.subr.bf16.mxu0 %v18908_v59  ;;  %v23164_v12 = vld [vmem:[#allocation6 + $0x174] ss:$8 sps:$4 sm:$0xff]   ;;  %v23247_v59 = vld [vmem:[#allocation6 + $0x30] ss:$8 sps:$4 sm:$0xff]  }
 0x3e0   :  { %10865 = vmatprep.subr.bf16.mxu1 %v22969_v29  ;;  %v11025_v29 = vcombine.high %v23156_v19, %v23156_v19 }
 0x3e2   :  { %10607 = vmatpush2.bf16.msra.mxu0 %v18906_v0  ;;  %v23249_v0 = vld [vmem:[#allocation6 + $0x124] ss:$8 sps:$4 sm:$0xff]  }
 0x3e3   :  { %10866 = vmatpush2.bf16.msra.mxu1 %v22976_v22  ;;  %10608 = vmatprep.subr.bf16.mxu0 %v18911_v62  ;;  %v9182_v22 = vld [vmem:[%s25151_s1] sm:$0x3]  ;;  %v23252_v62 = vld [vmem:[#allocation6 + $0x24] ss:$8 sps:$4 sm:$0xff]  }
 0x3e4   :  { %10867 = vmatprep.subr.bf16.mxu1 %v22983_v55  ;;  %v23180_v55 = vld [vmem:[#allocation6 + $0x70] ss:$8 sps:$4 sm:$0xff]   ;;  %v9187_v32 = vrot.slane %v9182_v22, %v20192_v45  ;;  %v9191_v33 = vrot.slane %v9182_v22, %v20208_v51  ;;  %v23260_v22 = vld [vmem:[#allocation6 + $0x20] ss:$8 sps:$4 sm:$0xff]  }
 0x3e6   :  { %10609 = vmatpush2.bf16.msra.mxu0 %v18909_v9 }
 0x3e7   :  { %10868 = vmatpush2.bf16.msra.mxu1 %v22990_v13  ;;  %11202 = vmatprep.subr.bf16.mxu0 %v23164_v12  ;;  %v11039_v13 = vrot.slane %v11025_v29, %v20129_v26  ;;  %v23255_v29 = vld [vmem:[#allocation6 + $0x120] ss:$8 sps:$4 sm:$0xff]  }
 0x3e8   :  { %11428 = vmatprep.subr.bf16.mxu1 %v23167_v30 }
 0x3e9   :  { %v8914_v61 = vpop.f32.mrf.mxu0  ;;  %10611 = vmatmul.mubr.bf16.vlgmr.msra.gmra.mxu0 %v23011_v38  ;;  %v23200_v38 = vld [vmem:[#allocation6 + $0x154] ss:$8 sps:$4 sm:$0xff]  }
 0x3ea   :  { %v8915_v63 = vadd.f32 %v8914_v61, %v23030_v37  ;;  %v9173_v48 = vpop.f32.mrf.mxu1  ;;  %10870 = vmatmul.mubr.bf16.vlgmr.msra.gmra.mxu1 %v10667_v11  ;;  %11203 = vmatpush1.bf16.msra.mxu0 %v23173_v21  ;;  %v9202_v37 = vld [vmem:[%s25062_s5] sm:$0x3] }
 0x3eb   :  { %11234 = vmatprep.mubr.bf16.mxu0 %v11039_v13  ;;  %11429 = vmatpush1.bf16.msra.mxu1 %v23180_v55  ;;  %v8916_v31 = vpop.f32.mrf.mxu0  ;;  %v9211_v47 = vrot.slane %v9202_v37, %v20208_v51  ;;  %v23262_v11 = vld [vmem:[#allocation6 + $0x114] ss:$8 sps:$4 sm:$0xff]   ;;  %v23268_v13 = vld [vmem:[#allocation6 + $0x110] ss:$8 sps:$4 sm:$0xff]  }
 0x3ec   :  { %v9180_v36 = vadd.f32 %v9173_v48, %v8915_v63  ;;  %v8917_v56 = vadd.f32 %v8916_v31, %v23041_v54  ;;  %v9175_v58 = vpop.f32.mrf.mxu1  ;;  %11204 = vmatprep.subr.bf16.mxu0 %v23185_v4  ;;  %11430 = vmatprep.subr.bf16.mxu1 %v23187_v18  ;;  %v9207_v54 = vrot.slane %v9202_v37, %v20192_v45  ;;  %v23265_v61 = vld [vmem:[#allocation6 + $0x14] ss:$8 sps:$4 sm:$0xff]   ;;  %v23274_v63 = vld [vmem:[#allocation6 + $0x104] ss:$8 sps:$4 sm:$0xff]   ;;  %v23284_v31 = vld [vmem:[#allocation6] ss:$8 sps:$4 sm:$0xff]  }
 0x3ed   :  { %v8918_v39 = vpop.f32.mrf.mxu0  ;;  %11460 = vmatprep.mubr.bf16.mxu1 %v11265_v40  ;;  %v23272_v40 = vld [vmem:[#allocation6 + $0x10] ss:$8 sps:$4 sm:$0xff]   ;;  %v23277_v48 = vld [vmem:[#allocation6 + $0x4] ss:$8 sps:$4 sm:$0xff]   ;;  %25154 = vst [vmem:[#allocation17_spill] sm:$0xff] %v23284_v31 }
 0x3ee   :  { %v9194_v52 = vadd.f32 %v9187_v32, %v9180_v36  ;;  %v9181_v60 = vadd.f32 %v9175_v58, %v8917_v56  ;;  %v9177_v17 = vpop.f32.mrf.mxu1  ;;  %11205 = vmatpush1.bf16.msra.mxu0 %v23195_v43  ;;  %25152 = vst [vmem:[#allocation15_spill] sm:$0xff] %v23272_v40  ;;  %25153 = vst [vmem:[#allocation16_spill] sm:$0xff] %v23277_v48  ;;  %v23280_v32 = vld [vmem:[#allocation6 + $0x100] ss:$8 sps:$4 sm:$0xff]   ;;  %v23286_v36 = vld [vmem:[#allocation6 + $0x1f4] ss:$8 sps:$4 sm:$0xff]  }
 0x3ef   :  { %11431 = vmatpush1.bf16.msra.mxu1 %v23198_v8  ;;  %v8919_v25 = vpop.f32.mrf.mxu0  ;;  %11206 = vmatprep.subr.bf16.mxu0 %v23200_v38  ;;  %v23289_v37 = vld [vmem:[#allocation6 + $0xf4] ss:$8 sps:$4 sm:$0xff]   ;;  %v23292_v56 = vld [vmem:[#allocation6 + $0x1f0] ss:$8 sps:$4 sm:$0xff]   ;;  %v23301_v39 = vld [vmem:[#allocation6 + $0xe4] ss:$8 sps:$4 sm:$0xff]  }
 0x3f0   :  { %vm9196_vm11 = vcmp.gt.f32.partialorder %v9194_v52, 0.0  ;;  %v9198_v50 = vmul.f32 0.2, %v9194_v52  ;;  %v9195_v53 = vadd.f32 %v9191_v33, %v9181_v60  ;;  %v9178_v16 = vpop.f32.mrf.mxu1  ;;  %11432 = vmatprep.subr.bf16.mxu1 %v23209_v27  ;;  %25155 = vst [vmem:[#allocation18_spill] sm:$0xff] %v23289_v37  ;;  %v23296_v58 = vld [vmem:[#allocation6 + $0xf0] ss:$8 sps:$4 sm:$0xff]  }
 0x3f1   :  { %25156 = vst [vmem:[#allocation19_spill] sm:$0xff] %v23296_v58  ;;  %v23298_v33 = vld [vmem:[#allocation6 + $0x1e4] ss:$8 sps:$4 sm:$0xff]   ;;  %25157 = vst [vmem:[#allocation20_spill] sm:$0xff] %v23301_v39  ;;  %v23308_v60 = vld [vmem:[#allocation6 + $0xe0] ss:$8 sps:$4 sm:$0xff]  }
 0x3f2   :  { %v9200_v44 = vsel %vm9196_vm11, %v9194_v52, %v9198_v50  ;;  %vm9197_vm12 = vcmp.gt.f32.partialorder %v9195_v53, 0.0  ;;  %v9199_v20 = vmul.f32 0.2, %v9195_v53  ;;  %11207 = vmatpush1.bf16.msra.mxu0 %v23212_v46  ;;  %v23304_v52 = vld [vmem:[#allocation6 + $0x1e0] ss:$8 sps:$4 sm:$0xff]   ;;  %25158 = vst [vmem:[#allocation21_spill] sm:$0xff] %v23308_v60 }
 0x3f3   :  { %v9214_v6 = vmul.f32 %v9207_v54, %v9200_v44  ;;  %11433 = vmatpush1.bf16.msra.mxu1 %v23220_v7  ;;  %11208 = vmatprep.subr.bf16.mxu0 %v23222_v2  ;;  %v23310_v17 = vld [vmem:[#allocation6 + $0x1d4] ss:$8 sps:$4 sm:$0xff]   ;;  %v23320_v25 = vld [vmem:[#allocation6 + $0xd0] ss:$8 sps:$4 sm:$0xff]   ;;  %v23322_v50 = vld [vmem:[#allocation6 + $0x1c4] ss:$8 sps:$4 sm:$0xff]  }
 0x3f4   :  { %v9201_v14 = vsel %vm9197_vm12, %v9195_v53, %v9199_v20  ;;  %11434 = vmatprep.subr.bf16.mxu1 %v23225_v23  ;;  %v23313_v54 = vld [vmem:[#allocation6 + $0xd4] ss:$8 sps:$4 sm:$0xff]   ;;  %25160 = vst [vmem:[#allocation23_spill] sm:$0xff] %v23320_v25  ;;  %v23325_v53 = vld [vmem:[#allocation6 + $0xc4] ss:$8 sps:$4 sm:$0xff]  }
 0x3f5   :  { %v9215_v41 = vmul.f32 %v9211_v47, %v9201_v14  ;;  %v9228_v49 = vadd.f32 %v9221_v57, %v9214_v6  ;;  %25159 = vst [vmem:[#allocation22_spill] sm:$0xff] %v23313_v54  ;;  %25161 = vst [vmem:[#allocation24_spill] sm:$0xff] %v23325_v53  ;;  %v23328_v16 = vld [vmem:[#allocation6 + $0x1c0] ss:$8 sps:$4 sm:$0xff]   ;;  %v23334_v44 = vld [vmem:[#allocation6 + $0x1b4] ss:$8 sps:$4 sm:$0xff]  }
 0x3f6   :  { %11209 = vmatpush1.bf16.msra.mxu0 %v23229_v10  ;;  %v23332_v47 = vld [vmem:[#allocation6 + $0xc0] ss:$8 sps:$4 sm:$0xff]   ;;  %v23337_v20 = vld [vmem:[#allocation6 + $0xb4] ss:$8 sps:$4 sm:$0xff]   ;;  %v23340_v6 = vld [vmem:[#allocation6 + $0x1b0] ss:$8 sps:$4 sm:$0xff]  }
 0x3f7   :  { %v9229_v35 = vadd.f32 %v9225_v1, %v9215_v41  ;;  %11435 = vmatpush1.bf16.msra.mxu1 %v23235_v3  ;;  %11210 = vmatprep.subr.bf16.mxu0 %v23237_v15  ;;  %25162 = vst [vmem:[#allocation25_spill] sm:$0xff] %v23332_v47  ;;  %25163 = vst [vmem:[#allocation26_spill] sm:$0xff] %v23337_v20  ;;  %v23344_v57 = vld [vmem:[#allocation6 + $0xb0] ss:$8 sps:$4 sm:$0xff]   ;;  %v23346_v1 = vld [vmem:[#allocation6 + $0x1a4] ss:$8 sps:$4 sm:$0xff]  }
 0x3f8   :  { %11436 = vmatprep.subr.bf16.mxu1 %v23240_v24  ;;  %25164 = vst [vmem:[#allocation27_spill] sm:$0xff] %v23344_v57  ;;  %v23349_v14 = vld [vmem:[#allocation6 + $0xa4] ss:$8 sps:$4 sm:$0xff]   ;;  %v23352_v41 = vld [vmem:[#allocation6 + $0x1a0] ss:$8 sps:$4 sm:$0xff]  }
 0x3f9   :  { %v17266_v9 = vpack.c.bf16 %v9229_v35, %v9228_v49  ;;  %25165 = vst [vmem:[#allocation28_spill] sm:$0xff] %v23349_v14  ;;  %v23356_v49 = vld [vmem:[#allocation6 + $0xa0] ss:$8 sps:$4 sm:$0xff]   ;;  %v23358_v35 = vld [vmem:[#allocation6 + $0x194] ss:$8 sps:$4 sm:$0xff]  }
 0x3fa   :  { %11211 = vmatpush1.bf16.msra.mxu0 %v23243_v42  ;;  %25166 = vst [vmem:[#allocation29_spill] sm:$0xff] %v23356_v49 }
 0x3fb   :  { %v9241_v5 = vrot.slane %v17266_v9, %v20129_v26  ;;  %11437 = vmatpush1.bf16.msra.mxu1 %v23247_v59  ;;  %11212 = vmatprep.subr.bf16.mxu0 %v23249_v0  ;;  %v23361_v9 = vld [vmem:[#allocation6 + $0x94] ss:$8 sps:$4 sm:$0xff]  }
 0x3fc   :  { %11438 = vmatprep.subr.bf16.mxu1 %v23252_v62  ;;  %25167 = vst [vmem:[#allocation30_spill] sm:$0xff] %v23361_v9 }
 0x3fd   :  { %17267 = vst.sshfl [vmem:[#allocation3 + $0xc] sm:$0x5 pattern:$0x73625140] %v9241_v5  ;;  %v23364_v5 = vld [vmem:[#allocation6 + $0x190] ss:$8 sps:$4 sm:$0xff]  }
 0x3fe   :  { %11213 = vmatpush1.bf16.msra.mxu0 %v23255_v29 }
 0x3ff   :  { %11439 = vmatpush1.bf16.msra.mxu1 %v23260_v22  ;;  %11214 = vmatprep.subr.bf16.mxu0 %v23262_v11 }
 0x400   :  { %11440 = vmatprep.subr.bf16.mxu1 %v23265_v61 }
 0x402   :  { %11215 = vmatpush1.bf16.msra.mxu0 %v23268_v13 }
 0x403   :  { %11441 = vmatpush1.bf16.msra.mxu1 %v23272_v40  ;;  %11216 = vmatprep.subr.bf16.mxu0 %v23274_v63  ;;  %v23431_v40 = vld [vmem:[#allocation6 + $0x244] ss:$8 sps:$4 sm:$0xff]  }
 0x404   :  { %11442 = vmatprep.subr.bf16.mxu1 %v23277_v48  ;;  %v23420_v48 = vld [vmem:[#allocation6 + $0x254] ss:$8 sps:$4 sm:$0xff]  }
 0x406   :  { %11217 = vmatpush1.bf16.msra.mxu0 %v23280_v32 }
 0x407   :  { %11443 = vmatpush1.bf16.msra.mxu1 %v23284_v31  ;;  %11218 = vmatprep.subr.bf16.mxu0 %v23286_v36 }
 0x408   :  { %11444 = vmatprep.subr.bf16.mxu1 %v23289_v37 }
 0x40a   :  { %11219 = vmatpush2.bf16.msra.mxu0 %v23292_v56 }
 0x40b   :  { %11445 = vmatpush2.bf16.msra.mxu1 %v23296_v58  ;;  %11220 = vmatprep.subr.bf16.mxu0 %v23298_v33  ;;  %v11032_v58 = vrot.slane %v23156_v19, %v20129_v26 }
 0x40c   :  { %11446 = vmatprep.subr.bf16.mxu1 %v23301_v39  ;;  %v23394_v39 = vld [vmem:[#allocation6 + $0x270] ss:$8 sps:$4 sm:$0xff]  }
 0x40e   :  { %11221 = vmatpush2.bf16.msra.mxu0 %v23304_v52 }
 0x40f   :  { %11447 = vmatpush2.bf16.msra.mxu1 %v23308_v60  ;;  %11222 = vmatprep.subr.bf16.mxu0 %v23310_v17  ;;  %v11258_v60 = vrot.slane %v23161_v28, %v20129_v26 }
 0x410   :  { %11448 = vmatprep.subr.bf16.mxu1 %v23313_v54  ;;  %v23386_v54 = vld [vmem:[#allocation6 + $0x274] ss:$8 sps:$4 sm:$0xff]  }
 0x412   :  { %11223 = vmatpush2.bf16.msra.mxu0 %v23316_v34 }
 0x413   :  { %11449 = vmatpush2.bf16.msra.mxu1 %v23320_v25  ;;  %11224 = vmatprep.subr.bf16.mxu0 %v23322_v50  ;;  %v23380_v25 = vld.sshfl [vmem:[#allocation3 + $0x6] sm:$0x11 pattern:$0x75316420] }
 0x414   :  { %11450 = vmatprep.subr.bf16.mxu1 %v23325_v53  ;;  %v23375_v53 = vld.sshfl [vmem:[#allocation3 + $0x4] sm:$0x11 pattern:$0x75316420] }
 0x416   :  { %11225 = vmatpush2.bf16.msra.mxu0 %v23328_v16 }
 0x417   :  { %11451 = vmatpush2.bf16.msra.mxu1 %v23332_v47  ;;  %11226 = vmatprep.subr.bf16.mxu0 %v23334_v44  ;;  %v23373_v47 = vld [vmem:[#allocation6 + $0x84] ss:$8 sps:$4 sm:$0xff]  }
 0x418   :  { %11452 = vmatprep.subr.bf16.mxu1 %v23337_v20  ;;  %v23368_v20 = vld [vmem:[#allocation6 + $0x90] ss:$8 sps:$4 sm:$0xff]   ;;  %25169 = vst [vmem:[#allocation32_spill] sm:$0xff] %v23373_v47 }
 0x419   :  { %25168 = vst [vmem:[#allocation31_spill] sm:$0xff] %v23368_v20 }
 0x41a   :  { %11227 = vmatpush2.bf16.msra.mxu0 %v23340_v6 }
 0x41b   :  { %11453 = vmatpush2.bf16.msra.mxu1 %v23344_v57  ;;  %11228 = vmatprep.subr.bf16.mxu0 %v23346_v1  ;;  %v23370_v57 = vld [vmem:[#allocation6 + $0x184] ss:$8 sps:$4 sm:$0xff]  }
 0x41c   :  { %11454 = vmatprep.subr.bf16.mxu1 %v23349_v14  ;;  %v23378_v14 = vld [vmem:[#allocation6 + $0x180] ss:$8 sps:$4 sm:$0xff]  }
 0x41e   :  { %11229 = vmatpush2.bf16.msra.mxu0 %v23352_v41 }
 0x41f   :  { %11455 = vmatpush2.bf16.msra.mxu1 %v23356_v49  ;;  %11230 = vmatprep.subr.bf16.mxu0 %v23358_v35  ;;  %v23384_v49 = vld [vmem:[#allocation6 + $0x80] ss:$8 sps:$4 sm:$0xff]  }
 0x420   :  { %11456 = vmatprep.subr.bf16.mxu1 %v23361_v9  ;;  %25170 = vst [vmem:[#allocation33_spill] sm:$0xff] %v23384_v49  ;;  %v11511_v9 = vcombine.high %v23375_v53, %v23375_v53 }
 0x422   :  { %11231 = vmatpush2.bf16.msra.mxu0 %v23364_v5  ;;  %v23408_v28 = vrot.slane %v11511_v9, %v20129_v26 }
 0x423   :  { %11457 = vmatpush2.bf16.msra.mxu1 %v23368_v20  ;;  %11232 = vmatprep.subr.bf16.mxu0 %v23370_v57  ;;  %v11875_v20 = vcombine.high %v23380_v25, %v23380_v25 }
 0x424   :  { %11458 = vmatprep.subr.bf16.mxu1 %v23373_v47  ;;  %v23403_v47 = vld [vmem:[#allocation6 + $0x264] ss:$8 sps:$4 sm:$0xff]  }
 0x425   :  { %v11889_v19 = vrot.slane %v11875_v20, %v20129_v26  ;;  %v23427_v20 = vld [vmem:[#allocation6 + $0x250] ss:$8 sps:$4 sm:$0xff]  }
 0x426   :  { %11233 = vmatpush2.bf16.msra.mxu0 %v23378_v14 }
 0x427   :  { %11459 = vmatpush2.bf16.msra.mxu1 %v23384_v49  ;;  %11688 = vmatprep.subr.bf16.mxu0 %v23386_v54  ;;  %v23414_v49 = vld [vmem:[#allocation6 + $0x260] ss:$8 sps:$4 sm:$0xff]  }
 0x428   :  { %12052 = vmatprep.subr.bf16.mxu1 %v23164_v12 }
 0x429   :  { %v23405_v37 = vpop.f32.mrf.mxu0  ;;  %11235 = vmatmul.mubr.bf16.vlgmr.msra.gmra.mxu0 %v11032_v58 }
 0x42a   :  { %v23410_v31 = vpop.f32.mrf.mxu1  ;;  %11461 = vmatmul.mubr.bf16.vlgmr.msra.gmra.mxu1 %v11258_v60  ;;  %11689 = vmatpush1.bf16.msra.mxu0 %v23394_v39 }
 0x42b   :  { %11720 = vmatprep.mubr.bf16.mxu0 %v23408_v28  ;;  %12053 = vmatpush1.bf16.msra.mxu1 %v23173_v21  ;;  %v23418_v12 = vpop.f32.mrf.mxu0 }
 0x42c   :  { %12084 = vmatprep.mubr.bf16.mxu1 %v11889_v19  ;;  %v23422_v58 = vpop.f32.mrf.mxu1  ;;  %11690 = vmatprep.subr.bf16.mxu0 %v23403_v47 }
 0x42d   :  { %v9541_v60 = vpop.f32.mrf.mxu0  ;;  %12054 = vmatprep.subr.bf16.mxu1 %v23185_v4  ;;  %v23439_v4 = vld [vmem:[#allocation6 + $0x234] ss:$8 sps:$4 sm:$0xff]  }
 0x42e   :  { %v9767_v9 = vpop.f32.mrf.mxu1  ;;  %11691 = vmatpush1.bf16.msra.mxu0 %v23414_v49  ;;  %v23435_v60 = vld [vmem:[#allocation6 + $0x240] ss:$8 sps:$4 sm:$0xff]  }
 0x42f   :  { %12055 = vmatpush1.bf16.msra.mxu1 %v23195_v43  ;;  %v9542_v21 = vpop.f32.mrf.mxu0  ;;  %11692 = vmatprep.subr.bf16.mxu0 %v23420_v48  ;;  %v23443_v43 = vld [vmem:[#allocation6 + $0x230] ss:$8 sps:$4 sm:$0xff]   ;;  %v23533_v9 = vld.sshfl [vmem:[#allocation3 + $0x8] sm:$0x11 pattern:$0x75316420] }
 0x430   :  { %v9768_v19 = vpop.f32.mrf.mxu1  ;;  %12056 = vmatprep.subr.bf16.mxu1 %v23200_v38  ;;  %v23447_v38 = vld [vmem:[#allocation6 + $0x224] ss:$8 sps:$4 sm:$0xff]  }
 0x432   :  { %11693 = vmatpush1.bf16.msra.mxu0 %v23427_v20 }
 0x433   :  { %12057 = vmatpush1.bf16.msra.mxu1 %v23212_v46  ;;  %11694 = vmatprep.subr.bf16.mxu0 %v23431_v40  ;;  %v23451_v46 = vld [vmem:[#allocation6 + $0x220] ss:$8 sps:$4 sm:$0xff]  }
 0x434   :  { %12058 = vmatprep.subr.bf16.mxu1 %v23222_v2  ;;  %v23455_v2 = vld [vmem:[#allocation6 + $0x214] ss:$8 sps:$4 sm:$0xff]  }
 0x436   :  { %11695 = vmatpush1.bf16.msra.mxu0 %v23435_v60 }
 0x437   :  { %12059 = vmatpush1.bf16.msra.mxu1 %v23229_v10  ;;  %11696 = vmatprep.subr.bf16.mxu0 %v23439_v4  ;;  %v23459_v10 = vld [vmem:[#allocation6 + $0x210] ss:$8 sps:$4 sm:$0xff]  }
 0x438   :  { %12060 = vmatprep.subr.bf16.mxu1 %v23237_v15  ;;  %v23463_v15 = vld [vmem:[#allocation6 + $0x204] ss:$8 sps:$4 sm:$0xff]  }
 0x43a   :  { %11697 = vmatpush1.bf16.msra.mxu0 %v23443_v43 }
 0x43b   :  { %12061 = vmatpush1.bf16.msra.mxu1 %v23243_v42  ;;  %11698 = vmatprep.subr.bf16.mxu0 %v23447_v38  ;;  %v23467_v42 = vld [vmem:[#allocation6 + $0x200] ss:$8 sps:$4 sm:$0xff]  }
 0x43c   :  { %12062 = vmatprep.subr.bf16.mxu1 %v23249_v0  ;;  %v23471_v0 = vld [vmem:[#allocation6 + $0x2f4] ss:$8 sps:$4 sm:$0xff]  }
 0x43e   :  { %11699 = vmatpush1.bf16.msra.mxu0 %v23451_v46 }
 0x43f   :  { %12063 = vmatpush1.bf16.msra.mxu1 %v23255_v29  ;;  %11700 = vmatprep.subr.bf16.mxu0 %v23455_v2  ;;  %v23475_v29 = vld [vmem:[#allocation6 + $0x2f0] ss:$8 sps:$4 sm:$0xff]  }
 0x440   :  { %12064 = vmatprep.subr.bf16.mxu1 %v23262_v11  ;;  %v23479_v11 = vld [vmem:[#allocation6 + $0x2e4] ss:$8 sps:$4 sm:$0xff]  }
 0x442   :  { %11701 = vmatpush1.bf16.msra.mxu0 %v23459_v10 }
 0x443   :  { %12065 = vmatpush1.bf16.msra.mxu1 %v23268_v13  ;;  %11702 = vmatprep.subr.bf16.mxu0 %v23463_v15  ;;  %v23483_v13 = vld [vmem:[#allocation6 + $0x2e0] ss:$8 sps:$4 sm:$0xff]  }
 0x444   :  { %12066 = vmatprep.subr.bf16.mxu1 %v23274_v63  ;;  %v23487_v63 = vld [vmem:[#allocation6 + $0x2d4] ss:$8 sps:$4 sm:$0xff]  }
 0x446   :  { %11703 = vmatpush1.bf16.msra.mxu0 %v23467_v42 }
 0x447   :  { %12067 = vmatpush1.bf16.msra.mxu1 %v23280_v32  ;;  %11704 = vmatprep.subr.bf16.mxu0 %v23471_v0  ;;  %v23491_v32 = vld [vmem:[#allocation6 + $0x2d0] ss:$8 sps:$4 sm:$0xff]  }
 0x448   :  { %12068 = vmatprep.subr.bf16.mxu1 %v23286_v36  ;;  %v23495_v36 = vld [vmem:[#allocation6 + $0x2c4] ss:$8 sps:$4 sm:$0xff]  }
 0x44a   :  { %11705 = vmatpush2.bf16.msra.mxu0 %v23475_v29 }
 0x44b   :  { %12069 = vmatpush2.bf16.msra.mxu1 %v23292_v56  ;;  %11706 = vmatprep.subr.bf16.mxu0 %v23479_v11  ;;  %v23499_v56 = vld [vmem:[#allocation6 + $0x2c0] ss:$8 sps:$4 sm:$0xff]  }
 0x44c   :  { %12070 = vmatprep.subr.bf16.mxu1 %v23298_v33  ;;  %v23503_v33 = vld [vmem:[#allocation6 + $0x2b4] ss:$8 sps:$4 sm:$0xff]  }
 0x44e   :  { %11707 = vmatpush2.bf16.msra.mxu0 %v23483_v13 }
 0x44f   :  { %12071 = vmatpush2.bf16.msra.mxu1 %v23304_v52  ;;  %11708 = vmatprep.subr.bf16.mxu0 %v23487_v63  ;;  %v23507_v52 = vld [vmem:[#allocation6 + $0x2b0] ss:$8 sps:$4 sm:$0xff]  }
 0x450   :  { %12072 = vmatprep.subr.bf16.mxu1 %v23310_v17  ;;  %v23511_v17 = vld [vmem:[#allocation6 + $0x2a4] ss:$8 sps:$4 sm:$0xff]  }
 0x452   :  { %11709 = vmatpush2.bf16.msra.mxu0 %v23491_v32 }
 0x453   :  { %12073 = vmatpush2.bf16.msra.mxu1 %v23316_v34  ;;  %11710 = vmatprep.subr.bf16.mxu0 %v23495_v36  ;;  %v23515_v34 = vld [vmem:[#allocation6 + $0x2a0] ss:$8 sps:$4 sm:$0xff]  }
 0x454   :  { %12074 = vmatprep.subr.bf16.mxu1 %v23322_v50  ;;  %v23519_v50 = vld [vmem:[#allocation6 + $0x294] ss:$8 sps:$4 sm:$0xff]  }
 0x456   :  { %11711 = vmatpush2.bf16.msra.mxu0 %v23499_v56 }
 0x457   :  { %12075 = vmatpush2.bf16.msra.mxu1 %v23328_v16  ;;  %11712 = vmatprep.subr.bf16.mxu0 %v23503_v33  ;;  %v23523_v16 = vld [vmem:[#allocation6 + $0x290] ss:$8 sps:$4 sm:$0xff]  }
 0x458   :  { %12076 = vmatprep.subr.bf16.mxu1 %v23334_v44  ;;  %v23527_v44 = vld [vmem:[#allocation6 + $0x284] ss:$8 sps:$4 sm:$0xff]  }
 0x45a   :  { %11713 = vmatpush2.bf16.msra.mxu0 %v23507_v52 }
 0x45b   :  { %12077 = vmatpush2.bf16.msra.mxu1 %v23340_v6  ;;  %11714 = vmatprep.subr.bf16.mxu0 %v23511_v17  ;;  %v23531_v6 = vld [vmem:[#allocation6 + $0x280] ss:$8 sps:$4 sm:$0xff]  }
 0x45c   :  { %12078 = vmatprep.subr.bf16.mxu1 %v23346_v1  ;;  %v10031_v1 = vld [vmem:[%s25151_s1] sm:$0x3] }
 0x45d   :  { %v10036_v21 = vrot.slane %v10031_v1, %v20192_v45 }
 0x45e   :  { %11715 = vmatpush2.bf16.msra.mxu0 %v23515_v34 }
 0x45f   :  { %12079 = vmatpush2.bf16.msra.mxu1 %v23352_v41  ;;  %11716 = vmatprep.subr.bf16.mxu0 %v23519_v50  ;;  %v12360_v41 = vcombine.high %v23533_v9, %v23533_v9 }
 0x460   :  { %12080 = vmatprep.subr.bf16.mxu1 %v23358_v35  ;;  %v23546_v35 = vrot.slane %v23375_v53, %v20129_v26 }
 0x461   :  { %v23558_v53 = vrot.slane %v12360_v41, %v20129_v26 }
 0x462   :  { %11717 = vmatpush2.bf16.msra.mxu0 %v23523_v16 }
 0x463   :  { %12081 = vmatpush2.bf16.msra.mxu1 %v23364_v5  ;;  %11718 = vmatprep.subr.bf16.mxu0 %v23527_v44  ;;  %v11882_v5 = vrot.slane %v23380_v25, %v20129_v26 }
 0x464   :  { %12082 = vmatprep.subr.bf16.mxu1 %v23370_v57  ;;  %v9764_v57 = vadd.f32 %v23410_v31, %v23405_v37  ;;  %v10051_v31 = vld [vmem:[%s25062_s5] sm:$0x3] }
 0x466   :  { %11719 = vmatpush2.bf16.msra.mxu0 %v23531_v6 }
 0x467   :  { %12083 = vmatpush2.bf16.msra.mxu1 %v23378_v14  ;;  %12278 = vmatprep.subr.bf16.mxu0 %v23167_v30  ;;  %v9766_v14 = vadd.f32 %v23422_v58, %v23418_v12 }
 0x468   :  { %12537 = vmatprep.subr.bf16.mxu1 %v23386_v54  ;;  %v10040_v54 = vrot.slane %v10031_v1, %v20208_v51 }
 0x469   :  { %v10022_v19 = vpop.f32.mrf.mxu0  ;;  %11721 = vmatmul.mubr.bf16.vlgmr.msra.gmra.mxu0 %v23546_v35 }
 0x46a   :  { %v10029_v30 = vadd.f32 %v10022_v19, %v9764_v57  ;;  %v23565_v37 = vpop.f32.mrf.mxu1  ;;  %12085 = vmatmul.mubr.bf16.vlgmr.msra.gmra.mxu1 %v11882_v5  ;;  %12279 = vmatpush1.bf16.msra.mxu0 %v23180_v55  ;;  %v10056_v57 = vrot.slane %v10051_v31, %v20192_v45 }
 0x46b   :  { %12310 = vmatprep.mubr.bf16.mxu0 %v23408_v28  ;;  %12538 = vmatpush1.bf16.msra.mxu1 %v23394_v39  ;;  %v10024_v25 = vpop.f32.mrf.mxu0  ;;  %v10065_v39 = vld [vmem:[%s25063_s6] sm:$0x3] }
 0x46c   :  { %v10043_v41 = vadd.f32 %v10036_v21, %v10029_v30  ;;  %12569 = vmatprep.mubr.bf16.mxu1 %v23558_v53  ;;  %v10030_v12 = vadd.f32 %v10024_v25, %v9766_v14  ;;  %v23572_v58 = vpop.f32.mrf.mxu1  ;;  %12280 = vmatprep.subr.bf16.mxu0 %v23187_v18  ;;  %v10060_v21 = vrot.slane %v10051_v31, %v20208_v51 }
 0x46d   :  { %v10026_v5 = vpop.f32.mrf.mxu0  ;;  %12539 = vmatprep.subr.bf16.mxu1 %v23403_v47  ;;  %v10070_v25 = vrot.slane %v10065_v39, %v20192_v45 }
 0x46e   :  { %vm10045_vm13 = vcmp.gt.f32.partialorder %v10043_v41, 0.0  ;;  %v10047_v55 = vmul.f32 0.2, %v10043_v41  ;;  %v10044_v28 = vadd.f32 %v10040_v54, %v10030_v12  ;;  %v10390_v1 = vpop.f32.mrf.mxu1  ;;  %12281 = vmatpush1.bf16.msra.mxu0 %v23198_v8  ;;  %v10074_v54 = vrot.slane %v10065_v39, %v20208_v51 }
 0x46f   :  { %12540 = vmatpush1.bf16.msra.mxu1 %v23414_v49  ;;  %v10027_v18 = vpop.f32.mrf.mxu0  ;;  %12282 = vmatprep.subr.bf16.mxu0 %v23209_v27 }
 0x470   :  { %v10049_v19 = vsel %vm10045_vm13, %v10043_v41, %v10047_v55  ;;  %vm10046_vm14 = vcmp.gt.f32.partialorder %v10044_v28, 0.0  ;;  %v10048_v47 = vmul.f32 0.2, %v10044_v28  ;;  %v10391_v14 = vpop.f32.mrf.mxu1  ;;  %12541 = vmatprep.subr.bf16.mxu1 %v23420_v48  ;;  %v23678_v41 = vld [vmem:[#allocation6 + $0x154] ss:$8 sps:$4 sm:$0xff]   ;;  %vm15798_vm13 = vcmask 74752  }
 0x471   :  { %v10063_v30 = vmul.f32 %v10056_v57, %v10049_v19 }
 0x472   :  { %v10050_v12 = vsel %vm10046_vm14, %v10044_v28, %v10048_v47  ;;  %12283 = vmatpush1.bf16.msra.mxu0 %v23220_v7  ;;  %v23687_v28 = vld [vmem:[#allocation6 + $0x54] ss:$8 sps:$4 sm:$0xff]   ;;  %v23691_v47 = vld [vmem:[#allocation6 + $0x150] ss:$8 sps:$4 sm:$0xff]   ;;  %vm15788_vm14 = vcmask 1024  }
 0x473   :  { %v10064_v8 = vmul.f32 %v10060_v21, %v10050_v12  ;;  %12542 = vmatpush1.bf16.msra.mxu1 %v23427_v20  ;;  %12284 = vmatprep.subr.bf16.mxu0 %v23225_v23  ;;  %v10077_v27 = vadd.f32 %v10070_v25, %v10063_v30  ;;  %v25171_v23 = vld [vmem:[#allocation15_spill] sm:$0xff]  ;;  %v23699_v30 = vld [vmem:[#allocation6 + $0x50] ss:$8 sps:$4 sm:$0xff]  }
 0x474   :  { %12543 = vmatprep.subr.bf16.mxu1 %v23431_v40  ;;  %v25178_v40 = vld [vmem:[#allocation22_spill] sm:$0xff]  ;;  %v25179_v20 = vld [vmem:[#allocation23_spill] sm:$0xff] }
 0x475   :  { %v10078_v49 = vadd.f32 %v10074_v54, %v10064_v8  ;;  %v23701_v25 = vld [vmem:[#allocation6 + $0x144] ss:$8 sps:$4 sm:$0xff]  }
 0x476   :  { %12285 = vmatpush1.bf16.msra.mxu0 %v23235_v3  ;;  %v25172_v3 = vld [vmem:[#allocation16_spill] sm:$0xff] }
 0x477   :  { %v17431_v48 = vpack.c.bf16 %v10078_v49, %v10077_v27  ;;  %12544 = vmatpush1.bf16.msra.mxu1 %v23435_v60  ;;  %12286 = vmatprep.subr.bf16.mxu0 %v23240_v24  ;;  %v25173_v24 = vld [vmem:[#allocation17_spill] sm:$0xff]  ;;  %v25180_v60 = vld [vmem:[#allocation24_spill] sm:$0xff] }
 0x478   :  { %12545 = vmatprep.subr.bf16.mxu1 %v23439_v4  ;;  %v25181_v4 = vld [vmem:[#allocation25_spill] sm:$0xff]  ;;  %v23704_v27 = vld [vmem:[#allocation6 + $0x44] ss:$8 sps:$4 sm:$0xff]  }
 0x479   :  { %v10090_v7 = vrot.slane %v17431_v48, %v20129_v26 }
 0x47a   :  { %12287 = vmatpush1.bf16.msra.mxu0 %v23247_v59  ;;  %v25174_v59 = vld [vmem:[#allocation18_spill] sm:$0xff] }
 0x47b   :  { %17432 = vst.sshfl [vmem:[#allocation3 + $0xe] sm:$0x5 pattern:$0x73625140] %v10090_v7  ;;  %12546 = vmatpush1.bf16.msra.mxu1 %v23443_v43  ;;  %12288 = vmatprep.subr.bf16.mxu0 %v23252_v62  ;;  %v25175_v62 = vld [vmem:[#allocation19_spill] sm:$0xff]  ;;  %v25182_v43 = vld [vmem:[#allocation26_spill] sm:$0xff] }
 0x47c   :  { %12547 = vmatprep.subr.bf16.mxu1 %v23447_v38  ;;  %v25183_v38 = vld [vmem:[#allocation27_spill] sm:$0xff] }
 0x47e   :  { %12289 = vmatpush1.bf16.msra.mxu0 %v23260_v22  ;;  %v25176_v22 = vld [vmem:[#allocation20_spill] sm:$0xff] }
 0x47f   :  { %12548 = vmatpush1.bf16.msra.mxu1 %v23451_v46  ;;  %12290 = vmatprep.subr.bf16.mxu0 %v23265_v61  ;;  %v25177_v61 = vld [vmem:[#allocation21_spill] sm:$0xff]  ;;  %v25184_v46 = vld [vmem:[#allocation28_spill] sm:$0xff] }
 0x480   :  { %12549 = vmatprep.subr.bf16.mxu1 %v23455_v2  ;;  %v25185_v2 = vld [vmem:[#allocation29_spill] sm:$0xff] }
 0x482   :  { %12291 = vmatpush1.bf16.msra.mxu0 %v25171_v23  ;;  %v23708_v23 = vld [vmem:[#allocation6 + $0x140] ss:$8 sps:$4 sm:$0xff]  }
 0x483   :  { %12550 = vmatpush1.bf16.msra.mxu1 %v23459_v10  ;;  %12292 = vmatprep.subr.bf16.mxu0 %v25172_v3  ;;  %v25186_v10 = vld [vmem:[#allocation30_spill] sm:$0xff] }
 0x484   :  { %12551 = vmatprep.subr.bf16.mxu1 %v23463_v15  ;;  %v25187_v15 = vld [vmem:[#allocation31_spill] sm:$0xff] }
 0x486   :  { %12293 = vmatpush1.bf16.msra.mxu0 %v25173_v24 }
 0x487   :  { %12552 = vmatpush1.bf16.msra.mxu1 %v23467_v42  ;;  %12294 = vmatprep.subr.bf16.mxu0 %v25174_v59  ;;  %v23637_v42 = vld.sshfl [vmem:[#allocation3 + $0xa] sm:$0x11 pattern:$0x75316420] }
 0x488   :  { %12553 = vmatprep.subr.bf16.mxu1 %v23471_v0  ;;  %v25188_v0 = vld [vmem:[#allocation32_spill] sm:$0xff] }
 0x48a   :  { %12295 = vmatpush2.bf16.msra.mxu0 %v25175_v62  ;;  %v23714_v62 = vld [vmem:[#allocation6 + $0x40] ss:$8 sps:$4 sm:$0xff]  }
 0x48b   :  { %12554 = vmatpush2.bf16.msra.mxu1 %v23475_v29  ;;  %12296 = vmatprep.subr.bf16.mxu0 %v25176_v22  ;;  %v23641_v29 = vld [vmem:[#allocation6 + $0x174] ss:$8 sps:$4 sm:$0xff]  }
 0x48c   :  { %12555 = vmatprep.subr.bf16.mxu1 %v23479_v11  ;;  %v23644_v11 = vld [vmem:[#allocation6 + $0x74] ss:$8 sps:$4 sm:$0xff]  }
 0x48d   :  { %v23716_v22 = vld [vmem:[#allocation6 + $0x134] ss:$8 sps:$4 sm:$0xff]  }
 0x48e   :  { %12297 = vmatpush2.bf16.msra.mxu0 %v25177_v61 }
 0x48f   :  { %12556 = vmatpush2.bf16.msra.mxu1 %v23483_v13  ;;  %12298 = vmatprep.subr.bf16.mxu0 %v25178_v40  ;;  %v12724_v13 = vcombine.high %v23637_v42, %v23637_v42  ;;  %v23719_v40 = vld [vmem:[#allocation6 + $0x34] ss:$8 sps:$4 sm:$0xff]  }
 0x490   :  { %12557 = vmatprep.subr.bf16.mxu1 %v23487_v63  ;;  %v25189_v63 = vld [vmem:[#allocation33_spill] sm:$0xff] }
 0x492   :  { %12299 = vmatpush2.bf16.msra.mxu0 %v25179_v20 }
 0x493   :  { %12558 = vmatpush2.bf16.msra.mxu1 %v23491_v32  ;;  %12300 = vmatprep.subr.bf16.mxu0 %v25180_v60  ;;  %v23649_v32 = vld [vmem:[#allocation6 + $0x170] ss:$8 sps:$4 sm:$0xff]  }
 0x494   :  { %12559 = vmatprep.subr.bf16.mxu1 %v23495_v36  ;;  %v10880_v36 = vld [vmem:[%s25151_s1] sm:$0x3] }
 0x495   :  { %v10889_v39 = vrot.slane %v10880_v36, %v20208_v51  ;;  %v23722_v60 = vld [vmem:[#allocation6 + $0x130] ss:$8 sps:$4 sm:$0xff]  }
 0x496   :  { %12301 = vmatpush2.bf16.msra.mxu0 %v25181_v4 }
 0x497   :  { %12560 = vmatpush2.bf16.msra.mxu1 %v23499_v56  ;;  %12302 = vmatprep.subr.bf16.mxu0 %v25182_v43  ;;  %v23656_v56 = vld [vmem:[#allocation6 + $0x70] ss:$8 sps:$4 sm:$0xff]  }
 0x498   :  { %12561 = vmatprep.subr.bf16.mxu1 %v23503_v33  ;;  %v23660_v33 = vrot.slane %v23533_v9, %v20129_v26  ;;  %v23673_v9 = vld [vmem:[#allocation6 + $0x160] ss:$8 sps:$4 sm:$0xff]  }
 0x49a   :  { %12303 = vmatpush2.bf16.msra.mxu0 %v25183_v38  ;;  %v23726_v38 = vld [vmem:[#allocation6 + $0x30] ss:$8 sps:$4 sm:$0xff]  }
 0x49b   :  { %12562 = vmatpush2.bf16.msra.mxu1 %v23507_v52  ;;  %12304 = vmatprep.subr.bf16.mxu0 %v25184_v46  ;;  %v23663_v52 = vld [vmem:[#allocation6 + $0x164] ss:$8 sps:$4 sm:$0xff]  }
 0x49c   :  { %12563 = vmatprep.subr.bf16.mxu1 %v23511_v17  ;;  %v23728_v46 = vld [vmem:[#allocation6 + $0x124] ss:$8 sps:$4 sm:$0xff]  }
 0x49e   :  { %12305 = vmatpush2.bf16.msra.mxu0 %v25185_v2  ;;  %v23731_v2 = vld [vmem:[#allocation6 + $0x24] ss:$8 sps:$4 sm:$0xff]  }
 0x49f   :  { %12564 = vmatpush2.bf16.msra.mxu1 %v23515_v34  ;;  %12306 = vmatprep.subr.bf16.mxu0 %v25186_v10  ;;  %v12738_v34 = vrot.slane %v12724_v13, %v20129_v26  ;;  %v23739_v13 = vld [vmem:[#allocation6 + $0x20] ss:$8 sps:$4 sm:$0xff]  }
 0x4a0   :  { %12565 = vmatprep.subr.bf16.mxu1 %v23519_v50  ;;  %v23667_v50 = vld [vmem:[#allocation6 + $0x64] ss:$8 sps:$4 sm:$0xff]  }
 0x4a2   :  { %12307 = vmatpush2.bf16.msra.mxu0 %v25187_v15  ;;  %v23734_v15 = vld [vmem:[#allocation6 + $0x120] ss:$8 sps:$4 sm:$0xff]  }
 0x4a3   :  { %12566 = vmatpush2.bf16.msra.mxu1 %v23523_v16  ;;  %12308 = vmatprep.subr.bf16.mxu0 %v25188_v0 }
 0x4a4   :  { %12567 = vmatprep.subr.bf16.mxu1 %v23527_v44 }
 0x4a6   :  { %12309 = vmatpush2.bf16.msra.mxu0 %v25189_v63  ;;  %v23741_v63 = vld [vmem:[#allocation6 + $0x114] ss:$8 sps:$4 sm:$0xff]  }
 0x4a7   :  { %12568 = vmatpush2.bf16.msra.mxu1 %v23531_v6  ;;  %12901 = vmatprep.subr.bf16.mxu0 %v23641_v29  ;;  %v10885_v6 = vrot.slane %v10880_v36, %v20192_v45  ;;  %v23744_v36 = vld [vmem:[#allocation6 + $0x14] ss:$8 sps:$4 sm:$0xff]  }
 0x4a8   :  { %13127 = vmatprep.subr.bf16.mxu1 %v23644_v11 }
 0x4a9   :  { %v10612_v17 = vpop.f32.mrf.mxu0  ;;  %12311 = vmatmul.mubr.bf16.vlgmr.msra.gmra.mxu0 %v23546_v35  ;;  %v23676_v35 = vld [vmem:[#allocation6 + $0x60] ss:$8 sps:$4 sm:$0xff]  }
 0x4aa   :  { %v10613_v16 = vadd.f32 %v10612_v17, %v23565_v37  ;;  %v10871_v44 = vpop.f32.mrf.mxu1  ;;  %12570 = vmatmul.mubr.bf16.vlgmr.msra.gmra.mxu1 %v23660_v33  ;;  %12902 = vmatpush1.bf16.msra.mxu0 %v23649_v32  ;;  %v10900_v37 = vld [vmem:[%s25062_s5] sm:$0x3] }
 0x4ab   :  { %12933 = vmatprep.mubr.bf16.mxu0 %v12738_v34  ;;  %13128 = vmatpush1.bf16.msra.mxu1 %v23656_v56  ;;  %v10614_v31 = vpop.f32.mrf.mxu0  ;;  %v10909_v49 = vrot.slane %v10900_v37, %v20208_v51  ;;  %v23747_v17 = vld [vmem:[#allocation6 + $0x110] ss:$8 sps:$4 sm:$0xff]  }
 0x4ac   :  { %v10878_v57 = vadd.f32 %v10871_v44, %v10613_v16  ;;  %13159 = vmatprep.mubr.bf16.mxu1 %v23558_v53  ;;  %v10615_v5 = vadd.f32 %v10614_v31, %v23572_v58  ;;  %v10873_v55 = vpop.f32.mrf.mxu1  ;;  %12903 = vmatprep.subr.bf16.mxu0 %v23663_v52  ;;  %v10905_v53 = vrot.slane %v10900_v37, %v20192_v45  ;;  %v10914_v58 = vld [vmem:[%s25063_s6] sm:$0x3]  ;;  %v23753_v16 = vld [vmem:[#allocation6 + $0x104] ss:$8 sps:$4 sm:$0xff]   ;;  %v23763_v31 = vld [vmem:[#allocation6] ss:$8 sps:$4 sm:$0xff]  }
 0x4ad   :  { %v10616_v1 = vpop.f32.mrf.mxu0  ;;  %13129 = vmatprep.subr.bf16.mxu1 %v23667_v50  ;;  %v10919_v24 = vrot.slane %v10914_v58, %v20192_v45  ;;  %v10923_v59 = vrot.slane %v10914_v58, %v20208_v51  ;;  %v23751_v34 = vld [vmem:[#allocation6 + $0x10] ss:$8 sps:$4 sm:$0xff]   ;;  %v23756_v44 = vld [vmem:[#allocation6 + $0x4] ss:$8 sps:$4 sm:$0xff]   ;;  %25192 = vst [vmem:[#allocation17_spill] sm:$0xff] %v23763_v31 }
 0x4ae   :  { %v10892_v21 = vadd.f32 %v10885_v6, %v10878_v57  ;;  %v10879_v18 = vadd.f32 %v10873_v55, %v10615_v5  ;;  %v10875_v19 = vpop.f32.mrf.mxu1  ;;  %12904 = vmatpush1.bf16.msra.mxu0 %v23673_v9  ;;  %25190 = vst [vmem:[#allocation15_spill] sm:$0xff] %v23751_v34  ;;  %25191 = vst [vmem:[#allocation16_spill] sm:$0xff] %v23756_v44  ;;  %v23759_v6 = vld [vmem:[#allocation6 + $0x100] ss:$8 sps:$4 sm:$0xff]   ;;  %v23765_v57 = vld [vmem:[#allocation6 + $0x1f4] ss:$8 sps:$4 sm:$0xff]  }
 0x4af   :  { %13130 = vmatpush1.bf16.msra.mxu1 %v23676_v35  ;;  %v10617_v14 = vpop.f32.mrf.mxu0  ;;  %12905 = vmatprep.subr.bf16.mxu0 %v23678_v41  ;;  %v23768_v37 = vld [vmem:[#allocation6 + $0xf4] ss:$8 sps:$4 sm:$0xff]   ;;  %v23771_v5 = vld [vmem:[#allocation6 + $0x1f0] ss:$8 sps:$4 sm:$0xff]   ;;  %v23780_v1 = vld [vmem:[#allocation6 + $0xe4] ss:$8 sps:$4 sm:$0xff]  }
 0x4b0   :  { %vm10894_vm15 = vcmp.gt.f32.partialorder %v10892_v21, 0.0  ;;  %v10896_v54 = vmul.f32 0.2, %v10892_v21  ;;  %v10893_v12 = vadd.f32 %v10889_v39, %v10879_v18  ;;  %v10876_v8 = vpop.f32.mrf.mxu1  ;;  %13131 = vmatprep.subr.bf16.mxu1 %v23687_v28  ;;  %25193 = vst [vmem:[#allocation18_spill] sm:$0xff] %v23768_v37  ;;  %v23775_v55 = vld [vmem:[#allocation6 + $0xf0] ss:$8 sps:$4 sm:$0xff]  }
 0x4b1   :  { %25194 = vst [vmem:[#allocation19_spill] sm:$0xff] %v23775_v55  ;;  %v23777_v39 = vld [vmem:[#allocation6 + $0x1e4] ss:$8 sps:$4 sm:$0xff]   ;;  %25195 = vst [vmem:[#allocation20_spill] sm:$0xff] %v23780_v1  ;;  %v23787_v18 = vld [vmem:[#allocation6 + $0xe0] ss:$8 sps:$4 sm:$0xff]  }
 0x4b2   :  { %v10898_v48 = vsel %vm10894_vm15, %v10892_v21, %v10896_v54  ;;  %vm10895_vm0 = vcmp.gt.f32.partialorder %v10893_v12, 0.0  ;;  %v10897_v7 = vmul.f32 0.2, %v10893_v12  ;;  %12906 = vmatpush1.bf16.msra.mxu0 %v23691_v47  ;;  %v23783_v21 = vld [vmem:[#allocation6 + $0x1e0] ss:$8 sps:$4 sm:$0xff]   ;;  %25196 = vst [vmem:[#allocation21_spill] sm:$0xff] %v23787_v18 }
 0x4b3   :  { %v10912_v3 = vmul.f32 %v10905_v53, %v10898_v48  ;;  %13132 = vmatpush1.bf16.msra.mxu1 %v23699_v30  ;;  %12907 = vmatprep.subr.bf16.mxu0 %v23701_v25  ;;  %v23789_v19 = vld [vmem:[#allocation6 + $0x1d4] ss:$8 sps:$4 sm:$0xff]   ;;  %v23795_v58 = vld [vmem:[#allocation6 + $0x1d0] ss:$8 sps:$4 sm:$0xff]   ;;  %v23801_v54 = vld [vmem:[#allocation6 + $0x1c4] ss:$8 sps:$4 sm:$0xff]  }
 0x4b4   :  { %v10899_v61 = vsel %vm10895_vm0, %v10893_v12, %v10897_v7  ;;  %13133 = vmatprep.subr.bf16.mxu1 %v23704_v27  ;;  %v23792_v53 = vld [vmem:[#allocation6 + $0xd4] ss:$8 sps:$4 sm:$0xff]   ;;  %v23799_v14 = vld [vmem:[#allocation6 + $0xd0] ss:$8 sps:$4 sm:$0xff]   ;;  %v23804_v12 = vld [vmem:[#allocation6 + $0xc4] ss:$8 sps:$4 sm:$0xff]  }
 0x4b5   :  { %v10913_v20 = vmul.f32 %v10909_v49, %v10899_v61  ;;  %v10926_v4 = vadd.f32 %v10919_v24, %v10912_v3  ;;  %25197 = vst [vmem:[#allocation22_spill] sm:$0xff] %v23792_v53  ;;  %25198 = vst [vmem:[#allocation23_spill] sm:$0xff] %v23799_v14  ;;  %v23807_v8 = vld [vmem:[#allocation6 + $0x1c0] ss:$8 sps:$4 sm:$0xff]   ;;  %v23813_v48 = vld [vmem:[#allocation6 + $0x1b4] ss:$8 sps:$4 sm:$0xff]  }
 0x4b6   :  { %12908 = vmatpush1.bf16.msra.mxu0 %v23708_v23  ;;  %25199 = vst [vmem:[#allocation24_spill] sm:$0xff] %v23804_v12  ;;  %v23811_v49 = vld [vmem:[#allocation6 + $0xc0] ss:$8 sps:$4 sm:$0xff]   ;;  %v23816_v7 = vld [vmem:[#allocation6 + $0xb4] ss:$8 sps:$4 sm:$0xff]  }
 0x4b7   :  { %v10927_v43 = vadd.f32 %v10923_v59, %v10913_v20  ;;  %13134 = vmatpush1.bf16.msra.mxu1 %v23714_v62  ;;  %12909 = vmatprep.subr.bf16.mxu0 %v23716_v22  ;;  %25200 = vst [vmem:[#allocation25_spill] sm:$0xff] %v23811_v49  ;;  %25201 = vst [vmem:[#allocation26_spill] sm:$0xff] %v23816_v7  ;;  %v23819_v3 = vld [vmem:[#allocation6 + $0x1b0] ss:$8 sps:$4 sm:$0xff]   ;;  %v23825_v59 = vld [vmem:[#allocation6 + $0x1a4] ss:$8 sps:$4 sm:$0xff]  }
 0x4b8   :  { %13135 = vmatprep.subr.bf16.mxu1 %v23719_v40  ;;  %v23823_v24 = vld [vmem:[#allocation6 + $0xb0] ss:$8 sps:$4 sm:$0xff]   ;;  %v23828_v61 = vld [vmem:[#allocation6 + $0xa4] ss:$8 sps:$4 sm:$0xff]   ;;  %v23831_v20 = vld [vmem:[#allocation6 + $0x1a0] ss:$8 sps:$4 sm:$0xff]  }
 0x4b9   :  { %v17596_v10 = vpack.c.bf16 %v10927_v43, %v10926_v4  ;;  %25202 = vst [vmem:[#allocation27_spill] sm:$0xff] %v23823_v24  ;;  %25203 = vst [vmem:[#allocation28_spill] sm:$0xff] %v23828_v61  ;;  %v23835_v4 = vld [vmem:[#allocation6 + $0xa0] ss:$8 sps:$4 sm:$0xff]   ;;  %v23837_v43 = vld [vmem:[#allocation6 + $0x194] ss:$8 sps:$4 sm:$0xff]  }
 0x4ba   :  { %12910 = vmatpush1.bf16.msra.mxu0 %v23722_v60  ;;  %25204 = vst [vmem:[#allocation29_spill] sm:$0xff] %v23835_v4 }
 0x4bb   :  { %v10939_v0 = vrot.slane %v17596_v10, %v20129_v26  ;;  %13136 = vmatpush1.bf16.msra.mxu1 %v23726_v38  ;;  %12911 = vmatprep.subr.bf16.mxu0 %v23728_v46  ;;  %v23840_v10 = vld [vmem:[#allocation6 + $0x94] ss:$8 sps:$4 sm:$0xff]  }
 0x4bc   :  { %13137 = vmatprep.subr.bf16.mxu1 %v23731_v2  ;;  %25205 = vst [vmem:[#allocation30_spill] sm:$0xff] %v23840_v10 }
 0x4bd   :  { %17597 = vst.sshfl [vmem:[#allocation3 + $0x10] sm:$0x5 pattern:$0x73625140] %v10939_v0  ;;  %v23843_v0 = vld [vmem:[#allocation6 + $0x190] ss:$8 sps:$4 sm:$0xff]  }
 0x4be   :  { %12912 = vmatpush1.bf16.msra.mxu0 %v23734_v15 }
 0x4bf   :  { %13138 = vmatpush1.bf16.msra.mxu1 %v23739_v13  ;;  %12913 = vmatprep.subr.bf16.mxu0 %v23741_v63 }
 0x4c0   :  { %13139 = vmatprep.subr.bf16.mxu1 %v23744_v36 }
 0x4c2   :  { %12914 = vmatpush1.bf16.msra.mxu0 %v23747_v17 }
 0x4c3   :  { %13140 = vmatpush1.bf16.msra.mxu1 %v23751_v34  ;;  %12915 = vmatprep.subr.bf16.mxu0 %v23753_v16  ;;  %v23909_v34 = vld [vmem:[#allocation6 + $0x244] ss:$8 sps:$4 sm:$0xff]  }
 0x4c4   :  { %13141 = vmatprep.subr.bf16.mxu1 %v23756_v44 }
 0x4c6   :  { %12916 = vmatpush1.bf16.msra.mxu0 %v23759_v6 }
 0x4c7   :  { %13142 = vmatpush1.bf16.msra.mxu1 %v23763_v31  ;;  %12917 = vmatprep.subr.bf16.mxu0 %v23765_v57 }
 0x4c8   :  { %13143 = vmatprep.subr.bf16.mxu1 %v23768_v37 }
 0x4ca   :  { %12918 = vmatpush2.bf16.msra.mxu0 %v23771_v5 }
 0x4cb   :  { %13144 = vmatpush2.bf16.msra.mxu1 %v23775_v55  ;;  %12919 = vmatprep.subr.bf16.mxu0 %v23777_v39 }
 0x4cc   :  { %13145 = vmatprep.subr.bf16.mxu1 %v23780_v1 }
 0x4ce   :  { %12920 = vmatpush2.bf16.msra.mxu0 %v23783_v21 }
 0x4cf   :  { %13146 = vmatpush2.bf16.msra.mxu1 %v23787_v18  ;;  %12921 = vmatprep.subr.bf16.mxu0 %v23789_v19  ;;  %v23871_v18 = vld [vmem:[#allocation6 + $0x270] ss:$8 sps:$4 sm:$0xff]  }
 0x4d0   :  { %13147 = vmatprep.subr.bf16.mxu1 %v23792_v53  ;;  %v23865_v53 = vld.sshfl [vmem:[#allocation3 + $0xe] sm:$0x11 pattern:$0x75316420] }
 0x4d1   :  { %v13573_v1 = vcombine.high %v23865_v53, %v23865_v53 }
 0x4d2   :  { %12922 = vmatpush2.bf16.msra.mxu0 %v23795_v58 }
 0x4d3   :  { %13148 = vmatpush2.bf16.msra.mxu1 %v23799_v14  ;;  %12923 = vmatprep.subr.bf16.mxu0 %v23801_v54  ;;  %v23859_v14 = vld [vmem:[#allocation6 + $0x80] ss:$8 sps:$4 sm:$0xff]  }
 0x4d4   :  { %13149 = vmatprep.subr.bf16.mxu1 %v23804_v12  ;;  %v23854_v12 = vld.sshfl [vmem:[#allocation3 + $0xc] sm:$0x11 pattern:$0x75316420]  ;;  %25208 = vst [vmem:[#allocation33_spill] sm:$0xff] %v23859_v14 }
 0x4d6   :  { %12924 = vmatpush2.bf16.msra.mxu0 %v23807_v8 }
 0x4d7   :  { %13150 = vmatpush2.bf16.msra.mxu1 %v23811_v49  ;;  %12925 = vmatprep.subr.bf16.mxu0 %v23813_v48  ;;  %v23852_v49 = vld [vmem:[#allocation6 + $0x84] ss:$8 sps:$4 sm:$0xff]  }
 0x4d8   :  { %13151 = vmatprep.subr.bf16.mxu1 %v23816_v7  ;;  %v23847_v7 = vld [vmem:[#allocation6 + $0x90] ss:$8 sps:$4 sm:$0xff]   ;;  %25207 = vst [vmem:[#allocation32_spill] sm:$0xff] %v23852_v49 }
 0x4d9   :  { %25206 = vst [vmem:[#allocation31_spill] sm:$0xff] %v23847_v7 }
 0x4da   :  { %12926 = vmatpush2.bf16.msra.mxu0 %v23819_v3 }
 0x4db   :  { %13152 = vmatpush2.bf16.msra.mxu1 %v23823_v24  ;;  %12927 = vmatprep.subr.bf16.mxu0 %v23825_v59  ;;  %v23849_v24 = vld [vmem:[#allocation6 + $0x184] ss:$8 sps:$4 sm:$0xff]  }
 0x4dc   :  { %13153 = vmatprep.subr.bf16.mxu1 %v23828_v61  ;;  %v23857_v61 = vld [vmem:[#allocation6 + $0x180] ss:$8 sps:$4 sm:$0xff]  }
 0x4de   :  { %12928 = vmatpush2.bf16.msra.mxu0 %v23831_v20 }
 0x4df   :  { %13154 = vmatpush2.bf16.msra.mxu1 %v23835_v4  ;;  %12929 = vmatprep.subr.bf16.mxu0 %v23837_v43  ;;  %v23863_v4 = vld [vmem:[#allocation6 + $0x274] ss:$8 sps:$4 sm:$0xff]  }
 0x4e0   :  { %13155 = vmatprep.subr.bf16.mxu1 %v23840_v10  ;;  %v13209_v10 = vcombine.high %v23854_v12, %v23854_v12 }
 0x4e2   :  { %12930 = vmatpush2.bf16.msra.mxu0 %v23843_v0  ;;  %v23885_v37 = vrot.slane %v13209_v10, %v20129_v26 }
 0x4e3   :  { %13156 = vmatpush2.bf16.msra.mxu1 %v23847_v7  ;;  %12931 = vmatprep.subr.bf16.mxu0 %v23849_v24  ;;  %v12731_v7 = vrot.slane %v23637_v42, %v20129_v26  ;;  %v13587_v42 = vrot.slane %v13573_v1, %v20129_v26  ;;  %v23905_v1 = vld [vmem:[#allocation6 + $0x250] ss:$8 sps:$4 sm:$0xff]  }
 0x4e4   :  { %13157 = vmatprep.subr.bf16.mxu1 %v23852_v49  ;;  %v23880_v49 = vld [vmem:[#allocation6 + $0x264] ss:$8 sps:$4 sm:$0xff]  }
 0x4e6   :  { %12932 = vmatpush2.bf16.msra.mxu0 %v23857_v61 }
 0x4e7   :  { %13158 = vmatpush2.bf16.msra.mxu1 %v23859_v14  ;;  %13386 = vmatprep.subr.bf16.mxu0 %v23863_v4  ;;  %v23892_v14 = vld [vmem:[#allocation6 + $0x260] ss:$8 sps:$4 sm:$0xff]  }
 0x4e8   :  { %13750 = vmatprep.subr.bf16.mxu1 %v23641_v29 }
 0x4e9   :  { %v23882_v55 = vpop.f32.mrf.mxu0  ;;  %12934 = vmatmul.mubr.bf16.vlgmr.msra.gmra.mxu0 %v12731_v7  ;;  %v23898_v7 = vld [vmem:[#allocation6 + $0x254] ss:$8 sps:$4 sm:$0xff]  }
 0x4ea   :  { %v23887_v31 = vpop.f32.mrf.mxu1  ;;  %13160 = vmatmul.mubr.bf16.vlgmr.msra.gmra.mxu1 %v23660_v33  ;;  %13387 = vmatpush1.bf16.msra.mxu0 %v23871_v18 }
 0x4eb   :  { %13418 = vmatprep.mubr.bf16.mxu0 %v23885_v37  ;;  %13751 = vmatpush1.bf16.msra.mxu1 %v23649_v32  ;;  %v23896_v29 = vpop.f32.mrf.mxu0 }
 0x4ec   :  { %13782 = vmatprep.mubr.bf16.mxu1 %v13587_v42  ;;  %v23900_v10 = vpop.f32.mrf.mxu1  ;;  %13388 = vmatprep.subr.bf16.mxu0 %v23880_v49 }
 0x4ed   :  { %v11240_v33 = vpop.f32.mrf.mxu0  ;;  %13752 = vmatprep.subr.bf16.mxu1 %v23663_v52  ;;  %v23917_v52 = vld [vmem:[#allocation6 + $0x234] ss:$8 sps:$4 sm:$0xff]  }
 0x4ee   :  { %v11466_v44 = vpop.f32.mrf.mxu1  ;;  %13389 = vmatpush1.bf16.msra.mxu0 %v23892_v14  ;;  %v23913_v33 = vld [vmem:[#allocation6 + $0x240] ss:$8 sps:$4 sm:$0xff]  }
 0x4ef   :  { %13753 = vmatpush1.bf16.msra.mxu1 %v23673_v9  ;;  %v11241_v32 = vpop.f32.mrf.mxu0  ;;  %13390 = vmatprep.subr.bf16.mxu0 %v23898_v7  ;;  %v23921_v9 = vld [vmem:[#allocation6 + $0x230] ss:$8 sps:$4 sm:$0xff]  }
 0x4f0   :  { %v11467_v42 = vpop.f32.mrf.mxu1  ;;  %13754 = vmatprep.subr.bf16.mxu1 %v23678_v41  ;;  %v23925_v41 = vld [vmem:[#allocation6 + $0x224] ss:$8 sps:$4 sm:$0xff]   ;;  %v23969_v44 = vld [vmem:[#allocation6 + $0x2d0] ss:$8 sps:$4 sm:$0xff]  }
 0x4f2   :  { %13391 = vmatpush1.bf16.msra.mxu0 %v23905_v1 }
 0x4f3   :  { %13755 = vmatpush1.bf16.msra.mxu1 %v23691_v47  ;;  %13392 = vmatprep.subr.bf16.mxu0 %v23909_v34  ;;  %v23929_v47 = vld [vmem:[#allocation6 + $0x220] ss:$8 sps:$4 sm:$0xff]  }
 0x4f4   :  { %13756 = vmatprep.subr.bf16.mxu1 %v23701_v25  ;;  %v23933_v25 = vld [vmem:[#allocation6 + $0x214] ss:$8 sps:$4 sm:$0xff]  }
 0x4f6   :  { %13393 = vmatpush1.bf16.msra.mxu0 %v23913_v33 }
 0x4f7   :  { %13757 = vmatpush1.bf16.msra.mxu1 %v23708_v23  ;;  %13394 = vmatprep.subr.bf16.mxu0 %v23917_v52  ;;  %v23937_v23 = vld [vmem:[#allocation6 + $0x210] ss:$8 sps:$4 sm:$0xff]  }
 0x4f8   :  { %13758 = vmatprep.subr.bf16.mxu1 %v23716_v22  ;;  %v23941_v22 = vld [vmem:[#allocation6 + $0x204] ss:$8 sps:$4 sm:$0xff]  }
 0x4fa   :  { %13395 = vmatpush1.bf16.msra.mxu0 %v23921_v9 }
 0x4fb   :  { %13759 = vmatpush1.bf16.msra.mxu1 %v23722_v60  ;;  %13396 = vmatprep.subr.bf16.mxu0 %v23925_v41  ;;  %v23945_v60 = vld [vmem:[#allocation6 + $0x200] ss:$8 sps:$4 sm:$0xff]  }
 0x4fc   :  { %13760 = vmatprep.subr.bf16.mxu1 %v23728_v46  ;;  %v23949_v46 = vld [vmem:[#allocation6 + $0x2f4] ss:$8 sps:$4 sm:$0xff]  }
 0x4fe   :  { %13397 = vmatpush1.bf16.msra.mxu0 %v23929_v47 }
 0x4ff   :  { %13761 = vmatpush1.bf16.msra.mxu1 %v23734_v15  ;;  %13398 = vmatprep.subr.bf16.mxu0 %v23933_v25  ;;  %v23953_v15 = vld [vmem:[#allocation6 + $0x2f0] ss:$8 sps:$4 sm:$0xff]  }
 0x500   :  { %13762 = vmatprep.subr.bf16.mxu1 %v23741_v63  ;;  %v23957_v63 = vld [vmem:[#allocation6 + $0x2e4] ss:$8 sps:$4 sm:$0xff]  }
 0x502   :  { %13399 = vmatpush1.bf16.msra.mxu0 %v23937_v23 }
 0x503   :  { %13763 = vmatpush1.bf16.msra.mxu1 %v23747_v17  ;;  %13400 = vmatprep.subr.bf16.mxu0 %v23941_v22  ;;  %v23961_v17 = vld [vmem:[#allocation6 + $0x2e0] ss:$8 sps:$4 sm:$0xff]  }
 0x504   :  { %13764 = vmatprep.subr.bf16.mxu1 %v23753_v16  ;;  %v23965_v16 = vld [vmem:[#allocation6 + $0x2d4] ss:$8 sps:$4 sm:$0xff]  }
 0x506   :  { %13401 = vmatpush1.bf16.msra.mxu0 %v23945_v60 }
 0x507   :  { %13765 = vmatpush1.bf16.msra.mxu1 %v23759_v6  ;;  %13402 = vmatprep.subr.bf16.mxu0 %v23949_v46  ;;  %v23973_v6 = vld [vmem:[#allocation6 + $0x2c4] ss:$8 sps:$4 sm:$0xff]  }
 0x508   :  { %13766 = vmatprep.subr.bf16.mxu1 %v23765_v57  ;;  %v23977_v57 = vld [vmem:[#allocation6 + $0x2c0] ss:$8 sps:$4 sm:$0xff]  }
 0x50a   :  { %13403 = vmatpush2.bf16.msra.mxu0 %v23953_v15 }
 0x50b   :  { %13767 = vmatpush2.bf16.msra.mxu1 %v23771_v5  ;;  %13404 = vmatprep.subr.bf16.mxu0 %v23957_v63  ;;  %v23981_v5 = vld [vmem:[#allocation6 + $0x2b4] ss:$8 sps:$4 sm:$0xff]  }
 0x50c   :  { %13768 = vmatprep.subr.bf16.mxu1 %v23777_v39  ;;  %v23985_v39 = vld [vmem:[#allocation6 + $0x2b0] ss:$8 sps:$4 sm:$0xff]  }
 0x50e   :  { %13405 = vmatpush2.bf16.msra.mxu0 %v23961_v17 }
 0x50f   :  { %13769 = vmatpush2.bf16.msra.mxu1 %v23783_v21  ;;  %13406 = vmatprep.subr.bf16.mxu0 %v23965_v16  ;;  %v23989_v21 = vld [vmem:[#allocation6 + $0x2a4] ss:$8 sps:$4 sm:$0xff]  }
 0x510   :  { %13770 = vmatprep.subr.bf16.mxu1 %v23789_v19  ;;  %v23993_v19 = vld [vmem:[#allocation6 + $0x2a0] ss:$8 sps:$4 sm:$0xff]  }
 0x512   :  { %13407 = vmatpush2.bf16.msra.mxu0 %v23969_v44 }
 0x513   :  { %13771 = vmatpush2.bf16.msra.mxu1 %v23795_v58  ;;  %13408 = vmatprep.subr.bf16.mxu0 %v23973_v6  ;;  %v23997_v58 = vld [vmem:[#allocation6 + $0x294] ss:$8 sps:$4 sm:$0xff]  }
 0x514   :  { %13772 = vmatprep.subr.bf16.mxu1 %v23801_v54  ;;  %v24001_v54 = vld [vmem:[#allocation6 + $0x290] ss:$8 sps:$4 sm:$0xff]  }
 0x516   :  { %13409 = vmatpush2.bf16.msra.mxu0 %v23977_v57 }
 0x517   :  { %13773 = vmatpush2.bf16.msra.mxu1 %v23807_v8  ;;  %13410 = vmatprep.subr.bf16.mxu0 %v23981_v5  ;;  %v24005_v8 = vld [vmem:[#allocation6 + $0x284] ss:$8 sps:$4 sm:$0xff]  }
 0x518   :  { %13774 = vmatprep.subr.bf16.mxu1 %v23813_v48  ;;  %v24009_v48 = vld [vmem:[#allocation6 + $0x280] ss:$8 sps:$4 sm:$0xff]  }
 0x51a   :  { %13411 = vmatpush2.bf16.msra.mxu0 %v23985_v39 }
 0x51b   :  { %13775 = vmatpush2.bf16.msra.mxu1 %v23819_v3  ;;  %13412 = vmatprep.subr.bf16.mxu0 %v23989_v21  ;;  %v24013_v3 = vld.sshfl [vmem:[#allocation3 + $0x10] sm:$0x11 pattern:$0x75316420] }
 0x51c   :  { %13776 = vmatprep.subr.bf16.mxu1 %v23825_v59  ;;  %25209 = vst [vmem:[#allocation34_spill] sm:$0xff] %v24013_v3  ;;  %v11731_v59 = vld [vmem:[%s25065_s8] sm:$0x3] }
 0x51d   :  { %v11736_v32 = vrot.slane %v11731_v59, %v20192_v45 }
 0x51e   :  { %13413 = vmatpush2.bf16.msra.mxu0 %v23993_v19 }
 0x51f   :  { %13777 = vmatpush2.bf16.msra.mxu1 %v23831_v20  ;;  %13414 = vmatprep.subr.bf16.mxu0 %v23997_v58  ;;  %v14058_v20 = vcombine.high %v24013_v3, %v24013_v3 }
 0x520   :  { %13778 = vmatprep.subr.bf16.mxu1 %v23837_v43  ;;  %v24024_v43 = vrot.slane %v23854_v12, %v20129_v26  ;;  %v11740_v12 = vrot.slane %v11731_v59, %v20208_v51 }
 0x522   :  { %13415 = vmatpush2.bf16.msra.mxu0 %v24001_v54 }
 0x523   :  { %13779 = vmatpush2.bf16.msra.mxu1 %v23843_v0  ;;  %13416 = vmatprep.subr.bf16.mxu0 %v24005_v8  ;;  %v13580_v0 = vrot.slane %v23865_v53, %v20129_v26 }
 0x524   :  { %13780 = vmatprep.subr.bf16.mxu1 %v23849_v24  ;;  %v11463_v24 = vadd.f32 %v23887_v31, %v23882_v55  ;;  %v14072_v55 = vrot.slane %v14058_v20, %v20129_v26 }
 0x526   :  { %13417 = vmatpush2.bf16.msra.mxu0 %v24009_v48 }
 0x527   :  { %13781 = vmatpush2.bf16.msra.mxu1 %v23857_v61  ;;  %13976 = vmatprep.subr.bf16.mxu0 %v23644_v11  ;;  %v11465_v61 = vadd.f32 %v23900_v10, %v23896_v29  ;;  %v11751_v11 = vld [vmem:[%s25066_s9] sm:$0x3] }
 0x528   :  { %14235 = vmatprep.subr.bf16.mxu1 %v23863_v4  ;;  %v11756_v59 = vrot.slane %v11751_v11, %v20192_v45 }
 0x529   :  { %v11722_v42 = vpop.f32.mrf.mxu0  ;;  %13419 = vmatmul.mubr.bf16.vlgmr.msra.gmra.mxu0 %v24024_v43 }
 0x52a   :  { %v11729_v3 = vadd.f32 %v11722_v42, %v11463_v24  ;;  %v24041_v31 = vpop.f32.mrf.mxu1  ;;  %13783 = vmatmul.mubr.bf16.vlgmr.msra.gmra.mxu1 %v13580_v0  ;;  %13977 = vmatpush1.bf16.msra.mxu0 %v23656_v56 }
 0x52b   :  { %14008 = vmatprep.mubr.bf16.mxu0 %v23885_v37  ;;  %14236 = vmatpush1.bf16.msra.mxu1 %v23871_v18  ;;  %v11724_v53 = vpop.f32.mrf.mxu0  ;;  %v11765_v37 = vld [vmem:[%s25067_s10] sm:$0x3] }
 0x52c   :  { %v11743_v4 = vadd.f32 %v11736_v32, %v11729_v3  ;;  %14267 = vmatprep.mubr.bf16.mxu1 %v14072_v55  ;;  %v11730_v29 = vadd.f32 %v11724_v53, %v11465_v61  ;;  %v24047_v10 = vpop.f32.mrf.mxu1  ;;  %13978 = vmatprep.subr.bf16.mxu0 %v23667_v50  ;;  %v11760_v3 = vrot.slane %v11751_v11, %v20208_v51 }
 0x52d   :  { %v11726_v24 = vpop.f32.mrf.mxu0  ;;  %14237 = vmatprep.subr.bf16.mxu1 %v23880_v49  ;;  %v11770_v61 = vrot.slane %v11765_v37, %v20192_v45 }
 0x52e   :  { %vm11745_vm1 = vcmp.gt.f32.partialorder %v11743_v4, 0.0  ;;  %v11747_v56 = vmul.f32 0.2, %v11743_v4  ;;  %v11744_v18 = vadd.f32 %v11740_v12, %v11730_v29  ;;  %v12090_v20 = vpop.f32.mrf.mxu1  ;;  %13979 = vmatpush1.bf16.msra.mxu0 %v23676_v35  ;;  %v11774_v12 = vrot.slane %v11765_v37, %v20208_v51 }
 0x52f   :  { %14238 = vmatpush1.bf16.msra.mxu1 %v23892_v14  ;;  %v11727_v50 = vpop.f32.mrf.mxu0  ;;  %13980 = vmatprep.subr.bf16.mxu0 %v23687_v28 }
 0x530   :  { %v11749_v0 = vsel %vm11745_vm1, %v11743_v4, %v11747_v56  ;;  %vm11746_vm2 = vcmp.gt.f32.partialorder %v11744_v18, 0.0  ;;  %v11748_v49 = vmul.f32 0.2, %v11744_v18  ;;  %v12091_v32 = vpop.f32.mrf.mxu1  ;;  %14239 = vmatprep.subr.bf16.mxu1 %v23898_v7  ;;  %v24153_v56 = vld [vmem:[#allocation9 + $0x60] ss:$8 sps:$4 sm:$0xff]  }
 0x531   :  { %v11763_v42 = vmul.f32 %v11756_v59, %v11749_v0  ;;  %v24150_v59 = vld [vmem:[#allocation9 + $0x160] ss:$8 sps:$4 sm:$0xff]   ;;  %v24164_v50 = vld [vmem:[#allocation9 + $0x54] ss:$8 sps:$4 sm:$0xff]  }
 0x532   :  { %v11750_v55 = vsel %vm11746_vm2, %v11744_v18, %v11748_v49  ;;  %13981 = vmatpush1.bf16.msra.mxu0 %v23699_v30 }
 0x533   :  { %v11764_v35 = vmul.f32 %v11760_v3, %v11750_v55  ;;  %14240 = vmatpush1.bf16.msra.mxu1 %v23905_v1  ;;  %13982 = vmatprep.subr.bf16.mxu0 %v23704_v27  ;;  %v11777_v28 = vadd.f32 %v11770_v61, %v11763_v42  ;;  %v25210_v27 = vld [vmem:[#allocation15_spill] sm:$0xff]  ;;  %v24167_v61 = vld [vmem:[#allocation9 + $0x150] ss:$8 sps:$4 sm:$0xff]  }
 0x534   :  { %14241 = vmatprep.subr.bf16.mxu1 %v23909_v34  ;;  %v25217_v34 = vld [vmem:[#allocation22_spill] sm:$0xff]  ;;  %v25218_v1 = vld [vmem:[#allocation23_spill] sm:$0xff] }
 0x535   :  { %v11778_v14 = vadd.f32 %v11774_v12, %v11764_v35  ;;  %v12614_v12 = vld [vmem:[%s25067_s10] sm:$0x3] }
 0x536   :  { %13983 = vmatpush1.bf16.msra.mxu0 %v23714_v62  ;;  %v25211_v62 = vld [vmem:[#allocation16_spill] sm:$0xff] }
 0x537   :  { %v17697_v7 = vpack.c.bf16 %v11778_v14, %v11777_v28  ;;  %14242 = vmatpush1.bf16.msra.mxu1 %v23913_v33  ;;  %13984 = vmatprep.subr.bf16.mxu0 %v23719_v40  ;;  %v25212_v40 = vld [vmem:[#allocation17_spill] sm:$0xff]  ;;  %v25219_v33 = vld [vmem:[#allocation24_spill] sm:$0xff] }
 0x538   :  { %14243 = vmatprep.subr.bf16.mxu1 %v23917_v52  ;;  %v25220_v52 = vld [vmem:[#allocation25_spill] sm:$0xff]  ;;  %v24177_v28 = vld [vmem:[#allocation9 + $0x144] ss:$8 sps:$4 sm:$0xff]  }
 0x539   :  { %v11790_v30 = vrot.slane %v17697_v7, %v20129_v26  ;;  %v24175_v35 = vld [vmem:[#allocation9 + $0x50] ss:$8 sps:$4 sm:$0xff]  }
 0x53a   :  { %13985 = vmatpush1.bf16.msra.mxu0 %v23726_v38  ;;  %v25213_v38 = vld [vmem:[#allocation18_spill] sm:$0xff] }
 0x53b   :  { %17698 = vst.sshfl [vmem:[#allocation4 + $0x2] sm:$0x5 pattern:$0x73625140] %v11790_v30  ;;  %14244 = vmatpush1.bf16.msra.mxu1 %v23921_v9  ;;  %13986 = vmatprep.subr.bf16.mxu0 %v23731_v2  ;;  %v25214_v2 = vld [vmem:[#allocation19_spill] sm:$0xff]  ;;  %v25221_v9 = vld [vmem:[#allocation26_spill] sm:$0xff] }
 0x53c   :  { %14245 = vmatprep.subr.bf16.mxu1 %v23925_v41  ;;  %v25222_v41 = vld [vmem:[#allocation27_spill] sm:$0xff] }
 0x53e   :  { %13987 = vmatpush1.bf16.msra.mxu0 %v23739_v13  ;;  %v25215_v13 = vld [vmem:[#allocation20_spill] sm:$0xff] }
 0x53f   :  { %14246 = vmatpush1.bf16.msra.mxu1 %v23929_v47  ;;  %13988 = vmatprep.subr.bf16.mxu0 %v23744_v36  ;;  %v25216_v36 = vld [vmem:[#allocation21_spill] sm:$0xff]  ;;  %v25223_v47 = vld [vmem:[#allocation28_spill] sm:$0xff] }
 0x540   :  { %14247 = vmatprep.subr.bf16.mxu1 %v23933_v25  ;;  %v25224_v25 = vld [vmem:[#allocation29_spill] sm:$0xff] }
 0x542   :  { %13989 = vmatpush1.bf16.msra.mxu0 %v25210_v27  ;;  %v24180_v27 = vld [vmem:[#allocation9 + $0x44] ss:$8 sps:$4 sm:$0xff]  }
 0x543   :  { %14248 = vmatpush1.bf16.msra.mxu1 %v23937_v23  ;;  %13990 = vmatprep.subr.bf16.mxu0 %v25211_v62  ;;  %v25225_v23 = vld [vmem:[#allocation30_spill] sm:$0xff] }
 0x544   :  { %14249 = vmatprep.subr.bf16.mxu1 %v23941_v22  ;;  %v24111_v22 = vld.sshfl [vmem:[#allocation4] sm:$0x11 pattern:$0x75316420] }
 0x546   :  { %13991 = vmatpush1.bf16.msra.mxu0 %v25212_v40 }
 0x547   :  { %14250 = vmatpush1.bf16.msra.mxu1 %v23945_v60  ;;  %13992 = vmatprep.subr.bf16.mxu0 %v25213_v38  ;;  %v25226_v60 = vld [vmem:[#allocation31_spill] sm:$0xff] }
 0x548   :  { %14251 = vmatprep.subr.bf16.mxu1 %v23949_v46  ;;  %v24114_v46 = vld.sshfl [vmem:[#allocation4 + $0x2] sm:$0x11 pattern:$0x75316420] }
 0x54a   :  { %13993 = vmatpush2.bf16.msra.mxu0 %v25214_v2  ;;  %v24184_v2 = vld [vmem:[#allocation9 + $0x140] ss:$8 sps:$4 sm:$0xff]  }
 0x54b   :  { %14252 = vmatpush2.bf16.msra.mxu1 %v23953_v15  ;;  %13994 = vmatprep.subr.bf16.mxu0 %v25215_v13  ;;  %v25227_v15 = vld [vmem:[#allocation32_spill] sm:$0xff] }
 0x54c   :  { %14253 = vmatprep.subr.bf16.mxu1 %v23957_v63  ;;  %v24118_v63 = vld [vmem:[#allocation9 + $0x174] ss:$8 sps:$4 sm:$0xff]  }
 0x54e   :  { %13995 = vmatpush2.bf16.msra.mxu0 %v25216_v36  ;;  %v12619_v36 = vrot.slane %v12614_v12, %v20192_v45 }
 0x54f   :  { %14254 = vmatpush2.bf16.msra.mxu1 %v23961_v17  ;;  %13996 = vmatprep.subr.bf16.mxu0 %v25217_v34  ;;  %v24121_v17 = vld [vmem:[#allocation9 + $0x74] ss:$8 sps:$4 sm:$0xff]   ;;  %v12623_v34 = vrot.slane %v12614_v12, %v20208_v51  ;;  %v24271_v12 = vld [vmem:[#allocation9 + $0x1d0] ss:$8 sps:$4 sm:$0xff]  }
 0x550   :  { %14255 = vmatprep.subr.bf16.mxu1 %v23965_v16  ;;  %v14423_v16 = vcombine.high %v24114_v46, %v24114_v46 }
 0x552   :  { %13997 = vmatpush2.bf16.msra.mxu0 %v25218_v1  ;;  %v24190_v1 = vld [vmem:[#allocation9 + $0x40] ss:$8 sps:$4 sm:$0xff]  }
 0x553   :  { %14256 = vmatpush2.bf16.msra.mxu1 %v23969_v44  ;;  %13998 = vmatprep.subr.bf16.mxu0 %v25219_v33  ;;  %v14649_v44 = vcombine.high %v24111_v22, %v24111_v22  ;;  %v24192_v33 = vld [vmem:[#allocation9 + $0x134] ss:$8 sps:$4 sm:$0xff]  }
 0x554   :  { %14257 = vmatprep.subr.bf16.mxu1 %v23973_v6  ;;  %v25228_v6 = vld [vmem:[#allocation33_spill] sm:$0xff] }
 0x555   :  { %v14663_v11 = vrot.slane %v14649_v44, %v20129_v26 }
 0x556   :  { %13999 = vmatpush2.bf16.msra.mxu0 %v25220_v52 }
 0x557   :  { %14258 = vmatpush2.bf16.msra.mxu1 %v23977_v57  ;;  %14000 = vmatprep.subr.bf16.mxu0 %v25221_v9  ;;  %v24128_v57 = vld [vmem:[#allocation9 + $0x170] ss:$8 sps:$4 sm:$0xff]   ;;  %v24195_v9 = vld [vmem:[#allocation9 + $0x34] ss:$8 sps:$4 sm:$0xff]  }
 0x558   :  { %14259 = vmatprep.subr.bf16.mxu1 %v23981_v5  ;;  %v12580_v5 = vld [vmem:[%s25065_s8] sm:$0x3] }
 0x559   :  { %v12585_v29 = vrot.slane %v12580_v5, %v20192_v45  ;;  %v12589_v3 = vrot.slane %v12580_v5, %v20208_v51 }
 0x55a   :  { %14001 = vmatpush2.bf16.msra.mxu0 %v25222_v41 }
 0x55b   :  { %14260 = vmatpush2.bf16.msra.mxu1 %v23985_v39  ;;  %14002 = vmatprep.subr.bf16.mxu0 %v25223_v47  ;;  %v24135_v39 = vld [vmem:[#allocation9 + $0x70] ss:$8 sps:$4 sm:$0xff]  }
 0x55c   :  { %14261 = vmatprep.subr.bf16.mxu1 %v23989_v21  ;;  %v25229_v21 = vld [vmem:[#allocation34_spill] sm:$0xff] }
 0x55d   :  { %v24198_v47 = vld [vmem:[#allocation9 + $0x130] ss:$8 sps:$4 sm:$0xff]  }
 0x55e   :  { %14003 = vmatpush2.bf16.msra.mxu0 %v25224_v25 }
 0x55f   :  { %14262 = vmatpush2.bf16.msra.mxu1 %v23993_v19  ;;  %14004 = vmatprep.subr.bf16.mxu0 %v25225_v23  ;;  %v14065_v19 = vrot.slane %v25229_v21, %v20129_v26  ;;  %v24215_v21 = vld [vmem:[#allocation9 + $0x20] ss:$8 sps:$4 sm:$0xff]  }
 0x560   :  { %14263 = vmatprep.subr.bf16.mxu1 %v23997_v58  ;;  %v24140_v58 = vld [vmem:[#allocation9 + $0x164] ss:$8 sps:$4 sm:$0xff]  }
 0x562   :  { %14005 = vmatpush2.bf16.msra.mxu0 %v25226_v60  ;;  %v24202_v60 = vld [vmem:[#allocation9 + $0x30] ss:$8 sps:$4 sm:$0xff]  }
 0x563   :  { %14264 = vmatpush2.bf16.msra.mxu1 %v24001_v54  ;;  %14006 = vmatprep.subr.bf16.mxu0 %v25227_v15  ;;  %v24142_v54 = vld [vmem:[#allocation9 + $0x64] ss:$8 sps:$4 sm:$0xff]  }
 0x564   :  { %14265 = vmatprep.subr.bf16.mxu1 %v24005_v8  ;;  %v24204_v15 = vld [vmem:[#allocation9 + $0x124] ss:$8 sps:$4 sm:$0xff]  }
 0x566   :  { %14007 = vmatpush2.bf16.msra.mxu0 %v25228_v6  ;;  %v24210_v6 = vld [vmem:[#allocation9 + $0x120] ss:$8 sps:$4 sm:$0xff]  }
 0x567   :  { %14266 = vmatpush2.bf16.msra.mxu1 %v24009_v48  ;;  %14600 = vmatprep.subr.bf16.mxu0 %v24118_v63  ;;  %v14437_v48 = vrot.slane %v14423_v16, %v20129_v26  ;;  %v24207_v16 = vld [vmem:[#allocation9 + $0x24] ss:$8 sps:$4 sm:$0xff]  }
 0x568   :  { %14826 = vmatprep.subr.bf16.mxu1 %v24121_v17 }
 0x569   :  { %v12312_v8 = vpop.f32.mrf.mxu0  ;;  %14009 = vmatmul.mubr.bf16.vlgmr.msra.gmra.mxu0 %v24024_v43  ;;  %v24155_v43 = vld [vmem:[#allocation9 + $0x154] ss:$8 sps:$4 sm:$0xff]  }
 0x56a   :  { %v12313_v53 = vadd.f32 %v12312_v8, %v24041_v31  ;;  %v12571_v4 = vpop.f32.mrf.mxu1  ;;  %14268 = vmatmul.mubr.bf16.vlgmr.msra.gmra.mxu1 %v14065_v19  ;;  %14601 = vmatpush1.bf16.msra.mxu0 %v24128_v57  ;;  %v12600_v31 = vld [vmem:[%s25066_s9] sm:$0x3] }
 0x56b   :  { %14632 = vmatprep.mubr.bf16.mxu0 %v14437_v48  ;;  %14827 = vmatpush1.bf16.msra.mxu1 %v24135_v39  ;;  %v12314_v24 = vpop.f32.mrf.mxu0  ;;  %v12609_v62 = vrot.slane %v12600_v31, %v20208_v51  ;;  %v24217_v19 = vld [vmem:[#allocation9 + $0x114] ss:$8 sps:$4 sm:$0xff]   ;;  %v24223_v48 = vld [vmem:[#allocation9 + $0x110] ss:$8 sps:$4 sm:$0xff]  }
 0x56c   :  { %v12578_v37 = vadd.f32 %v12571_v4, %v12313_v53  ;;  %v12315_v18 = vadd.f32 %v12314_v24, %v24047_v10  ;;  %v12573_v20 = vpop.f32.mrf.mxu1  ;;  %14602 = vmatprep.subr.bf16.mxu0 %v24140_v58  ;;  %14828 = vmatprep.subr.bf16.mxu1 %v24142_v54  ;;  %v12605_v10 = vrot.slane %v12600_v31, %v20192_v45  ;;  %v24220_v8 = vld [vmem:[#allocation9 + $0x14] ss:$8 sps:$4 sm:$0xff]   ;;  %v24229_v53 = vld [vmem:[#allocation9 + $0x104] ss:$8 sps:$4 sm:$0xff]   ;;  %v24239_v24 = vld [vmem:[#allocation9] ss:$8 sps:$4 sm:$0xff]  }
 0x56d   :  { %v12316_v0 = vpop.f32.mrf.mxu0  ;;  %14858 = vmatprep.mubr.bf16.mxu1 %v14663_v11  ;;  %v24227_v11 = vld [vmem:[#allocation9 + $0x10] ss:$8 sps:$4 sm:$0xff]   ;;  %v24232_v4 = vld [vmem:[#allocation9 + $0x4] ss:$8 sps:$4 sm:$0xff]   ;;  %25230 = vst [vmem:[#allocation15_spill] sm:$0xff] %v24239_v24 }
 0x56e   :  { %v12592_v49 = vadd.f32 %v12585_v29, %v12578_v37  ;;  %v12579_v32 = vadd.f32 %v12573_v20, %v12315_v18  ;;  %v12575_v42 = vpop.f32.mrf.mxu1  ;;  %14603 = vmatpush1.bf16.msra.mxu0 %v24150_v59  ;;  %v24235_v29 = vld [vmem:[#allocation9 + $0x100] ss:$8 sps:$4 sm:$0xff]   ;;  %v24241_v37 = vld [vmem:[#allocation9 + $0x1f4] ss:$8 sps:$4 sm:$0xff]   ;;  %v24247_v18 = vld [vmem:[#allocation9 + $0x1f0] ss:$8 sps:$4 sm:$0xff]  }
 0x56f   :  { %14829 = vmatpush1.bf16.msra.mxu1 %v24153_v56  ;;  %v12317_v55 = vpop.f32.mrf.mxu0  ;;  %14604 = vmatprep.subr.bf16.mxu0 %v24155_v43  ;;  %v24244_v31 = vld [vmem:[#allocation9 + $0xf4] ss:$8 sps:$4 sm:$0xff]   ;;  %v24251_v20 = vld [vmem:[#allocation9 + $0xf0] ss:$8 sps:$4 sm:$0xff]   ;;  %v24256_v0 = vld [vmem:[#allocation9 + $0xe4] ss:$8 sps:$4 sm:$0xff]  }
 0x570   :  { %vm12594_vm3 = vcmp.gt.f32.partialorder %v12592_v49, 0.0  ;;  %v12596_v14 = vmul.f32 0.2, %v12592_v49  ;;  %v12593_v7 = vadd.f32 %v12589_v3, %v12579_v32  ;;  %v12576_v30 = vpop.f32.mrf.mxu1  ;;  %14830 = vmatprep.subr.bf16.mxu1 %v24164_v50  ;;  %25231 = vst [vmem:[#allocation16_spill] sm:$0xff] %v24244_v31  ;;  %25232 = vst [vmem:[#allocation17_spill] sm:$0xff] %v24251_v20 }
 0x571   :  { %v24253_v3 = vld [vmem:[#allocation9 + $0x1e4] ss:$8 sps:$4 sm:$0xff]   ;;  %25233 = vst [vmem:[#allocation18_spill] sm:$0xff] %v24256_v0  ;;  %v24263_v32 = vld [vmem:[#allocation9 + $0xe0] ss:$8 sps:$4 sm:$0xff]  }
 0x572   :  { %v12598_v40 = vsel %vm12594_vm3, %v12592_v49, %v12596_v14  ;;  %vm12595_vm4 = vcmp.gt.f32.partialorder %v12593_v7, 0.0  ;;  %v12597_v38 = vmul.f32 0.2, %v12593_v7  ;;  %14605 = vmatpush1.bf16.msra.mxu0 %v24167_v61  ;;  %v24259_v49 = vld [vmem:[#allocation9 + $0x1e0] ss:$8 sps:$4 sm:$0xff]   ;;  %25234 = vst [vmem:[#allocation19_spill] sm:$0xff] %v24263_v32 }
 0x573   :  { %v12612_v13 = vmul.f32 %v12605_v10, %v12598_v40  ;;  %14831 = vmatpush1.bf16.msra.mxu1 %v24175_v35  ;;  %14606 = vmatprep.subr.bf16.mxu0 %v24177_v28  ;;  %v24265_v42 = vld [vmem:[#allocation9 + $0x1d4] ss:$8 sps:$4 sm:$0xff]   ;;  %v24275_v55 = vld [vmem:[#allocation9 + $0xd0] ss:$8 sps:$4 sm:$0xff]   ;;  %v24277_v14 = vld [vmem:[#allocation9 + $0x1c4] ss:$8 sps:$4 sm:$0xff]  }
 0x574   :  { %v12599_v52 = vsel %vm12595_vm4, %v12593_v7, %v12597_v38  ;;  %14832 = vmatprep.subr.bf16.mxu1 %v24180_v27  ;;  %v24268_v10 = vld [vmem:[#allocation9 + $0xd4] ss:$8 sps:$4 sm:$0xff]   ;;  %25236 = vst [vmem:[#allocation21_spill] sm:$0xff] %v24275_v55  ;;  %v24280_v7 = vld [vmem:[#allocation9 + $0xc4] ss:$8 sps:$4 sm:$0xff]  }
 0x575   :  { %v12613_v41 = vmul.f32 %v12609_v62, %v12599_v52  ;;  %v12626_v25 = vadd.f32 %v12619_v36, %v12612_v13  ;;  %25235 = vst [vmem:[#allocation20_spill] sm:$0xff] %v24268_v10  ;;  %25237 = vst [vmem:[#allocation22_spill] sm:$0xff] %v24280_v7  ;;  %v24283_v30 = vld [vmem:[#allocation9 + $0x1c0] ss:$8 sps:$4 sm:$0xff]   ;;  %v24289_v40 = vld [vmem:[#allocation9 + $0x1b4] ss:$8 sps:$4 sm:$0xff]  }
 0x576   :  { %14607 = vmatpush1.bf16.msra.mxu0 %v24184_v2  ;;  %v24287_v62 = vld [vmem:[#allocation9 + $0xc0] ss:$8 sps:$4 sm:$0xff]   ;;  %v24292_v38 = vld [vmem:[#allocation9 + $0xb4] ss:$8 sps:$4 sm:$0xff]   ;;  %v24295_v13 = vld [vmem:[#allocation9 + $0x1b0] ss:$8 sps:$4 sm:$0xff]  }
 0x577   :  { %v12627_v23 = vadd.f32 %v12623_v34, %v12613_v41  ;;  %14833 = vmatpush1.bf16.msra.mxu1 %v24190_v1  ;;  %14608 = vmatprep.subr.bf16.mxu0 %v24192_v33  ;;  %25238 = vst [vmem:[#allocation23_spill] sm:$0xff] %v24287_v62  ;;  %25239 = vst [vmem:[#allocation24_spill] sm:$0xff] %v24292_v38  ;;  %v24299_v36 = vld [vmem:[#allocation9 + $0xb0] ss:$8 sps:$4 sm:$0xff]   ;;  %v24301_v34 = vld [vmem:[#allocation9 + $0x1a4] ss:$8 sps:$4 sm:$0xff]  }
 0x578   :  { %14834 = vmatprep.subr.bf16.mxu1 %v24195_v9  ;;  %25240 = vst [vmem:[#allocation25_spill] sm:$0xff] %v24299_v36  ;;  %v24304_v52 = vld [vmem:[#allocation9 + $0xa4] ss:$8 sps:$4 sm:$0xff]   ;;  %v24307_v41 = vld [vmem:[#allocation9 + $0x1a0] ss:$8 sps:$4 sm:$0xff]  }
 0x579   :  { %v17798_v44 = vpack.c.bf16 %v12627_v23, %v12626_v25  ;;  %25241 = vst [vmem:[#allocation26_spill] sm:$0xff] %v24304_v52  ;;  %v24311_v25 = vld [vmem:[#allocation9 + $0xa0] ss:$8 sps:$4 sm:$0xff]   ;;  %v24313_v23 = vld [vmem:[#allocation9 + $0x194] ss:$8 sps:$4 sm:$0xff]  }
 0x57a   :  { %14609 = vmatpush1.bf16.msra.mxu0 %v24198_v47  ;;  %25242 = vst [vmem:[#allocation27_spill] sm:$0xff] %v24311_v25 }
 0x57b   :  { %v12639_v5 = vrot.slane %v17798_v44, %v20129_v26  ;;  %14835 = vmatpush1.bf16.msra.mxu1 %v24202_v60  ;;  %14610 = vmatprep.subr.bf16.mxu0 %v24204_v15  ;;  %v24316_v44 = vld [vmem:[#allocation9 + $0x94] ss:$8 sps:$4 sm:$0xff]  }
 0x57c   :  { %14836 = vmatprep.subr.bf16.mxu1 %v24207_v16  ;;  %25243 = vst [vmem:[#allocation28_spill] sm:$0xff] %v24316_v44 }
 0x57d   :  { %17799 = vst.sshfl [vmem:[#allocation4 + $0x4] sm:$0x5 pattern:$0x73625140] %v12639_v5  ;;  %v24319_v5 = vld [vmem:[#allocation9 + $0x190] ss:$8 sps:$4 sm:$0xff]  }
 0x57e   :  { %14611 = vmatpush1.bf16.msra.mxu0 %v24210_v6 }
 0x57f   :  { %14837 = vmatpush1.bf16.msra.mxu1 %v24215_v21  ;;  %14612 = vmatprep.subr.bf16.mxu0 %v24217_v19 }
 0x580   :  { %14838 = vmatprep.subr.bf16.mxu1 %v24220_v8 }
 0x582   :  { %14613 = vmatpush1.bf16.msra.mxu0 %v24223_v48 }
 0x583   :  { %14839 = vmatpush1.bf16.msra.mxu1 %v24227_v11  ;;  %14614 = vmatprep.subr.bf16.mxu0 %v24229_v53 }
 0x584   :  { %14840 = vmatprep.subr.bf16.mxu1 %v24232_v4 }
 0x586   :  { %14615 = vmatpush1.bf16.msra.mxu0 %v24235_v29 }
 0x587   :  { %14841 = vmatpush1.bf16.msra.mxu1 %v24239_v24  ;;  %14616 = vmatprep.subr.bf16.mxu0 %v24241_v37  ;;  %v24380_v24 = vld [vmem:[#allocation9 + $0x244] ss:$8 sps:$4 sm:$0xff]  }
 0x588   :  { %14842 = vmatprep.subr.bf16.mxu1 %v24244_v31 }
 0x58a   :  { %14617 = vmatpush2.bf16.msra.mxu0 %v24247_v18 }
 0x58b   :  { %14843 = vmatpush2.bf16.msra.mxu1 %v24251_v20  ;;  %14618 = vmatprep.subr.bf16.mxu0 %v24253_v3 }
 0x58c   :  { %14844 = vmatprep.subr.bf16.mxu1 %v24256_v0  ;;  %v24353_v0 = vld [vmem:[#allocation9 + $0x264] ss:$8 sps:$4 sm:$0xff]  }
 0x58d   :  { %25248 = vst [vmem:[#allocation33_spill] sm:$0xff] %v24353_v0 }
 0x58e   :  { %14619 = vmatpush2.bf16.msra.mxu0 %v24259_v49 }
 0x58f   :  { %14845 = vmatpush2.bf16.msra.mxu1 %v24263_v32  ;;  %14620 = vmatprep.subr.bf16.mxu0 %v24265_v42  ;;  %v24347_v32 = vld [vmem:[#allocation9 + $0x270] ss:$8 sps:$4 sm:$0xff]  }
 0x590   :  { %14846 = vmatprep.subr.bf16.mxu1 %v24268_v10  ;;  %v14656_v10 = vrot.slane %v24111_v22, %v20129_v26  ;;  %25247 = vst [vmem:[#allocation32_spill] sm:$0xff] %v24347_v32 }
 0x592   :  { %14621 = vmatpush2.bf16.msra.mxu0 %v24271_v12 }
 0x593   :  { %14847 = vmatpush2.bf16.msra.mxu1 %v24275_v55  ;;  %14622 = vmatprep.subr.bf16.mxu0 %v24277_v14  ;;  %v24339_v55 = vld [vmem:[#allocation9 + $0x274] ss:$8 sps:$4 sm:$0xff]  }
 0x594   :  { %14848 = vmatprep.subr.bf16.mxu1 %v24280_v7  ;;  %v24333_v7 = vld.sshfl [vmem:[#allocation4 + $0x4] sm:$0x11 pattern:$0x75316420] }
 0x596   :  { %14623 = vmatpush2.bf16.msra.mxu0 %v24283_v30 }
 0x597   :  { %14849 = vmatpush2.bf16.msra.mxu1 %v24287_v62  ;;  %14624 = vmatprep.subr.bf16.mxu0 %v24289_v40  ;;  %v24328_v62 = vld [vmem:[#allocation9 + $0x84] ss:$8 sps:$4 sm:$0xff]  }
 0x598   :  { %14850 = vmatprep.subr.bf16.mxu1 %v24292_v38  ;;  %v24323_v38 = vld [vmem:[#allocation9 + $0x90] ss:$8 sps:$4 sm:$0xff]   ;;  %25245 = vst [vmem:[#allocation30_spill] sm:$0xff] %v24328_v62 }
 0x599   :  { %25244 = vst [vmem:[#allocation29_spill] sm:$0xff] %v24323_v38 }
 0x59a   :  { %14625 = vmatpush2.bf16.msra.mxu0 %v24295_v13 }
 0x59b   :  { %14851 = vmatpush2.bf16.msra.mxu1 %v24299_v36  ;;  %14626 = vmatprep.subr.bf16.mxu0 %v24301_v34  ;;  %v24325_v36 = vld [vmem:[#allocation9 + $0x184] ss:$8 sps:$4 sm:$0xff]  }
 0x59c   :  { %14852 = vmatprep.subr.bf16.mxu1 %v24304_v52  ;;  %v24331_v52 = vld [vmem:[#allocation9 + $0x180] ss:$8 sps:$4 sm:$0xff]  }
 0x59e   :  { %14627 = vmatpush2.bf16.msra.mxu0 %v24307_v41 }
 0x59f   :  { %14853 = vmatpush2.bf16.msra.mxu1 %v24311_v25  ;;  %14628 = vmatprep.subr.bf16.mxu0 %v24313_v23  ;;  %v24337_v25 = vld [vmem:[#allocation9 + $0x80] ss:$8 sps:$4 sm:$0xff]  }
 0x5a0   :  { %14854 = vmatprep.subr.bf16.mxu1 %v24316_v44  ;;  %25246 = vst [vmem:[#allocation31_spill] sm:$0xff] %v24337_v25  ;;  %v14909_v44 = vcombine.high %v24333_v7, %v24333_v7 }
 0x5a2   :  { %14629 = vmatpush2.bf16.msra.mxu0 %v24319_v5  ;;  %v24359_v20 = vrot.slane %v14909_v44, %v20129_v26  ;;  %v24377_v44 = vld [vmem:[#allocation9 + $0x250] ss:$8 sps:$4 sm:$0xff]  }
 0x5a3   :  { %14855 = vmatpush2.bf16.msra.mxu1 %v24323_v38  ;;  %14630 = vmatprep.subr.bf16.mxu0 %v24325_v36  ;;  %v14430_v38 = vrot.slane %v24114_v46, %v20129_v26  ;;  %v24364_v46 = vld [vmem:[#allocation9 + $0x260] ss:$8 sps:$4 sm:$0xff]  }
 0x5a4   :  { %14856 = vmatprep.subr.bf16.mxu1 %v24328_v62 }
 0x5a6   :  { %14631 = vmatpush2.bf16.msra.mxu0 %v24331_v52 }
 0x5a7   :  { %14857 = vmatpush2.bf16.msra.mxu1 %v24337_v25  ;;  %15086 = vmatprep.subr.bf16.mxu0 %v24339_v55 }
 0x5a8   :  { %15267 = vmatprep.subr.bf16.mxu1 %v24118_v63  ;;  %v24370_v63 = vld [vmem:[#allocation9 + $0x254] ss:$8 sps:$4 sm:$0xff]  }
 0x5a9   :  { %v24356_v62 = vpop.f32.mrf.mxu0  ;;  %14633 = vmatmul.mubr.bf16.vlgmr.msra.gmra.mxu0 %v14430_v38 }
 0x5aa   :  { %v24361_v22 = vpop.f32.mrf.mxu1  ;;  %14859 = vmatmul.mubr.bf16.vlgmr.msra.gmra.mxu1 %v14656_v10  ;;  %15087 = vmatpush1.bf16.msra.mxu0 %v24347_v32 }
 0x5ab   :  { %15118 = vmatprep.mubr.bf16.mxu0 %v24359_v20  ;;  %v24367_v25 = vpop.f32.mrf.mxu0  ;;  %15088 = vmatprep.subr.bf16.mxu0 %v24353_v0 }
 0x5ac   :  { %v24372_v31 = vpop.f32.mrf.mxu1  ;;  %15268 = vmatpush1.bf16.msra.mxu1 %v24128_v57  ;;  %v24385_v57 = vld [vmem:[#allocation9 + $0x240] ss:$8 sps:$4 sm:$0xff]  }
 0x5ad   :  { %v12939_v38 = vpop.f32.mrf.mxu0  ;;  %15269 = vmatprep.subr.bf16.mxu1 %v24140_v58  ;;  %v24388_v58 = vld [vmem:[#allocation9 + $0x234] ss:$8 sps:$4 sm:$0xff]  }
 0x5ae   :  { %v13165_v10 = vpop.f32.mrf.mxu1  ;;  %15089 = vmatpush1.bf16.msra.mxu0 %v24364_v46 }
 0x5af   :  { %v12940_v32 = vpop.f32.mrf.mxu0  ;;  %15090 = vmatprep.subr.bf16.mxu0 %v24370_v63 }
 0x5b0   :  { %v13166_v0 = vpop.f32.mrf.mxu1  ;;  %15270 = vmatpush1.bf16.msra.mxu1 %v24150_v59  ;;  %v24393_v32 = vld [vmem:[#allocation9 + $0x230] ss:$8 sps:$4 sm:$0xff]   ;;  %v24396_v59 = vld [vmem:[#allocation9 + $0x224] ss:$8 sps:$4 sm:$0xff]  }
 0x5b1   :  { %15271 = vmatprep.subr.bf16.mxu1 %v24155_v43  ;;  %v24401_v43 = vld [vmem:[#allocation9 + $0x220] ss:$8 sps:$4 sm:$0xff]   ;;  %v24460_v0 = vld [vmem:[#allocation9 + $0x2a4] ss:$8 sps:$4 sm:$0xff]  }
 0x5b2   :  { %15091 = vmatpush1.bf16.msra.mxu0 %v24377_v44 }
 0x5b3   :  { %15092 = vmatprep.subr.bf16.mxu0 %v24380_v24 }
 0x5b4   :  { %15272 = vmatpush1.bf16.msra.mxu1 %v24167_v61  ;;  %v24404_v61 = vld [vmem:[#allocation9 + $0x214] ss:$8 sps:$4 sm:$0xff]  }
 0x5b5   :  { %15273 = vmatprep.subr.bf16.mxu1 %v24177_v28  ;;  %v24409_v28 = vld [vmem:[#allocation9 + $0x210] ss:$8 sps:$4 sm:$0xff]  }
 0x5b6   :  { %15093 = vmatpush1.bf16.msra.mxu0 %v24385_v57 }
 0x5b7   :  { %15094 = vmatprep.subr.bf16.mxu0 %v24388_v58 }
 0x5b8   :  { %15274 = vmatpush1.bf16.msra.mxu1 %v24184_v2  ;;  %v24412_v2 = vld [vmem:[#allocation9 + $0x204] ss:$8 sps:$4 sm:$0xff]  }
 0x5b9   :  { %15275 = vmatprep.subr.bf16.mxu1 %v24192_v33  ;;  %v24417_v33 = vld [vmem:[#allocation9 + $0x200] ss:$8 sps:$4 sm:$0xff]  }
 0x5ba   :  { %15095 = vmatpush1.bf16.msra.mxu0 %v24393_v32 }
 0x5bb   :  { %15096 = vmatprep.subr.bf16.mxu0 %v24396_v59 }
 0x5bc   :  { %15276 = vmatpush1.bf16.msra.mxu1 %v24198_v47  ;;  %v24420_v47 = vld [vmem:[#allocation9 + $0x2f4] ss:$8 sps:$4 sm:$0xff]  }
 0x5bd   :  { %15277 = vmatprep.subr.bf16.mxu1 %v24204_v15  ;;  %v24425_v15 = vld [vmem:[#allocation9 + $0x2f0] ss:$8 sps:$4 sm:$0xff]  }
 0x5be   :  { %15097 = vmatpush1.bf16.msra.mxu0 %v24401_v43 }
 0x5bf   :  { %15098 = vmatprep.subr.bf16.mxu0 %v24404_v61 }
 0x5c0   :  { %15278 = vmatpush1.bf16.msra.mxu1 %v24210_v6  ;;  %v24428_v6 = vld [vmem:[#allocation9 + $0x2e4] ss:$8 sps:$4 sm:$0xff]  }
 0x5c1   :  { %15279 = vmatprep.subr.bf16.mxu1 %v24217_v19  ;;  %v24433_v19 = vld [vmem:[#allocation9 + $0x2e0] ss:$8 sps:$4 sm:$0xff]  }
 0x5c2   :  { %15099 = vmatpush1.bf16.msra.mxu0 %v24409_v28 }
 0x5c3   :  { %15100 = vmatprep.subr.bf16.mxu0 %v24412_v2 }
 0x5c4   :  { %15280 = vmatpush1.bf16.msra.mxu1 %v24223_v48  ;;  %v24436_v48 = vld [vmem:[#allocation9 + $0x2d4] ss:$8 sps:$4 sm:$0xff]  }
 0x5c5   :  { %15281 = vmatprep.subr.bf16.mxu1 %v24229_v53  ;;  %v24441_v53 = vld [vmem:[#allocation9 + $0x2d0] ss:$8 sps:$4 sm:$0xff]  }
 0x5c6   :  { %15101 = vmatpush1.bf16.msra.mxu0 %v24417_v33 }
 0x5c7   :  { %15102 = vmatprep.subr.bf16.mxu0 %v24420_v47 }
 0x5c8   :  { %15282 = vmatpush1.bf16.msra.mxu1 %v24235_v29  ;;  %v24444_v29 = vld [vmem:[#allocation9 + $0x2c4] ss:$8 sps:$4 sm:$0xff]  }
 0x5c9   :  { %15283 = vmatprep.subr.bf16.mxu1 %v24241_v37  ;;  %v24449_v37 = vld [vmem:[#allocation9 + $0x2c0] ss:$8 sps:$4 sm:$0xff]  }
 0x5ca   :  { %15103 = vmatpush2.bf16.msra.mxu0 %v24425_v15 }
 0x5cb   :  { %15104 = vmatprep.subr.bf16.mxu0 %v24428_v6 }
 0x5cc   :  { %15284 = vmatpush2.bf16.msra.mxu1 %v24247_v18  ;;  %v24452_v18 = vld [vmem:[#allocation9 + $0x2b4] ss:$8 sps:$4 sm:$0xff]  }
 0x5cd   :  { %15285 = vmatprep.subr.bf16.mxu1 %v24253_v3  ;;  %v24457_v3 = vld [vmem:[#allocation9 + $0x2b0] ss:$8 sps:$4 sm:$0xff]  }
 0x5ce   :  { %15105 = vmatpush2.bf16.msra.mxu0 %v24433_v19 }
 0x5cf   :  { %15106 = vmatprep.subr.bf16.mxu0 %v24436_v48 }
 0x5d0   :  { %15286 = vmatpush2.bf16.msra.mxu1 %v24259_v49  ;;  %v24465_v49 = vld [vmem:[#allocation9 + $0x2a0] ss:$8 sps:$4 sm:$0xff]  }
 0x5d1   :  { %15287 = vmatprep.subr.bf16.mxu1 %v24265_v42  ;;  %v24468_v42 = vld [vmem:[#allocation9 + $0x294] ss:$8 sps:$4 sm:$0xff]  }
 0x5d2   :  { %15107 = vmatpush2.bf16.msra.mxu0 %v24441_v53 }
 0x5d3   :  { %15108 = vmatprep.subr.bf16.mxu0 %v24444_v29 }
 0x5d4   :  { %15288 = vmatpush2.bf16.msra.mxu1 %v24271_v12  ;;  %v24473_v12 = vld [vmem:[#allocation9 + $0x290] ss:$8 sps:$4 sm:$0xff]  }
 0x5d5   :  { %15289 = vmatprep.subr.bf16.mxu1 %v24277_v14  ;;  %v24476_v14 = vld [vmem:[#allocation9 + $0x284] ss:$8 sps:$4 sm:$0xff]  }
 0x5d6   :  { %15109 = vmatpush2.bf16.msra.mxu0 %v24449_v37 }
 0x5d7   :  { %15110 = vmatprep.subr.bf16.mxu0 %v24452_v18 }
 0x5d8   :  { %15290 = vmatpush2.bf16.msra.mxu1 %v24283_v30  ;;  %v24481_v30 = vld [vmem:[#allocation9 + $0x280] ss:$8 sps:$4 sm:$0xff]  }
 0x5d9   :  { %15291 = vmatprep.subr.bf16.mxu1 %v24289_v40  ;;  %25249 = vst [vmem:[#allocation34_spill] sm:$0xff] %v24481_v30  ;;  %v13429_v40 = vld [vmem:[%s25065_s8] sm:$0x3] }
 0x5da   :  { %15111 = vmatpush2.bf16.msra.mxu0 %v24457_v3 }
 0x5db   :  { %15112 = vmatprep.subr.bf16.mxu0 %v24460_v0 }
 0x5dc   :  { %15292 = vmatpush2.bf16.msra.mxu1 %v24295_v13  ;;  %v24492_v13 = vrot.slane %v24333_v7, %v20129_v26 }
 0x5dd   :  { %15293 = vmatprep.subr.bf16.mxu1 %v24301_v34  ;;  %v13162_v34 = vadd.f32 %v24361_v22, %v24356_v62  ;;  %v13438_v62 = vrot.slane %v13429_v40, %v20208_v51 }
 0x5de   :  { %15113 = vmatpush2.bf16.msra.mxu0 %v24465_v49 }
 0x5df   :  { %15114 = vmatprep.subr.bf16.mxu0 %v24468_v42 }
 0x5e0   :  { %15294 = vmatpush2.bf16.msra.mxu1 %v24307_v41  ;;  %v13434_v41 = vrot.slane %v13429_v40, %v20192_v45 }
 0x5e1   :  { %15295 = vmatprep.subr.bf16.mxu1 %v24313_v23 }
 0x5e2   :  { %15115 = vmatpush2.bf16.msra.mxu0 %v24473_v12 }
 0x5e3   :  { %15116 = vmatprep.subr.bf16.mxu0 %v24476_v14 }
 0x5e4   :  { %15296 = vmatpush2.bf16.msra.mxu1 %v24319_v5 }
 0x5e5   :  { %15297 = vmatprep.subr.bf16.mxu1 %v24325_v36  ;;  %v13164_v36 = vadd.f32 %v24372_v31, %v24367_v25 }
 0x5e6   :  { %15117 = vmatpush2.bf16.msra.mxu0 %v24481_v30 }
 0x5e7   :  { %15308 = vmatprep.subr.bf16.mxu0 %v24121_v17  ;;  %v13449_v17 = vld [vmem:[%s25066_s9] sm:$0x3] }
 0x5e8   :  { %15298 = vmatpush2.bf16.msra.mxu1 %v24331_v52  ;;  %v13454_v31 = vrot.slane %v13449_v17, %v20192_v45  ;;  %v13458_v40 = vrot.slane %v13449_v17, %v20208_v51 }
 0x5e9   :  { %v13420_v23 = vpop.f32.mrf.mxu0  ;;  %15119 = vmatmul.mubr.bf16.vlgmr.msra.gmra.mxu0 %v24492_v13  ;;  %15375 = vmatprep.subr.bf16.mxu1 %v24339_v55 }
 0x5ea   :  { %v13427_v5 = vadd.f32 %v13420_v23, %v13162_v34  ;;  %v24506_v7 = vpop.f32.mrf.mxu1  ;;  %15309 = vmatpush1.bf16.msra.mxu0 %v24135_v39  ;;  %15340 = vmatprep.mubr.bf16.mxu0 %v24359_v20  ;;  %v13463_v39 = vld [vmem:[%s25067_s10] sm:$0x3] }
 0x5eb   :  { %v13422_v52 = vpop.f32.mrf.mxu0  ;;  %15310 = vmatprep.subr.bf16.mxu0 %v24142_v54 }
 0x5ec   :  { %v13441_v55 = vadd.f32 %v13434_v41, %v13427_v5  ;;  %v13428_v22 = vadd.f32 %v13422_v52, %v13164_v36  ;;  %v24512_v38 = vpop.f32.mrf.mxu1  ;;  %v13468_v52 = vrot.slane %v13463_v39, %v20192_v45 }
 0x5ed   :  { %v13424_v25 = vpop.f32.mrf.mxu0 }
 0x5ee   :  { %vm13443_vm5 = vcmp.gt.f32.partialorder %v13441_v55, 0.0  ;;  %v13445_v10 = vmul.f32 0.2, %v13441_v55  ;;  %v13442_v34 = vadd.f32 %v13438_v62, %v13428_v22  ;;  %v13788_v20 = vpop.f32.mrf.mxu1  ;;  %15311 = vmatpush1.bf16.msra.mxu0 %v24153_v56  ;;  %v13472_v25 = vrot.slane %v13463_v39, %v20208_v51  ;;  %v25257_v22 = vld [vmem:[#allocation20_spill] sm:$0xff]  ;;  %v25260_v39 = vld [vmem:[#allocation23_spill] sm:$0xff] }
 0x5ef   :  { %v13425_v54 = vpop.f32.mrf.mxu0  ;;  %15312 = vmatprep.subr.bf16.mxu0 %v24164_v50 }
 0x5f0   :  { %v13447_v41 = vsel %vm13443_vm5, %v13441_v55, %v13445_v10  ;;  %vm13444_vm6 = vcmp.gt.f32.partialorder %v13442_v34, 0.0  ;;  %v13446_v23 = vmul.f32 0.2, %v13442_v34  ;;  %v13789_v36 = vpop.f32.mrf.mxu1  ;;  %v25259_v10 = vld [vmem:[#allocation22_spill] sm:$0xff] }
 0x5f1   :  { %v13461_v5 = vmul.f32 %v13454_v31, %v13447_v41  ;;  %v25258_v31 = vld [vmem:[#allocation21_spill] sm:$0xff] }
 0x5f2   :  { %v13448_v30 = vsel %vm13444_vm6, %v13442_v34, %v13446_v23  ;;  %15313 = vmatpush1.bf16.msra.mxu0 %v24175_v35 }
 0x5f3   :  { %v13462_v62 = vmul.f32 %v13458_v40, %v13448_v30  ;;  %15314 = vmatprep.subr.bf16.mxu0 %v24180_v27  ;;  %v13475_v56 = vadd.f32 %v13468_v52, %v13461_v5 }
 0x5f5   :  { %v13476_v17 = vadd.f32 %v13472_v25, %v13462_v62 }
 0x5f6   :  { %15315 = vmatpush1.bf16.msra.mxu0 %v24190_v1 }
 0x5f7   :  { %v17899_v50 = vpack.c.bf16 %v13476_v17, %v13475_v56  ;;  %15316 = vmatprep.subr.bf16.mxu0 %v24195_v9  ;;  %v25250_v9 = vld [vmem:[#allocation15_spill] sm:$0xff] }
 0x5f9   :  { %v13488_v55 = vrot.slane %v17899_v50, %v20129_v26 }
 0x5fa   :  { %15317 = vmatpush1.bf16.msra.mxu0 %v24202_v60  ;;  %v25251_v60 = vld [vmem:[#allocation16_spill] sm:$0xff] }
 0x5fb   :  { %17900 = vst.sshfl [vmem:[#allocation4 + $0x6] sm:$0x5 pattern:$0x73625140] %v13488_v55  ;;  %15318 = vmatprep.subr.bf16.mxu0 %v24207_v16  ;;  %v25252_v16 = vld [vmem:[#allocation32_spill] sm:$0xff] }
 0x5fe   :  { %15319 = vmatpush1.bf16.msra.mxu0 %v24215_v21  ;;  %v25253_v21 = vld [vmem:[#allocation17_spill] sm:$0xff] }
 0x5ff   :  { %15320 = vmatprep.subr.bf16.mxu0 %v24220_v8  ;;  %v25254_v8 = vld [vmem:[#allocation33_spill] sm:$0xff] }
 0x602   :  { %15321 = vmatpush1.bf16.msra.mxu0 %v24227_v11  ;;  %v18101_v35 = vld.sshfl [vmem:[#allocation4 + $0x6] sm:$0x11 pattern:$0x75316420] }
 0x603   :  { %15322 = vmatprep.subr.bf16.mxu0 %v24232_v4  ;;  %v15250_v27 = vcombine.high %v18101_v35, %v18101_v35  ;;  %v15257_v30 = vrot.slane %v18101_v35, %v20129_v26  ;;  %v25255_v11 = vld [vmem:[#allocation18_spill] sm:$0xff]  ;;  %v25256_v4 = vld [vmem:[#allocation19_spill] sm:$0xff] }
 0x605   :  { %v15264_v1 = vrot.slane %v15250_v27, %v20129_v26 }
 0x606   :  { %15323 = vmatpush1.bf16.msra.mxu0 %v25250_v9 }
 0x607   :  { %15299 = vmatprep.mubr.bf16.mxu1 %v15264_v1  ;;  %15324 = vmatprep.subr.bf16.mxu0 %v25251_v60  ;;  %v15205_v60 = vld [vmem:[%s25072_s15 + $0xe0] sm:$0xff] }
 0x608   :  { %15300 = vmatmul.mubr.bf16.vlgmr.msra.gmra.mxu1 %v15257_v30 }
 0x609   :  { %15376 = vmatpush1.bf16.msra.mxu1 %v25252_v16  ;;  %v15189_v16 = vld [vmem:[%s25072_s15 + $0x60] sm:$0xff] }
 0x60a   :  { %15325 = vmatpush2.bf16.msra.mxu0 %v25253_v21  ;;  %15377 = vmatprep.subr.bf16.mxu1 %v25254_v8  ;;  %v15204_v21 = vld [vmem:[%s25072_s15 + $0xd8] sm:$0xff] }
 0x60b   :  { %15326 = vmatprep.subr.bf16.mxu0 %v25255_v11  ;;  %v15188_v8 = vld [vmem:[%s25072_s15 + $0x58] sm:$0xff]  ;;  %v15203_v11 = vld [vmem:[%s25072_s15 + $0xd0] sm:$0xff] }
 0x60d   :  { %15378 = vmatpush1.bf16.msra.mxu1 %v24364_v46  ;;  %v25261_v46 = vld [vmem:[#allocation24_spill] sm:$0xff] }
 0x60e   :  { %15327 = vmatpush2.bf16.msra.mxu0 %v25256_v4  ;;  %15379 = vmatprep.subr.bf16.mxu1 %v24370_v63  ;;  %v25262_v63 = vld [vmem:[#allocation25_spill] sm:$0xff] }
 0x60f   :  { %15328 = vmatprep.subr.bf16.mxu0 %v25257_v22  ;;  %v15187_v4 = vld [vmem:[%s25072_s15 + $0x50] sm:$0xff]  ;;  %v15202_v22 = vld [vmem:[%s25072_s15 + $0xc8] sm:$0xff] }
 0x611   :  { %15380 = vmatpush1.bf16.msra.mxu1 %v24377_v44  ;;  %v25263_v44 = vld [vmem:[#allocation26_spill] sm:$0xff] }
 0x612   :  { %15329 = vmatpush2.bf16.msra.mxu0 %v25258_v31  ;;  %15381 = vmatprep.subr.bf16.mxu1 %v24380_v24  ;;  %v25264_v24 = vld [vmem:[#allocation27_spill] sm:$0xff] }
 0x613   :  { %15330 = vmatprep.subr.bf16.mxu0 %v25259_v10  ;;  %v15186_v31 = vld [vmem:[%s25072_s15 + $0x48] sm:$0xff]  ;;  %v15201_v10 = vld [vmem:[%s25072_s15 + $0xc0] sm:$0xff] }
 0x615   :  { %15382 = vmatpush1.bf16.msra.mxu1 %v24385_v57  ;;  %v25265_v57 = vld [vmem:[#allocation28_spill] sm:$0xff] }
 0x616   :  { %15331 = vmatpush2.bf16.msra.mxu0 %v25260_v39  ;;  %15383 = vmatprep.subr.bf16.mxu1 %v24388_v58  ;;  %v25266_v58 = vld [vmem:[#allocation29_spill] sm:$0xff]  ;;  %v15185_v39 = vld [vmem:[%s25072_s15 + $0x40] sm:$0xff] }
 0x617   :  { %15332 = vmatprep.subr.bf16.mxu0 %v25261_v46  ;;  %v15200_v46 = vld [vmem:[%s25072_s15 + $0xb8] sm:$0xff] }
 0x619   :  { %15384 = vmatpush1.bf16.msra.mxu1 %v24393_v32  ;;  %v25267_v32 = vld [vmem:[#allocation30_spill] sm:$0xff] }
 0x61a   :  { %15333 = vmatpush2.bf16.msra.mxu0 %v25262_v63  ;;  %15385 = vmatprep.subr.bf16.mxu1 %v24396_v59  ;;  %v25268_v59 = vld [vmem:[#allocation31_spill] sm:$0xff]  ;;  %v15184_v63 = vld [vmem:[%s25072_s15 + $0x38] sm:$0xff] }
 0x61b   :  { %15334 = vmatprep.subr.bf16.mxu0 %v25263_v44  ;;  %v15199_v44 = vld [vmem:[%s25072_s15 + $0xb0] sm:$0xff] }
 0x61d   :  { %15386 = vmatpush1.bf16.msra.mxu1 %v24401_v43  ;;  %v14278_v43 = vld [vmem:[%s25065_s8] sm:$0x3] }
 0x61e   :  { %15335 = vmatpush2.bf16.msra.mxu0 %v25264_v24  ;;  %15387 = vmatprep.subr.bf16.mxu1 %v24404_v61  ;;  %v14283_v34 = vrot.slane %v14278_v43, %v20192_v45  ;;  %v15183_v24 = vld [vmem:[%s25072_s15 + $0x30] sm:$0xff] }
 0x61f   :  { %15336 = vmatprep.subr.bf16.mxu0 %v25265_v57  ;;  %v15198_v57 = vld [vmem:[%s25072_s15 + $0xa8] sm:$0xff] }
 0x621   :  { %15388 = vmatpush1.bf16.msra.mxu1 %v24409_v28 }
 0x622   :  { %15337 = vmatpush2.bf16.msra.mxu0 %v25266_v58  ;;  %15389 = vmatprep.subr.bf16.mxu1 %v24412_v2  ;;  %v15182_v58 = vld [vmem:[%s25072_s15 + $0x28] sm:$0xff] }
 0x623   :  { %15338 = vmatprep.subr.bf16.mxu0 %v25267_v32  ;;  %v15197_v32 = vld [vmem:[%s25072_s15 + $0xa0] sm:$0xff] }
 0x625   :  { %15390 = vmatpush1.bf16.msra.mxu1 %v24417_v33 }
 0x626   :  { %15339 = vmatpush2.bf16.msra.mxu0 %v25268_v59  ;;  %15391 = vmatprep.subr.bf16.mxu1 %v24420_v47  ;;  %v14298_v47 = vld [vmem:[%s25066_s9] sm:$0x3] }
 0x627   :  { %v14307_v62 = vrot.slane %v14298_v47, %v20208_v51  ;;  %v15181_v59 = vld [vmem:[%s25072_s15 + $0x20] sm:$0xff] }
 0x629   :  { %v14010_v61 = vpop.f32.mrf.mxu0  ;;  %15341 = vmatmul.mubr.bf16.vlgmr.msra.gmra.mxu0 %v24492_v13  ;;  %15392 = vmatpush2.bf16.msra.mxu1 %v24425_v15  ;;  %v14287_v13 = vrot.slane %v14278_v43, %v20208_v51  ;;  %v15196_v43 = vld [vmem:[%s25072_s15 + $0x98] sm:$0xff] }
 0x62a   :  { %v14011_v28 = vadd.f32 %v14010_v61, %v24506_v7  ;;  %v14269_v2 = vpop.f32.mrf.mxu1  ;;  %15393 = vmatprep.subr.bf16.mxu1 %v24428_v6  ;;  %v14303_v6 = vrot.slane %v14298_v47, %v20192_v45  ;;  %v15180_v61 = vld [vmem:[%s25072_s15 + $0x18] sm:$0xff]  ;;  %v15177_v47 = vld [vmem:[%s25072_s15] sm:$0xff] }
 0x62b   :  { %v14012_v33 = vpop.f32.mrf.mxu0 }
 0x62c   :  { %v14276_v20 = vadd.f32 %v14269_v2, %v14011_v28  ;;  %v14013_v40 = vadd.f32 %v14012_v33, %v24512_v38  ;;  %v14271_v54 = vpop.f32.mrf.mxu1  ;;  %v14312_v38 = vld [vmem:[%s25067_s10] sm:$0x3]  ;;  %v15195_v28 = vld [vmem:[%s25072_s15 + $0x90] sm:$0xff]  ;;  %v15178_v33 = vld [vmem:[%s25072_s15 + $0x8] sm:$0xff] }
 0x62d   :  { %v14014_v41 = vpop.f32.mrf.mxu0  ;;  %15394 = vmatpush2.bf16.msra.mxu1 %v24433_v19  ;;  %v14317_v17 = vrot.slane %v14312_v38, %v20192_v45  ;;  %v14321_v50 = vrot.slane %v14312_v38, %v20208_v51  ;;  %v15179_v2 = vld [vmem:[%s25072_s15 + $0x10] sm:$0xff]  ;;  %v15445_v38 = vld [vmem:[%s25072_s15 + $0x178] sm:$0xff] }
 0x62e   :  { %v14290_v15 = vadd.f32 %v14283_v34, %v14276_v20  ;;  %v14277_v7 = vadd.f32 %v14271_v54, %v14013_v40  ;;  %v14273_v23 = vpop.f32.mrf.mxu1  ;;  %15395 = vmatprep.subr.bf16.mxu1 %v24436_v48  ;;  %v15194_v34 = vld [vmem:[%s25072_s15 + $0x88] sm:$0xff]  ;;  %v15193_v20 = vld [vmem:[%s25072_s15 + $0x80] sm:$0xff]  ;;  %v15240_v40 = vld [vmem:[%s25074_s17 + $0xf8] sm:$0xff] }
 0x62f   :  { %v14015_v36 = vpop.f32.mrf.mxu0 }
 0x630   :  { %vm14292_vm7 = vcmp.gt.f32.partialorder %v14290_v15, 0.0  ;;  %v14294_v5 = vmul.f32 0.2, %v14290_v15  ;;  %v14291_v52 = vadd.f32 %v14287_v13, %v14277_v7  ;;  %v14274_v25 = vpop.f32.mrf.mxu1 }
 0x631   :  { %15396 = vmatpush2.bf16.msra.mxu1 %v24441_v53 }
 0x632   :  { %v14296_v19 = vsel %vm14292_vm7, %v14290_v15, %v14294_v5  ;;  %vm14293_vm8 = vcmp.gt.f32.partialorder %v14291_v52, 0.0  ;;  %v14295_v56 = vmul.f32 0.2, %v14291_v52  ;;  %15397 = vmatprep.subr.bf16.mxu1 %v24444_v29  ;;  %v15208_v29 = vld [vmem:[%s25072_s15 + $0xf8] sm:$0xff] }
 0x633   :  { %v14310_v48 = vmul.f32 %v14303_v6, %v14296_v19  ;;  %v15461_v5 = vld [vmem:[%s25072_s15 + $0x1f8] sm:$0xff]  ;;  %v15459_v19 = vld [vmem:[%s25072_s15 + $0x1e8] sm:$0xff] }
 0x634   :  { %v14297_v55 = vsel %vm14293_vm8, %v14291_v52, %v14295_v56  ;;  %v15460_v52 = vld [vmem:[%s25072_s15 + $0x1f0] sm:$0xff]  ;;  %18105 = vmatprep.subr.mxu0 %v15461_v5  ;;  %v15443_v56 = vld [vmem:[%s25072_s15 + $0x168] sm:$0xff] }
 0x635   :  { %v14311_v35 = vmul.f32 %v14307_v62, %v14297_v55  ;;  %15398 = vmatpush2.bf16.msra.mxu1 %v24449_v37  ;;  %v14324_v27 = vadd.f32 %v14317_v17, %v14310_v48  ;;  %v15444_v62 = vld [vmem:[%s25072_s15 + $0x170] sm:$0xff]  ;;  %18106 = vmatpush3.msra.mxu0 %v15445_v38  ;;  %v15458_v48 = vld [vmem:[%s25072_s15 + $0x1e0] sm:$0xff]  ;;  %v15441_v55 = vld [vmem:[%s25072_s15 + $0x158] sm:$0xff] }
 0x636   :  { %15399 = vmatprep.subr.bf16.mxu1 %v24452_v18  ;;  %v25269_v18 = vld [vmem:[#allocation34_spill] sm:$0xff]  ;;  %18107 = vmatprep.subr.mxu0 %v15460_v52  ;;  %v15222_v5 = vld [vmem:[%s25074_s17 + $0x68] sm:$0xff] }
 0x637   :  { %v14325_v1 = vadd.f32 %v14321_v50, %v14311_v35  ;;  %18108 = vmatpush3.msra.mxu0 %v15444_v62  ;;  %v15442_v17 = vld [vmem:[%s25072_s15 + $0x160] sm:$0xff]  ;;  %v15457_v50 = vld [vmem:[%s25072_s15 + $0x1d8] sm:$0xff]  ;;  %v15456_v35 = vld [vmem:[%s25072_s15 + $0x1d0] sm:$0xff] }
 0x638   :  { %18109 = vmatprep.subr.mxu0 %v15459_v19  ;;  %v15237_v38 = vld [vmem:[%s25074_s17 + $0xe0] sm:$0xff]  ;;  %v15220_v62 = vld [vmem:[%s25074_s17 + $0x58] sm:$0xff]  ;;  %v15235_v19 = vld [vmem:[%s25074_s17 + $0xd0] sm:$0xff] }
 0x639   :  { %v18000_v9 = vpack.c.bf16 %v14325_v1, %v14324_v27  ;;  %15400 = vmatpush2.bf16.msra.mxu1 %v24457_v3  ;;  %18110 = vmatpush3.msra.mxu0 %v15443_v56  ;;  %v15440_v27 = vld [vmem:[%s25072_s15 + $0x150] sm:$0xff]  ;;  %v15455_v1 = vld [vmem:[%s25072_s15 + $0x1c8] sm:$0xff]  ;;  %v15221_v52 = vld [vmem:[%s25074_s17 + $0x60] sm:$0xff] }
 0x63a   :  { %15401 = vmatprep.subr.bf16.mxu1 %v24460_v0  ;;  %18111 = vmatprep.subr.mxu0 %v15458_v48  ;;  %v15219_v56 = vld [vmem:[%s25074_s17 + $0x50] sm:$0xff]  ;;  %v15234_v48 = vld [vmem:[%s25074_s17 + $0xc8] sm:$0xff] }
 0x63b   :  { %v14337_v53 = vrot.slane %v18000_v9, %v20129_v26  ;;  %18112 = vmatpush3.msra.mxu0 %v15442_v17  ;;  %v15439_v9 = vld [vmem:[%s25072_s15 + $0x148] sm:$0xff] }
 0x63c   :  { %18113 = vmatprep.subr.mxu0 %v15457_v50  ;;  %v15218_v17 = vld [vmem:[%s25074_s17 + $0x48] sm:$0xff]  ;;  %v15233_v50 = vld [vmem:[%s25074_s17 + $0xc0] sm:$0xff] }
 0x63d   :  { %18001 = vst.sshfl [vmem:[#allocation4 + $0x8] sm:$0x5 pattern:$0x73625140] %v14337_v53  ;;  %15402 = vmatpush2.bf16.msra.mxu1 %v24465_v49  ;;  %v15192_v49 = vld [vmem:[%s25072_s15 + $0x78] sm:$0xff]  ;;  %18114 = vmatpush3.msra.mxu0 %v15441_v55  ;;  %v15454_v53 = vld [vmem:[%s25072_s15 + $0x1c0] sm:$0xff] }
 0x63e   :  { %15403 = vmatprep.subr.bf16.mxu1 %v24468_v42  ;;  %v15207_v42 = vld [vmem:[%s25072_s15 + $0xf0] sm:$0xff]  ;;  %18115 = vmatprep.subr.mxu0 %v15456_v35  ;;  %v15217_v55 = vld [vmem:[%s25074_s17 + $0x40] sm:$0xff]  ;;  %v15232_v35 = vld [vmem:[%s25074_s17 + $0xb8] sm:$0xff] }
 0x63f   :  { %18116 = vmatpush3.msra.mxu0 %v15440_v27  ;;  %v15216_v27 = vld [vmem:[%s25074_s17 + $0x38] sm:$0xff] }
 0x640   :  { %18117 = vmatprep.subr.mxu0 %v15455_v1  ;;  %v15231_v1 = vld [vmem:[%s25074_s17 + $0xb0] sm:$0xff] }
 0x641   :  { %15404 = vmatpush2.bf16.msra.mxu1 %v24473_v12  ;;  %v15191_v12 = vld [vmem:[%s25072_s15 + $0x70] sm:$0xff]  ;;  %18118 = vmatpush3.msra.mxu0 %v15439_v9 }
 0x642   :  { %15405 = vmatprep.subr.bf16.mxu1 %v24476_v14  ;;  %v15206_v14 = vld [vmem:[%s25072_s15 + $0xe8] sm:$0xff]  ;;  %18119 = vmatprep.subr.mxu0 %v15454_v53  ;;  %v15215_v53 = vld [vmem:[%s25074_s17 + $0x30] sm:$0xff] }
 0x644   :  { %v18102_v37 = vld.sshfl [vmem:[#allocation4 + $0x8] sm:$0x11 pattern:$0x75316420] }
 0x645   :  { %15406 = vmatpush2.bf16.msra.mxu1 %v25269_v18  ;;  %v15358_v3 = vcombine.high %v18102_v37, %v18102_v37  ;;  %v15365_v30 = vrot.slane %v18102_v37, %v20129_v26  ;;  %v15453_v37 = vld [vmem:[%s25072_s15 + $0x1b8] sm:$0xff] }
 0x646   :  { %18140 = vmatprep.subr.mxu1 %v15208_v29  ;;  %v15438_v29 = vld [vmem:[%s25072_s15 + $0x140] sm:$0xff]  ;;  %v15437_v18 = vld [vmem:[%s25072_s15 + $0x138] sm:$0xff] }
 0x647   :  { %v15372_v0 = vrot.slane %v15358_v3, %v20129_v26  ;;  %v15190_v26 = vld [vmem:[%s25072_s15 + $0x68] sm:$0xff]  ;;  %18120 = vmatpush3.msra.mxu0 %v15438_v29  ;;  %v15452_v3 = vld [vmem:[%s25072_s15 + $0x1b0] sm:$0xff] }
 0x648   :  { %18121 = vmatprep.subr.mxu0 %v15453_v37  ;;  %v15230_v29 = vld [vmem:[%s25074_s17 + $0xa8] sm:$0xff] }
 0x649   :  { %15407 = vmatprep.mubr.bf16.mxu1 %v15372_v0  ;;  %18122 = vmatpush3.msra.mxu0 %v15437_v18  ;;  %v15436_v0 = vld [vmem:[%s25072_s15 + $0x130] sm:$0xff]  ;;  %v15214_v18 = vld [vmem:[%s25074_s17 + $0x28] sm:$0xff] }
 0x64a   :  { %15408 = vmatmul.mubr.bf16.vlgmr.msra.gmra.mxu1 %v15365_v30  ;;  %18123 = vmatprep.subr.mxu0 %v15452_v3  ;;  %v15451_v30 = vld [vmem:[%s25072_s15 + $0x1a8] sm:$0xff]  ;;  %v15229_v3 = vld [vmem:[%s25074_s17 + $0xa0] sm:$0xff] }
 0x64b   :  { %18141 = vmatpush3.msra.mxu1 %v15192_v49  ;;  %18124 = vmatpush3.msra.mxu0 %v15436_v0  ;;  %v15435_v49 = vld [vmem:[%s25072_s15 + $0x128] sm:$0xff] }
 0x64c   :  { %18142 = vmatprep.subr.mxu1 %v15207_v42  ;;  %18125 = vmatprep.subr.mxu0 %v15451_v30  ;;  %v15450_v42 = vld [vmem:[%s25072_s15 + $0x1a0] sm:$0xff] }
 0x64d   :  { %18143 = vmatpush3.msra.mxu1 %v15191_v12  ;;  %18126 = vmatpush3.msra.mxu0 %v15435_v49  ;;  %v15434_v12 = vld [vmem:[%s25072_s15 + $0x120] sm:$0xff]  ;;  %v15228_v49 = vld [vmem:[%s25074_s17 + $0x98] sm:$0xff] }
 0x64e   :  { %18144 = vmatprep.subr.mxu1 %v15206_v14  ;;  %18127 = vmatprep.subr.mxu0 %v15450_v42  ;;  %v15449_v14 = vld [vmem:[%s25072_s15 + $0x198] sm:$0xff]  ;;  %v15213_v30 = vld [vmem:[%s25074_s17 + $0x20] sm:$0xff] }
 0x64f   :  { %18145 = vmatpush3.msra.mxu1 %v15190_v26  ;;  %18128 = vmatpush3.msra.mxu0 %v15434_v12  ;;  %v15433_v26 = vld [vmem:[%s25072_s15 + $0x118] sm:$0xff] }
 0x650   :  { %18146 = vmatprep.subr.mxu1 %v15205_v60  ;;  %18129 = vmatprep.subr.mxu0 %v15449_v14  ;;  %v15448_v60 = vld [vmem:[%s25072_s15 + $0x190] sm:$0xff]  ;;  %v15212_v12 = vld [vmem:[%s25074_s17 + $0x18] sm:$0xff] }
 0x651   :  { %18147 = vmatpush3.msra.mxu1 %v15189_v16  ;;  %18130 = vmatpush3.msra.mxu0 %v15433_v26  ;;  %v15432_v16 = vld [vmem:[%s25072_s15 + $0x110] sm:$0xff] }
 0x652   :  { %18148 = vmatprep.subr.mxu1 %v15204_v21  ;;  %18131 = vmatprep.subr.mxu0 %v15448_v60  ;;  %v15447_v21 = vld [vmem:[%s25072_s15 + $0x188] sm:$0xff]  ;;  %v15227_v14 = vld [vmem:[%s25074_s17 + $0x90] sm:$0xff] }
 0x653   :  { %18149 = vmatpush3.msra.mxu1 %v15188_v8  ;;  %v15431_v8 = vld [vmem:[%s25072_s15 + $0x108] sm:$0xff]  ;;  %18132 = vmatpush3.msra.mxu0 %v15432_v16  ;;  %v15211_v26 = vld [vmem:[%s25074_s17 + $0x10] sm:$0xff] }
 0x654   :  { %18150 = vmatprep.subr.mxu1 %v15203_v11  ;;  %v15446_v11 = vld [vmem:[%s25072_s15 + $0x180] sm:$0xff]  ;;  %18133 = vmatprep.subr.mxu0 %v15447_v21  ;;  %v15226_v60 = vld [vmem:[%s25074_s17 + $0x88] sm:$0xff] }
 0x655   :  { %18151 = vmatpush3.msra.mxu1 %v15187_v4  ;;  %v15430_v4 = vld [vmem:[%s25072_s15 + $0x100] sm:$0xff]  ;;  %18134 = vmatpush3.msra.mxu0 %v15431_v8  ;;  %v15210_v16 = vld [vmem:[%s25074_s17 + $0x8] sm:$0xff] }
 0x656   :  { %18152 = vmatprep.subr.mxu1 %v15202_v22  ;;  %18135 = vmatprep.subr.mxu0 %v15446_v11  ;;  %v15633_v22 = vld [vmem:[%s25074_s17 + $0x1f8] sm:$0xff]  ;;  %v15225_v21 = vld [vmem:[%s25074_s17 + $0x80] sm:$0xff] }
 0x657   :  { %18153 = vmatpush3.msra.mxu1 %v15186_v31  ;;  %18136 = vmatpush3.msra.mxu0 %v15430_v4  ;;  %v15129_v31 = vld [vmem:[%s25069_s12] sm:$0x3] }
 0x658   :  { %18154 = vmatprep.subr.mxu1 %v15201_v10  ;;  %18175 = vmatprep.subr.mxu0 %v15633_v22  ;;  %v24813_v10 = vrot.slane %v15129_v31, %v20192_v45  ;;  %v15209_v8 = vld [vmem:[%s25074_s17] sm:$0xff] }
 0x659   :  { %18155 = vmatpush3.msra.mxu1 %v15185_v39 }
 0x65a   :  { %18156 = vmatprep.subr.mxu1 %v15200_v46 }
 0x65b   :  { %18157 = vmatpush3.msra.mxu1 %v15184_v63 }
 0x65c   :  { %18158 = vmatprep.subr.mxu1 %v15199_v44  ;;  %v24819_v44 = vrot.slane %v15129_v31, %v20208_v51 }
 0x65d   :  { %18159 = vmatpush3.msra.mxu1 %v15183_v24  ;;  %v15149_v24 = vld [vmem:[%s25070_s13] sm:$0x3] }
 0x65e   :  { %18160 = vmatprep.subr.mxu1 %v15198_v57 }
 0x65f   :  { %18161 = vmatpush3.msra.mxu1 %v15182_v58 }
 0x660   :  { %18162 = vmatprep.subr.mxu1 %v15197_v32 }
 0x661   :  { %18163 = vmatpush3.msra.mxu1 %v15181_v59 }
 0x662   :  { %18164 = vmatprep.subr.mxu1 %v15196_v43 }
 0x663   :  { %18165 = vmatpush3.msra.mxu1 %v15180_v61  ;;  %v24826_v61 = vrot.slane %v15149_v24, %v20192_v45 }
 0x664   :  { %18166 = vmatprep.subr.mxu1 %v15195_v28 }
 0x665   :  { %18167 = vmatpush3.msra.mxu1 %v15179_v2 }
 0x666   :  { %18168 = vmatprep.subr.mxu1 %v15194_v34  ;;  %v24830_v34 = vrot.slane %v15149_v24, %v20208_v51 }
 0x667   :  { %18169 = vmatpush3.msra.mxu1 %v15178_v33  ;;  %v15163_v33 = vld [vmem:[%s25071_s14] sm:$0x3] }
 0x668   :  { %18170 = vmatprep.subr.mxu1 %v15193_v20 }
 0x669   :  { %v14634_v54 = vpop.f32.mrf.mxu0  ;;  %18171 = vmatpush3.msra.mxu1 %v15177_v47 }
 0x66a   :  { %v14860_v13 = vpop.f32.mrf.mxu1  ;;  %18210 = vmatprep.subr.mxu1 %v15240_v40  ;;  %v24836_v40 = vrot.slane %v15163_v33, %v20208_v51  ;;  %v15239_v51 = vld [vmem:[%s25074_s17 + $0xf0] sm:$0xff] }
 0x66b   :  { %v24704_v41 = vadd.f32 %v14860_v13, %v14634_v54  ;;  %v24706_v15 = vpop.f32.mrf.mxu0 }
 0x66c   :  { %v24708_v7 = vpop.f32.mrf.mxu1 }
 0x66d   :  { %v14638_v23 = vpop.f32.mrf.mxu0  ;;  %v14863_v46 = vadd.f32 %v24708_v7, %v24706_v15 }
 0x66e   :  { %v14864_v6 = vpop.f32.mrf.mxu1 }
 0x66f   :  { %v14639_v36 = vpop.f32.mrf.mxu0  ;;  %v15224_v6 = vld [vmem:[%s25074_s17 + $0x78] sm:$0xff] }
 0x670   :  { %v14865_v25 = vpop.f32.mrf.mxu1  ;;  %v15238_v36 = vld [vmem:[%s25074_s17 + $0xe8] sm:$0xff] }
 0x671   :  { %v15236_v25 = vld [vmem:[%s25074_s17 + $0xd8] sm:$0xff] }
 0x6a9   :  { %v15120_v39 = vpop.f32.mrf.mxu0 }
 0x6aa   :  { %v15127_v63 = vadd.f32 %v15120_v39, %v24704_v41  ;;  %v24840_v41 = vrot.slane %v15163_v33, %v20192_v45  ;;  %v15223_v45 = vld [vmem:[%s25074_s17 + $0x70] sm:$0xff] }
 0x6ab   :  { %v15122_v57 = vpop.f32.mrf.mxu0 }
 0x6ac   :  { %v15141_v58 = vadd.f32 %v24813_v10, %v15127_v63  ;;  %v15128_v32 = vadd.f32 %v15122_v57, %v14863_v46 }
 0x6ad   :  { %v15124_v59 = vpop.f32.mrf.mxu0 }
 0x6ae   :  { %vm15143_vm9 = vcmp.gt.f32.partialorder %v15141_v58, 0.0  ;;  %v15145_v43 = vmul.f32 0.2, %v15141_v58  ;;  %v15142_v28 = vadd.f32 %v24819_v44, %v15128_v32 }
 0x6af   :  { %v15125_v2 = vpop.f32.mrf.mxu0 }
 0x6b0   :  { %v15147_v20 = vsel %vm15143_vm9, %v15141_v58, %v15145_v43  ;;  %vm15144_vm10 = vcmp.gt.f32.partialorder %v15142_v28, 0.0  ;;  %v15146_v47 = vmul.f32 0.2, %v15142_v28 }
 0x6b1   :  { %v15161_v54 = vmul.f32 %v24826_v61, %v15147_v20 }
 0x6b2   :  { %v15148_v13 = vsel %vm15144_vm10, %v15142_v28, %v15146_v47 }
 0x6b3   :  { %v15162_v15 = vmul.f32 %v24830_v34, %v15148_v13  ;;  %v24845_v23 = vadd.f32 %v24840_v41, %v15161_v54 }
 0x6b5   :  { %v15176_v7 = vadd.f32 %v24836_v40, %v15162_v15 }
 0x6b7   :  { %15596 = vmatprep.mubr.f32.mxu1 %v15176_v7 }
 0x6b8   :  { %15597 = vmatmul.mubr.f32.vlgmr.msra.gmra.mxu1 %v24845_v23 }
 0x6b9   :  { %18211 = vmatpush3.msra.mxu1 %v15224_v6  ;;  %15768 = vmatprep.mubr.f32.mxu1 %v15176_v7  ;;  %v15629_v6 = vld [vmem:[%s25074_s17 + $0x1d8] sm:$0xff] }
 0x6ba   :  { %18212 = vmatprep.subr.mxu1 %v15239_v51  ;;  %v15613_v51 = vld [vmem:[%s25074_s17 + $0x158] sm:$0xff] }
 0x6bb   :  { %18213 = vmatpush3.msra.mxu1 %v15223_v45  ;;  %v15628_v45 = vld [vmem:[%s25074_s17 + $0x1d0] sm:$0xff] }
 0x6bc   :  { %18214 = vmatprep.subr.mxu1 %v15238_v36  ;;  %v15612_v36 = vld [vmem:[%s25074_s17 + $0x150] sm:$0xff] }
 0x6bd   :  { %18215 = vmatpush3.msra.mxu1 %v15222_v5  ;;  %v15627_v5 = vld [vmem:[%s25074_s17 + $0x1c8] sm:$0xff] }
 0x6be   :  { %18216 = vmatprep.subr.mxu1 %v15237_v38  ;;  %v15611_v38 = vld [vmem:[%s25074_s17 + $0x148] sm:$0xff] }
 0x6bf   :  { %18217 = vmatpush3.msra.mxu1 %v15221_v52  ;;  %v15626_v52 = vld [vmem:[%s25074_s17 + $0x1c0] sm:$0xff] }
 0x6c0   :  { %18218 = vmatprep.subr.mxu1 %v15236_v25  ;;  %v15610_v25 = vld [vmem:[%s25074_s17 + $0x140] sm:$0xff] }
 0x6c1   :  { %18219 = vmatpush3.msra.mxu1 %v15220_v62  ;;  %v15625_v62 = vld [vmem:[%s25074_s17 + $0x1b8] sm:$0xff] }
 0x6c2   :  { %18220 = vmatprep.subr.mxu1 %v15235_v19  ;;  %v15609_v19 = vld [vmem:[%s25074_s17 + $0x138] sm:$0xff] }
 0x6c3   :  { %18221 = vmatpush3.msra.mxu1 %v15219_v56  ;;  %v15624_v56 = vld [vmem:[%s25074_s17 + $0x1b0] sm:$0xff] }
 0x6c4   :  { %18222 = vmatprep.subr.mxu1 %v15234_v48  ;;  %v15608_v48 = vld [vmem:[%s25074_s17 + $0x130] sm:$0xff] }
 0x6c5   :  { %18223 = vmatpush3.msra.mxu1 %v15218_v17  ;;  %v15623_v17 = vld [vmem:[%s25074_s17 + $0x1a8] sm:$0xff] }
 0x6c6   :  { %18224 = vmatprep.subr.mxu1 %v15233_v50  ;;  %v15607_v50 = vld [vmem:[%s25074_s17 + $0x128] sm:$0xff] }
 0x6c7   :  { %18225 = vmatpush3.msra.mxu1 %v15217_v55  ;;  %v15622_v55 = vld [vmem:[%s25074_s17 + $0x1a0] sm:$0xff] }
 0x6c8   :  { %18226 = vmatprep.subr.mxu1 %v15232_v35  ;;  %v15301_v9 = vpop.f32.mrf.mxu1  ;;  %v15606_v35 = vld [vmem:[%s25074_s17 + $0x120] sm:$0xff] }
 0x6c9   :  { %18227 = vmatpush3.msra.mxu1 %v15216_v27  ;;  %v15621_v27 = vld [vmem:[%s25074_s17 + $0x198] sm:$0xff] }
 0x6ca   :  { %18228 = vmatprep.subr.mxu1 %v15231_v1  ;;  %v15303_v37 = vpop.f32.mrf.mxu1  ;;  %v15605_v1 = vld [vmem:[%s25074_s17 + $0x118] sm:$0xff] }
 0x6cb   :  { %18229 = vmatpush3.msra.mxu1 %v15215_v53  ;;  %v15604_v53 = vld [vmem:[%s25074_s17 + $0x110] sm:$0xff] }
 0x6cc   :  { %18230 = vmatprep.subr.mxu1 %v15230_v29  ;;  %v15305_v0 = vpop.f32.mrf.mxu1  ;;  %v15619_v29 = vld [vmem:[%s25074_s17 + $0x188] sm:$0xff] }
 0x6cd   :  { %18231 = vmatpush3.msra.mxu1 %v15214_v18  ;;  %v15618_v18 = vld [vmem:[%s25074_s17 + $0x180] sm:$0xff] }
 0x6ce   :  { %18232 = vmatprep.subr.mxu1 %v15229_v3  ;;  %v15306_v42 = vpop.f32.mrf.mxu1  ;;  %v15602_v3 = vld [vmem:[%s25074_s17 + $0x100] sm:$0xff] }
 0x6cf   :  { %18233 = vmatpush3.msra.mxu1 %v15213_v30 }
 0x6d0   :  { %18234 = vmatprep.subr.mxu1 %v15228_v49 }
 0x6d1   :  { %18235 = vmatpush3.msra.mxu1 %v15212_v12 }
 0x6d2   :  { %18236 = vmatprep.subr.mxu1 %v15227_v14 }
 0x6d3   :  { %18237 = vmatpush3.msra.mxu1 %v15211_v26  ;;  %v18103_v26 = vld [vmem:[#allocation5] ss:$0 sm:$0xff] }
 0x6d4   :  { %18238 = vmatprep.subr.mxu1 %v15226_v60 }
 0x6d5   :  { %18239 = vmatpush3.msra.mxu1 %v15210_v16 }
 0x6d6   :  { %18240 = vmatprep.subr.mxu1 %v15225_v21 }
 0x6d7   :  { %18241 = vmatpush3.msra.mxu1 %v15209_v8 }
 0x6d8   :  { %15769 = vmatmul.mubr.f32.vlgmr.msra.gmra.mxu1 %v24845_v23  ;;  %v15614_v23 = vld [vmem:[%s25074_s17 + $0x160] sm:$0xff] }
 0x6e9   :  { %v15342_v11 = vpop.f32.mrf.mxu0 }
 0x6ea   :  { %v15343_v39 = vadd.f32 %v15342_v11, %v15301_v9  ;;  %v15620_v9 = vld [vmem:[%s25074_s17 + $0x190] sm:$0xff] }
 0x6eb   :  { %v15344_v4 = vpop.f32.mrf.mxu0 }
 0x6ec   :  { %v15345_v63 = vadd.f32 %v15344_v4, %v15303_v37  ;;  %v15603_v37 = vld [vmem:[%s25074_s17 + $0x108] sm:$0xff] }
 0x6ed   :  { %v15346_v22 = vpop.f32.mrf.mxu0 }
 0x6ef   :  { %v15347_v31 = vpop.f32.mrf.mxu0 }
 0x70a   :  { %v15409_v46 = vpop.f32.mrf.mxu1 }
 0x70b   :  { %v15416_v24 = vadd.f32 %v15409_v46, %v15343_v39 }
 0x70c   :  { %v15411_v57 = vpop.f32.mrf.mxu1 }
 0x70d   :  { %v15418_v58 = vadd.f32 %v15416_v24, %v24813_v10  ;;  %v15417_v32 = vadd.f32 %v15411_v57, %v15345_v63  ;;  %v15617_v10 = vld [vmem:[%s25074_s17 + $0x178] sm:$0xff]  ;;  %v18104_v57 = vld [vmem:[%s25075_s18] ss:$0 sm:$0xff]  ;;  %s19427_s18 = smov [#allocation11]  }
 0x70e   :  { %v15413_v59 = vpop.f32.mrf.mxu1  ;;  %s15819_s1 = sshll.u32 %s19427_s18, 4  ;;  %s15820_s1 = int_to_ptr.vmem [resolvable:$true] %s15819_s1 }
 0x70f   :  { %vm15420_vm11 = vcmp.gt.f32.partialorder %v15418_v58, 0.0  ;;  %v15422_v43 = vmul.f32 0.2, %v15418_v58  ;;  %v15419_v28 = vadd.f32 %v15417_v32, %v24819_v44  ;;  %v15632_v44 = vld [vmem:[%s25074_s17 + $0x1f0] sm:$0xff]  ;;  %s19395_s3 = scalar_lea.vmem %s15820_s1, 32  ;;  %p19400_p11 = scmp.lt.s32.totalorder %s15820_s1, %s15820_s1 }
 0x710   :  { %v15414_v2 = vpop.f32.mrf.mxu1  ;;  %p19396_p10 = scmp.ne.s32.totalorder %s15820_s1, %s19395_s3  ;;  %p19401_p12 = scmp.lt.s32.totalorder %s19395_s3, %s19395_s3 }
 0x711   :  { %v15424_v33 = vsel %vm15420_vm11, %v15418_v58, %v15422_v43  ;;  %vm15421_vm12 = vcmp.gt.f32.partialorder %v15419_v28, 0.0  ;;  %v15423_v20 = vmul.f32 0.2, %v15419_v28 }
 0x712   :  { %v15426_v47 = vmul.f32 %v15424_v33, %v24826_v61  ;;  %v15616_v61 = vld [vmem:[%s25074_s17 + $0x170] sm:$0xff]  ;;  %p19402_p13 = por %p19401_p12, %p19400_p11 }
 0x713   :  { %v15425_v54 = vsel %vm15421_vm12, %v15419_v28, %v15423_v20 }
 0x714   :  { %v15427_v13 = vmul.f32 %v15425_v54, %v24830_v34  ;;  %v24948_v7 = vadd.f32 %v15426_v47, %v24840_v41  ;;  %v15631_v34 = vld [vmem:[%s25074_s17 + $0x1e8] sm:$0xff]  ;;  %v15630_v41 = vld [vmem:[%s25074_s17 + $0x1e0] sm:$0xff]  ;;  %p19403_p0 = pnand %p19402_p13, %p19396_p10 }
 0x716   :  { %v15429_v15 = vadd.f32 %v15427_v13, %v24836_v40  ;;  %v15615_v40 = vld [vmem:[%s25074_s17 + $0x168] sm:$0xff] }
 0x718   :  { %15526 = vmatprep.mubr.f32.mxu0 %v15429_v15 }
 0x719   :  { %15527 = vmatmul.mubr.f32.vlgmr.msra.gmra.mxu0 %v24948_v7 }
 0x71a   :  { %18176 = vmatpush3.msra.mxu0 %v15617_v10  ;;  %15698 = vmatprep.mubr.f32.mxu0 %v15429_v15 }
 0x71b   :  { %18177 = vmatprep.subr.mxu0 %v15632_v44 }
 0x71c   :  { %18178 = vmatpush3.msra.mxu0 %v15616_v61 }
 0x71d   :  { %18179 = vmatprep.subr.mxu0 %v15631_v34 }
 0x71e   :  { %18180 = vmatpush3.msra.mxu0 %v15615_v40 }
 0x71f   :  { %18181 = vmatprep.subr.mxu0 %v15630_v41 }
 0x720   :  { %18182 = vmatpush3.msra.mxu0 %v15614_v23 }
 0x721   :  { %18183 = vmatprep.subr.mxu0 %v15629_v6 }
 0x722   :  { %18184 = vmatpush3.msra.mxu0 %v15613_v51 }
 0x723   :  { %18185 = vmatprep.subr.mxu0 %v15628_v45 }
 0x724   :  { %18186 = vmatpush3.msra.mxu0 %v15612_v36 }
 0x725   :  { %18187 = vmatprep.subr.mxu0 %v15627_v5 }
 0x726   :  { %18188 = vmatpush3.msra.mxu0 %v15611_v38 }
 0x727   :  { %18189 = vmatprep.subr.mxu0 %v15626_v52 }
 0x728   :  { %18190 = vmatpush3.msra.mxu0 %v15610_v25 }
 0x729   :  { %18191 = vmatprep.subr.mxu0 %v15625_v62 }
 0x72a   :  { %18192 = vmatpush3.msra.mxu0 %v15609_v19 }
 0x72b   :  { %18193 = vmatprep.subr.mxu0 %v15624_v56 }
 0x72c   :  { %18194 = vmatpush3.msra.mxu0 %v15608_v48 }
 0x72d   :  { %18195 = vmatprep.subr.mxu0 %v15623_v17 }
 0x72e   :  { %18196 = vmatpush3.msra.mxu0 %v15607_v50 }
 0x72f   :  { %18197 = vmatprep.subr.mxu0 %v15622_v55 }
 0x730   :  { %18198 = vmatpush3.msra.mxu0 %v15606_v35 }
 0x731   :  { %18199 = vmatprep.subr.mxu0 %v15621_v27 }
 0x732   :  { %18200 = vmatpush3.msra.mxu0 %v15605_v1 }
 0x733   :  { %18201 = vmatprep.subr.mxu0 %v15620_v9 }
 0x734   :  { %18202 = vmatpush3.msra.mxu0 %v15604_v53 }
 0x735   :  { %18203 = vmatprep.subr.mxu0 %v15619_v29 }
 0x736   :  { %18204 = vmatpush3.msra.mxu0 %v15603_v37 }
 0x737   :  { %18205 = vmatprep.subr.mxu0 %v15618_v18 }
 0x738   :  { %18206 = vmatpush3.msra.mxu0 %v15602_v3 }
 0x739   :  { %15699 = vmatmul.mubr.f32.vlgmr.msra.gmra.mxu0 %v24948_v7 }
 0x778   :  { %v18172_v0 = vpop.f32.mrf.mxu1 }
 0x77a   :  { %v18173_v30 = vpop.f32.mrf.mxu1 }
 0x77b   :  { %v18174_v12 = vadd.f32 %v18173_v30, %v18172_v0 }
 0x798   :  { %v18242_v22 = vpop.f32.mrf.mxu1 }
 0x79a   :  { %v18243_v31 = vpop.f32.mrf.mxu1 }
 0x79b   :  { %v18244_v63 = vadd.f32 %v18243_v31, %v18242_v22 }
 0x7d9   :  { %v18137_v49 = vpop.f32.mrf.mxu0 }
 0x7db   :  { %v18138_v42 = vpop.f32.mrf.mxu0 }
 0x7dc   :  { %v18139_v14 = vadd.f32 %v18138_v42, %v18137_v49 }
 0x7de   :  { %v15599_v60 = vadd.f32 %v18174_v12, %v18139_v14 }
 0x7e0   :  { %v15781_v16 = vadd.f32 %v18103_v26, %v15599_v60 }
 0x7e2   :  { %v15782_v21 = vsub.f32 0.0, %v15781_v16 }
 0x7e4   :  { %v15783_v8 = vmul.f32 1.442695, %v15782_v21 }
 0x7e6   :  { %19344 = vpow2.f32 %v15783_v8 }
 0x7f3   :  { %v19345_v11 = vpop.eup %19344 }
 0x7f4   :  { %v15785_v4 = vadd.f32 1.0, %v19345_v11 }
 0x7f6   :  { %19346 = vrcp.f32 %v15785_v4 }
 0x7f9   :  { %v18207_v39 = vpop.f32.mrf.mxu0 }
 0x7fb   :  { %v18208_v46 = vpop.f32.mrf.mxu0 }
 0x7fc   :  { %v18209_v24 = vadd.f32 %v18208_v46, %v18207_v39 }
 0x7fe   :  { %v15771_v58 = vadd.f32 %v18244_v63, %v18209_v24 }
 0x800   :  { %v15797_v32 = vadd.f32 %v18104_v57, %v15771_v58 }
 0x802   :  { %v15799_v59 = vsel %vm15798_vm13, %v15797_v32, -inf }
 0x803   :  { %v19347_v43 = vpop.eup %19346  ;;  %15800 = vmax.xlane.f32.xlu0 %v15799_v59 }
 0x804   :  { %15789 = vst.msk [vmem:[%s25076_s19] sm:$0x3] %vm15788_vm14, %v19347_v43 }
 0x88c   :  { %v15801_v28 = vpop.xlane.xlu0 %15800 }
 0x88d   :  { %v15802_v2 = vsub.f32 %v15797_v32, %v15801_v28 }
 0x88f   :  { %v15803_v33 = vmul.f32 1.442695, %v15802_v2 }
 0x891   :  { %19348 = vpow2.f32 %v15803_v33 }
 0x89e   :  { %v19349_v20 = vpop.eup %19348 }
 0x89f   :  { %v15805_v47 = vsel %vm15798_vm13, %v19349_v20, 0.0 }
 0x8a0   :  { %15806 = vadd.xlane.f32.xlu0 %v15805_v47 }
 0x929   :  { %v15807_v54 = vpop.xlane.xlu0 %15806 }
 0x92a   :  { %19350 = vrcp.f32 %v15807_v54 }
 0x937   :  { %v19351_v13 = vpop.eup %19350 }
 0x938   :  { %v15809_v15 = vmul.f32 %v19351_v13, %v19349_v20 }
 0x93a   :  { %15810 = vst.msk [vmem:[#allocation11] sm:$0x3] %vm15798_vm13, %v15809_v15 }
 0x93b   :  { %19406 = shalt.err (!%p19403_p0)
}
 0x93c   :  { %15822 = dma.vmem_to_hbm [thread:$0]  %s15820_s1, 32, %s25077_s20, [#allocation8]  }
 0x93d   :  { %19419 = dma.done.wait [#allocation8], 32  }
 0x93e   :  { %19420 = vsyncadd [#allocation8], 4294967264 }
 0x93f   :  { %15828 = vsyncpa [#allocation7], 1 }
 0x940   :  { %15829 = vsyncpa [#allocation10], 1 }
 0x941   :  { %15830 = vsyncpa [#allocation8], 1 }

</bundles_post_ra>
